<compile_context>
chip_gen: v7x
topology: tpu7x:2x2x1
jax: 0.10.0
libtpu: 0.0.40
codegen_flags: <defaults>
</compile_context>

<pallas_src>
import functools

import jax
import jax.numpy as jnp
from jax import lax
from jax.experimental import pallas as pl
from jax.experimental.pallas import tpu as pltpu

NEG_SLOPE = 0.2
BN_EPS = 1e-5
_LANE = 128
_VMEM_LIMIT = 32 * 1024 * 1024   # safe on v5e / v6e / v7x; per-step blocks are tiny


def _round_up(x, m):
    return (x + m - 1) // m * m


# ---------------------------------------------------------------------------
# Kernels.
# ---------------------------------------------------------------------------
def _taps_matmul(ph_ref, w_ref, *, ww, l_acc):
    """4x4/stride-2/pad-1 conv for one image as 16 accumulated matmuls.

    ph_ref block: (1, 4, Cin, P_in)  phase-split padded input (bf16), lanes =
                  flattened (i*Ww + j) phase grid, zero-padded past Hh*Ww.
    w_ref  block: (16, Cout, Cin)    per-tap weights, tap index t = kh*4 + kw.
    Returns acc (Cout, l_acc) f32; column m maps to output (ho, wo) =
    (m // Ww, m % Ww); columns with ho >= Hout or wo >= Wout are garbage.
    """
    acc = None
    for p in range(4):                       # phase p = (kh % 2) * 2 + (kw % 2)
        phase = ph_ref[0, p]                 # (Cin, P_in), loaded once per phase
        r, s = p // 2, p % 2
        for a in range(2):
            for b in range(2):
                kh, kw = 2 * a + r, 2 * b + s
                off = a * ww + b             # static, unit-stride lane window
                win = phase[:, off:off + l_acc]
                t = jnp.dot(w_ref[kh * 4 + kw], win,
                            preferred_element_type=jnp.float32)
                acc = t if acc is None else acc + t
    return acc


def _conv_bias_lrelu_kernel(ph_ref, w_ref, b_ref, o_ref, *, ww, l_acc):
    # Layer 1: conv + bias + LeakyReLU (no BN), fully fused per image block.
    y = _taps_matmul(ph_ref, w_ref, ww=ww, l_acc=l_acc) + b_ref[...]
    o_ref[0] = jnp.where(y > 0.0, y, NEG_SLOPE * y).astype(o_ref.dtype)


def _conv_stats_kernel(ph_ref, w_ref, mask_ref, o_ref, stats_ref, *, ww, l_acc):
    # Layers 2-4 pass 1: raw conv + masked per-channel (sum, sum_sq) partials.
    acc = _taps_matmul(ph_ref, w_ref, ww=ww, l_acc=l_acc)
    o_ref[0] = acc.astype(o_ref.dtype)
    am = acc * mask_ref[...]                               # zero garbage columns
    stats_ref[0, :, 0:1] = jnp.sum(am, axis=1, keepdims=True)
    stats_ref[0, :, 1:2] = jnp.sum(acc * am, axis=1, keepdims=True)


def _bn_lrelu_kernel(x_ref, ss_ref, o_ref):
    # Layers 2-3 pass 2: per-channel affine (folded BN) + LeakyReLU.
    y = x_ref[0] * ss_ref[:, 0:1] + ss_ref[:, 1:2]
    o_ref[0] = jnp.where(y > 0.0, y, NEG_SLOPE * y).astype(o_ref.dtype)


def _bn_lrelu_head_kernel(x_ref, ss_ref, w5_ref, b5_ref, o_ref):
    # Layer 4 pass 2 fused with the final 4x4 conv (Cout=1) + Sigmoid.
    y = x_ref[0] * ss_ref[:, 0:1] + ss_ref[:, 1:2]
    a = jnp.where(y > 0.0, y, NEG_SLOPE * y)               # (C4, 128)
    z = jnp.sum(a * w5_ref[...], axis=1, keepdims=True)    # lane reduce  (C4, 1)
    z = jnp.sum(z, axis=0, keepdims=True)                  # sublane reduce (1, 1)
    o_ref[0] = jax.nn.sigmoid(z + b5_ref[...])


# ---------------------------------------------------------------------------
# pallas_call wrappers (grid over images, all axes "parallel").
# ---------------------------------------------------------------------------
def _cparams():
    return pltpu.CompilerParams(dimension_semantics=("parallel",),
                                vmem_limit_bytes=_VMEM_LIMIT)


def _conv_cost(n, cfg, out_bytes_per_elem):
    flops = 2 * n * 16 * cfg["cout"] * cfg["cin"] * cfg["l_acc"]
    bytes_acc = (n * 4 * cfg["cin"] * cfg["p_in"] * 2
                 + 16 * cfg["cout"] * cfg["cin"] * 2
                 + n * cfg["cout"] * cfg["l_acc"] * out_bytes_per_elem)
    return pl.CostEstimate(flops=int(flops), transcendentals=0,
                           bytes_accessed=int(bytes_acc))


def _run_conv_bias_lrelu(ph, w16, bias, cfg):
    n = ph.shape[0]
    cin, cout, l_acc, p_in = cfg["cin"], cfg["cout"], cfg["l_acc"], cfg["p_in"]
    kernel = functools.partial(_conv_bias_lrelu_kernel, ww=cfg["ww"], l_acc=l_acc)
    return pl.pallas_call(
        kernel,
        out_shape=jax.ShapeDtypeStruct((n, cout, l_acc), jnp.bfloat16),
        grid=(n,),
        in_specs=[
            pl.BlockSpec((1, 4, cin, p_in), lambda g: (g, 0, 0, 0)),
            pl.BlockSpec((16, cout, cin), lambda g: (0, 0, 0)),   # resident
            pl.BlockSpec((cout, 1), lambda g: (0, 0)),            # resident
        ],
        out_specs=pl.BlockSpec((1, cout, l_acc), lambda g: (g, 0, 0)),
        compiler_params=_cparams(),
        cost_estimate=_conv_cost(n, cfg, 2),
    )(ph, w16, bias)


def _run_conv_stats(ph, w16, mask, cfg):
    n = ph.shape[0]
    cin, cout, l_acc, p_in = cfg["cin"], cfg["cout"], cfg["l_acc"], cfg["p_in"]
    kernel = functools.partial(_conv_stats_kernel, ww=cfg["ww"], l_acc=l_acc)
    return pl.pallas_call(
        kernel,
        out_shape=(jax.ShapeDtypeStruct((n, cout, l_acc), jnp.float32),
                   jax.ShapeDtypeStruct((n, cout, 2), jnp.float32)),
        grid=(n,),
        in_specs=[
            pl.BlockSpec((1, 4, cin, p_in), lambda g: (g, 0, 0, 0)),
            pl.BlockSpec((16, cout, cin), lambda g: (0, 0, 0)),   # resident
            pl.BlockSpec((1, l_acc), lambda g: (0, 0)),           # resident mask
        ],
        out_specs=(pl.BlockSpec((1, cout, l_acc), lambda g: (g, 0, 0)),
                   pl.BlockSpec((1, cout, 2), lambda g: (g, 0, 0))),
        compiler_params=_cparams(),
        cost_estimate=_conv_cost(n, cfg, 4),
    )(ph, w16, mask)


def _run_bn_lrelu(x, scale_shift):
    n, cout, p = x.shape
    return pl.pallas_call(
        _bn_lrelu_kernel,
        out_shape=jax.ShapeDtypeStruct((n, cout, p), jnp.bfloat16),
        grid=(n,),
        in_specs=[pl.BlockSpec((1, cout, p), lambda g: (g, 0, 0)),
                  pl.BlockSpec((cout, 2), lambda g: (0, 0))],
        out_specs=pl.BlockSpec((1, cout, p), lambda g: (g, 0, 0)),
        compiler_params=_cparams(),
    )(x, scale_shift)


def _run_bn_lrelu_head(x, scale_shift, w5col, b5):
    n, c4, p = x.shape
    return pl.pallas_call(
        _bn_lrelu_head_kernel,
        out_shape=jax.ShapeDtypeStruct((n, 1, 1), jnp.float32),
        grid=(n,),
        in_specs=[pl.BlockSpec((1, c4, p), lambda g: (g, 0, 0)),
                  pl.BlockSpec((c4, 2), lambda g: (0, 0)),
                  pl.BlockSpec((c4, p), lambda g: (0, 0)),
                  pl.BlockSpec((1, 1), lambda g: (0, 0))],
        out_specs=pl.BlockSpec((1, 1, 1), lambda g: (g, 0, 0)),
        compiler_params=_cparams(),
    )(x, scale_shift, w5col, b5)


# ---------------------------------------------------------------------------
# Layer-shape config and XLA-side glue (pad / phase-split / BN finalize).
# ---------------------------------------------------------------------------
def _conv_cfg(cin, cout, h, w):
    hout, wout = h // 2, w // 2
    hh, ww = hout + 1, wout + 1                 # phase-grid spatial dims
    hw = hh * ww
    l_acc = _round_up(hw, _LANE)                # lane-dense, 128-aligned output
    return dict(cin=cin, cout=cout, hout=hout, wout=wout,
                hh=hh, ww=ww, hw=hw, l_acc=l_acc, p_in=l_acc + _LANE)


def _phase_split(y_nchw, cfg):
    """(N, C, H, W) -> (N, 4, C, P_in) bf16, phases p=(kh%2)*2+(kw%2)."""
    n, c, _, _ = y_nchw.shape
    yp = jnp.pad(y_nchw, ((0, 0), (0, 0), (1, 1), (1, 1)))
    yr = yp.reshape(n, c, cfg["hh"], 2, cfg["ww"], 2)
    ph = jnp.transpose(yr, (0, 3, 5, 1, 2, 4)).reshape(n, 4, c, cfg["hw"])
    ph = jnp.pad(ph, ((0, 0), (0, 0), (0, 0), (0, cfg["p_in"] - cfg["hw"])))
    return ph.astype(jnp.bfloat16)


def _w16(w_oihw):
    cout, cin, kh, kw = w_oihw.shape
    return (jnp.transpose(w_oihw, (2, 3, 0, 1))
            .reshape(kh * kw, cout, cin).astype(jnp.bfloat16))


def _valid_mask(cfg):
    m = jnp.arange(cfg["l_acc"])
    valid = ((m < cfg["hw"])
             & (m % cfg["ww"] < cfg["wout"])
             & (m // cfg["ww"] < cfg["hout"]))
    return valid.astype(jnp.float32).reshape(1, cfg["l_acc"])


def _extract_valid(y_flat, cfg):
    """(N, C, L_acc) -> (N, C, Hout, Wout) by dropping garbage columns."""
    n, c, _ = y_flat.shape
    y = y_flat[:, :, :cfg["hw"]].reshape(n, c, cfg["hh"], cfg["ww"])
    return y[:, :, :cfg["hout"], :cfg["wout"]]


def _finalize_bn(stats, gamma, beta, count):
    s = jnp.sum(stats, axis=0)                            # (Cout, 2)
    mean = s[:, 0] / count
    var = s[:, 1] / count - mean * mean                   # biased (training mode)
    scale = gamma * lax.rsqrt(var + BN_EPS)
    shift = beta - mean * scale
    return jnp.stack([scale, shift], axis=1).astype(jnp.float32)


# ---------------------------------------------------------------------------
# Discriminator forward (Pallas-backed).
# ---------------------------------------------------------------------------
def discriminator_forward(x_nchw, params):
    n, c_in, h, w = x_nchw.shape

    # layer 1: conv + bias + LeakyReLU
    cfg = _conv_cfg(c_in, params["w1"].shape[0], h, w)
    ph = _phase_split(x_nchw, cfg)
    y = _run_conv_bias_lrelu(ph, _w16(params["w1"]),
                             params["b1"].reshape(-1, 1).astype(jnp.float32), cfg)
    act = _extract_valid(y, cfg)

    # layers 2-3: conv (no bias) + two-phase BatchNorm + LeakyReLU
    for i in (2, 3):
        cfg = _conv_cfg(cfg["cout"], params[f"w{i}"].shape[0],
                        cfg["hout"], cfg["wout"])
        ph = _phase_split(act, cfg)
        raw, stats = _run_conv_stats(ph, _w16(params[f"w{i}"]), _valid_mask(cfg), cfg)
        ss = _finalize_bn(stats, params[f"g{i}"], params[f"beta{i}"],
                          n * cfg["hout"] * cfg["wout"])
        y = _run_bn_lrelu(raw, ss)
        act = _extract_valid(y, cfg)

    # layer 4 (conv + BN + LeakyReLU) with the final 4x4 conv + Sigmoid fused
    # into its normalization pass.
    cfg4 = _conv_cfg(cfg["cout"], params["w4"].shape[0], cfg["hout"], cfg["wout"])
    assert (cfg4["hout"], cfg4["wout"]) == (4, 4), "architecture expects 64x64 input"
    ph = _phase_split(act, cfg4)
    raw, stats = _run_conv_stats(ph, _w16(params["w4"]), _valid_mask(cfg4), cfg4)
    ss = _finalize_bn(stats, params["g4"], params["beta4"],
                      n * cfg4["hout"] * cfg4["wout"])
    c4 = cfg4["cout"]
    w5col = jnp.zeros((c4, cfg4["hh"], cfg4["ww"]), jnp.float32)
    w5col = w5col.at[:, :cfg4["hout"], :cfg4["wout"]].set(params["w5"][0])
    w5col = jnp.pad(w5col.reshape(c4, cfg4["hw"]),
                    ((0, 0), (0, cfg4["l_acc"] - cfg4["hw"])))
    z = _run_bn_lrelu_head(raw, ss, w5col,
                           params["b5"].reshape(1, 1).astype(jnp.float32))
    return z.reshape(n, 1, 1, 1)


# ---------------------------------------------------------------------------
# Pure-JAX f32 reference (lax.conv) for correctness checking.
# ---------------------------------------------------------------------------
def _ref_conv(x, w, stride, pad):
    return lax.conv_general_dilated(
        x, w, (stride, stride), [(pad, pad), (pad, pad)],
        dimension_numbers=("NCHW", "OIHW", "NCHW"))


def discriminator_reference(x, params):
    y = _ref_conv(x, params["w1"], 2, 1) + params["b1"][None, :, None, None]
    y = jnp.where(y > 0, y, NEG_SLOPE * y)
    for i in (2, 3, 4):
        y = _ref_conv(y, params[f"w{i}"], 2, 1)
        mean = jnp.mean(y, axis=(0, 2, 3), keepdims=True)
        var = jnp.mean(jnp.square(y - mean), axis=(0, 2, 3), keepdims=True)
        y = (y - mean) * lax.rsqrt(var + BN_EPS)
        y = y * params[f"g{i}"][None, :, None, None] + params[f"beta{i}"][None, :, None, None]
        y = jnp.where(y > 0, y, NEG_SLOPE * y)
    y = _ref_conv(y, params["w5"], 2, 0) + params["b5"][None, :, None, None]
    return jax.nn.sigmoid(y)


# ---------------------------------------------------------------------------
# Deterministic parameter init (synthetic, matches nn.Module shapes).
# ---------------------------------------------------------------------------
def init_params(key, img_channels, features):
    ks = jax.random.split(key, 16)
    f = features
    p = {}
    p["w1"] = 0.05 * jax.random.normal(ks[0], (f, img_channels, 4, 4), jnp.float32)
    p["b1"] = 0.05 * jax.random.normal(ks[1], (f,), jnp.float32)
    chans = {2: (2 * f, f), 3: (4 * f, 2 * f), 4: (8 * f, 4 * f)}
    for i, (co, ci) in chans.items():
        p[f"w{i}"] = 0.05 * jax.random.normal(ks[3 * i - 4], (co, ci, 4, 4), jnp.float32)
        p[f"g{i}"] = 1.0 + 0.1 * jax.random.normal(ks[3 * i - 3], (co,), jnp.float32)
        p[f"beta{i}"] = 0.1 * jax.random.normal(ks[3 * i - 2], (co,), jnp.float32)
    p["w5"] = 0.05 * jax.random.normal(ks[14], (1, 8 * f, 4, 4), jnp.float32)
    p["b5"] = 0.05 * jax.random.normal(ks[15], (1,), jnp.float32)
    return p


if __name__ == "__main__":
    # Architecture requires 64x64 input so the final 4x4/stride-2/pad-0 conv
    # produces a 1x1 map. Keep batch/channels/features small.
    batch, img_channels, features, spatial = 2, 3, 8, 64

    key = jax.random.PRNGKey(0)
    k_x, k_p = jax.random.split(key)
    x = jax.random.normal(k_x, (batch, img_channels, spatial, spatial), jnp.float32)
    params = init_params(k_p, img_channels, features)

    fwd = jax.jit(discriminator_forward)
    out = jax.block_until_ready(fwd(x, params))
    ref = jax.block_until_ready(discriminator_reference(x, params))

    assert out.shape == (batch, 1, 1, 1), out.shape
    # bf16 MXU inputs (f32 accumulation) compared against a pure-f32 reference.
    assert jnp.allclose(out, ref, rtol=2e-2, atol=2e-2), (out, ref)
    print("KERNEL_OK")
</pallas_src>

<mosaic_0001>
module attributes {stable_mosaic.version = 11 : i64} {
  func.func @_conv_bias_lrelu_kernel(%arg0: i32, %arg1: memref<1x4x3x1280xbf16, #tpu.memory_space<vmem>>, %arg2: memref<16x8x3xbf16, #tpu.memory_space<vmem>>, %arg3: memref<8x1xf32, #tpu.memory_space<vmem>>, %arg4: memref<1x8x1152xbf16, #tpu.memory_space<vmem>>) attributes {dimension_semantics = [#tpu.dimension_semantics<parallel>], iteration_bounds = array<i64: 2>, scalar_prefetch = 0 : i64, scratch_operands = 0 : i64, tpu.core_type = #tpu.core_type<tc>, window_params = [{transform_indices = @transform_0, window_bounds = array<i64: 1, 4, 3, 1280>}, {pipeline_mode = #tpu.pipeline_mode<synchronous>, transform_indices = @transform_1, window_bounds = array<i64: 16, 8, 3>}, {pipeline_mode = #tpu.pipeline_mode<synchronous>, transform_indices = @transform_2, window_bounds = array<i64: 8, 1>}, {transform_indices = @transform_3, window_bounds = array<i64: 1, 8, 1152>}]} {
    %c0 = arith.constant 0 : index
    %c0_0 = arith.constant 0 : index
    %c0_1 = arith.constant 0 : index
    %c0_2 = arith.constant 0 : index
    %0 = vector.load %arg1[%c0, %c0_0, %c0_1, %c0_2] : memref<1x4x3x1280xbf16, #tpu.memory_space<vmem>>, vector<1x1x3x1280xbf16>
    %1 = vector.shape_cast %0 : vector<1x1x3x1280xbf16> to vector<3x1280xbf16>
    %2 = vector.extract_strided_slice %1 {offsets = [0, 0], sizes = [3, 1152], strides = [1, 1]} : vector<3x1280xbf16> to vector<3x1152xbf16>
    %c0_3 = arith.constant 0 : index
    %c0_4 = arith.constant 0 : index
    %c0_5 = arith.constant 0 : index
    %3 = vector.load %arg2[%c0_3, %c0_4, %c0_5] : memref<16x8x3xbf16, #tpu.memory_space<vmem>>, vector<1x8x3xbf16>
    %4 = vector.shape_cast %3 : vector<1x8x3xbf16> to vector<8x3xbf16>
    %cst = arith.constant dense<0.000000e+00> : vector<8x1152xf32>
    %5 = tpu.matmul %4, %2, %cst {dimension_numbers = #tpu.dot_dimension_numbers<[1], [0], [0], [1], [0, 0, 1, 1], [], []>} : vector<8x3xbf16>, vector<3x1152xbf16>, vector<8x1152xf32> -> vector<8x1152xf32>
    %6 = vector.extract_strided_slice %1 {offsets = [0, 1], sizes = [3, 1152], strides = [1, 1]} : vector<3x1280xbf16> to vector<3x1152xbf16>
    %c2 = arith.constant 2 : index
    %c0_6 = arith.constant 0 : index
    %c0_7 = arith.constant 0 : index
    %7 = vector.load %arg2[%c2, %c0_6, %c0_7] : memref<16x8x3xbf16, #tpu.memory_space<vmem>>, vector<1x8x3xbf16>
    %8 = vector.shape_cast %7 : vector<1x8x3xbf16> to vector<8x3xbf16>
    %cst_8 = arith.constant dense<0.000000e+00> : vector<8x1152xf32>
    %9 = tpu.matmul %8, %6, %cst_8 {dimension_numbers = #tpu.dot_dimension_numbers<[1], [0], [0], [1], [0, 0, 1, 1], [], []>} : vector<8x3xbf16>, vector<3x1152xbf16>, vector<8x1152xf32> -> vector<8x1152xf32>
    %10 = arith.addf %5, %9 : vector<8x1152xf32>
    %11 = vector.extract_strided_slice %1 {offsets = [0, 33], sizes = [3, 1152], strides = [1, 1]} : vector<3x1280xbf16> to vector<3x1152xbf16>
    %c8 = arith.constant 8 : index
    %c0_9 = arith.constant 0 : index
    %c0_10 = arith.constant 0 : index
    %12 = vector.load %arg2[%c8, %c0_9, %c0_10] : memref<16x8x3xbf16, #tpu.memory_space<vmem>>, vector<1x8x3xbf16>
    %13 = vector.shape_cast %12 : vector<1x8x3xbf16> to vector<8x3xbf16>
    %cst_11 = arith.constant dense<0.000000e+00> : vector<8x1152xf32>
    %14 = tpu.matmul %13, %11, %cst_11 {dimension_numbers = #tpu.dot_dimension_numbers<[1], [0], [0], [1], [0, 0, 1, 1], [], []>} : vector<8x3xbf16>, vector<3x1152xbf16>, vector<8x1152xf32> -> vector<8x1152xf32>
    %15 = arith.addf %10, %14 : vector<8x1152xf32>
    %16 = vector.extract_strided_slice %1 {offsets = [0, 34], sizes = [3, 1152], strides = [1, 1]} : vector<3x1280xbf16> to vector<3x1152xbf16>
    %c10 = arith.constant 10 : index
    %c0_12 = arith.constant 0 : index
    %c0_13 = arith.constant 0 : index
    %17 = vector.load %arg2[%c10, %c0_12, %c0_13] : memref<16x8x3xbf16, #tpu.memory_space<vmem>>, vector<1x8x3xbf16>
    %18 = vector.shape_cast %17 : vector<1x8x3xbf16> to vector<8x3xbf16>
    %cst_14 = arith.constant dense<0.000000e+00> : vector<8x1152xf32>
    %19 = tpu.matmul %18, %16, %cst_14 {dimension_numbers = #tpu.dot_dimension_numbers<[1], [0], [0], [1], [0, 0, 1, 1], [], []>} : vector<8x3xbf16>, vector<3x1152xbf16>, vector<8x1152xf32> -> vector<8x1152xf32>
    %20 = arith.addf %15, %19 : vector<8x1152xf32>
    %c0_15 = arith.constant 0 : index
    %c1 = arith.constant 1 : index
    %c0_16 = arith.constant 0 : index
    %c0_17 = arith.constant 0 : index
    %21 = vector.load %arg1[%c0_15, %c1, %c0_16, %c0_17] : memref<1x4x3x1280xbf16, #tpu.memory_space<vmem>>, vector<1x1x3x1280xbf16>
    %22 = vector.shape_cast %21 : vector<1x1x3x1280xbf16> to vector<3x1280xbf16>
    %23 = vector.extract_strided_slice %22 {offsets = [0, 0], sizes = [3, 1152], strides = [1, 1]} : vector<3x1280xbf16> to vector<3x1152xbf16>
    %c1_18 = arith.constant 1 : index
    %c0_19 = arith.constant 0 : index
    %c0_20 = arith.constant 0 : index
    %24 = vector.load %arg2[%c1_18, %c0_19, %c0_20] : memref<16x8x3xbf16, #tpu.memory_space<vmem>>, vector<1x8x3xbf16>
    %25 = vector.shape_cast %24 : vector<1x8x3xbf16> to vector<8x3xbf16>
    %cst_21 = arith.constant dense<0.000000e+00> : vector<8x1152xf32>
    %26 = tpu.matmul %25, %23, %cst_21 {dimension_numbers = #tpu.dot_dimension_numbers<[1], [0], [0], [1], [0, 0, 1, 1], [], []>} : vector<8x3xbf16>, vector<3x1152xbf16>, vector<8x1152xf32> -> vector<8x1152xf32>
    %27 = arith.addf %20, %26 : vector<8x1152xf32>
    %28 = vector.extract_strided_slice %22 {offsets = [0, 1], sizes = [3, 1152], strides = [1, 1]} : vector<3x1280xbf16> to vector<3x1152xbf16>
    %c3 = arith.constant 3 : index
    %c0_22 = arith.constant 0 : index
    %c0_23 = arith.constant 0 : index
    %29 = vector.load %arg2[%c3, %c0_22, %c0_23] : memref<16x8x3xbf16, #tpu.memory_space<vmem>>, vector<1x8x3xbf16>
    %30 = vector.shape_cast %29 : vector<1x8x3xbf16> to vector<8x3xbf16>
    %cst_24 = arith.constant dense<0.000000e+00> : vector<8x1152xf32>
    %31 = tpu.matmul %30, %28, %cst_24 {dimension_numbers = #tpu.dot_dimension_numbers<[1], [0], [0], [1], [0, 0, 1, 1], [], []>} : vector<8x3xbf16>, vector<3x1152xbf16>, vector<8x1152xf32> -> vector<8x1152xf32>
    %32 = arith.addf %27, %31 : vector<8x1152xf32>
    %33 = vector.extract_strided_slice %22 {offsets = [0, 33], sizes = [3, 1152], strides = [1, 1]} : vector<3x1280xbf16> to vector<3x1152xbf16>
    %c9 = arith.constant 9 : index
    %c0_25 = arith.constant 0 : index
    %c0_26 = arith.constant 0 : index
    %34 = vector.load %arg2[%c9, %c0_25, %c0_26] : memref<16x8x3xbf16, #tpu.memory_space<vmem>>, vector<1x8x3xbf16>
    %35 = vector.shape_cast %34 : vector<1x8x3xbf16> to vector<8x3xbf16>
    %cst_27 = arith.constant dense<0.000000e+00> : vector<8x1152xf32>
    %36 = tpu.matmul %35, %33, %cst_27 {dimension_numbers = #tpu.dot_dimension_numbers<[1], [0], [0], [1], [0, 0, 1, 1], [], []>} : vector<8x3xbf16>, vector<3x1152xbf16>, vector<8x1152xf32> -> vector<8x1152xf32>
    %37 = arith.addf %32, %36 : vector<8x1152xf32>
    %38 = vector.extract_strided_slice %22 {offsets = [0, 34], sizes = [3, 1152], strides = [1, 1]} : vector<3x1280xbf16> to vector<3x1152xbf16>
    %c11 = arith.constant 11 : index
    %c0_28 = arith.constant 0 : index
    %c0_29 = arith.constant 0 : index
    %39 = vector.load %arg2[%c11, %c0_28, %c0_29] : memref<16x8x3xbf16, #tpu.memory_space<vmem>>, vector<1x8x3xbf16>
    %40 = vector.shape_cast %39 : vector<1x8x3xbf16> to vector<8x3xbf16>
    %cst_30 = arith.constant dense<0.000000e+00> : vector<8x1152xf32>
    %41 = tpu.matmul %40, %38, %cst_30 {dimension_numbers = #tpu.dot_dimension_numbers<[1], [0], [0], [1], [0, 0, 1, 1], [], []>} : vector<8x3xbf16>, vector<3x1152xbf16>, vector<8x1152xf32> -> vector<8x1152xf32>
    %42 = arith.addf %37, %41 : vector<8x1152xf32>
    %c0_31 = arith.constant 0 : index
    %c2_32 = arith.constant 2 : index
    %c0_33 = arith.constant 0 : index
    %c0_34 = arith.constant 0 : index
    %43 = vector.load %arg1[%c0_31, %c2_32, %c0_33, %c0_34] : memref<1x4x3x1280xbf16, #tpu.memory_space<vmem>>, vector<1x1x3x1280xbf16>
    %44 = vector.shape_cast %43 : vector<1x1x3x1280xbf16> to vector<3x1280xbf16>
    %45 = vector.extract_strided_slice %44 {offsets = [0, 0], sizes = [3, 1152], strides = [1, 1]} : vector<3x1280xbf16> to vector<3x1152xbf16>
    %c4 = arith.constant 4 : index
    %c0_35 = arith.constant 0 : index
    %c0_36 = arith.constant 0 : index
    %46 = vector.load %arg2[%c4, %c0_35, %c0_36] : memref<16x8x3xbf16, #tpu.memory_space<vmem>>, vector<1x8x3xbf16>
    %47 = vector.shape_cast %46 : vector<1x8x3xbf16> to vector<8x3xbf16>
    %cst_37 = arith.constant dense<0.000000e+00> : vector<8x1152xf32>
    %48 = tpu.matmul %47, %45, %cst_37 {dimension_numbers = #tpu.dot_dimension_numbers<[1], [0], [0], [1], [0, 0, 1, 1], [], []>} : vector<8x3xbf16>, vector<3x1152xbf16>, vector<8x1152xf32> -> vector<8x1152xf32>
    %49 = arith.addf %42, %48 : vector<8x1152xf32>
    %50 = vector.extract_strided_slice %44 {offsets = [0, 1], sizes = [3, 1152], strides = [1, 1]} : vector<3x1280xbf16> to vector<3x1152xbf16>
    %c6 = arith.constant 6 : index
    %c0_38 = arith.constant 0 : index
    %c0_39 = arith.constant 0 : index
    %51 = vector.load %arg2[%c6, %c0_38, %c0_39] : memref<16x8x3xbf16, #tpu.memory_space<vmem>>, vector<1x8x3xbf16>
    %52 = vector.shape_cast %51 : vector<1x8x3xbf16> to vector<8x3xbf16>
    %cst_40 = arith.constant dense<0.000000e+00> : vector<8x1152xf32>
    %53 = tpu.matmul %52, %50, %cst_40 {dimension_numbers = #tpu.dot_dimension_numbers<[1], [0], [0], [1], [0, 0, 1, 1], [], []>} : vector<8x3xbf16>, vector<3x1152xbf16>, vector<8x1152xf32> -> vector<8x1152xf32>
    %54 = arith.addf %49, %53 : vector<8x1152xf32>
    %55 = vector.extract_strided_slice %44 {offsets = [0, 33], sizes = [3, 1152], strides = [1, 1]} : vector<3x1280xbf16> to vector<3x1152xbf16>
    %c12 = arith.constant 12 : index
    %c0_41 = arith.constant 0 : index
    %c0_42 = arith.constant 0 : index
    %56 = vector.load %arg2[%c12, %c0_41, %c0_42] : memref<16x8x3xbf16, #tpu.memory_space<vmem>>, vector<1x8x3xbf16>
    %57 = vector.shape_cast %56 : vector<1x8x3xbf16> to vector<8x3xbf16>
    %cst_43 = arith.constant dense<0.000000e+00> : vector<8x1152xf32>
    %58 = tpu.matmul %57, %55, %cst_43 {dimension_numbers = #tpu.dot_dimension_numbers<[1], [0], [0], [1], [0, 0, 1, 1], [], []>} : vector<8x3xbf16>, vector<3x1152xbf16>, vector<8x1152xf32> -> vector<8x1152xf32>
    %59 = arith.addf %54, %58 : vector<8x1152xf32>
    %60 = vector.extract_strided_slice %44 {offsets = [0, 34], sizes = [3, 1152], strides = [1, 1]} : vector<3x1280xbf16> to vector<3x1152xbf16>
    %c14 = arith.constant 14 : index
    %c0_44 = arith.constant 0 : index
    %c0_45 = arith.constant 0 : index
    %61 = vector.load %arg2[%c14, %c0_44, %c0_45] : memref<16x8x3xbf16, #tpu.memory_space<vmem>>, vector<1x8x3xbf16>
    %62 = vector.shape_cast %61 : vector<1x8x3xbf16> to vector<8x3xbf16>
    %cst_46 = arith.constant dense<0.000000e+00> : vector<8x1152xf32>
    %63 = tpu.matmul %62, %60, %cst_46 {dimension_numbers = #tpu.dot_dimension_numbers<[1], [0], [0], [1], [0, 0, 1, 1], [], []>} : vector<8x3xbf16>, vector<3x1152xbf16>, vector<8x1152xf32> -> vector<8x1152xf32>
    %64 = arith.addf %59, %63 : vector<8x1152xf32>
    %c0_47 = arith.constant 0 : index
    %c3_48 = arith.constant 3 : index
    %c0_49 = arith.constant 0 : index
    %c0_50 = arith.constant 0 : index
    %65 = vector.load %arg1[%c0_47, %c3_48, %c0_49, %c0_50] : memref<1x4x3x1280xbf16, #tpu.memory_space<vmem>>, vector<1x1x3x1280xbf16>
    %66 = vector.shape_cast %65 : vector<1x1x3x1280xbf16> to vector<3x1280xbf16>
    %67 = vector.extract_strided_slice %66 {offsets = [0, 0], sizes = [3, 1152], strides = [1, 1]} : vector<3x1280xbf16> to vector<3x1152xbf16>
    %c5 = arith.constant 5 : index
    %c0_51 = arith.constant 0 : index
    %c0_52 = arith.constant 0 : index
    %68 = vector.load %arg2[%c5, %c0_51, %c0_52] : memref<16x8x3xbf16, #tpu.memory_space<vmem>>, vector<1x8x3xbf16>
    %69 = vector.shape_cast %68 : vector<1x8x3xbf16> to vector<8x3xbf16>
    %cst_53 = arith.constant dense<0.000000e+00> : vector<8x1152xf32>
    %70 = tpu.matmul %69, %67, %cst_53 {dimension_numbers = #tpu.dot_dimension_numbers<[1], [0], [0], [1], [0, 0, 1, 1], [], []>} : vector<8x3xbf16>, vector<3x1152xbf16>, vector<8x1152xf32> -> vector<8x1152xf32>
    %71 = arith.addf %64, %70 : vector<8x1152xf32>
    %72 = vector.extract_strided_slice %66 {offsets = [0, 1], sizes = [3, 1152], strides = [1, 1]} : vector<3x1280xbf16> to vector<3x1152xbf16>
    %c7 = arith.constant 7 : index
    %c0_54 = arith.constant 0 : index
    %c0_55 = arith.constant 0 : index
    %73 = vector.load %arg2[%c7, %c0_54, %c0_55] : memref<16x8x3xbf16, #tpu.memory_space<vmem>>, vector<1x8x3xbf16>
    %74 = vector.shape_cast %73 : vector<1x8x3xbf16> to vector<8x3xbf16>
    %cst_56 = arith.constant dense<0.000000e+00> : vector<8x1152xf32>
    %75 = tpu.matmul %74, %72, %cst_56 {dimension_numbers = #tpu.dot_dimension_numbers<[1], [0], [0], [1], [0, 0, 1, 1], [], []>} : vector<8x3xbf16>, vector<3x1152xbf16>, vector<8x1152xf32> -> vector<8x1152xf32>
    %76 = arith.addf %71, %75 : vector<8x1152xf32>
    %77 = vector.extract_strided_slice %66 {offsets = [0, 33], sizes = [3, 1152], strides = [1, 1]} : vector<3x1280xbf16> to vector<3x1152xbf16>
    %c13 = arith.constant 13 : index
    %c0_57 = arith.constant 0 : index
    %c0_58 = arith.constant 0 : index
    %78 = vector.load %arg2[%c13, %c0_57, %c0_58] : memref<16x8x3xbf16, #tpu.memory_space<vmem>>, vector<1x8x3xbf16>
    %79 = vector.shape_cast %78 : vector<1x8x3xbf16> to vector<8x3xbf16>
    %cst_59 = arith.constant dense<0.000000e+00> : vector<8x1152xf32>
    %80 = tpu.matmul %79, %77, %cst_59 {dimension_numbers = #tpu.dot_dimension_numbers<[1], [0], [0], [1], [0, 0, 1, 1], [], []>} : vector<8x3xbf16>, vector<3x1152xbf16>, vector<8x1152xf32> -> vector<8x1152xf32>
    %81 = arith.addf %76, %80 : vector<8x1152xf32>
    %82 = vector.extract_strided_slice %66 {offsets = [0, 34], sizes = [3, 1152], strides = [1, 1]} : vector<3x1280xbf16> to vector<3x1152xbf16>
    %c15 = arith.constant 15 : index
    %c0_60 = arith.constant 0 : index
    %c0_61 = arith.constant 0 : index
    %83 = vector.load %arg2[%c15, %c0_60, %c0_61] : memref<16x8x3xbf16, #tpu.memory_space<vmem>>, vector<1x8x3xbf16>
    %84 = vector.shape_cast %83 : vector<1x8x3xbf16> to vector<8x3xbf16>
    %cst_62 = arith.constant dense<0.000000e+00> : vector<8x1152xf32>
    %85 = tpu.matmul %84, %82, %cst_62 {dimension_numbers = #tpu.dot_dimension_numbers<[1], [0], [0], [1], [0, 0, 1, 1], [], []>} : vector<8x3xbf16>, vector<3x1152xbf16>, vector<8x1152xf32> -> vector<8x1152xf32>
    %86 = arith.addf %81, %85 : vector<8x1152xf32>
    %c0_63 = arith.constant 0 : index
    %c0_64 = arith.constant 0 : index
    %87 = vector.load %arg3[%c0_63, %c0_64] : memref<8x1xf32, #tpu.memory_space<vmem>>, vector<8x1xf32>
    %88 = vector.broadcast %87 : vector<8x1xf32> to vector<8x1152xf32>
    %89 = arith.addf %86, %88 : vector<8x1152xf32>
    %cst_65 = arith.constant 0.000000e+00 : f32
    %90 = vector.broadcast %cst_65 : f32 to vector<8x1152xf32>
    %91 = arith.cmpf ogt, %89, %90 : vector<8x1152xf32>
    %cst_66 = arith.constant 2.000000e-01 : f32
    %92 = vector.broadcast %cst_66 : f32 to vector<8x1152xf32>
    %93 = arith.mulf %92, %89 : vector<8x1152xf32>
    %94 = arith.select %91, %89, %93 : vector<8x1152xi1>, vector<8x1152xf32>
    %95 = arith.truncf %94 : vector<8x1152xf32> to vector<8x1152xbf16>
    %c0_67 = arith.constant 0 : index
    %c0_68 = arith.constant 0 : index
    %c0_69 = arith.constant 0 : index
    %96 = vector.load %arg4[%c0_67, %c0_68, %c0_69] : memref<1x8x1152xbf16, #tpu.memory_space<vmem>>, vector<1x8x1152xbf16>
    %97 = vector.shape_cast %96 : vector<1x8x1152xbf16> to vector<8x1152xbf16>
    %98 = vector.shape_cast %95 : vector<8x1152xbf16> to vector<1x8x1152xbf16>
    tpu.vector_store %arg4[%c0_67, %c0_68, %c0_69], %98 {strides = array<i32>} : memref<1x8x1152xbf16, #tpu.memory_space<vmem>>, vector<1x8x1152xbf16>,
    return
  }
  func.func @transform_0(%arg0: i32) -> (i32, i32, i32, i32) {
    %c0_i32 = arith.constant 0 : i32
    %c0_i32_0 = arith.constant 0 : i32
    %c0_i32_1 = arith.constant 0 : i32
    %c0_i32_2 = arith.constant 0 : i32
    return %arg0, %c0_i32, %c0_i32_0, %c0_i32_1 : i32, i32, i32, i32
  }
  func.func @transform_1(%arg0: i32) -> (i32, i32, i32) {
    %c0_i32 = arith.constant 0 : i32
    %c0_i32_0 = arith.constant 0 : i32
    %c0_i32_1 = arith.constant 0 : i32
    %c0_i32_2 = arith.constant 0 : i32
    return %c0_i32, %c0_i32_0, %c0_i32_1 : i32, i32, i32
  }
  func.func @transform_2(%arg0: i32) -> (i32, i32) {
    %c0_i32 = arith.constant 0 : i32
    %c0_i32_0 = arith.constant 0 : i32
    %c0_i32_1 = arith.constant 0 : i32
    return %c0_i32, %c0_i32_0 : i32, i32
  }
  func.func @transform_3(%arg0: i32) -> (i32, i32, i32) {
    %c0_i32 = arith.constant 0 : i32
    %c0_i32_0 = arith.constant 0 : i32
    %c0_i32_1 = arith.constant 0 : i32
    return %arg0, %c0_i32, %c0_i32_0 : i32, i32, i32
  }
}

module attributes {stable_mosaic.version = 11 : i64} {
  func.func @_conv_stats_kernel(%arg0: i32, %arg1: memref<1x4x8x512xbf16, #tpu.memory_space<vmem>>, %arg2: memref<16x16x8xbf16, #tpu.memory_space<vmem>>, %arg3: memref<1x384xf32, #tpu.memory_space<vmem>>, %arg4: memref<1x16x384xf32, #tpu.memory_space<vmem>>, %arg5: memref<1x16x2xf32, #tpu.memory_space<vmem>>) attributes {dimension_semantics = [#tpu.dimension_semantics<parallel>], iteration_bounds = array<i64: 2>, scalar_prefetch = 0 : i64, scratch_operands = 0 : i64, tpu.core_type = #tpu.core_type<tc>, window_params = [{transform_indices = @transform_0, window_bounds = array<i64: 1, 4, 8, 512>}, {pipeline_mode = #tpu.pipeline_mode<synchronous>, transform_indices = @transform_1, window_bounds = array<i64: 16, 16, 8>}, {pipeline_mode = #tpu.pipeline_mode<synchronous>, transform_indices = @transform_2, window_bounds = array<i64: 1, 384>}, {transform_indices = @transform_3, window_bounds = array<i64: 1, 16, 384>}, {transform_indices = @transform_4, window_bounds = array<i64: 1, 16, 2>}]} {
    %c0 = arith.constant 0 : index
    %c0_0 = arith.constant 0 : index
    %c0_1 = arith.constant 0 : index
    %c0_2 = arith.constant 0 : index
    %0 = vector.load %arg1[%c0, %c0_0, %c0_1, %c0_2] : memref<1x4x8x512xbf16, #tpu.memory_space<vmem>>, vector<1x1x8x512xbf16>
    %1 = vector.shape_cast %0 : vector<1x1x8x512xbf16> to vector<8x512xbf16>
    %2 = vector.extract_strided_slice %1 {offsets = [0, 0], sizes = [8, 384], strides = [1, 1]} : vector<8x512xbf16> to vector<8x384xbf16>
    %c0_3 = arith.constant 0 : index
    %c0_4 = arith.constant 0 : index
    %c0_5 = arith.constant 0 : index
    %3 = vector.load %arg2[%c0_3, %c0_4, %c0_5] : memref<16x16x8xbf16, #tpu.memory_space<vmem>>, vector<1x16x8xbf16>
    %4 = vector.shape_cast %3 : vector<1x16x8xbf16> to vector<16x8xbf16>
    %cst = arith.constant dense<0.000000e+00> : vector<16x384xf32>
    %5 = tpu.matmul %4, %2, %cst {dimension_numbers = #tpu.dot_dimension_numbers<[1], [0], [0], [1], [0, 0, 1, 1], [], []>} : vector<16x8xbf16>, vector<8x384xbf16>, vector<16x384xf32> -> vector<16x384xf32>
    %6 = vector.extract_strided_slice %1 {offsets = [0, 1], sizes = [8, 384], strides = [1, 1]} : vector<8x512xbf16> to vector<8x384xbf16>
    %c2 = arith.constant 2 : index
    %c0_6 = arith.constant 0 : index
    %c0_7 = arith.constant 0 : index
    %7 = vector.load %arg2[%c2, %c0_6, %c0_7] : memref<16x16x8xbf16, #tpu.memory_space<vmem>>, vector<1x16x8xbf16>
    %8 = vector.shape_cast %7 : vector<1x16x8xbf16> to vector<16x8xbf16>
    %cst_8 = arith.constant dense<0.000000e+00> : vector<16x384xf32>
    %9 = tpu.matmul %8, %6, %cst_8 {dimension_numbers = #tpu.dot_dimension_numbers<[1], [0], [0], [1], [0, 0, 1, 1], [], []>} : vector<16x8xbf16>, vector<8x384xbf16>, vector<16x384xf32> -> vector<16x384xf32>
    %10 = arith.addf %5, %9 : vector<16x384xf32>
    %11 = vector.extract_strided_slice %1 {offsets = [0, 17], sizes = [8, 384], strides = [1, 1]} : vector<8x512xbf16> to vector<8x384xbf16>
    %c8 = arith.constant 8 : index
    %c0_9 = arith.constant 0 : index
    %c0_10 = arith.constant 0 : index
    %12 = vector.load %arg2[%c8, %c0_9, %c0_10] : memref<16x16x8xbf16, #tpu.memory_space<vmem>>, vector<1x16x8xbf16>
    %13 = vector.shape_cast %12 : vector<1x16x8xbf16> to vector<16x8xbf16>
    %cst_11 = arith.constant dense<0.000000e+00> : vector<16x384xf32>
    %14 = tpu.matmul %13, %11, %cst_11 {dimension_numbers = #tpu.dot_dimension_numbers<[1], [0], [0], [1], [0, 0, 1, 1], [], []>} : vector<16x8xbf16>, vector<8x384xbf16>, vector<16x384xf32> -> vector<16x384xf32>
    %15 = arith.addf %10, %14 : vector<16x384xf32>
    %16 = vector.extract_strided_slice %1 {offsets = [0, 18], sizes = [8, 384], strides = [1, 1]} : vector<8x512xbf16> to vector<8x384xbf16>
    %c10 = arith.constant 10 : index
    %c0_12 = arith.constant 0 : index
    %c0_13 = arith.constant 0 : index
    %17 = vector.load %arg2[%c10, %c0_12, %c0_13] : memref<16x16x8xbf16, #tpu.memory_space<vmem>>, vector<1x16x8xbf16>
    %18 = vector.shape_cast %17 : vector<1x16x8xbf16> to vector<16x8xbf16>
    %cst_14 = arith.constant dense<0.000000e+00> : vector<16x384xf32>
    %19 = tpu.matmul %18, %16, %cst_14 {dimension_numbers = #tpu.dot_dimension_numbers<[1], [0], [0], [1], [0, 0, 1, 1], [], []>} : vector<16x8xbf16>, vector<8x384xbf16>, vector<16x384xf32> -> vector<16x384xf32>
    %20 = arith.addf %15, %19 : vector<16x384xf32>
    %c0_15 = arith.constant 0 : index
    %c1 = arith.constant 1 : index
    %c0_16 = arith.constant 0 : index
    %c0_17 = arith.constant 0 : index
    %21 = vector.load %arg1[%c0_15, %c1, %c0_16, %c0_17] : memref<1x4x8x512xbf16, #tpu.memory_space<vmem>>, vector<1x1x8x512xbf16>
    %22 = vector.shape_cast %21 : vector<1x1x8x512xbf16> to vector<8x512xbf16>
    %23 = vector.extract_strided_slice %22 {offsets = [0, 0], sizes = [8, 384], strides = [1, 1]} : vector<8x512xbf16> to vector<8x384xbf16>
    %c1_18 = arith.constant 1 : index
    %c0_19 = arith.constant 0 : index
    %c0_20 = arith.constant 0 : index
    %24 = vector.load %arg2[%c1_18, %c0_19, %c0_20] : memref<16x16x8xbf16, #tpu.memory_space<vmem>>, vector<1x16x8xbf16>
    %25 = vector.shape_cast %24 : vector<1x16x8xbf16> to vector<16x8xbf16>
    %cst_21 = arith.constant dense<0.000000e+00> : vector<16x384xf32>
    %26 = tpu.matmul %25, %23, %cst_21 {dimension_numbers = #tpu.dot_dimension_numbers<[1], [0], [0], [1], [0, 0, 1, 1], [], []>} : vector<16x8xbf16>, vector<8x384xbf16>, vector<16x384xf32> -> vector<16x384xf32>
    %27 = arith.addf %20, %26 : vector<16x384xf32>
    %28 = vector.extract_strided_slice %22 {offsets = [0, 1], sizes = [8, 384], strides = [1, 1]} : vector<8x512xbf16> to vector<8x384xbf16>
    %c3 = arith.constant 3 : index
    %c0_22 = arith.constant 0 : index
    %c0_23 = arith.constant 0 : index
    %29 = vector.load %arg2[%c3, %c0_22, %c0_23] : memref<16x16x8xbf16, #tpu.memory_space<vmem>>, vector<1x16x8xbf16>
    %30 = vector.shape_cast %29 : vector<1x16x8xbf16> to vector<16x8xbf16>
    %cst_24 = arith.constant dense<0.000000e+00> : vector<16x384xf32>
    %31 = tpu.matmul %30, %28, %cst_24 {dimension_numbers = #tpu.dot_dimension_numbers<[1], [0], [0], [1], [0, 0, 1, 1], [], []>} : vector<16x8xbf16>, vector<8x384xbf16>, vector<16x384xf32> -> vector<16x384xf32>
    %32 = arith.addf %27, %31 : vector<16x384xf32>
    %33 = vector.extract_strided_slice %22 {offsets = [0, 17], sizes = [8, 384], strides = [1, 1]} : vector<8x512xbf16> to vector<8x384xbf16>
    %c9 = arith.constant 9 : index
    %c0_25 = arith.constant 0 : index
    %c0_26 = arith.constant 0 : index
    %34 = vector.load %arg2[%c9, %c0_25, %c0_26] : memref<16x16x8xbf16, #tpu.memory_space<vmem>>, vector<1x16x8xbf16>
    %35 = vector.shape_cast %34 : vector<1x16x8xbf16> to vector<16x8xbf16>
    %cst_27 = arith.constant dense<0.000000e+00> : vector<16x384xf32>
    %36 = tpu.matmul %35, %33, %cst_27 {dimension_numbers = #tpu.dot_dimension_numbers<[1], [0], [0], [1], [0, 0, 1, 1], [], []>} : vector<16x8xbf16>, vector<8x384xbf16>, vector<16x384xf32> -> vector<16x384xf32>
    %37 = arith.addf %32, %36 : vector<16x384xf32>
    %38 = vector.extract_strided_slice %22 {offsets = [0, 18], sizes = [8, 384], strides = [1, 1]} : vector<8x512xbf16> to vector<8x384xbf16>
    %c11 = arith.constant 11 : index
    %c0_28 = arith.constant 0 : index
    %c0_29 = arith.constant 0 : index
    %39 = vector.load %arg2[%c11, %c0_28, %c0_29] : memref<16x16x8xbf16, #tpu.memory_space<vmem>>, vector<1x16x8xbf16>
    %40 = vector.shape_cast %39 : vector<1x16x8xbf16> to vector<16x8xbf16>
    %cst_30 = arith.constant dense<0.000000e+00> : vector<16x384xf32>
    %41 = tpu.matmul %40, %38, %cst_30 {dimension_numbers = #tpu.dot_dimension_numbers<[1], [0], [0], [1], [0, 0, 1, 1], [], []>} : vector<16x8xbf16>, vector<8x384xbf16>, vector<16x384xf32> -> vector<16x384xf32>
    %42 = arith.addf %37, %41 : vector<16x384xf32>
    %c0_31 = arith.constant 0 : index
    %c2_32 = arith.constant 2 : index
    %c0_33 = arith.constant 0 : index
    %c0_34 = arith.constant 0 : index
    %43 = vector.load %arg1[%c0_31, %c2_32, %c0_33, %c0_34] : memref<1x4x8x512xbf16, #tpu.memory_space<vmem>>, vector<1x1x8x512xbf16>
    %44 = vector.shape_cast %43 : vector<1x1x8x512xbf16> to vector<8x512xbf16>
    %45 = vector.extract_strided_slice %44 {offsets = [0, 0], sizes = [8, 384], strides = [1, 1]} : vector<8x512xbf16> to vector<8x384xbf16>
    %c4 = arith.constant 4 : index
    %c0_35 = arith.constant 0 : index
    %c0_36 = arith.constant 0 : index
    %46 = vector.load %arg2[%c4, %c0_35, %c0_36] : memref<16x16x8xbf16, #tpu.memory_space<vmem>>, vector<1x16x8xbf16>
    %47 = vector.shape_cast %46 : vector<1x16x8xbf16> to vector<16x8xbf16>
    %cst_37 = arith.constant dense<0.000000e+00> : vector<16x384xf32>
    %48 = tpu.matmul %47, %45, %cst_37 {dimension_numbers = #tpu.dot_dimension_numbers<[1], [0], [0], [1], [0, 0, 1, 1], [], []>} : vector<16x8xbf16>, vector<8x384xbf16>, vector<16x384xf32> -> vector<16x384xf32>
    %49 = arith.addf %42, %48 : vector<16x384xf32>
    %50 = vector.extract_strided_slice %44 {offsets = [0, 1], sizes = [8, 384], strides = [1, 1]} : vector<8x512xbf16> to vector<8x384xbf16>
    %c6 = arith.constant 6 : index
    %c0_38 = arith.constant 0 : index
    %c0_39 = arith.constant 0 : index
    %51 = vector.load %arg2[%c6, %c0_38, %c0_39] : memref<16x16x8xbf16, #tpu.memory_space<vmem>>, vector<1x16x8xbf16>
    %52 = vector.shape_cast %51 : vector<1x16x8xbf16> to vector<16x8xbf16>
    %cst_40 = arith.constant dense<0.000000e+00> : vector<16x384xf32>
    %53 = tpu.matmul %52, %50, %cst_40 {dimension_numbers = #tpu.dot_dimension_numbers<[1], [0], [0], [1], [0, 0, 1, 1], [], []>} : vector<16x8xbf16>, vector<8x384xbf16>, vector<16x384xf32> -> vector<16x384xf32>
    %54 = arith.addf %49, %53 : vector<16x384xf32>
    %55 = vector.extract_strided_slice %44 {offsets = [0, 17], sizes = [8, 384], strides = [1, 1]} : vector<8x512xbf16> to vector<8x384xbf16>
    %c12 = arith.constant 12 : index
    %c0_41 = arith.constant 0 : index
    %c0_42 = arith.constant 0 : index
    %56 = vector.load %arg2[%c12, %c0_41, %c0_42] : memref<16x16x8xbf16, #tpu.memory_space<vmem>>, vector<1x16x8xbf16>
    %57 = vector.shape_cast %56 : vector<1x16x8xbf16> to vector<16x8xbf16>
    %cst_43 = arith.constant dense<0.000000e+00> : vector<16x384xf32>
    %58 = tpu.matmul %57, %55, %cst_43 {dimension_numbers = #tpu.dot_dimension_numbers<[1], [0], [0], [1], [0, 0, 1, 1], [], []>} : vector<16x8xbf16>, vector<8x384xbf16>, vector<16x384xf32> -> vector<16x384xf32>
    %59 = arith.addf %54, %58 : vector<16x384xf32>
    %60 = vector.extract_strided_slice %44 {offsets = [0, 18], sizes = [8, 384], strides = [1, 1]} : vector<8x512xbf16> to vector<8x384xbf16>
    %c14 = arith.constant 14 : index
    %c0_44 = arith.constant 0 : index
    %c0_45 = arith.constant 0 : index
    %61 = vector.load %arg2[%c14, %c0_44, %c0_45] : memref<16x16x8xbf16, #tpu.memory_space<vmem>>, vector<1x16x8xbf16>
    %62 = vector.shape_cast %61 : vector<1x16x8xbf16> to vector<16x8xbf16>
    %cst_46 = arith.constant dense<0.000000e+00> : vector<16x384xf32>
    %63 = tpu.matmul %62, %60, %cst_46 {dimension_numbers = #tpu.dot_dimension_numbers<[1], [0], [0], [1], [0, 0, 1, 1], [], []>} : vector<16x8xbf16>, vector<8x384xbf16>, vector<16x384xf32> -> vector<16x384xf32>
    %64 = arith.addf %59, %63 : vector<16x384xf32>
    %c0_47 = arith.constant 0 : index
    %c3_48 = arith.constant 3 : index
    %c0_49 = arith.constant 0 : index
    %c0_50 = arith.constant 0 : index
    %65 = vector.load %arg1[%c0_47, %c3_48, %c0_49, %c0_50] : memref<1x4x8x512xbf16, #tpu.memory_space<vmem>>, vector<1x1x8x512xbf16>
    %66 = vector.shape_cast %65 : vector<1x1x8x512xbf16> to vector<8x512xbf16>
    %67 = vector.extract_strided_slice %66 {offsets = [0, 0], sizes = [8, 384], strides = [1, 1]} : vector<8x512xbf16> to vector<8x384xbf16>
    %c5 = arith.constant 5 : index
    %c0_51 = arith.constant 0 : index
    %c0_52 = arith.constant 0 : index
    %68 = vector.load %arg2[%c5, %c0_51, %c0_52] : memref<16x16x8xbf16, #tpu.memory_space<vmem>>, vector<1x16x8xbf16>
    %69 = vector.shape_cast %68 : vector<1x16x8xbf16> to vector<16x8xbf16>
    %cst_53 = arith.constant dense<0.000000e+00> : vector<16x384xf32>
    %70 = tpu.matmul %69, %67, %cst_53 {dimension_numbers = #tpu.dot_dimension_numbers<[1], [0], [0], [1], [0, 0, 1, 1], [], []>} : vector<16x8xbf16>, vector<8x384xbf16>, vector<16x384xf32> -> vector<16x384xf32>
    %71 = arith.addf %64, %70 : vector<16x384xf32>
    %72 = vector.extract_strided_slice %66 {offsets = [0, 1], sizes = [8, 384], strides = [1, 1]} : vector<8x512xbf16> to vector<8x384xbf16>
    %c7 = arith.constant 7 : index
    %c0_54 = arith.constant 0 : index
    %c0_55 = arith.constant 0 : index
    %73 = vector.load %arg2[%c7, %c0_54, %c0_55] : memref<16x16x8xbf16, #tpu.memory_space<vmem>>, vector<1x16x8xbf16>
    %74 = vector.shape_cast %73 : vector<1x16x8xbf16> to vector<16x8xbf16>
    %cst_56 = arith.constant dense<0.000000e+00> : vector<16x384xf32>
    %75 = tpu.matmul %74, %72, %cst_56 {dimension_numbers = #tpu.dot_dimension_numbers<[1], [0], [0], [1], [0, 0, 1, 1], [], []>} : vector<16x8xbf16>, vector<8x384xbf16>, vector<16x384xf32> -> vector<16x384xf32>
    %76 = arith.addf %71, %75 : vector<16x384xf32>
    %77 = vector.extract_strided_slice %66 {offsets = [0, 17], sizes = [8, 384], strides = [1, 1]} : vector<8x512xbf16> to vector<8x384xbf16>
    %c13 = arith.constant 13 : index
    %c0_57 = arith.constant 0 : index
    %c0_58 = arith.constant 0 : index
    %78 = vector.load %arg2[%c13, %c0_57, %c0_58] : memref<16x16x8xbf16, #tpu.memory_space<vmem>>, vector<1x16x8xbf16>
    %79 = vector.shape_cast %78 : vector<1x16x8xbf16> to vector<16x8xbf16>
    %cst_59 = arith.constant dense<0.000000e+00> : vector<16x384xf32>
    %80 = tpu.matmul %79, %77, %cst_59 {dimension_numbers = #tpu.dot_dimension_numbers<[1], [0], [0], [1], [0, 0, 1, 1], [], []>} : vector<16x8xbf16>, vector<8x384xbf16>, vector<16x384xf32> -> vector<16x384xf32>
    %81 = arith.addf %76, %80 : vector<16x384xf32>
    %82 = vector.extract_strided_slice %66 {offsets = [0, 18], sizes = [8, 384], strides = [1, 1]} : vector<8x512xbf16> to vector<8x384xbf16>
    %c15 = arith.constant 15 : index
    %c0_60 = arith.constant 0 : index
    %c0_61 = arith.constant 0 : index
    %83 = vector.load %arg2[%c15, %c0_60, %c0_61] : memref<16x16x8xbf16, #tpu.memory_space<vmem>>, vector<1x16x8xbf16>
    %84 = vector.shape_cast %83 : vector<1x16x8xbf16> to vector<16x8xbf16>
    %cst_62 = arith.constant dense<0.000000e+00> : vector<16x384xf32>
    %85 = tpu.matmul %84, %82, %cst_62 {dimension_numbers = #tpu.dot_dimension_numbers<[1], [0], [0], [1], [0, 0, 1, 1], [], []>} : vector<16x8xbf16>, vector<8x384xbf16>, vector<16x384xf32> -> vector<16x384xf32>
    %86 = arith.addf %81, %85 : vector<16x384xf32>
    %c0_63 = arith.constant 0 : index
    %c0_64 = arith.constant 0 : index
    %c0_65 = arith.constant 0 : index
    %87 = vector.load %arg4[%c0_63, %c0_64, %c0_65] : memref<1x16x384xf32, #tpu.memory_space<vmem>>, vector<1x16x384xf32>
    %88 = vector.shape_cast %87 : vector<1x16x384xf32> to vector<16x384xf32>
    %89 = vector.shape_cast %86 : vector<16x384xf32> to vector<1x16x384xf32>
    tpu.vector_store %arg4[%c0_63, %c0_64, %c0_65], %89 {strides = array<i32>} : memref<1x16x384xf32, #tpu.memory_space<vmem>>, vector<1x16x384xf32>,
    %c0_66 = arith.constant 0 : index
    %c0_67 = arith.constant 0 : index
    %90 = vector.load %arg3[%c0_66, %c0_67] : memref<1x384xf32, #tpu.memory_space<vmem>>, vector<1x384xf32>
    %91 = vector.broadcast %90 : vector<1x384xf32> to vector<16x384xf32>
    %92 = arith.mulf %86, %91 : vector<16x384xf32>
    %cst_68 = arith.constant dense<0.000000e+00> : vector<16xf32>
    %93 = vector.multi_reduction <add>, %92, %cst_68 [1] : vector<16x384xf32> to vector<16xf32>
    %94 = vector.shape_cast %93 : vector<16xf32> to vector<16x1xf32>
    %c0_69 = arith.constant 0 : index
    %c0_70 = arith.constant 0 : index
    %c0_71 = arith.constant 0 : index
    %95 = vector.load %arg5[%c0_69, %c0_70, %c0_71] : memref<1x16x2xf32, #tpu.memory_space<vmem>>, vector<1x16x1xf32>
    %96 = vector.shape_cast %95 : vector<1x16x1xf32> to vector<16x1xf32>
    %97 = vector.shape_cast %94 : vector<16x1xf32> to vector<1x16x1xf32>
    tpu.vector_store %arg5[%c0_69, %c0_70, %c0_71], %97 {strides = array<i32>} : memref<1x16x2xf32, #tpu.memory_space<vmem>>, vector<1x16x1xf32>,
    %98 = arith.mulf %86, %92 : vector<16x384xf32>
    %cst_72 = arith.constant dense<0.000000e+00> : vector<16xf32>
    %99 = vector.multi_reduction <add>, %98, %cst_72 [1] : vector<16x384xf32> to vector<16xf32>
    %100 = vector.shape_cast %99 : vector<16xf32> to vector<16x1xf32>
    %c0_73 = arith.constant 0 : index
    %c0_74 = arith.constant 0 : index
    %c1_75 = arith.constant 1 : index
    %101 = vector.load %arg5[%c0_73, %c0_74, %c1_75] : memref<1x16x2xf32, #tpu.memory_space<vmem>>, vector<1x16x1xf32>
    %102 = vector.shape_cast %101 : vector<1x16x1xf32> to vector<16x1xf32>
    %103 = vector.shape_cast %100 : vector<16x1xf32> to vector<1x16x1xf32>
    tpu.vector_store %arg5[%c0_73, %c0_74, %c1_75], %103 {strides = array<i32>} : memref<1x16x2xf32, #tpu.memory_space<vmem>>, vector<1x16x1xf32>,
    return
  }
  func.func @transform_0(%arg0: i32) -> (i32, i32, i32, i32) {
    %c0_i32 = arith.constant 0 : i32
    %c0_i32_0 = arith.constant 0 : i32
    %c0_i32_1 = arith.constant 0 : i32
    %c0_i32_2 = arith.constant 0 : i32
    return %arg0, %c0_i32, %c0_i32_0, %c0_i32_1 : i32, i32, i32, i32
  }
  func.func @transform_1(%arg0: i32) -> (i32, i32, i32) {
    %c0_i32 = arith.constant 0 : i32
    %c0_i32_0 = arith.constant 0 : i32
    %c0_i32_1 = arith.constant 0 : i32
    %c0_i32_2 = arith.constant 0 : i32
    return %c0_i32, %c0_i32_0, %c0_i32_1 : i32, i32, i32
  }
  func.func @transform_2(%arg0: i32) -> (i32, i32) {
    %c0_i32 = arith.constant 0 : i32
    %c0_i32_0 = arith.constant 0 : i32
    %c0_i32_1 = arith.constant 0 : i32
    return %c0_i32, %c0_i32_0 : i32, i32
  }
  func.func @transform_3(%arg0: i32) -> (i32, i32, i32) {
    %c0_i32 = arith.constant 0 : i32
    %c0_i32_0 = arith.constant 0 : i32
    %c0_i32_1 = arith.constant 0 : i32
    return %arg0, %c0_i32, %c0_i32_0 : i32, i32, i32
  }
  func.func @transform_4(%arg0: i32) -> (i32, i32, i32) {
    %c0_i32 = arith.constant 0 : i32
    %c0_i32_0 = arith.constant 0 : i32
    %c0_i32_1 = arith.constant 0 : i32
    return %arg0, %c0_i32, %c0_i32_0 : i32, i32, i32
  }
}

module attributes {stable_mosaic.version = 11 : i64} {
  func.func @_bn_lrelu_kernel(%arg0: i32, %arg1: memref<1x16x384xf32, #tpu.memory_space<vmem>>, %arg2: memref<16x2xf32, #tpu.memory_space<vmem>>, %arg3: memref<1x16x384xbf16, #tpu.memory_space<vmem>>) attributes {dimension_semantics = [#tpu.dimension_semantics<parallel>], iteration_bounds = array<i64: 2>, scalar_prefetch = 0 : i64, scratch_operands = 0 : i64, tpu.core_type = #tpu.core_type<tc>, window_params = [{transform_indices = @transform_0, window_bounds = array<i64: 1, 16, 384>}, {pipeline_mode = #tpu.pipeline_mode<synchronous>, transform_indices = @transform_1, window_bounds = array<i64: 16, 2>}, {transform_indices = @transform_2, window_bounds = array<i64: 1, 16, 384>}]} {
    %c0 = arith.constant 0 : index
    %c0_0 = arith.constant 0 : index
    %c0_1 = arith.constant 0 : index
    %0 = vector.load %arg1[%c0, %c0_0, %c0_1] : memref<1x16x384xf32, #tpu.memory_space<vmem>>, vector<1x16x384xf32>
    %1 = vector.shape_cast %0 : vector<1x16x384xf32> to vector<16x384xf32>
    %c0_2 = arith.constant 0 : index
    %c0_3 = arith.constant 0 : index
    %2 = vector.load %arg2[%c0_2, %c0_3] : memref<16x2xf32, #tpu.memory_space<vmem>>, vector<16x1xf32>
    %3 = vector.broadcast %2 : vector<16x1xf32> to vector<16x384xf32>
    %4 = arith.mulf %1, %3 : vector<16x384xf32>
    %c0_4 = arith.constant 0 : index
    %c1 = arith.constant 1 : index
    %5 = vector.load %arg2[%c0_4, %c1] : memref<16x2xf32, #tpu.memory_space<vmem>>, vector<16x1xf32>
    %6 = vector.broadcast %5 : vector<16x1xf32> to vector<16x384xf32>
    %7 = arith.addf %4, %6 : vector<16x384xf32>
    %cst = arith.constant 0.000000e+00 : f32
    %8 = vector.broadcast %cst : f32 to vector<16x384xf32>
    %9 = arith.cmpf ogt, %7, %8 : vector<16x384xf32>
    %cst_5 = arith.constant 2.000000e-01 : f32
    %10 = vector.broadcast %cst_5 : f32 to vector<16x384xf32>
    %11 = arith.mulf %10, %7 : vector<16x384xf32>
    %12 = arith.select %9, %7, %11 : vector<16x384xi1>, vector<16x384xf32>
    %13 = arith.truncf %12 : vector<16x384xf32> to vector<16x384xbf16>
    %c0_6 = arith.constant 0 : index
    %c0_7 = arith.constant 0 : index
    %c0_8 = arith.constant 0 : index
    %14 = vector.load %arg3[%c0_6, %c0_7, %c0_8] : memref<1x16x384xbf16, #tpu.memory_space<vmem>>, vector<1x16x384xbf16>
    %15 = vector.shape_cast %14 : vector<1x16x384xbf16> to vector<16x384xbf16>
    %16 = vector.shape_cast %13 : vector<16x384xbf16> to vector<1x16x384xbf16>
    tpu.vector_store %arg3[%c0_6, %c0_7, %c0_8], %16 {strides = array<i32>} : memref<1x16x384xbf16, #tpu.memory_space<vmem>>, vector<1x16x384xbf16>,
    return
  }
  func.func @transform_0(%arg0: i32) -> (i32, i32, i32) {
    %c0_i32 = arith.constant 0 : i32
    %c0_i32_0 = arith.constant 0 : i32
    %c0_i32_1 = arith.constant 0 : i32
    return %arg0, %c0_i32, %c0_i32_0 : i32, i32, i32
  }
  func.func @transform_1(%arg0: i32) -> (i32, i32) {
    %c0_i32 = arith.constant 0 : i32
    %c0_i32_0 = arith.constant 0 : i32
    %c0_i32_1 = arith.constant 0 : i32
    return %c0_i32, %c0_i32_0 : i32, i32
  }
  func.func @transform_2(%arg0: i32) -> (i32, i32, i32) {
    %c0_i32 = arith.constant 0 : i32
    %c0_i32_0 = arith.constant 0 : i32
    %c0_i32_1 = arith.constant 0 : i32
    return %arg0, %c0_i32, %c0_i32_0 : i32, i32, i32
  }
}

module attributes {stable_mosaic.version = 11 : i64} {
  func.func @_conv_stats_kernel(%arg0: i32, %arg1: memref<1x4x16x256xbf16, #tpu.memory_space<vmem>>, %arg2: memref<16x32x16xbf16, #tpu.memory_space<vmem>>, %arg3: memref<1x128xf32, #tpu.memory_space<vmem>>, %arg4: memref<1x32x128xf32, #tpu.memory_space<vmem>>, %arg5: memref<1x32x2xf32, #tpu.memory_space<vmem>>) attributes {dimension_semantics = [#tpu.dimension_semantics<parallel>], iteration_bounds = array<i64: 2>, scalar_prefetch = 0 : i64, scratch_operands = 0 : i64, tpu.core_type = #tpu.core_type<tc>, window_params = [{transform_indices = @transform_0, window_bounds = array<i64: 1, 4, 16, 256>}, {pipeline_mode = #tpu.pipeline_mode<synchronous>, transform_indices = @transform_1, window_bounds = array<i64: 16, 32, 16>}, {pipeline_mode = #tpu.pipeline_mode<synchronous>, transform_indices = @transform_2, window_bounds = array<i64: 1, 128>}, {transform_indices = @transform_3, window_bounds = array<i64: 1, 32, 128>}, {transform_indices = @transform_4, window_bounds = array<i64: 1, 32, 2>}]} {
    %c0 = arith.constant 0 : index
    %c0_0 = arith.constant 0 : index
    %c0_1 = arith.constant 0 : index
    %c0_2 = arith.constant 0 : index
    %0 = vector.load %arg1[%c0, %c0_0, %c0_1, %c0_2] : memref<1x4x16x256xbf16, #tpu.memory_space<vmem>>, vector<1x1x16x256xbf16>
    %1 = vector.shape_cast %0 : vector<1x1x16x256xbf16> to vector<16x256xbf16>
    %2 = vector.extract_strided_slice %1 {offsets = [0, 0], sizes = [16, 128], strides = [1, 1]} : vector<16x256xbf16> to vector<16x128xbf16>
    %c0_3 = arith.constant 0 : index
    %c0_4 = arith.constant 0 : index
    %c0_5 = arith.constant 0 : index
    %3 = vector.load %arg2[%c0_3, %c0_4, %c0_5] : memref<16x32x16xbf16, #tpu.memory_space<vmem>>, vector<1x32x16xbf16>
    %4 = vector.shape_cast %3 : vector<1x32x16xbf16> to vector<32x16xbf16>
    %cst = arith.constant dense<0.000000e+00> : vector<32x128xf32>
    %5 = tpu.matmul %4, %2, %cst {dimension_numbers = #tpu.dot_dimension_numbers<[1], [0], [0], [1], [0, 0, 1, 1], [], []>} : vector<32x16xbf16>, vector<16x128xbf16>, vector<32x128xf32> -> vector<32x128xf32>
    %6 = vector.extract_strided_slice %1 {offsets = [0, 1], sizes = [16, 128], strides = [1, 1]} : vector<16x256xbf16> to vector<16x128xbf16>
    %c2 = arith.constant 2 : index
    %c0_6 = arith.constant 0 : index
    %c0_7 = arith.constant 0 : index
    %7 = vector.load %arg2[%c2, %c0_6, %c0_7] : memref<16x32x16xbf16, #tpu.memory_space<vmem>>, vector<1x32x16xbf16>
    %8 = vector.shape_cast %7 : vector<1x32x16xbf16> to vector<32x16xbf16>
    %cst_8 = arith.constant dense<0.000000e+00> : vector<32x128xf32>
    %9 = tpu.matmul %8, %6, %cst_8 {dimension_numbers = #tpu.dot_dimension_numbers<[1], [0], [0], [1], [0, 0, 1, 1], [], []>} : vector<32x16xbf16>, vector<16x128xbf16>, vector<32x128xf32> -> vector<32x128xf32>
    %10 = arith.addf %5, %9 : vector<32x128xf32>
    %11 = vector.extract_strided_slice %1 {offsets = [0, 9], sizes = [16, 128], strides = [1, 1]} : vector<16x256xbf16> to vector<16x128xbf16>
    %c8 = arith.constant 8 : index
    %c0_9 = arith.constant 0 : index
    %c0_10 = arith.constant 0 : index
    %12 = vector.load %arg2[%c8, %c0_9, %c0_10] : memref<16x32x16xbf16, #tpu.memory_space<vmem>>, vector<1x32x16xbf16>
    %13 = vector.shape_cast %12 : vector<1x32x16xbf16> to vector<32x16xbf16>
    %cst_11 = arith.constant dense<0.000000e+00> : vector<32x128xf32>
    %14 = tpu.matmul %13, %11, %cst_11 {dimension_numbers = #tpu.dot_dimension_numbers<[1], [0], [0], [1], [0, 0, 1, 1], [], []>} : vector<32x16xbf16>, vector<16x128xbf16>, vector<32x128xf32> -> vector<32x128xf32>
    %15 = arith.addf %10, %14 : vector<32x128xf32>
    %16 = vector.extract_strided_slice %1 {offsets = [0, 10], sizes = [16, 128], strides = [1, 1]} : vector<16x256xbf16> to vector<16x128xbf16>
    %c10 = arith.constant 10 : index
    %c0_12 = arith.constant 0 : index
    %c0_13 = arith.constant 0 : index
    %17 = vector.load %arg2[%c10, %c0_12, %c0_13] : memref<16x32x16xbf16, #tpu.memory_space<vmem>>, vector<1x32x16xbf16>
    %18 = vector.shape_cast %17 : vector<1x32x16xbf16> to vector<32x16xbf16>
    %cst_14 = arith.constant dense<0.000000e+00> : vector<32x128xf32>
    %19 = tpu.matmul %18, %16, %cst_14 {dimension_numbers = #tpu.dot_dimension_numbers<[1], [0], [0], [1], [0, 0, 1, 1], [], []>} : vector<32x16xbf16>, vector<16x128xbf16>, vector<32x128xf32> -> vector<32x128xf32>
    %20 = arith.addf %15, %19 : vector<32x128xf32>
    %c0_15 = arith.constant 0 : index
    %c1 = arith.constant 1 : index
    %c0_16 = arith.constant 0 : index
    %c0_17 = arith.constant 0 : index
    %21 = vector.load %arg1[%c0_15, %c1, %c0_16, %c0_17] : memref<1x4x16x256xbf16, #tpu.memory_space<vmem>>, vector<1x1x16x256xbf16>
    %22 = vector.shape_cast %21 : vector<1x1x16x256xbf16> to vector<16x256xbf16>
    %23 = vector.extract_strided_slice %22 {offsets = [0, 0], sizes = [16, 128], strides = [1, 1]} : vector<16x256xbf16> to vector<16x128xbf16>
    %c1_18 = arith.constant 1 : index
    %c0_19 = arith.constant 0 : index
    %c0_20 = arith.constant 0 : index
    %24 = vector.load %arg2[%c1_18, %c0_19, %c0_20] : memref<16x32x16xbf16, #tpu.memory_space<vmem>>, vector<1x32x16xbf16>
    %25 = vector.shape_cast %24 : vector<1x32x16xbf16> to vector<32x16xbf16>
    %cst_21 = arith.constant dense<0.000000e+00> : vector<32x128xf32>
    %26 = tpu.matmul %25, %23, %cst_21 {dimension_numbers = #tpu.dot_dimension_numbers<[1], [0], [0], [1], [0, 0, 1, 1], [], []>} : vector<32x16xbf16>, vector<16x128xbf16>, vector<32x128xf32> -> vector<32x128xf32>
    %27 = arith.addf %20, %26 : vector<32x128xf32>
    %28 = vector.extract_strided_slice %22 {offsets = [0, 1], sizes = [16, 128], strides = [1, 1]} : vector<16x256xbf16> to vector<16x128xbf16>
    %c3 = arith.constant 3 : index
    %c0_22 = arith.constant 0 : index
    %c0_23 = arith.constant 0 : index
    %29 = vector.load %arg2[%c3, %c0_22, %c0_23] : memref<16x32x16xbf16, #tpu.memory_space<vmem>>, vector<1x32x16xbf16>
    %30 = vector.shape_cast %29 : vector<1x32x16xbf16> to vector<32x16xbf16>
    %cst_24 = arith.constant dense<0.000000e+00> : vector<32x128xf32>
    %31 = tpu.matmul %30, %28, %cst_24 {dimension_numbers = #tpu.dot_dimension_numbers<[1], [0], [0], [1], [0, 0, 1, 1], [], []>} : vector<32x16xbf16>, vector<16x128xbf16>, vector<32x128xf32> -> vector<32x128xf32>
    %32 = arith.addf %27, %31 : vector<32x128xf32>
    %33 = vector.extract_strided_slice %22 {offsets = [0, 9], sizes = [16, 128], strides = [1, 1]} : vector<16x256xbf16> to vector<16x128xbf16>
    %c9 = arith.constant 9 : index
    %c0_25 = arith.constant 0 : index
    %c0_26 = arith.constant 0 : index
    %34 = vector.load %arg2[%c9, %c0_25, %c0_26] : memref<16x32x16xbf16, #tpu.memory_space<vmem>>, vector<1x32x16xbf16>
    %35 = vector.shape_cast %34 : vector<1x32x16xbf16> to vector<32x16xbf16>
    %cst_27 = arith.constant dense<0.000000e+00> : vector<32x128xf32>
    %36 = tpu.matmul %35, %33, %cst_27 {dimension_numbers = #tpu.dot_dimension_numbers<[1], [0], [0], [1], [0, 0, 1, 1], [], []>} : vector<32x16xbf16>, vector<16x128xbf16>, vector<32x128xf32> -> vector<32x128xf32>
    %37 = arith.addf %32, %36 : vector<32x128xf32>
    %38 = vector.extract_strided_slice %22 {offsets = [0, 10], sizes = [16, 128], strides = [1, 1]} : vector<16x256xbf16> to vector<16x128xbf16>
    %c11 = arith.constant 11 : index
    %c0_28 = arith.constant 0 : index
    %c0_29 = arith.constant 0 : index
    %39 = vector.load %arg2[%c11, %c0_28, %c0_29] : memref<16x32x16xbf16, #tpu.memory_space<vmem>>, vector<1x32x16xbf16>
    %40 = vector.shape_cast %39 : vector<1x32x16xbf16> to vector<32x16xbf16>
    %cst_30 = arith.constant dense<0.000000e+00> : vector<32x128xf32>
    %41 = tpu.matmul %40, %38, %cst_30 {dimension_numbers = #tpu.dot_dimension_numbers<[1], [0], [0], [1], [0, 0, 1, 1], [], []>} : vector<32x16xbf16>, vector<16x128xbf16>, vector<32x128xf32> -> vector<32x128xf32>
    %42 = arith.addf %37, %41 : vector<32x128xf32>
    %c0_31 = arith.constant 0 : index
    %c2_32 = arith.constant 2 : index
    %c0_33 = arith.constant 0 : index
    %c0_34 = arith.constant 0 : index
    %43 = vector.load %arg1[%c0_31, %c2_32, %c0_33, %c0_34] : memref<1x4x16x256xbf16, #tpu.memory_space<vmem>>, vector<1x1x16x256xbf16>
    %44 = vector.shape_cast %43 : vector<1x1x16x256xbf16> to vector<16x256xbf16>
    %45 = vector.extract_strided_slice %44 {offsets = [0, 0], sizes = [16, 128], strides = [1, 1]} : vector<16x256xbf16> to vector<16x128xbf16>
    %c4 = arith.constant 4 : index
    %c0_35 = arith.constant 0 : index
    %c0_36 = arith.constant 0 : index
    %46 = vector.load %arg2[%c4, %c0_35, %c0_36] : memref<16x32x16xbf16, #tpu.memory_space<vmem>>, vector<1x32x16xbf16>
    %47 = vector.shape_cast %46 : vector<1x32x16xbf16> to vector<32x16xbf16>
    %cst_37 = arith.constant dense<0.000000e+00> : vector<32x128xf32>
    %48 = tpu.matmul %47, %45, %cst_37 {dimension_numbers = #tpu.dot_dimension_numbers<[1], [0], [0], [1], [0, 0, 1, 1], [], []>} : vector<32x16xbf16>, vector<16x128xbf16>, vector<32x128xf32> -> vector<32x128xf32>
    %49 = arith.addf %42, %48 : vector<32x128xf32>
    %50 = vector.extract_strided_slice %44 {offsets = [0, 1], sizes = [16, 128], strides = [1, 1]} : vector<16x256xbf16> to vector<16x128xbf16>
    %c6 = arith.constant 6 : index
    %c0_38 = arith.constant 0 : index
    %c0_39 = arith.constant 0 : index
    %51 = vector.load %arg2[%c6, %c0_38, %c0_39] : memref<16x32x16xbf16, #tpu.memory_space<vmem>>, vector<1x32x16xbf16>
    %52 = vector.shape_cast %51 : vector<1x32x16xbf16> to vector<32x16xbf16>
    %cst_40 = arith.constant dense<0.000000e+00> : vector<32x128xf32>
    %53 = tpu.matmul %52, %50, %cst_40 {dimension_numbers = #tpu.dot_dimension_numbers<[1], [0], [0], [1], [0, 0, 1, 1], [], []>} : vector<32x16xbf16>, vector<16x128xbf16>, vector<32x128xf32> -> vector<32x128xf32>
    %54 = arith.addf %49, %53 : vector<32x128xf32>
    %55 = vector.extract_strided_slice %44 {offsets = [0, 9], sizes = [16, 128], strides = [1, 1]} : vector<16x256xbf16> to vector<16x128xbf16>
    %c12 = arith.constant 12 : index
    %c0_41 = arith.constant 0 : index
    %c0_42 = arith.constant 0 : index
    %56 = vector.load %arg2[%c12, %c0_41, %c0_42] : memref<16x32x16xbf16, #tpu.memory_space<vmem>>, vector<1x32x16xbf16>
    %57 = vector.shape_cast %56 : vector<1x32x16xbf16> to vector<32x16xbf16>
    %cst_43 = arith.constant dense<0.000000e+00> : vector<32x128xf32>
    %58 = tpu.matmul %57, %55, %cst_43 {dimension_numbers = #tpu.dot_dimension_numbers<[1], [0], [0], [1], [0, 0, 1, 1], [], []>} : vector<32x16xbf16>, vector<16x128xbf16>, vector<32x128xf32> -> vector<32x128xf32>
    %59 = arith.addf %54, %58 : vector<32x128xf32>
    %60 = vector.extract_strided_slice %44 {offsets = [0, 10], sizes = [16, 128], strides = [1, 1]} : vector<16x256xbf16> to vector<16x128xbf16>
    %c14 = arith.constant 14 : index
    %c0_44 = arith.constant 0 : index
    %c0_45 = arith.constant 0 : index
    %61 = vector.load %arg2[%c14, %c0_44, %c0_45] : memref<16x32x16xbf16, #tpu.memory_space<vmem>>, vector<1x32x16xbf16>
    %62 = vector.shape_cast %61 : vector<1x32x16xbf16> to vector<32x16xbf16>
    %cst_46 = arith.constant dense<0.000000e+00> : vector<32x128xf32>
    %63 = tpu.matmul %62, %60, %cst_46 {dimension_numbers = #tpu.dot_dimension_numbers<[1], [0], [0], [1], [0, 0, 1, 1], [], []>} : vector<32x16xbf16>, vector<16x128xbf16>, vector<32x128xf32> -> vector<32x128xf32>
    %64 = arith.addf %59, %63 : vector<32x128xf32>
    %c0_47 = arith.constant 0 : index
    %c3_48 = arith.constant 3 : index
    %c0_49 = arith.constant 0 : index
    %c0_50 = arith.constant 0 : index
    %65 = vector.load %arg1[%c0_47, %c3_48, %c0_49, %c0_50] : memref<1x4x16x256xbf16, #tpu.memory_space<vmem>>, vector<1x1x16x256xbf16>
    %66 = vector.shape_cast %65 : vector<1x1x16x256xbf16> to vector<16x256xbf16>
    %67 = vector.extract_strided_slice %66 {offsets = [0, 0], sizes = [16, 128], strides = [1, 1]} : vector<16x256xbf16> to vector<16x128xbf16>
    %c5 = arith.constant 5 : index
    %c0_51 = arith.constant 0 : index
    %c0_52 = arith.constant 0 : index
    %68 = vector.load %arg2[%c5, %c0_51, %c0_52] : memref<16x32x16xbf16, #tpu.memory_space<vmem>>, vector<1x32x16xbf16>
    %69 = vector.shape_cast %68 : vector<1x32x16xbf16> to vector<32x16xbf16>
    %cst_53 = arith.constant dense<0.000000e+00> : vector<32x128xf32>
    %70 = tpu.matmul %69, %67, %cst_53 {dimension_numbers = #tpu.dot_dimension_numbers<[1], [0], [0], [1], [0, 0, 1, 1], [], []>} : vector<32x16xbf16>, vector<16x128xbf16>, vector<32x128xf32> -> vector<32x128xf32>
    %71 = arith.addf %64, %70 : vector<32x128xf32>
    %72 = vector.extract_strided_slice %66 {offsets = [0, 1], sizes = [16, 128], strides = [1, 1]} : vector<16x256xbf16> to vector<16x128xbf16>
    %c7 = arith.constant 7 : index
    %c0_54 = arith.constant 0 : index
    %c0_55 = arith.constant 0 : index
    %73 = vector.load %arg2[%c7, %c0_54, %c0_55] : memref<16x32x16xbf16, #tpu.memory_space<vmem>>, vector<1x32x16xbf16>
    %74 = vector.shape_cast %73 : vector<1x32x16xbf16> to vector<32x16xbf16>
    %cst_56 = arith.constant dense<0.000000e+00> : vector<32x128xf32>
    %75 = tpu.matmul %74, %72, %cst_56 {dimension_numbers = #tpu.dot_dimension_numbers<[1], [0], [0], [1], [0, 0, 1, 1], [], []>} : vector<32x16xbf16>, vector<16x128xbf16>, vector<32x128xf32> -> vector<32x128xf32>
    %76 = arith.addf %71, %75 : vector<32x128xf32>
    %77 = vector.extract_strided_slice %66 {offsets = [0, 9], sizes = [16, 128], strides = [1, 1]} : vector<16x256xbf16> to vector<16x128xbf16>
    %c13 = arith.constant 13 : index
    %c0_57 = arith.constant 0 : index
    %c0_58 = arith.constant 0 : index
    %78 = vector.load %arg2[%c13, %c0_57, %c0_58] : memref<16x32x16xbf16, #tpu.memory_space<vmem>>, vector<1x32x16xbf16>
    %79 = vector.shape_cast %78 : vector<1x32x16xbf16> to vector<32x16xbf16>
    %cst_59 = arith.constant dense<0.000000e+00> : vector<32x128xf32>
    %80 = tpu.matmul %79, %77, %cst_59 {dimension_numbers = #tpu.dot_dimension_numbers<[1], [0], [0], [1], [0, 0, 1, 1], [], []>} : vector<32x16xbf16>, vector<16x128xbf16>, vector<32x128xf32> -> vector<32x128xf32>
    %81 = arith.addf %76, %80 : vector<32x128xf32>
    %82 = vector.extract_strided_slice %66 {offsets = [0, 10], sizes = [16, 128], strides = [1, 1]} : vector<16x256xbf16> to vector<16x128xbf16>
    %c15 = arith.constant 15 : index
    %c0_60 = arith.constant 0 : index
    %c0_61 = arith.constant 0 : index
    %83 = vector.load %arg2[%c15, %c0_60, %c0_61] : memref<16x32x16xbf16, #tpu.memory_space<vmem>>, vector<1x32x16xbf16>
    %84 = vector.shape_cast %83 : vector<1x32x16xbf16> to vector<32x16xbf16>
    %cst_62 = arith.constant dense<0.000000e+00> : vector<32x128xf32>
    %85 = tpu.matmul %84, %82, %cst_62 {dimension_numbers = #tpu.dot_dimension_numbers<[1], [0], [0], [1], [0, 0, 1, 1], [], []>} : vector<32x16xbf16>, vector<16x128xbf16>, vector<32x128xf32> -> vector<32x128xf32>
    %86 = arith.addf %81, %85 : vector<32x128xf32>
    %c0_63 = arith.constant 0 : index
    %c0_64 = arith.constant 0 : index
    %c0_65 = arith.constant 0 : index
    %87 = vector.load %arg4[%c0_63, %c0_64, %c0_65] : memref<1x32x128xf32, #tpu.memory_space<vmem>>, vector<1x32x128xf32>
    %88 = vector.shape_cast %87 : vector<1x32x128xf32> to vector<32x128xf32>
    %89 = vector.shape_cast %86 : vector<32x128xf32> to vector<1x32x128xf32>
    tpu.vector_store %arg4[%c0_63, %c0_64, %c0_65], %89 {strides = array<i32>} : memref<1x32x128xf32, #tpu.memory_space<vmem>>, vector<1x32x128xf32>,
    %c0_66 = arith.constant 0 : index
    %c0_67 = arith.constant 0 : index
    %90 = vector.load %arg3[%c0_66, %c0_67] : memref<1x128xf32, #tpu.memory_space<vmem>>, vector<1x128xf32>
    %91 = vector.broadcast %90 : vector<1x128xf32> to vector<32x128xf32>
    %92 = arith.mulf %86, %91 : vector<32x128xf32>
    %cst_68 = arith.constant dense<0.000000e+00> : vector<32xf32>
    %93 = vector.multi_reduction <add>, %92, %cst_68 [1] : vector<32x128xf32> to vector<32xf32>
    %94 = vector.shape_cast %93 : vector<32xf32> to vector<32x1xf32>
    %c0_69 = arith.constant 0 : index
    %c0_70 = arith.constant 0 : index
    %c0_71 = arith.constant 0 : index
    %95 = vector.load %arg5[%c0_69, %c0_70, %c0_71] : memref<1x32x2xf32, #tpu.memory_space<vmem>>, vector<1x32x1xf32>
    %96 = vector.shape_cast %95 : vector<1x32x1xf32> to vector<32x1xf32>
    %97 = vector.shape_cast %94 : vector<32x1xf32> to vector<1x32x1xf32>
    tpu.vector_store %arg5[%c0_69, %c0_70, %c0_71], %97 {strides = array<i32>} : memref<1x32x2xf32, #tpu.memory_space<vmem>>, vector<1x32x1xf32>,
    %98 = arith.mulf %86, %92 : vector<32x128xf32>
    %cst_72 = arith.constant dense<0.000000e+00> : vector<32xf32>
    %99 = vector.multi_reduction <add>, %98, %cst_72 [1] : vector<32x128xf32> to vector<32xf32>
    %100 = vector.shape_cast %99 : vector<32xf32> to vector<32x1xf32>
    %c0_73 = arith.constant 0 : index
    %c0_74 = arith.constant 0 : index
    %c1_75 = arith.constant 1 : index
    %101 = vector.load %arg5[%c0_73, %c0_74, %c1_75] : memref<1x32x2xf32, #tpu.memory_space<vmem>>, vector<1x32x1xf32>
    %102 = vector.shape_cast %101 : vector<1x32x1xf32> to vector<32x1xf32>
    %103 = vector.shape_cast %100 : vector<32x1xf32> to vector<1x32x1xf32>
    tpu.vector_store %arg5[%c0_73, %c0_74, %c1_75], %103 {strides = array<i32>} : memref<1x32x2xf32, #tpu.memory_space<vmem>>, vector<1x32x1xf32>,
    return
  }
  func.func @transform_0(%arg0: i32) -> (i32, i32, i32, i32) {
    %c0_i32 = arith.constant 0 : i32
    %c0_i32_0 = arith.constant 0 : i32
    %c0_i32_1 = arith.constant 0 : i32
    %c0_i32_2 = arith.constant 0 : i32
    return %arg0, %c0_i32, %c0_i32_0, %c0_i32_1 : i32, i32, i32, i32
  }
  func.func @transform_1(%arg0: i32) -> (i32, i32, i32) {
    %c0_i32 = arith.constant 0 : i32
    %c0_i32_0 = arith.constant 0 : i32
    %c0_i32_1 = arith.constant 0 : i32
    %c0_i32_2 = arith.constant 0 : i32
    return %c0_i32, %c0_i32_0, %c0_i32_1 : i32, i32, i32
  }
  func.func @transform_2(%arg0: i32) -> (i32, i32) {
    %c0_i32 = arith.constant 0 : i32
    %c0_i32_0 = arith.constant 0 : i32
    %c0_i32_1 = arith.constant 0 : i32
    return %c0_i32, %c0_i32_0 : i32, i32
  }
  func.func @transform_3(%arg0: i32) -> (i32, i32, i32) {
    %c0_i32 = arith.constant 0 : i32
    %c0_i32_0 = arith.constant 0 : i32
    %c0_i32_1 = arith.constant 0 : i32
    return %arg0, %c0_i32, %c0_i32_0 : i32, i32, i32
  }
  func.func @transform_4(%arg0: i32) -> (i32, i32, i32) {
    %c0_i32 = arith.constant 0 : i32
    %c0_i32_0 = arith.constant 0 : i32
    %c0_i32_1 = arith.constant 0 : i32
    return %arg0, %c0_i32, %c0_i32_0 : i32, i32, i32
  }
}

module attributes {stable_mosaic.version = 11 : i64} {
  func.func @_bn_lrelu_kernel(%arg0: i32, %arg1: memref<1x32x128xf32, #tpu.memory_space<vmem>>, %arg2: memref<32x2xf32, #tpu.memory_space<vmem>>, %arg3: memref<1x32x128xbf16, #tpu.memory_space<vmem>>) attributes {dimension_semantics = [#tpu.dimension_semantics<parallel>], iteration_bounds = array<i64: 2>, scalar_prefetch = 0 : i64, scratch_operands = 0 : i64, tpu.core_type = #tpu.core_type<tc>, window_params = [{transform_indices = @transform_0, window_bounds = array<i64: 1, 32, 128>}, {pipeline_mode = #tpu.pipeline_mode<synchronous>, transform_indices = @transform_1, window_bounds = array<i64: 32, 2>}, {transform_indices = @transform_2, window_bounds = array<i64: 1, 32, 128>}]} {
    %c0 = arith.constant 0 : index
    %c0_0 = arith.constant 0 : index
    %c0_1 = arith.constant 0 : index
    %0 = vector.load %arg1[%c0, %c0_0, %c0_1] : memref<1x32x128xf32, #tpu.memory_space<vmem>>, vector<1x32x128xf32>
    %1 = vector.shape_cast %0 : vector<1x32x128xf32> to vector<32x128xf32>
    %c0_2 = arith.constant 0 : index
    %c0_3 = arith.constant 0 : index
    %2 = vector.load %arg2[%c0_2, %c0_3] : memref<32x2xf32, #tpu.memory_space<vmem>>, vector<32x1xf32>
    %3 = vector.broadcast %2 : vector<32x1xf32> to vector<32x128xf32>
    %4 = arith.mulf %1, %3 : vector<32x128xf32>
    %c0_4 = arith.constant 0 : index
    %c1 = arith.constant 1 : index
    %5 = vector.load %arg2[%c0_4, %c1] : memref<32x2xf32, #tpu.memory_space<vmem>>, vector<32x1xf32>
    %6 = vector.broadcast %5 : vector<32x1xf32> to vector<32x128xf32>
    %7 = arith.addf %4, %6 : vector<32x128xf32>
    %cst = arith.constant 0.000000e+00 : f32
    %8 = vector.broadcast %cst : f32 to vector<32x128xf32>
    %9 = arith.cmpf ogt, %7, %8 : vector<32x128xf32>
    %cst_5 = arith.constant 2.000000e-01 : f32
    %10 = vector.broadcast %cst_5 : f32 to vector<32x128xf32>
    %11 = arith.mulf %10, %7 : vector<32x128xf32>
    %12 = arith.select %9, %7, %11 : vector<32x128xi1>, vector<32x128xf32>
    %13 = arith.truncf %12 : vector<32x128xf32> to vector<32x128xbf16>
    %c0_6 = arith.constant 0 : index
    %c0_7 = arith.constant 0 : index
    %c0_8 = arith.constant 0 : index
    %14 = vector.load %arg3[%c0_6, %c0_7, %c0_8] : memref<1x32x128xbf16, #tpu.memory_space<vmem>>, vector<1x32x128xbf16>
    %15 = vector.shape_cast %14 : vector<1x32x128xbf16> to vector<32x128xbf16>
    %16 = vector.shape_cast %13 : vector<32x128xbf16> to vector<1x32x128xbf16>
    tpu.vector_store %arg3[%c0_6, %c0_7, %c0_8], %16 {strides = array<i32>} : memref<1x32x128xbf16, #tpu.memory_space<vmem>>, vector<1x32x128xbf16>,
    return
  }
  func.func @transform_0(%arg0: i32) -> (i32, i32, i32) {
    %c0_i32 = arith.constant 0 : i32
    %c0_i32_0 = arith.constant 0 : i32
    %c0_i32_1 = arith.constant 0 : i32
    return %arg0, %c0_i32, %c0_i32_0 : i32, i32, i32
  }
  func.func @transform_1(%arg0: i32) -> (i32, i32) {
    %c0_i32 = arith.constant 0 : i32
    %c0_i32_0 = arith.constant 0 : i32
    %c0_i32_1 = arith.constant 0 : i32
    return %c0_i32, %c0_i32_0 : i32, i32
  }
  func.func @transform_2(%arg0: i32) -> (i32, i32, i32) {
    %c0_i32 = arith.constant 0 : i32
    %c0_i32_0 = arith.constant 0 : i32
    %c0_i32_1 = arith.constant 0 : i32
    return %arg0, %c0_i32, %c0_i32_0 : i32, i32, i32
  }
}

module attributes {stable_mosaic.version = 11 : i64} {
  func.func @_conv_stats_kernel(%arg0: i32, %arg1: memref<1x4x32x256xbf16, #tpu.memory_space<vmem>>, %arg2: memref<16x64x32xbf16, #tpu.memory_space<vmem>>, %arg3: memref<1x128xf32, #tpu.memory_space<vmem>>, %arg4: memref<1x64x128xf32, #tpu.memory_space<vmem>>, %arg5: memref<1x64x2xf32, #tpu.memory_space<vmem>>) attributes {dimension_semantics = [#tpu.dimension_semantics<parallel>], iteration_bounds = array<i64: 2>, scalar_prefetch = 0 : i64, scratch_operands = 0 : i64, tpu.core_type = #tpu.core_type<tc>, window_params = [{transform_indices = @transform_0, window_bounds = array<i64: 1, 4, 32, 256>}, {pipeline_mode = #tpu.pipeline_mode<synchronous>, transform_indices = @transform_1, window_bounds = array<i64: 16, 64, 32>}, {pipeline_mode = #tpu.pipeline_mode<synchronous>, transform_indices = @transform_2, window_bounds = array<i64: 1, 128>}, {transform_indices = @transform_3, window_bounds = array<i64: 1, 64, 128>}, {transform_indices = @transform_4, window_bounds = array<i64: 1, 64, 2>}]} {
    %c0 = arith.constant 0 : index
    %c0_0 = arith.constant 0 : index
    %c0_1 = arith.constant 0 : index
    %c0_2 = arith.constant 0 : index
    %0 = vector.load %arg1[%c0, %c0_0, %c0_1, %c0_2] : memref<1x4x32x256xbf16, #tpu.memory_space<vmem>>, vector<1x1x32x256xbf16>
    %1 = vector.shape_cast %0 : vector<1x1x32x256xbf16> to vector<32x256xbf16>
    %2 = vector.extract_strided_slice %1 {offsets = [0, 0], sizes = [32, 128], strides = [1, 1]} : vector<32x256xbf16> to vector<32x128xbf16>
    %c0_3 = arith.constant 0 : index
    %c0_4 = arith.constant 0 : index
    %c0_5 = arith.constant 0 : index
    %3 = vector.load %arg2[%c0_3, %c0_4, %c0_5] : memref<16x64x32xbf16, #tpu.memory_space<vmem>>, vector<1x64x32xbf16>
    %4 = vector.shape_cast %3 : vector<1x64x32xbf16> to vector<64x32xbf16>
    %cst = arith.constant dense<0.000000e+00> : vector<64x128xf32>
    %5 = tpu.matmul %4, %2, %cst {dimension_numbers = #tpu.dot_dimension_numbers<[1], [0], [0], [1], [0, 0, 1, 1], [], []>} : vector<64x32xbf16>, vector<32x128xbf16>, vector<64x128xf32> -> vector<64x128xf32>
    %6 = vector.extract_strided_slice %1 {offsets = [0, 1], sizes = [32, 128], strides = [1, 1]} : vector<32x256xbf16> to vector<32x128xbf16>
    %c2 = arith.constant 2 : index
    %c0_6 = arith.constant 0 : index
    %c0_7 = arith.constant 0 : index
    %7 = vector.load %arg2[%c2, %c0_6, %c0_7] : memref<16x64x32xbf16, #tpu.memory_space<vmem>>, vector<1x64x32xbf16>
    %8 = vector.shape_cast %7 : vector<1x64x32xbf16> to vector<64x32xbf16>
    %cst_8 = arith.constant dense<0.000000e+00> : vector<64x128xf32>
    %9 = tpu.matmul %8, %6, %cst_8 {dimension_numbers = #tpu.dot_dimension_numbers<[1], [0], [0], [1], [0, 0, 1, 1], [], []>} : vector<64x32xbf16>, vector<32x128xbf16>, vector<64x128xf32> -> vector<64x128xf32>
    %10 = arith.addf %5, %9 : vector<64x128xf32>
    %11 = vector.extract_strided_slice %1 {offsets = [0, 5], sizes = [32, 128], strides = [1, 1]} : vector<32x256xbf16> to vector<32x128xbf16>
    %c8 = arith.constant 8 : index
    %c0_9 = arith.constant 0 : index
    %c0_10 = arith.constant 0 : index
    %12 = vector.load %arg2[%c8, %c0_9, %c0_10] : memref<16x64x32xbf16, #tpu.memory_space<vmem>>, vector<1x64x32xbf16>
    %13 = vector.shape_cast %12 : vector<1x64x32xbf16> to vector<64x32xbf16>
    %cst_11 = arith.constant dense<0.000000e+00> : vector<64x128xf32>
    %14 = tpu.matmul %13, %11, %cst_11 {dimension_numbers = #tpu.dot_dimension_numbers<[1], [0], [0], [1], [0, 0, 1, 1], [], []>} : vector<64x32xbf16>, vector<32x128xbf16>, vector<64x128xf32> -> vector<64x128xf32>
    %15 = arith.addf %10, %14 : vector<64x128xf32>
    %16 = vector.extract_strided_slice %1 {offsets = [0, 6], sizes = [32, 128], strides = [1, 1]} : vector<32x256xbf16> to vector<32x128xbf16>
    %c10 = arith.constant 10 : index
    %c0_12 = arith.constant 0 : index
    %c0_13 = arith.constant 0 : index
    %17 = vector.load %arg2[%c10, %c0_12, %c0_13] : memref<16x64x32xbf16, #tpu.memory_space<vmem>>, vector<1x64x32xbf16>
    %18 = vector.shape_cast %17 : vector<1x64x32xbf16> to vector<64x32xbf16>
    %cst_14 = arith.constant dense<0.000000e+00> : vector<64x128xf32>
    %19 = tpu.matmul %18, %16, %cst_14 {dimension_numbers = #tpu.dot_dimension_numbers<[1], [0], [0], [1], [0, 0, 1, 1], [], []>} : vector<64x32xbf16>, vector<32x128xbf16>, vector<64x128xf32> -> vector<64x128xf32>
    %20 = arith.addf %15, %19 : vector<64x128xf32>
    %c0_15 = arith.constant 0 : index
    %c1 = arith.constant 1 : index
    %c0_16 = arith.constant 0 : index
    %c0_17 = arith.constant 0 : index
    %21 = vector.load %arg1[%c0_15, %c1, %c0_16, %c0_17] : memref<1x4x32x256xbf16, #tpu.memory_space<vmem>>, vector<1x1x32x256xbf16>
    %22 = vector.shape_cast %21 : vector<1x1x32x256xbf16> to vector<32x256xbf16>
    %23 = vector.extract_strided_slice %22 {offsets = [0, 0], sizes = [32, 128], strides = [1, 1]} : vector<32x256xbf16> to vector<32x128xbf16>
    %c1_18 = arith.constant 1 : index
    %c0_19 = arith.constant 0 : index
    %c0_20 = arith.constant 0 : index
    %24 = vector.load %arg2[%c1_18, %c0_19, %c0_20] : memref<16x64x32xbf16, #tpu.memory_space<vmem>>, vector<1x64x32xbf16>
    %25 = vector.shape_cast %24 : vector<1x64x32xbf16> to vector<64x32xbf16>
    %cst_21 = arith.constant dense<0.000000e+00> : vector<64x128xf32>
    %26 = tpu.matmul %25, %23, %cst_21 {dimension_numbers = #tpu.dot_dimension_numbers<[1], [0], [0], [1], [0, 0, 1, 1], [], []>} : vector<64x32xbf16>, vector<32x128xbf16>, vector<64x128xf32> -> vector<64x128xf32>
    %27 = arith.addf %20, %26 : vector<64x128xf32>
    %28 = vector.extract_strided_slice %22 {offsets = [0, 1], sizes = [32, 128], strides = [1, 1]} : vector<32x256xbf16> to vector<32x128xbf16>
    %c3 = arith.constant 3 : index
    %c0_22 = arith.constant 0 : index
    %c0_23 = arith.constant 0 : index
    %29 = vector.load %arg2[%c3, %c0_22, %c0_23] : memref<16x64x32xbf16, #tpu.memory_space<vmem>>, vector<1x64x32xbf16>
    %30 = vector.shape_cast %29 : vector<1x64x32xbf16> to vector<64x32xbf16>
    %cst_24 = arith.constant dense<0.000000e+00> : vector<64x128xf32>
    %31 = tpu.matmul %30, %28, %cst_24 {dimension_numbers = #tpu.dot_dimension_numbers<[1], [0], [0], [1], [0, 0, 1, 1], [], []>} : vector<64x32xbf16>, vector<32x128xbf16>, vector<64x128xf32> -> vector<64x128xf32>
    %32 = arith.addf %27, %31 : vector<64x128xf32>
    %33 = vector.extract_strided_slice %22 {offsets = [0, 5], sizes = [32, 128], strides = [1, 1]} : vector<32x256xbf16> to vector<32x128xbf16>
    %c9 = arith.constant 9 : index
    %c0_25 = arith.constant 0 : index
    %c0_26 = arith.constant 0 : index
    %34 = vector.load %arg2[%c9, %c0_25, %c0_26] : memref<16x64x32xbf16, #tpu.memory_space<vmem>>, vector<1x64x32xbf16>
    %35 = vector.shape_cast %34 : vector<1x64x32xbf16> to vector<64x32xbf16>
    %cst_27 = arith.constant dense<0.000000e+00> : vector<64x128xf32>
    %36 = tpu.matmul %35, %33, %cst_27 {dimension_numbers = #tpu.dot_dimension_numbers<[1], [0], [0], [1], [0, 0, 1, 1], [], []>} : vector<64x32xbf16>, vector<32x128xbf16>, vector<64x128xf32> -> vector<64x128xf32>
    %37 = arith.addf %32, %36 : vector<64x128xf32>
    %38 = vector.extract_strided_slice %22 {offsets = [0, 6], sizes = [32, 128], strides = [1, 1]} : vector<32x256xbf16> to vector<32x128xbf16>
    %c11 = arith.constant 11 : index
    %c0_28 = arith.constant 0 : index
    %c0_29 = arith.constant 0 : index
    %39 = vector.load %arg2[%c11, %c0_28, %c0_29] : memref<16x64x32xbf16, #tpu.memory_space<vmem>>, vector<1x64x32xbf16>
    %40 = vector.shape_cast %39 : vector<1x64x32xbf16> to vector<64x32xbf16>
    %cst_30 = arith.constant dense<0.000000e+00> : vector<64x128xf32>
    %41 = tpu.matmul %40, %38, %cst_30 {dimension_numbers = #tpu.dot_dimension_numbers<[1], [0], [0], [1], [0, 0, 1, 1], [], []>} : vector<64x32xbf16>, vector<32x128xbf16>, vector<64x128xf32> -> vector<64x128xf32>
    %42 = arith.addf %37, %41 : vector<64x128xf32>
    %c0_31 = arith.constant 0 : index
    %c2_32 = arith.constant 2 : index
    %c0_33 = arith.constant 0 : index
    %c0_34 = arith.constant 0 : index
    %43 = vector.load %arg1[%c0_31, %c2_32, %c0_33, %c0_34] : memref<1x4x32x256xbf16, #tpu.memory_space<vmem>>, vector<1x1x32x256xbf16>
    %44 = vector.shape_cast %43 : vector<1x1x32x256xbf16> to vector<32x256xbf16>
    %45 = vector.extract_strided_slice %44 {offsets = [0, 0], sizes = [32, 128], strides = [1, 1]} : vector<32x256xbf16> to vector<32x128xbf16>
    %c4 = arith.constant 4 : index
    %c0_35 = arith.constant 0 : index
    %c0_36 = arith.constant 0 : index
    %46 = vector.load %arg2[%c4, %c0_35, %c0_36] : memref<16x64x32xbf16, #tpu.memory_space<vmem>>, vector<1x64x32xbf16>
    %47 = vector.shape_cast %46 : vector<1x64x32xbf16> to vector<64x32xbf16>
    %cst_37 = arith.constant dense<0.000000e+00> : vector<64x128xf32>
    %48 = tpu.matmul %47, %45, %cst_37 {dimension_numbers = #tpu.dot_dimension_numbers<[1], [0], [0], [1], [0, 0, 1, 1], [], []>} : vector<64x32xbf16>, vector<32x128xbf16>, vector<64x128xf32> -> vector<64x128xf32>
    %49 = arith.addf %42, %48 : vector<64x128xf32>
    %50 = vector.extract_strided_slice %44 {offsets = [0, 1], sizes = [32, 128], strides = [1, 1]} : vector<32x256xbf16> to vector<32x128xbf16>
    %c6 = arith.constant 6 : index
    %c0_38 = arith.constant 0 : index
    %c0_39 = arith.constant 0 : index
    %51 = vector.load %arg2[%c6, %c0_38, %c0_39] : memref<16x64x32xbf16, #tpu.memory_space<vmem>>, vector<1x64x32xbf16>
    %52 = vector.shape_cast %51 : vector<1x64x32xbf16> to vector<64x32xbf16>
    %cst_40 = arith.constant dense<0.000000e+00> : vector<64x128xf32>
    %53 = tpu.matmul %52, %50, %cst_40 {dimension_numbers = #tpu.dot_dimension_numbers<[1], [0], [0], [1], [0, 0, 1, 1], [], []>} : vector<64x32xbf16>, vector<32x128xbf16>, vector<64x128xf32> -> vector<64x128xf32>
    %54 = arith.addf %49, %53 : vector<64x128xf32>
    %55 = vector.extract_strided_slice %44 {offsets = [0, 5], sizes = [32, 128], strides = [1, 1]} : vector<32x256xbf16> to vector<32x128xbf16>
    %c12 = arith.constant 12 : index
    %c0_41 = arith.constant 0 : index
    %c0_42 = arith.constant 0 : index
    %56 = vector.load %arg2[%c12, %c0_41, %c0_42] : memref<16x64x32xbf16, #tpu.memory_space<vmem>>, vector<1x64x32xbf16>
    %57 = vector.shape_cast %56 : vector<1x64x32xbf16> to vector<64x32xbf16>
    %cst_43 = arith.constant dense<0.000000e+00> : vector<64x128xf32>
    %58 = tpu.matmul %57, %55, %cst_43 {dimension_numbers = #tpu.dot_dimension_numbers<[1], [0], [0], [1], [0, 0, 1, 1], [], []>} : vector<64x32xbf16>, vector<32x128xbf16>, vector<64x128xf32> -> vector<64x128xf32>
    %59 = arith.addf %54, %58 : vector<64x128xf32>
    %60 = vector.extract_strided_slice %44 {offsets = [0, 6], sizes = [32, 128], strides = [1, 1]} : vector<32x256xbf16> to vector<32x128xbf16>
    %c14 = arith.constant 14 : index
    %c0_44 = arith.constant 0 : index
    %c0_45 = arith.constant 0 : index
    %61 = vector.load %arg2[%c14, %c0_44, %c0_45] : memref<16x64x32xbf16, #tpu.memory_space<vmem>>, vector<1x64x32xbf16>
    %62 = vector.shape_cast %61 : vector<1x64x32xbf16> to vector<64x32xbf16>
    %cst_46 = arith.constant dense<0.000000e+00> : vector<64x128xf32>
    %63 = tpu.matmul %62, %60, %cst_46 {dimension_numbers = #tpu.dot_dimension_numbers<[1], [0], [0], [1], [0, 0, 1, 1], [], []>} : vector<64x32xbf16>, vector<32x128xbf16>, vector<64x128xf32> -> vector<64x128xf32>
    %64 = arith.addf %59, %63 : vector<64x128xf32>
    %c0_47 = arith.constant 0 : index
    %c3_48 = arith.constant 3 : index
    %c0_49 = arith.constant 0 : index
    %c0_50 = arith.constant 0 : index
    %65 = vector.load %arg1[%c0_47, %c3_48, %c0_49, %c0_50] : memref<1x4x32x256xbf16, #tpu.memory_space<vmem>>, vector<1x1x32x256xbf16>
    %66 = vector.shape_cast %65 : vector<1x1x32x256xbf16> to vector<32x256xbf16>
    %67 = vector.extract_strided_slice %66 {offsets = [0, 0], sizes = [32, 128], strides = [1, 1]} : vector<32x256xbf16> to vector<32x128xbf16>
    %c5 = arith.constant 5 : index
    %c0_51 = arith.constant 0 : index
    %c0_52 = arith.constant 0 : index
    %68 = vector.load %arg2[%c5, %c0_51, %c0_52] : memref<16x64x32xbf16, #tpu.memory_space<vmem>>, vector<1x64x32xbf16>
    %69 = vector.shape_cast %68 : vector<1x64x32xbf16> to vector<64x32xbf16>
    %cst_53 = arith.constant dense<0.000000e+00> : vector<64x128xf32>
    %70 = tpu.matmul %69, %67, %cst_53 {dimension_numbers = #tpu.dot_dimension_numbers<[1], [0], [0], [1], [0, 0, 1, 1], [], []>} : vector<64x32xbf16>, vector<32x128xbf16>, vector<64x128xf32> -> vector<64x128xf32>
    %71 = arith.addf %64, %70 : vector<64x128xf32>
    %72 = vector.extract_strided_slice %66 {offsets = [0, 1], sizes = [32, 128], strides = [1, 1]} : vector<32x256xbf16> to vector<32x128xbf16>
    %c7 = arith.constant 7 : index
    %c0_54 = arith.constant 0 : index
    %c0_55 = arith.constant 0 : index
    %73 = vector.load %arg2[%c7, %c0_54, %c0_55] : memref<16x64x32xbf16, #tpu.memory_space<vmem>>, vector<1x64x32xbf16>
    %74 = vector.shape_cast %73 : vector<1x64x32xbf16> to vector<64x32xbf16>
    %cst_56 = arith.constant dense<0.000000e+00> : vector<64x128xf32>
    %75 = tpu.matmul %74, %72, %cst_56 {dimension_numbers = #tpu.dot_dimension_numbers<[1], [0], [0], [1], [0, 0, 1, 1], [], []>} : vector<64x32xbf16>, vector<32x128xbf16>, vector<64x128xf32> -> vector<64x128xf32>
    %76 = arith.addf %71, %75 : vector<64x128xf32>
    %77 = vector.extract_strided_slice %66 {offsets = [0, 5], sizes = [32, 128], strides = [1, 1]} : vector<32x256xbf16> to vector<32x128xbf16>
    %c13 = arith.constant 13 : index
    %c0_57 = arith.constant 0 : index
    %c0_58 = arith.constant 0 : index
    %78 = vector.load %arg2[%c13, %c0_57, %c0_58] : memref<16x64x32xbf16, #tpu.memory_space<vmem>>, vector<1x64x32xbf16>
    %79 = vector.shape_cast %78 : vector<1x64x32xbf16> to vector<64x32xbf16>
    %cst_59 = arith.constant dense<0.000000e+00> : vector<64x128xf32>
    %80 = tpu.matmul %79, %77, %cst_59 {dimension_numbers = #tpu.dot_dimension_numbers<[1], [0], [0], [1], [0, 0, 1, 1], [], []>} : vector<64x32xbf16>, vector<32x128xbf16>, vector<64x128xf32> -> vector<64x128xf32>
    %81 = arith.addf %76, %80 : vector<64x128xf32>
    %82 = vector.extract_strided_slice %66 {offsets = [0, 6], sizes = [32, 128], strides = [1, 1]} : vector<32x256xbf16> to vector<32x128xbf16>
    %c15 = arith.constant 15 : index
    %c0_60 = arith.constant 0 : index
    %c0_61 = arith.constant 0 : index
    %83 = vector.load %arg2[%c15, %c0_60, %c0_61] : memref<16x64x32xbf16, #tpu.memory_space<vmem>>, vector<1x64x32xbf16>
    %84 = vector.shape_cast %83 : vector<1x64x32xbf16> to vector<64x32xbf16>
    %cst_62 = arith.constant dense<0.000000e+00> : vector<64x128xf32>
    %85 = tpu.matmul %84, %82, %cst_62 {dimension_numbers = #tpu.dot_dimension_numbers<[1], [0], [0], [1], [0, 0, 1, 1], [], []>} : vector<64x32xbf16>, vector<32x128xbf16>, vector<64x128xf32> -> vector<64x128xf32>
    %86 = arith.addf %81, %85 : vector<64x128xf32>
    %c0_63 = arith.constant 0 : index
    %c0_64 = arith.constant 0 : index
    %c0_65 = arith.constant 0 : index
    %87 = vector.load %arg4[%c0_63, %c0_64, %c0_65] : memref<1x64x128xf32, #tpu.memory_space<vmem>>, vector<1x64x128xf32>
    %88 = vector.shape_cast %87 : vector<1x64x128xf32> to vector<64x128xf32>
    %89 = vector.shape_cast %86 : vector<64x128xf32> to vector<1x64x128xf32>
    tpu.vector_store %arg4[%c0_63, %c0_64, %c0_65], %89 {strides = array<i32>} : memref<1x64x128xf32, #tpu.memory_space<vmem>>, vector<1x64x128xf32>,
    %c0_66 = arith.constant 0 : index
    %c0_67 = arith.constant 0 : index
    %90 = vector.load %arg3[%c0_66, %c0_67] : memref<1x128xf32, #tpu.memory_space<vmem>>, vector<1x128xf32>
    %91 = vector.broadcast %90 : vector<1x128xf32> to vector<64x128xf32>
    %92 = arith.mulf %86, %91 : vector<64x128xf32>
    %cst_68 = arith.constant dense<0.000000e+00> : vector<64xf32>
    %93 = vector.multi_reduction <add>, %92, %cst_68 [1] : vector<64x128xf32> to vector<64xf32>
    %94 = vector.shape_cast %93 : vector<64xf32> to vector<64x1xf32>
    %c0_69 = arith.constant 0 : index
    %c0_70 = arith.constant 0 : index
    %c0_71 = arith.constant 0 : index
    %95 = vector.load %arg5[%c0_69, %c0_70, %c0_71] : memref<1x64x2xf32, #tpu.memory_space<vmem>>, vector<1x64x1xf32>
    %96 = vector.shape_cast %95 : vector<1x64x1xf32> to vector<64x1xf32>
    %97 = vector.shape_cast %94 : vector<64x1xf32> to vector<1x64x1xf32>
    tpu.vector_store %arg5[%c0_69, %c0_70, %c0_71], %97 {strides = array<i32>} : memref<1x64x2xf32, #tpu.memory_space<vmem>>, vector<1x64x1xf32>,
    %98 = arith.mulf %86, %92 : vector<64x128xf32>
    %cst_72 = arith.constant dense<0.000000e+00> : vector<64xf32>
    %99 = vector.multi_reduction <add>, %98, %cst_72 [1] : vector<64x128xf32> to vector<64xf32>
    %100 = vector.shape_cast %99 : vector<64xf32> to vector<64x1xf32>
    %c0_73 = arith.constant 0 : index
    %c0_74 = arith.constant 0 : index
    %c1_75 = arith.constant 1 : index
    %101 = vector.load %arg5[%c0_73, %c0_74, %c1_75] : memref<1x64x2xf32, #tpu.memory_space<vmem>>, vector<1x64x1xf32>
    %102 = vector.shape_cast %101 : vector<1x64x1xf32> to vector<64x1xf32>
    %103 = vector.shape_cast %100 : vector<64x1xf32> to vector<1x64x1xf32>
    tpu.vector_store %arg5[%c0_73, %c0_74, %c1_75], %103 {strides = array<i32>} : memref<1x64x2xf32, #tpu.memory_space<vmem>>, vector<1x64x1xf32>,
    return
  }
  func.func @transform_0(%arg0: i32) -> (i32, i32, i32, i32) {
    %c0_i32 = arith.constant 0 : i32
    %c0_i32_0 = arith.constant 0 : i32
    %c0_i32_1 = arith.constant 0 : i32
    %c0_i32_2 = arith.constant 0 : i32
    return %arg0, %c0_i32, %c0_i32_0, %c0_i32_1 : i32, i32, i32, i32
  }
  func.func @transform_1(%arg0: i32) -> (i32, i32, i32) {
    %c0_i32 = arith.constant 0 : i32
    %c0_i32_0 = arith.constant 0 : i32
    %c0_i32_1 = arith.constant 0 : i32
    %c0_i32_2 = arith.constant 0 : i32
    return %c0_i32, %c0_i32_0, %c0_i32_1 : i32, i32, i32
  }
  func.func @transform_2(%arg0: i32) -> (i32, i32) {
    %c0_i32 = arith.constant 0 : i32
    %c0_i32_0 = arith.constant 0 : i32
    %c0_i32_1 = arith.constant 0 : i32
    return %c0_i32, %c0_i32_0 : i32, i32
  }
  func.func @transform_3(%arg0: i32) -> (i32, i32, i32) {
    %c0_i32 = arith.constant 0 : i32
    %c0_i32_0 = arith.constant 0 : i32
    %c0_i32_1 = arith.constant 0 : i32
    return %arg0, %c0_i32, %c0_i32_0 : i32, i32, i32
  }
  func.func @transform_4(%arg0: i32) -> (i32, i32, i32) {
    %c0_i32 = arith.constant 0 : i32
    %c0_i32_0 = arith.constant 0 : i32
    %c0_i32_1 = arith.constant 0 : i32
    return %arg0, %c0_i32, %c0_i32_0 : i32, i32, i32
  }
}

module attributes {stable_mosaic.version = 11 : i64} {
  func.func @_bn_lrelu_head_kernel(%arg0: i32, %arg1: memref<1x64x128xf32, #tpu.memory_space<vmem>>, %arg2: memref<64x2xf32, #tpu.memory_space<vmem>>, %arg3: memref<64x128xf32, #tpu.memory_space<vmem>>, %arg4: memref<1x1xf32, #tpu.memory_space<vmem>>, %arg5: memref<1x1x1xf32, #tpu.memory_space<vmem>>) attributes {dimension_semantics = [#tpu.dimension_semantics<parallel>], iteration_bounds = array<i64: 2>, scalar_prefetch = 0 : i64, scratch_operands = 0 : i64, tpu.core_type = #tpu.core_type<tc>, window_params = [{transform_indices = @transform_0, window_bounds = array<i64: 1, 64, 128>}, {pipeline_mode = #tpu.pipeline_mode<synchronous>, transform_indices = @transform_1, window_bounds = array<i64: 64, 2>}, {pipeline_mode = #tpu.pipeline_mode<synchronous>, transform_indices = @transform_2, window_bounds = array<i64: 64, 128>}, {pipeline_mode = #tpu.pipeline_mode<synchronous>, transform_indices = @transform_3, window_bounds = array<i64: 1, 1>}, {transform_indices = @transform_4, window_bounds = array<i64: 1, 1, 1>}]} {
    %c0 = arith.constant 0 : index
    %c0_0 = arith.constant 0 : index
    %c0_1 = arith.constant 0 : index
    %0 = vector.load %arg1[%c0, %c0_0, %c0_1] : memref<1x64x128xf32, #tpu.memory_space<vmem>>, vector<1x64x128xf32>
    %1 = vector.shape_cast %0 : vector<1x64x128xf32> to vector<64x128xf32>
    %c0_2 = arith.constant 0 : index
    %c0_3 = arith.constant 0 : index
    %2 = vector.load %arg2[%c0_2, %c0_3] : memref<64x2xf32, #tpu.memory_space<vmem>>, vector<64x1xf32>
    %3 = vector.broadcast %2 : vector<64x1xf32> to vector<64x128xf32>
    %4 = arith.mulf %1, %3 : vector<64x128xf32>
    %c0_4 = arith.constant 0 : index
    %c1 = arith.constant 1 : index
    %5 = vector.load %arg2[%c0_4, %c1] : memref<64x2xf32, #tpu.memory_space<vmem>>, vector<64x1xf32>
    %6 = vector.broadcast %5 : vector<64x1xf32> to vector<64x128xf32>
    %7 = arith.addf %4, %6 : vector<64x128xf32>
    %cst = arith.constant 0.000000e+00 : f32
    %8 = vector.broadcast %cst : f32 to vector<64x128xf32>
    %9 = arith.cmpf ogt, %7, %8 : vector<64x128xf32>
    %cst_5 = arith.constant 2.000000e-01 : f32
    %10 = vector.broadcast %cst_5 : f32 to vector<64x128xf32>
    %11 = arith.mulf %10, %7 : vector<64x128xf32>
    %12 = arith.select %9, %7, %11 : vector<64x128xi1>, vector<64x128xf32>
    %c0_6 = arith.constant 0 : index
    %c0_7 = arith.constant 0 : index
    %13 = vector.load %arg3[%c0_6, %c0_7] : memref<64x128xf32, #tpu.memory_space<vmem>>, vector<64x128xf32>
    %14 = arith.mulf %12, %13 : vector<64x128xf32>
    %cst_8 = arith.constant dense<0.000000e+00> : vector<64xf32>
    %15 = vector.multi_reduction <add>, %14, %cst_8 [1] : vector<64x128xf32> to vector<64xf32>
    %16 = vector.shape_cast %15 : vector<64xf32> to vector<64x1xf32>
    %cst_9 = arith.constant dense<0.000000e+00> : vector<1xf32>
    %17 = vector.multi_reduction <add>, %16, %cst_9 [0] : vector<64x1xf32> to vector<1xf32>
    %18 = vector.shape_cast %17 : vector<1xf32> to vector<1x1xf32>
    %c0_10 = arith.constant 0 : index
    %c0_11 = arith.constant 0 : index
    %19 = vector.load %arg4[%c0_10, %c0_11] : memref<1x1xf32, #tpu.memory_space<vmem>>, vector<1x1xf32>
    %20 = arith.addf %18, %19 : vector<1x1xf32>
    %21 = arith.negf %20 : vector<1x1xf32>
    %22 = math.exp %21 : vector<1x1xf32>
    %cst_12 = arith.constant 1.000000e+00 : f32
    %23 = vector.broadcast %cst_12 : f32 to vector<1x1xf32>
    %24 = arith.addf %23, %22 : vector<1x1xf32>
    %25 = arith.divf %23, %24 : vector<1x1xf32>
    %c0_13 = arith.constant 0 : index
    %c0_14 = arith.constant 0 : index
    %c0_15 = arith.constant 0 : index
    %26 = vector.load %arg5[%c0_13, %c0_14, %c0_15] : memref<1x1x1xf32, #tpu.memory_space<vmem>>, vector<1x1x1xf32>
    %27 = vector.shape_cast %26 : vector<1x1x1xf32> to vector<1x1xf32>
    %28 = vector.shape_cast %25 : vector<1x1xf32> to vector<1x1x1xf32>
    tpu.vector_store %arg5[%c0_13, %c0_14, %c0_15], %28 {strides = array<i32>} : memref<1x1x1xf32, #tpu.memory_space<vmem>>, vector<1x1x1xf32>,
    return
  }
  func.func @transform_0(%arg0: i32) -> (i32, i32, i32) {
    %c0_i32 = arith.constant 0 : i32
    %c0_i32_0 = arith.constant 0 : i32
    %c0_i32_1 = arith.constant 0 : i32
    return %arg0, %c0_i32, %c0_i32_0 : i32, i32, i32
  }
  func.func @transform_1(%arg0: i32) -> (i32, i32) {
    %c0_i32 = arith.constant 0 : i32
    %c0_i32_0 = arith.constant 0 : i32
    %c0_i32_1 = arith.constant 0 : i32
    return %c0_i32, %c0_i32_0 : i32, i32
  }
  func.func @transform_2(%arg0: i32) -> (i32, i32) {
    %c0_i32 = arith.constant 0 : i32
    %c0_i32_0 = arith.constant 0 : i32
    %c0_i32_1 = arith.constant 0 : i32
    return %c0_i32, %c0_i32_0 : i32, i32
  }
  func.func @transform_3(%arg0: i32) -> (i32, i32) {
    %c0_i32 = arith.constant 0 : i32
    %c0_i32_0 = arith.constant 0 : i32
    %c0_i32_1 = arith.constant 0 : i32
    return %c0_i32, %c0_i32_0 : i32, i32
  }
  func.func @transform_4(%arg0: i32) -> (i32, i32, i32) {
    %c0_i32 = arith.constant 0 : i32
    %c0_i32_0 = arith.constant 0 : i32
    %c0_i32_1 = arith.constant 0 : i32
    return %arg0, %c0_i32, %c0_i32_0 : i32, i32, i32
  }
}

</mosaic_0001>

<bundles_post_ra>
// kernel: discriminator_forward.7
= control target key start
LH: loop header
LB: loop body
LE: loop exit
PB: predicated region body
PF: predicated region fallthrough
CT: control target
= control target key end

     0   :  { %s5081_s12 = smov 0   ;;  %s6460_s0 = inlined_call_operand.vmem [shape: bf16[2,4,3,1280], index: 0, kind: input, shape index: {}]   ;;  %s6461_s1 = inlined_call_operand.vmem [shape: bf16[16,8,3], index: 1, kind: input, shape index: {}]   ;;  %s6462_s2 = inlined_call_operand.vmem [shape: f32[8,1], index: 2, kind: input, shape index: {}]   ;;  %s6463_s3 = inlined_call_operand.vmem [shape: bf16[2,8,1152], index: 3, kind: output, shape index: {}]  }
   0x1 LB: > { %s4763_s13 = sadd.s32 4294967295, %s5051_s12   ;;  %p4767_p0 = scmp.ge.s32.totalorder %s5051_s12, 1  ;;  %s5051_s12 = sphi %s5081_s12, %s13_s12  }
   0x2   : > { %p137_p1 = scmp.lt.s32.totalorder %s5051_s12, 3 }
   0x4   : > { %p138_p2 = pnand %p4767_p0, %p137_p1 }
   0x5   : > { %p161_p3 = scmp.lt.s32.totalorder (!%p138_p2), %s4763_s13, 1  ;;  %v185_v0 = vlaneseq (!%p138_p2)  ;;  %v5053_v1 = vmov (!%p138_p2), 1983009808   ;;  %s5054_s18 = smov (!%p138_p2), 127   ;;  %v5055_v15 = vmov (!%p138_p2), 0   ;;  %vm257_vm0 = vcmask (!%p138_p2), 1040384  }
   0x6   : > { %141 = sbr.rel (%p138_p2) target bundleno = 686 (0x2ae), region = 32  ;;  %v183_v2 = vunpack.c.l.s4 (!%p138_p2), %v5053_v1  ;;  %320 = vmatprep.mubr.bf16.mxu0 (!%p138_p2), %v5055_v15  ;;  %361 = vmatprep.mubr.bf16.mxu1 (!%p138_p2), %v5055_v15  ;;  %s5056_s19 = smov (!%p138_p2), 95   ;;  %vm243_vm1 = vcmask (!%p138_p2), 1039360   ;;  %vm258_vm2 = vcmask (!%p138_p2), 1041408   ;;  %v5058_v41 = vmov (!%p138_p2), 65535  }
   0x7   : > { %v186_v3 = vshrl.u32 (!%p138_p2), %v185_v0, 7  ;;  %5036 = vset.pattern.permute.xlu0 (!%p138_p2), %v5055_v15  ;;  %s5057_s20 = smov (!%p138_p2), 94   ;;  %v259_v42 = vsel (!%p138_p2), %vm257_vm0, 4294967295, %v5058_v41  ;;  %v5321_v57 = vld [vmem:[%s6461_s1 + $0x8] sm:$0xf] (!%p138_p2)  ;;  %vm253_vm3 = vcmask (!%p138_p2), 23552  }
   0x8   : > { %v184_v4 = vunpack.c.0.s8 (!%p138_p2), %v183_v2  ;;  %v5297_v46 = vsel (!%p138_p2), %vm258_vm2, %v259_v42, 0  ;;  %vm5060_vm4 = vmmov (!%p138_p2), 0   ;;  %vm748_vm5 = vcmask (!%p138_p2), 777216  }
   0x9   : > { %vm1023_vm6 = vcmask (!%p138_p2), 769024  }
   0xa   : > { %v5092_v5 = vsub.s32 (!%p138_p2), %v184_v4, %v186_v3 }
   0xd   : > { %s6465_s13 = smov (!%p161_p3, %s4763_s13), 1 }
   0xe   : > { %s5018_s14 = smul.u32 80, %s6465_s13 }
   0xf   : > { %s5019_s30 = smul.u32 36, %s6465_s13 }
  0x10   : > { %s5097_s17 = scalar_lea.vmem %s6460_s0, %s5018_s14 }
  0x11   : > { %v172_v6 = vld [vmem:[%s5097_s17] sm:$0xff]  ;;  %v173_v7 = vld [vmem:[%s5097_s17 + $0x8] sm:$0xff]  ;;  %v5143_v19 = vld.sshfl [vmem:[%s5097_s17 + $0x10] sm:$0x33 pattern:$0x76325410]  ;;  %s6443_s6 = scalar_lea.vmem %s6463_s3, %s5019_s30 }
  0x12   : > { %v5102_v8 = vrot.slane %v172_v6, %v5092_v5  ;;  %v181_v9 = vcombine.high %v172_v6, %v172_v6  ;;  %v5114_v12 = vrot.slane %v173_v7, %v5092_v5  ;;  %v198_v13 = vcombine.high %v173_v7, %v173_v7  ;;  %v4794_v21 = vld [vmem:[%s5097_s17 + $0x14] sm:$0xff]  ;;  %v4795_v26 = vld [vmem:[%s5097_s17 + $0x1c] sm:$0xff]  ;;  %v5237_v33 = vld.sshfl [vmem:[%s5097_s17 + $0x24] sm:$0x33 pattern:$0x76325410] }
  0x13   : > { %v222_v20 = vcombine.high %v5143_v19, %v5143_v19  ;;  %v1285_v22 = vcombine.high %v4794_v21, %v4794_v21  ;;  %v5193_v23 = vrot.slane %v4794_v21, %v5092_v5  ;;  %v5215_v28 = vrot.slane %v4795_v26, %v5092_v5  ;;  %v4822_v35 = vld [vmem:[%s5097_s17 + $0x28] sm:$0xff]  ;;  %v4823_v50 = vld [vmem:[%s5097_s17 + $0x30] sm:$0xff]  ;;  %v5369_v41 = vld.sshfl [vmem:[%s5097_s17 + $0x38] sm:$0x33 pattern:$0x76325410] }
  0x14   : > { %223 = vrot.lane.b32.xlu1 %v5102_v8, %s5054_s18  ;;  %v5108_v10 = vcombine.high %v5102_v8, %v5102_v8  ;;  %v5111_v11 = vrot.slane %v181_v9, %v5092_v5  ;;  %v5128_v16 = vcombine.high %v5114_v12, %v5114_v12  ;;  %v5131_v17 = vrot.slane %v198_v13, %v5092_v5 }
  0x15   : > { %v5197_v24 = vrot.slane %v1285_v22, %v5092_v5  ;;  %v5203_v25 = vcombine.high %v5193_v23, %v5193_v23  ;;  %v1302_v29 = vcombine.high %v4795_v26, %v4795_v26  ;;  %v5221_v30 = vcombine.high %v5215_v28, %v5215_v28 }
  0x16   : > { %225 = vrot.lane.b32.xlu0 %v5108_v10, %s5054_s18  ;;  %v5120_v14 = vcombine.high %v5111_v11, %v5111_v11  ;;  %v5140_v18 = vcombine.high %v5131_v17, %v5131_v17  ;;  %v1571_v34 = vcombine.high %v5237_v33, %v5237_v33  ;;  %v2401_v36 = vcombine.high %v4822_v35, %v4822_v35 }
  0x17   : > { %v5210_v27 = vcombine.high %v5197_v24, %v5197_v24  ;;  %v5226_v31 = vrot.slane %v1302_v29, %v5092_v5  ;;  %v5285_v38 = vrot.slane %v4822_v35, %v5092_v5  ;;  %v5314_v56 = vrot.slane %v4823_v50, %v5092_v5 }
  0x18   : > { %229 = vrot.lane.b32.xlu1 %v5120_v14, %s5054_s18  ;;  %v5289_v40 = vrot.slane %v2401_v36, %v5092_v5  ;;  %v2418_v59 = vcombine.high %v4823_v50, %v4823_v50  ;;  %v499_v35 = vand.u32 %v5297_v46, %v5108_v10  ;;  %v5377_v42 = vcombine.high %v5369_v41, %v5369_v41 }
  0x19   : > { %v5232_v32 = vcombine.high %v5226_v31, %v5226_v31  ;;  %v5295_v44 = vcombine.high %v5285_v38, %v5285_v38  ;;  %v5329_v62 = vcombine.high %v5314_v56, %v5314_v56 }
  0x1a   : > { %227 = vrot.lane.b32.xlu0 %v5111_v11, %s5054_s18  ;;  %v5304_v48 = vcombine.high %v5289_v40, %v5289_v40  ;;  %v5338_v3 = vrot.slane %v2418_v59, %v5092_v5 }
  0x1c   : > { %233 = vrot.lane.b32.xlu1 %v5128_v16, %s5054_s18  ;;  %v5348_v9 = vcombine.high %v5338_v3, %v5338_v3 }
  0x1e   : > { %231 = vrot.lane.b32.xlu0 %v5114_v12, %s5054_s18 }
  0x20   : > { %237 = vrot.lane.b32.xlu1 %v5140_v18, %s5054_s18 }
  0x22   : > { %235 = vrot.lane.b32.xlu0 %v5131_v17, %s5054_s18 }
  0x24   : > { %241 = vrot.lane.b32.xlu1 %v222_v20, %s5054_s18 }
  0x26   : > { %239 = vrot.lane.b32.xlu0 %v5143_v19, %s5054_s18 }
  0x28   : > { %732 = vrot.lane.b32.xlu1 %v5111_v11, %s5056_s19 }
  0x2a   : > { %730 = vrot.lane.b32.xlu0 %v5108_v10, %s5056_s19 }
  0x2c   : > { %734 = vrot.lane.b32.xlu1 %v5120_v14, %s5056_s19 }
  0x2e   : > { %728 = vrot.lane.b32.xlu0 %v5102_v8, %s5056_s19 }
  0x30   : > { %738 = vrot.lane.b32.xlu1 %v5128_v16, %s5056_s19 }
  0x32   : > { %736 = vrot.lane.b32.xlu0 %v5114_v12, %s5056_s19 }
  0x34   : > { %742 = vrot.lane.b32.xlu1 %v5140_v18, %s5056_s19 }
  0x36   : > { %740 = vrot.lane.b32.xlu0 %v5131_v17, %s5056_s19 }
  0x38   : > { %746 = vrot.lane.b32.xlu1 %v222_v20, %s5056_s19 }
  0x3a   : > { %744 = vrot.lane.b32.xlu0 %v5143_v19, %s5056_s19 }
  0x3c   : > { %1007 = vrot.lane.b32.xlu1 %v5111_v11, %s5057_s20 }
  0x3e   : > { %1005 = vrot.lane.b32.xlu0 %v5108_v10, %s5057_s20 }
  0x40   : > { %1009 = vrot.lane.b32.xlu1 %v5120_v14, %s5057_s20 }
  0x42   : > { %1003 = vrot.lane.b32.xlu0 %v5102_v8, %s5057_s20 }
  0x44   : > { %1013 = vrot.lane.b32.xlu1 %v5128_v16, %s5057_s20 }
  0x46   : > { %1011 = vrot.lane.b32.xlu0 %v5114_v12, %s5057_s20 }
  0x48   : > { %1017 = vrot.lane.b32.xlu1 %v5140_v18, %s5057_s20 }
  0x4a   : > { %1015 = vrot.lane.b32.xlu0 %v5131_v17, %s5057_s20 }
  0x4c   : > { %1021 = vrot.lane.b32.xlu1 %v222_v20, %s5057_s20 }
  0x4e   : > { %1019 = vrot.lane.b32.xlu0 %v5143_v19, %s5057_s20 }
  0x50   : > { %1576 = vrot.lane.b32.xlu1 %v5197_v24, %s5054_s18 }
  0x52   : > { %1574 = vrot.lane.b32.xlu0 %v5203_v25, %s5054_s18 }
  0x54   : > { %1578 = vrot.lane.b32.xlu1 %v5210_v27, %s5054_s18 }
  0x56   : > { %1572 = vrot.lane.b32.xlu0 %v5193_v23, %s5054_s18 }
  0x58   : > { %1582 = vrot.lane.b32.xlu1 %v5221_v30, %s5054_s18 }
  0x5a   : > { %1580 = vrot.lane.b32.xlu0 %v5215_v28, %s5054_s18 }
  0x5c   : > { %1586 = vrot.lane.b32.xlu1 %v5232_v32, %s5054_s18 }
  0x5e   : > { %1584 = vrot.lane.b32.xlu0 %v5226_v31, %s5054_s18 }
  0x60   : > { %1590 = vrot.lane.b32.xlu1 %v1571_v34, %s5054_s18 }
  0x62   : > { %1588 = vrot.lane.b32.xlu0 %v5237_v33, %s5054_s18 }
  0x64   : > { %1850 = vrot.lane.b32.xlu1 %v5197_v24, %s5056_s19 }
  0x66   : > { %1848 = vrot.lane.b32.xlu0 %v5203_v25, %s5056_s19 }
  0x68   : > { %1852 = vrot.lane.b32.xlu1 %v5210_v27, %s5056_s19 }
  0x6a   : > { %1846 = vrot.lane.b32.xlu0 %v5193_v23, %s5056_s19 }
  0x6c   : > { %1856 = vrot.lane.b32.xlu1 %v5221_v30, %s5056_s19 }
  0x6e   : > { %1854 = vrot.lane.b32.xlu0 %v5215_v28, %s5056_s19 }
  0x70   : > { %1860 = vrot.lane.b32.xlu1 %v5232_v32, %s5056_s19 }
  0x72   : > { %1858 = vrot.lane.b32.xlu0 %v5226_v31, %s5056_s19 }
  0x74   : > { %1864 = vrot.lane.b32.xlu1 %v1571_v34, %s5056_s19 }
  0x76   : > { %1862 = vrot.lane.b32.xlu0 %v5237_v33, %s5056_s19 }
  0x78   : > { %2124 = vrot.lane.b32.xlu1 %v5197_v24, %s5057_s20 }
  0x7a   : > { %2122 = vrot.lane.b32.xlu0 %v5203_v25, %s5057_s20 }
  0x7c   : > { %2126 = vrot.lane.b32.xlu1 %v5210_v27, %s5057_s20 }
  0x7e   : > { %2120 = vrot.lane.b32.xlu0 %v5193_v23, %s5057_s20 }
  0x80   : > { %2130 = vrot.lane.b32.xlu1 %v5221_v30, %s5057_s20 }
  0x82   : > { %2128 = vrot.lane.b32.xlu0 %v5215_v28, %s5057_s20 }
  0x84   : > { %2134 = vrot.lane.b32.xlu1 %v5232_v32, %s5057_s20 }
  0x86   : > { %v224_v37 = vpop.permute.xlu1 %223  ;;  %2132 = vrot.lane.b32.xlu0 %v5226_v31, %s5057_s20 }
  0x88   : > { %v226_v39 = vpop.permute.xlu0 %225  ;;  %2138 = vrot.lane.b32.xlu1 %v1571_v34, %s5057_s20  ;;  %v5059_v34 = vmov 0.0  }
  0x89   : > { %v244_v47 = vsel %vm243_vm1, %v224_v37, %v226_v39 }
  0x8a   : > { %v230_v43 = vpop.permute.xlu1 %229  ;;  %2136 = vrot.lane.b32.xlu0 %v5237_v33, %s5057_s20  ;;  %v262_v53 = vand.u32 %v5297_v46, %v244_v47 }
  0x8c   : > { %v228_v45 = vpop.permute.xlu0 %227  ;;  %2692 = vrot.lane.b32.xlu1 %v5289_v40, %s5054_s18 }
  0x8d   : > { %v245_v49 = vsel %vm243_vm1, %v226_v39, %v228_v45  ;;  %v246_v55 = vsel %vm243_vm1, %v228_v45, %v230_v43  ;;  %v505_v39 = vand.u32 %v5297_v46, %v5120_v14  ;;  %v511_v14 = vand.u32 %v5297_v46, %v5128_v16 }
  0x8e   : > { %v265_v51 = vand.u32 %v5297_v46, %v245_v49  ;;  %v234_v52 = vpop.permute.xlu1 %233  ;;  %2690 = vrot.lane.b32.xlu0 %v5295_v44, %s5054_s18  ;;  %v268_v63 = vand.u32 %v5297_v46, %v246_v55  ;;  %v517_v16 = vand.u32 %v5297_v46, %v5140_v18  ;;  %v508_v18 = vand.u32 %v5297_v46, %v5114_v12 }
  0x8f   : > { %v514_v12 = vand.u32 %v5297_v46, %v5131_v17  ;;  %v520_v17 = vand.u32 %v5143_v19, %v5297_v46 }
  0x90   : > { %288 = vmatprep.subr.bf16.mxu0 %v265_v51  ;;  %v232_v54 = vpop.permute.xlu0 %231  ;;  %2694 = vrot.lane.b32.xlu1 %v5304_v48, %s5054_s18 }
  0x91   : > { %289 = vmatpush1.bf16.msra.mxu0 %v262_v53  ;;  %v247_v58 = vsel %vm243_vm1, %v230_v43, %v232_v54  ;;  %v248_v0 = vsel %vm243_vm1, %v232_v54, %v234_v52  ;;  %v496_v43 = vand.u32 %v5297_v46, %v5102_v8  ;;  %v502_v8 = vand.u32 %v5297_v46, %v5111_v11  ;;  %v175_v11 = vld [vmem:[%s6461_s1] sm:$0xf] }
  0x92   : > { %v271_v60 = vand.u32 %v5297_v46, %v247_v58  ;;  %v238_v61 = vpop.permute.xlu1 %237  ;;  %2688 = vrot.lane.b32.xlu0 %v5285_v38, %s5054_s18  ;;  %v274_v7 = vand.u32 %v5297_v46, %v248_v0 }
  0x94   : > { %4772 = vmatmul.mubr.msk.bf16.vlgmr.msra.gmra.mrb[0].mxu0 %vm253_vm3, %v5321_v57  ;;  %v236_v1 = vpop.permute.xlu0 %235  ;;  %329 = vmatprep.subr.bf16.mxu1 %v271_v60 }
  0x95   : > { %v249_v2 = vsel %vm243_vm1, %v234_v52, %v236_v1  ;;  %330 = vmatpush1.bf16.msra.mxu1 %v268_v63  ;;  %402 = vmatprep.mubr.bf16.mxu0 %v5055_v15  ;;  %v250_v13 = vsel %vm243_vm1, %v236_v1, %v238_v61 }
  0x96   : > { %v277_v4 = vand.u32 %v5297_v46, %v249_v2  ;;  %v242_v6 = vpop.permute.xlu1 %241  ;;  %2696 = vrot.lane.b32.xlu0 %v5314_v56, %s5054_s18  ;;  %2698 = vrot.lane.b32.xlu1 %v5329_v62, %s5054_s18  ;;  %v280_v37 = vand.u32 %v5297_v46, %v250_v13 }
  0x98   : > { %v240_v20 = vpop.permute.xlu0 %239  ;;  %4773 = vmatmul.mubr.msk.bf16.vlgmr.msra.gmra.mrb[0].mxu1 %vm253_vm3, %v5321_v57  ;;  %370 = vmatprep.subr.bf16.mxu0 %v277_v4 }
  0x99   : > { %v251_v21 = vsel %vm243_vm1, %v238_v61, %v240_v20  ;;  %v252_v22 = vsel %vm243_vm1, %v240_v20, %v242_v6  ;;  %371 = vmatpush1.bf16.msra.mxu0 %v274_v7  ;;  %443 = vmatprep.mubr.bf16.mxu1 %v5055_v15 }
  0x9a   : > { %v286_v26 = vand.u32 %v5297_v46, %v252_v22  ;;  %v283_v29 = vand.u32 %v5297_v46, %v251_v21  ;;  %4922 = vmatprep.subr.bf16.mxu0 %v5059_v34  ;;  %v5361_v36 = vpop.permute.xlu1 %732  ;;  %2700 = vrot.lane.b32.xlu0 %v5338_v3, %s5054_s18 }
  0x9b   : > { %2702 = vrot.lane.b32.xlu1 %v5348_v9, %s5054_s18 }
  0x9c   : > { %4774 = vmatmul.mubr.msk.bf16.vlgmr.msra.gmra.mrb[4].mxu0 %vm253_vm3, %v5321_v57  ;;  %411 = vmatprep.subr.bf16.mxu1 %v283_v29  ;;  %v731_v10 = vpop.permute.xlu0 %730 }
  0x9d   : > { %412 = vmatpush1.bf16.msra.mxu1 %v280_v37  ;;  %4923 = vmatpush3.bf16.msra.mxu0 %v286_v26  ;;  %v750_v52 = vsel %vm748_vm5, %v731_v10, %v5361_v36 }
  0x9e   : > { %4924 = vmatprep.mubr.msk.bf16.mxu0 %vm5060_vm4, %v5059_v34  ;;  %522 = vmatprep.subr.bf16.mxu1 %v499_v35  ;;  %v735_v45 = vpop.permute.xlu1 %734  ;;  %v765_v54 = vand.u32 %v750_v52, %v5297_v46  ;;  %v4782_v35 = vld [vmem:[%s6461_s1 + $0x20] sm:$0xf] }
  0x9f   : > { %563 = vmatprep.subr.bf16.mxu0 %v505_v39  ;;  %2704 = vrot.lane.b32.xlu0 %v5369_v41, %s5054_s18  ;;  %v751_v1 = vsel %vm748_vm5, %v5361_v36, %v735_v45 }
  0xa0   : > { %4775 = vmatmul.mubr.msk.bf16.vlgmr.msra.gmra.mrb[4].mxu1 %vm253_vm3, %v5321_v57  ;;  %v729_v47 = vpop.permute.xlu0 %728  ;;  %2706 = vrot.lane.b32.xlu1 %v5377_v42, %s5054_s18  ;;  %v768_v13 = vand.u32 %v751_v1, %v5297_v46 }
  0xa1   : > { %523 = vmatpush1.bf16.msra.mxu1 %v496_v43  ;;  %554 = vmatprep.mubr.bf16.mxu1 %v5055_v15  ;;  %v749_v59 = vsel %vm748_vm5, %v729_v47, %v731_v10 }
  0xa2   : > { %604 = vmatprep.subr.bf16.mxu1 %v511_v14  ;;  %v739_v49 = vpop.permute.xlu1 %738  ;;  %v762_v19 = vand.u32 %v749_v59, %v5297_v46 }
  0xa3   : > { %2964 = vrot.lane.b32.xlu0 %v5295_v44, %s5056_s19 }
  0xa4   : > { %4925 = vmatmul.mubr.msk.bf16.vlgmr.msra.gmra.mrb[8].mxu0 %vm253_vm3, %v5321_v57  ;;  %v737_v50 = vpop.permute.xlu0 %736  ;;  %2966 = vrot.lane.b32.xlu1 %v5289_v40, %s5056_s19 }
  0xa5   : > { %564 = vmatpush1.bf16.msra.mxu0 %v502_v8  ;;  %595 = vmatprep.mubr.bf16.mxu0 %v5055_v15  ;;  %v752_v57 = vsel %vm748_vm5, %v735_v45, %v737_v50  ;;  %v753_v20 = vsel %vm748_vm5, %v737_v50, %v739_v49 }
  0xa6   : > { %645 = vmatprep.subr.bf16.mxu0 %v517_v16  ;;  %v743_v51 = vpop.permute.xlu1 %742  ;;  %v771_v60 = vand.u32 %v752_v57, %v5297_v46  ;;  %v774_v29 = vand.u32 %v753_v20, %v5297_v46 }
  0xa7   : > { %2962 = vrot.lane.b32.xlu0 %v5285_v38, %s5056_s19 }
  0xa8   : > { %4777 = vmatmul.mubr.msk.bf16.vlgmr.msra.gmra.mrb[8].mxu1 %vm253_vm3, %v175_v11  ;;  %v741_v53 = vpop.permute.xlu0 %740  ;;  %2968 = vrot.lane.b32.xlu1 %v5304_v48, %s5056_s19 }
  0xa9   : > { %605 = vmatpush1.bf16.msra.mxu1 %v508_v18  ;;  %636 = vmatprep.mubr.bf16.mxu1 %v5055_v15  ;;  %v754_v63 = vsel %vm748_vm5, %v739_v49, %v741_v53  ;;  %v755_v36 = vsel %vm748_vm5, %v741_v53, %v743_v51  ;;  %v4850_v49 = vld [vmem:[%s5097_s17 + $0x3c] sm:$0xff] }
  0xaa   : > { %4928 = vmatprep.subr.bf16.mxu1 %v5059_v34  ;;  %v747_v55 = vpop.permute.xlu1 %746  ;;  %v777_v2 = vand.u32 %v754_v63, %v5297_v46  ;;  %v780_v43 = vand.u32 %v755_v36, %v5297_v46  ;;  %v5502_v53 = vrot.slane %v4850_v49, %v5092_v5 }
  0xab   : > { %2970 = vrot.lane.b32.xlu0 %v5314_v56, %s5056_s19 }
  0xac   : > { %4778 = vmatmul.mubr.msk.bf16.vlgmr.msra.gmra.mrb[12].mxu0 %vm253_vm3, %v175_v11  ;;  %v745_v58 = vpop.permute.xlu0 %744  ;;  %2972 = vrot.lane.b32.xlu1 %v5329_v62, %s5056_s19 }
  0xad   : > { %646 = vmatpush1.bf16.msra.mxu0 %v514_v12  ;;  %677 = vmatprep.mubr.bf16.mxu0 %v5055_v15  ;;  %v756_v6 = vsel %vm748_vm5, %v743_v51, %v745_v58  ;;  %v757_v14 = vsel %vm748_vm5, %v745_v58, %v747_v55 }
  0xae   : > { %788 = vmatprep.subr.bf16.mxu0 %v765_v54  ;;  %v5431_v61 = vpop.permute.xlu1 %1007  ;;  %v783_v21 = vand.u32 %v756_v6, %v5297_v46  ;;  %v786_v50 = vand.u32 %v757_v14, %v5297_v46  ;;  %v3517_v54 = vcombine.high %v4850_v49, %v4850_v49 }
  0xaf   : > { %2974 = vrot.lane.b32.xlu0 %v5338_v3, %s5056_s19 }
  0xb0   : > { %4779 = vmatmul.mubr.msk.bf16.vlgmr.msra.gmra.mrb[12].mxu1 %vm253_vm3, %v175_v11  ;;  %v1006_v0 = vpop.permute.xlu0 %1005  ;;  %2976 = vrot.lane.b32.xlu1 %v5348_v9, %s5056_s19 }
  0xb1   : > { %4929 = vmatpush3.bf16.msra.mxu1 %v520_v17  ;;  %4930 = vmatprep.mubr.msk.bf16.mxu1 %vm5060_vm4, %v5059_v34  ;;  %v1025_v39 = vsel %vm1023_vm6, %v1006_v0, %v5431_v61 }
  0xb2   : > { %829 = vmatprep.subr.bf16.mxu1 %v771_v60  ;;  %v1010_v4 = vpop.permute.xlu1 %1009  ;;  %v1040_v45 = vand.u32 %v1025_v39, %v5297_v46  ;;  %v5523_v60 = vcombine.high %v5502_v53, %v5502_v53  ;;  %v1333_v39 = vand.u32 %v5203_v25, %v5297_v46 }
  0xb3   : > { %2978 = vrot.lane.b32.xlu0 %v5369_v41, %s5056_s19  ;;  %v1026_v57 = vsel %vm1023_vm6, %v5431_v61, %v1010_v4  ;;  %v5531_v61 = vrot.slane %v3517_v54, %v5092_v5 }
  0xb4   : > { %4780 = vmatmul.mubr.msk.bf16.vlgmr.msra.gmra.mrb[16].mxu0 %vm253_vm3, %v175_v11  ;;  %v1004_v7 = vpop.permute.xlu0 %1003  ;;  %2980 = vrot.lane.b32.xlu1 %v5377_v42, %s5056_s19 }
  0xb5   : > { %789 = vmatpush1.bf16.msra.mxu0 %v762_v19  ;;  %820 = vmatprep.mubr.bf16.mxu0 %v5055_v15  ;;  %v5550_v6 = vcombine.high %v5531_v61, %v5531_v61 }
  0xb6   : > { %870 = vmatprep.subr.bf16.mxu0 %v777_v2  ;;  %v5455_v22 = vpop.permute.xlu1 %1013 }
  0xb7   : > { %3238 = vrot.lane.b32.xlu0 %v5295_v44, %s5057_s20 }
  0xb8   : > { %4931 = vmatmul.mubr.msk.bf16.vlgmr.msra.gmra.mrb[16].mxu1 %vm253_vm3, %v175_v11  ;;  %v1012_v26 = vpop.permute.xlu0 %1011  ;;  %3240 = vrot.lane.b32.xlu1 %v5289_v40, %s5057_s20  ;;  %v1024_v11 = vsel %vm1023_vm6, %v1004_v7, %v1006_v0  ;;  %v1043_v0 = vand.u32 %v1026_v57, %v5297_v46 }
  0xb9   : > { %830 = vmatpush1.bf16.msra.mxu1 %v768_v13  ;;  %861 = vmatprep.mubr.bf16.mxu1 %v5055_v15  ;;  %v1027_v8 = vsel %vm1023_vm6, %v1010_v4, %v1012_v26  ;;  %v1037_v55 = vand.u32 %v1024_v11, %v5297_v46  ;;  %v1028_v19 = vsel %vm1023_vm6, %v1012_v26, %v5455_v22  ;;  %v4788_v13 = vld [vmem:[%s6461_s1 + $0x28] sm:$0xf] }
  0xba   : > { %911 = vmatprep.subr.bf16.mxu1 %v783_v21  ;;  %v5468_v37 = vpop.permute.xlu1 %1017  ;;  %v1046_v18 = vand.u32 %v1027_v8, %v5297_v46  ;;  %v1049_v7 = vand.u32 %v1028_v19, %v5297_v46  ;;  %v5607_v8 = vld.sshfl [vmem:[%s5097_s17 + $0x4c] sm:$0x33 pattern:$0x76325410] }
  0xbb   : > { %3236 = vrot.lane.b32.xlu0 %v5285_v38, %s5057_s20  ;;  %v5616_v49 = vcombine.high %v5607_v8, %v5607_v8 }
  0xbc   : > { %4783 = vmatmul.mubr.msk.bf16.vlgmr.msra.gmra.mrb[20].mxu0 %vm253_vm3, %v4782_v35  ;;  %v1016_v10 = vpop.permute.xlu0 %1015  ;;  %3242 = vrot.lane.b32.xlu1 %v5304_v48, %s5057_s20 }
  0xbd   : > { %871 = vmatpush1.bf16.msra.mxu0 %v774_v29  ;;  %902 = vmatprep.mubr.bf16.mxu0 %v5055_v15  ;;  %v1029_v52 = vsel %vm1023_vm6, %v5455_v22, %v1016_v10  ;;  %v1030_v20 = vsel %vm1023_vm6, %v1016_v10, %v5468_v37 }
  0xbe   : > { %4934 = vmatprep.subr.bf16.mxu0 %v5059_v34  ;;  %v5482_v47 = vpop.permute.xlu1 %1021  ;;  %v1052_v58 = vand.u32 %v1029_v52, %v5297_v46  ;;  %v1055_v36 = vand.u32 %v1030_v20, %v5297_v46 }
  0xbf   : > { %3244 = vrot.lane.b32.xlu0 %v5314_v56, %s5057_s20 }
  0xc0   : > { %4784 = vmatmul.mubr.msk.bf16.vlgmr.msra.gmra.mrb[20].mxu1 %vm253_vm3, %v4782_v35  ;;  %v1020_v16 = vpop.permute.xlu0 %1019  ;;  %3246 = vrot.lane.b32.xlu1 %v5329_v62, %s5057_s20 }
  0xc1   : > { %912 = vmatpush1.bf16.msra.mxu1 %v780_v43  ;;  %943 = vmatprep.mubr.bf16.mxu1 %v5055_v15  ;;  %v1031_v59 = vsel %vm1023_vm6, %v5468_v37, %v1020_v16  ;;  %v1032_v37 = vsel %vm1023_vm6, %v1020_v16, %v5482_v47 }
  0xc2   : > { %1063 = vmatprep.subr.bf16.mxu1 %v1040_v45  ;;  %v5495_v51 = vpop.permute.xlu1 %1576  ;;  %v1058_v1 = vand.u32 %v1031_v59, %v5297_v46  ;;  %v1061_v25 = vand.u32 %v1032_v37, %v5297_v46 }
  0xc3   : > { %3248 = vrot.lane.b32.xlu0 %v5338_v3, %s5057_s20 }
  0xc4   : > { %4785 = vmatmul.mubr.msk.bf16.vlgmr.msra.gmra.mrb[24].mxu0 %vm253_vm3, %v4782_v35  ;;  %v5505_v12 = vpop.permute.xlu0 %1574  ;;  %3250 = vrot.lane.b32.xlu1 %v5348_v9, %s5057_s20 }
  0xc5   : > { %4935 = vmatpush3.bf16.msra.mxu0 %v786_v50  ;;  %4936 = vmatprep.mubr.msk.bf16.mxu0 %vm5060_vm4, %v5059_v34  ;;  %v1345_v50 = vand.u32 %v5221_v30, %v5297_v46  ;;  %v1351_v30 = vand.u32 %v5232_v32, %v5297_v46  ;;  %v1342_v32 = vand.u32 %v5215_v28, %v5297_v46 }
  0xc6   : > { %1104 = vmatprep.subr.bf16.mxu0 %v1046_v18  ;;  %v5515_v17 = vpop.permute.xlu1 %1578  ;;  %v1593_v54 = vsel %vm243_vm1, %v5505_v12, %v5495_v51  ;;  %v1348_v28 = vand.u32 %v5226_v31, %v5297_v46  ;;  %v1354_v31 = vand.u32 %v5237_v33, %v5297_v46 }
  0xc7   : > { %3252 = vrot.lane.b32.xlu0 %v5369_v41, %s5057_s20 }
  0xc8   : > { %4786 = vmatmul.mubr.msk.bf16.vlgmr.msra.gmra.mrb[24].mxu1 %vm253_vm3, %v4782_v35  ;;  %v5526_v63 = vpop.permute.xlu0 %1572  ;;  %3254 = vrot.lane.b32.xlu1 %v5377_v42, %s5057_s20  ;;  %v4851_v42 = vld [vmem:[%s5097_s17 + $0x44] sm:$0xff] }
  0xc9   : > { %1064 = vmatpush1.bf16.msra.mxu1 %v1037_v55  ;;  %1095 = vmatprep.mubr.bf16.mxu1 %v5055_v15  ;;  %v5562_v22 = vrot.slane %v4851_v42, %v5092_v5  ;;  %v3534_v26 = vcombine.high %v4851_v42, %v4851_v42 }
  0xca   : > { %1145 = vmatprep.subr.bf16.mxu1 %v1052_v58  ;;  %v5538_v2 = vpop.permute.xlu1 %1582  ;;  %v1608_v58 = vand.u32 %v1593_v54, %v5297_v46 }
  0xcb   : > { %3806 = vrot.lane.b32.xlu0 %v5523_v60, %s5054_s18  ;;  %v5585_v43 = vrot.slane %v3534_v26, %v5092_v5  ;;  %v1339_v5 = vand.u32 %v5210_v27, %v5297_v46  ;;  %v1330_v27 = vand.u32 %v5193_v23, %v5297_v46  ;;  %v1336_v23 = vand.u32 %v5197_v24, %v5297_v46  ;;  %v4797_v24 = vld [vmem:[%s6461_s1 + $0x4] sm:$0xf] }
  0xcc   : > { %4937 = vmatmul.mubr.msk.bf16.vlgmr.msra.gmra.mrb[28].mxu0 %vm253_vm3, %v4782_v35  ;;  %v5544_v4 = vpop.permute.xlu0 %1580  ;;  %3808 = vrot.lane.b32.xlu1 %v5531_v61, %s5054_s18  ;;  %v5573_v35 = vcombine.high %v5562_v22, %v5562_v22 }
  0xcd   : > { %1105 = vmatpush1.bf16.msra.mxu0 %v1043_v0  ;;  %1136 = vmatprep.mubr.bf16.mxu0 %v5055_v15  ;;  %v5596_v45 = vcombine.high %v5585_v43, %v5585_v43  ;;  %v1595_v59 = vsel %vm243_vm1, %v5515_v17, %v5544_v4 }
  0xce   : > { %1186 = vmatprep.subr.bf16.mxu0 %v1058_v1  ;;  %v5559_v21 = vpop.permute.xlu1 %1586  ;;  %v1592_v1 = vsel %vm243_vm1, %v5526_v63, %v5505_v12  ;;  %v1614_v42 = vand.u32 %v1595_v59, %v5297_v46  ;;  %v1594_v12 = vsel %vm243_vm1, %v5495_v51, %v5515_v17  ;;  %v1596_v51 = vsel %vm243_vm1, %v5544_v4, %v5538_v2 }
  0xcf   : > { %3804 = vrot.lane.b32.xlu0 %v5502_v53, %s5054_s18  ;;  %v1605_v33 = vand.u32 %v1592_v1, %v5297_v46 }
  0xd0   : > { %4789 = vmatmul.mubr.msk.bf16.vlgmr.msra.gmra.mrb[28].mxu1 %vm253_vm3, %v4788_v13  ;;  %v5567_v29 = vpop.permute.xlu0 %1584  ;;  %3810 = vrot.lane.b32.xlu1 %v5550_v6, %s5054_s18 }
  0xd1   : > { %1146 = vmatpush1.bf16.msra.mxu1 %v1049_v7  ;;  %1177 = vmatprep.mubr.bf16.mxu1 %v5055_v15  ;;  %v1597_v7 = vsel %vm243_vm1, %v5538_v2, %v5567_v29  ;;  %v4804_v2 = vld [vmem:[%s6461_s1 + $0xc] sm:$0xf] }
  0xd2   : > { %4940 = vmatprep.subr.bf16.mxu1 %v5059_v34  ;;  %v5582_v10 = vpop.permute.xlu1 %1590  ;;  %v1620_v63 = vand.u32 %v1597_v7, %v5297_v46 }
  0xd3   : > { %3812 = vrot.lane.b32.xlu0 %v5562_v22, %s5054_s18 }
  0xd4   : > { %4790 = vmatmul.mubr.msk.bf16.vlgmr.msra.gmra.mrb[32].mxu0 %vm253_vm3, %v4788_v13  ;;  %v5590_v14 = vpop.permute.xlu0 %1588  ;;  %3814 = vrot.lane.b32.xlu1 %v5573_v35, %s5054_s18 }
  0xd5   : > { %1187 = vmatpush1.bf16.msra.mxu0 %v1055_v36  ;;  %1218 = vmatprep.mubr.bf16.mxu0 %v5055_v15  ;;  %v1599_v20 = vsel %vm243_vm1, %v5559_v21, %v5590_v14  ;;  %v1611_v36 = vand.u32 %v1594_v12, %v5297_v46 }
  0xd6   : > { %1356 = vmatprep.subr.bf16.mxu0 %v1333_v39  ;;  %v5602_v47 = vpop.permute.xlu1 %1850  ;;  %v1626_v17 = vand.u32 %v1599_v20, %v5297_v46  ;;  %v1617_v39 = vand.u32 %v1596_v51, %v5297_v46 }
  0xd7   : > { %3816 = vrot.lane.b32.xlu0 %v5585_v43, %s5054_s18 }
  0xd8   : > { %4791 = vmatmul.mubr.msk.bf16.vlgmr.msra.gmra.mrb[32].mxu1 %vm253_vm3, %v4788_v13  ;;  %v5610_v16 = vpop.permute.xlu0 %1848  ;;  %3818 = vrot.lane.b32.xlu1 %v5596_v45, %s5054_s18 }
  0xd9   : > { %4941 = vmatpush3.bf16.msra.mxu1 %v1061_v25  ;;  %4942 = vmatprep.mubr.msk.bf16.mxu1 %vm5060_vm4, %v5059_v34  ;;  %v1598_v25 = vsel %vm243_vm1, %v5567_v29, %v5559_v21  ;;  %v1600_v21 = vsel %vm243_vm1, %v5590_v14, %v5582_v10 }
  0xda   : > { %1397 = vmatprep.subr.bf16.mxu1 %v1339_v5  ;;  %v5634_v18 = vpop.permute.xlu1 %1852  ;;  %v1867_v5 = vsel %vm748_vm5, %v5610_v16, %v5602_v47  ;;  %v1629_v10 = vand.u32 %v1600_v21, %v5297_v46 }
  0xdb   : > { %3820 = vrot.lane.b32.xlu0 %v5607_v8, %s5054_s18  ;;  %v1882_v29 = vand.u32 %v1867_v5, %v5297_v46 }
  0xdc   : > { %4792 = vmatmul.mubr.msk.bf16.vlgmr.msra.gmra.mrb[36].mxu0 %vm253_vm3, %v4788_v13  ;;  %v5627_v11 = vpop.permute.xlu0 %1846  ;;  %3822 = vrot.lane.b32.xlu1 %v5616_v49, %s5054_s18 }
  0xdd   : > { %1357 = vmatpush1.bf16.msra.mxu0 %v1330_v27  ;;  %1388 = vmatprep.mubr.bf16.mxu0 %v5055_v15  ;;  %v1866_v14 = vsel %vm748_vm5, %v5627_v11, %v5610_v16  ;;  %v1868_v11 = vsel %vm748_vm5, %v5602_v47, %v5634_v18 }
  0xde   : > { %1438 = vmatprep.subr.bf16.mxu0 %v1345_v50  ;;  %v5654_v55 = vpop.permute.xlu1 %1856  ;;  %v1623_v50 = vand.u32 %v1598_v25, %v5297_v46  ;;  %v1885_v1 = vand.u32 %v1868_v11, %v5297_v46 }
  0xdf   : > { %4080 = vrot.lane.b32.xlu0 %v5523_v60, %s5056_s19 }
  0xe0   : > { %4943 = vmatmul.mubr.msk.bf16.vlgmr.msra.gmra.mrb[36].mxu1 %vm253_vm3, %v4788_v13  ;;  %v5641_v52 = vpop.permute.xlu0 %1854  ;;  %4082 = vrot.lane.b32.xlu1 %v5531_v61, %s5056_s19 }
  0xe1   : > { %1398 = vmatpush1.bf16.msra.mxu1 %v1336_v23  ;;  %1429 = vmatprep.mubr.bf16.mxu1 %v5055_v15  ;;  %v1869_v23 = vsel %vm748_vm5, %v5634_v18, %v5641_v52  ;;  %v1870_v47 = vsel %vm748_vm5, %v5641_v52, %v5654_v55 }
  0xe2   : > { %1479 = vmatprep.subr.bf16.mxu1 %v1351_v30  ;;  %v5681_v19 = vpop.permute.xlu1 %1860 }
  0xe3   : > { %4078 = vrot.lane.b32.xlu0 %v5502_v53, %s5056_s19 }
  0xe4   : > { %4799 = vmatmul.mubr.msk.bf16.vlgmr.msra.gmra.mrb[40].mxu0 %vm253_vm3, %v4797_v24  ;;  %v5659_v57 = vpop.permute.xlu0 %1858  ;;  %4084 = vrot.lane.b32.xlu1 %v5550_v6, %s5056_s19 }
  0xe5   : > { %1439 = vmatpush1.bf16.msra.mxu0 %v1342_v32  ;;  %1470 = vmatprep.mubr.bf16.mxu0 %v5055_v15  ;;  %v1871_v54 = vsel %vm748_vm5, %v5654_v55, %v5659_v57  ;;  %v1872_v52 = vsel %vm748_vm5, %v5659_v57, %v5681_v19 }
  0xe6   : > { %4946 = vmatprep.subr.bf16.mxu0 %v5059_v34  ;;  %v5707_v26 = vpop.permute.xlu1 %1864 }
  0xe7   : > { %4086 = vrot.lane.b32.xlu0 %v5562_v22, %s5056_s19 }
  0xe8   : > { %4800 = vmatmul.mubr.msk.bf16.vlgmr.msra.gmra.mrb[40].mxu1 %vm253_vm3, %v4797_v24  ;;  %v5674_v0 = vpop.permute.xlu0 %1862  ;;  %4088 = vrot.lane.b32.xlu1 %v5573_v35, %s5056_s19 }
  0xe9   : > { %1480 = vmatpush1.bf16.msra.mxu1 %v1348_v28  ;;  %1511 = vmatprep.mubr.bf16.mxu1 %v5055_v15  ;;  %v1879_v28 = vand.u32 %v1866_v14, %v5297_v46  ;;  %v1873_v59 = vsel %vm748_vm5, %v5681_v19, %v5674_v0  ;;  %v1874_v20 = vsel %vm748_vm5, %v5674_v0, %v5707_v26  ;;  %v4816_v14 = vld [vmem:[%s6461_s1 + $0x2c] sm:$0xf] }
  0xea   : > { %1631 = vmatprep.subr.bf16.mxu1 %v1608_v58  ;;  %v5732_v4 = vpop.permute.xlu1 %2124  ;;  %v1894_v58 = vand.u32 %v1871_v54, %v5297_v46  ;;  %v1900_v18 = vand.u32 %v1873_v59, %v5297_v46 }
  0xeb   : > { %4090 = vrot.lane.b32.xlu0 %v5585_v43, %s5056_s19 }
  0xec   : > { %4801 = vmatmul.mubr.msk.bf16.vlgmr.msra.gmra.mrb[44].mxu0 %vm253_vm3, %v4797_v24  ;;  %v5693_v13 = vpop.permute.xlu0 %2122  ;;  %4092 = vrot.lane.b32.xlu1 %v5596_v45, %s5056_s19 }
  0xed   : > { %4947 = vmatpush3.bf16.msra.mxu0 %v1354_v31  ;;  %4948 = vmatprep.mubr.msk.bf16.mxu0 %vm5060_vm4, %v5059_v34  ;;  %v2141_v55 = vsel %vm1023_vm6, %v5693_v13, %v5732_v4 }
  0xee   : > { %1672 = vmatprep.subr.bf16.mxu0 %v1614_v42  ;;  %v5757_v30 = vpop.permute.xlu1 %2126 }
  0xef   : > { %4094 = vrot.lane.b32.xlu0 %v5607_v8, %s5056_s19 }
  0xf0   : > { %4802 = vmatmul.mubr.msk.bf16.vlgmr.msra.gmra.mrb[44].mxu1 %vm253_vm3, %v4797_v24  ;;  %4096 = vrot.lane.b32.xlu1 %v5616_v49, %s5056_s19  ;;  %v5720_v37 = vpop.permute.xlu0 %2120 }
  0xf1   : > { %1632 = vmatpush1.bf16.msra.mxu1 %v1605_v33  ;;  %1663 = vmatprep.mubr.bf16.mxu1 %v5055_v15  ;;  %v1891_v33 = vand.u32 %v1870_v47, %v5297_v46  ;;  %v2140_v0 = vsel %vm1023_vm6, %v5720_v37, %v5693_v13  ;;  %v2142_v13 = vsel %vm1023_vm6, %v5732_v4, %v5757_v30 }
  0xf2   : > { %1713 = vmatprep.subr.bf16.mxu1 %v1620_v63  ;;  %v2131_v16 = vpop.permute.xlu1 %2130  ;;  %v1897_v63 = vand.u32 %v1872_v52, %v5297_v46  ;;  %v2153_v25 = vand.u32 %v2140_v0, %v5297_v46  ;;  %v2159_v21 = vand.u32 %v2142_v13, %v5297_v46  ;;  %v2452_v47 = vand.u32 %v5289_v40, %v5297_v46  ;;  %v4832_v13 = vld [vmem:[%s6461_s1 + $0x18] sm:$0xf] }
  0xf3   : > { %4354 = vrot.lane.b32.xlu0 %v5523_v60, %s5057_s20 }
  0xf4   : > { %4949 = vmatmul.mubr.msk.bf16.vlgmr.msra.gmra.mrb[48].mxu0 %vm253_vm3, %v4797_v24  ;;  %4356 = vrot.lane.b32.xlu1 %v5531_v61, %s5057_s20  ;;  %v5743_v27 = vpop.permute.xlu0 %2128  ;;  %v1888_v24 = vand.u32 %v1869_v23, %v5297_v46 }
  0xf5   : > { %1673 = vmatpush1.bf16.msra.mxu0 %v1611_v36  ;;  %1704 = vmatprep.mubr.bf16.mxu0 %v5055_v15  ;;  %v2156_v36 = vand.u32 %v2141_v55, %v5297_v46  ;;  %v2143_v19 = vsel %vm1023_vm6, %v5757_v30, %v5743_v27 }
  0xf6   : > { %1754 = vmatprep.subr.bf16.mxu0 %v1626_v17  ;;  %v2135_v42 = vpop.permute.xlu1 %2134  ;;  %v1903_v17 = vand.u32 %v1874_v20, %v5297_v46  ;;  %v2162_v26 = vand.u32 %v2143_v19, %v5297_v46 }
  0xf7   : > { %4352 = vrot.lane.b32.xlu0 %v5502_v53, %s5057_s20 }
  0xf8   : > { %4805 = vmatmul.mubr.msk.bf16.vlgmr.msra.gmra.mrb[48].mxu1 %vm253_vm3, %v4804_v2  ;;  %4358 = vrot.lane.b32.xlu1 %v5550_v6, %s5057_s20  ;;  %v5770_v32 = vpop.permute.xlu0 %2132 }
  0xf9   : > { %1714 = vmatpush1.bf16.msra.mxu1 %v1617_v39  ;;  %1745 = vmatprep.mubr.bf16.mxu1 %v5055_v15  ;;  %v2145_v39 = vsel %vm1023_vm6, %v2131_v16, %v5770_v32 }
  0xfa   : > { %4952 = vmatprep.subr.bf16.mxu1 %v5059_v34  ;;  %v2139_v12 = vpop.permute.xlu1 %2138  ;;  %v2168_v37 = vand.u32 %v2145_v39, %v5297_v46 }
  0xfb   : > { %4360 = vrot.lane.b32.xlu0 %v5562_v22, %s5057_s20 }
  0xfc   : > { %4806 = vmatmul.mubr.msk.bf16.vlgmr.msra.gmra.mrb[52].mxu0 %vm253_vm3, %v4804_v2  ;;  %4362 = vrot.lane.b32.xlu1 %v5573_v35, %s5057_s20  ;;  %v5793_v31 = vpop.permute.xlu0 %2136 }
  0xfd   : > { %1755 = vmatpush1.bf16.msra.mxu0 %v1623_v50  ;;  %1786 = vmatprep.mubr.bf16.mxu0 %v5055_v15  ;;  %v2147_v50 = vsel %vm1023_vm6, %v2135_v42, %v5793_v31 }
  0xfe   : > { %1905 = vmatprep.subr.bf16.mxu0 %v1882_v29  ;;  %v5830_v51 = vpop.permute.xlu1 %2692  ;;  %v2144_v29 = vsel %vm1023_vm6, %v5743_v27, %v2131_v16  ;;  %v2174_v23 = vand.u32 %v2147_v50, %v5297_v46  ;;  %v2146_v27 = vsel %vm1023_vm6, %v5770_v32, %v2135_v42  ;;  %v2148_v16 = vsel %vm1023_vm6, %v5793_v31, %v2139_v12 }
  0xff   : > { %4364 = vrot.lane.b32.xlu0 %v5585_v43, %s5057_s20  ;;  %v2171_v54 = vand.u32 %v2146_v27, %v5297_v46  ;;  %v2449_v32 = vand.u32 %v5295_v44, %v5297_v46  ;;  %v2177_v11 = vand.u32 %v2148_v16, %v5297_v46  ;;  %v2446_v44 = vand.u32 %v5285_v38, %v5297_v46 }
 0x100   : > { %4807 = vmatmul.mubr.msk.bf16.vlgmr.msra.gmra.mrb[52].mxu1 %vm253_vm3, %v4804_v2  ;;  %4366 = vrot.lane.b32.xlu1 %v5596_v45, %s5057_s20  ;;  %v5804_v7 = vpop.permute.xlu0 %2690  ;;  %v2461_v31 = vand.u32 %v5329_v62, %v5297_v46  ;;  %v2467_v38 = vand.u32 %v5348_v9, %v5297_v46  ;;  %v4825_v62 = vld [vmem:[%s6461_s1 + $0x10] sm:$0xf]  ;;  %v2458_v42 = vand.u32 %v5314_v56, %v5297_v46 }
 0x101   : > { %4953 = vmatpush3.bf16.msra.mxu1 %v1629_v10  ;;  %4954 = vmatprep.mubr.msk.bf16.mxu1 %vm5060_vm4, %v5059_v34  ;;  %v2165_v10 = vand.u32 %v2144_v29, %v5297_v46  ;;  %v2470_v12 = vand.u32 %v5369_v41, %v5297_v46 }
 0x102   : > { %1946 = vmatprep.subr.bf16.mxu1 %v1888_v24  ;;  %v5847_v5 = vpop.permute.xlu1 %2694 }
 0x103   : > { %4368 = vrot.lane.b32.xlu0 %v5607_v8, %s5057_s20  ;;  %v2710_v41 = vsel %vm243_vm1, %v5830_v51, %v5847_v5 }
 0x104   : > { %4808 = vmatmul.mubr.msk.bf16.vlgmr.msra.gmra.mrb[56].mxu0 %vm253_vm3, %v4804_v2  ;;  %4370 = vrot.lane.b32.xlu1 %v5616_v49, %s5057_s20  ;;  %v4810_v49 = vld [vmem:[%s6461_s1 + $0x24] sm:$0xf]  ;;  %v5825_v57 = vpop.permute.xlu0 %2688 }
 0x105   : > { %1906 = vmatpush1.bf16.msra.mxu0 %v1879_v28  ;;  %1937 = vmatprep.mubr.bf16.mxu0 %v5055_v15 }
 0x106   : > { %1987 = vmatprep.subr.bf16.mxu0 %v1894_v58  ;;  %v2455_v58 = vand.u32 %v5304_v48, %v5297_v46 }
 0x108   : > { %4955 = vmatmul.mubr.msk.bf16.vlgmr.msra.gmra.mrb[56].mxu1 %vm253_vm3, %v4804_v2  ;;  %v5842_v2 = vpop.permute.xlu0 %2696  ;;  %v5863_v30 = vpop.permute.xlu1 %2698 }
 0x109   : > { %1947 = vmatpush1.bf16.msra.mxu1 %v1885_v1  ;;  %1978 = vmatprep.mubr.bf16.mxu1 %v5055_v15  ;;  %v2711_v56 = vsel %vm243_vm1, %v5847_v5, %v5842_v2 }
 0x10a   : > { %2028 = vmatprep.subr.bf16.mxu1 %v1900_v18  ;;  %v2730_v20 = vand.u32 %v2711_v56, %v5297_v46 }
 0x10c   : > { %4811 = vmatmul.mubr.msk.bf16.vlgmr.msra.gmra.mrb[60].mxu0 %vm253_vm3, %v4810_v49  ;;  %v5861_v4 = vpop.permute.xlu0 %2700 }
 0x10d   : > { %1988 = vmatpush1.bf16.msra.mxu0 %v1891_v33  ;;  %2019 = vmatprep.mubr.bf16.mxu0 %v5055_v15  ;;  %v5878_v28 = vpop.permute.xlu1 %2702  ;;  %v2709_v33 = vsel %vm243_vm1, %v5804_v7, %v5830_v51  ;;  %v2712_v51 = vsel %vm243_vm1, %v5842_v2, %v5863_v30 }
 0x10e   : > { %4958 = vmatprep.subr.bf16.mxu0 %v5059_v34  ;;  %v2724_v52 = vand.u32 %v2709_v33, %v5297_v46  ;;  %v2733_v5 = vand.u32 %v2712_v51, %v5297_v46  ;;  %v2714_v2 = vsel %vm243_vm1, %v5861_v4, %v5878_v28 }
 0x110   : > { %4812 = vmatmul.mubr.msk.bf16.vlgmr.msra.gmra.mrb[60].mxu1 %vm253_vm3, %v4810_v49 }
 0x111   : > { %2029 = vmatpush1.bf16.msra.mxu1 %v1897_v63  ;;  %2060 = vmatprep.mubr.bf16.mxu1 %v5055_v15  ;;  %v5874_v24 = vpop.permute.xlu0 %2704 }
 0x112   : > { %2179 = vmatprep.subr.bf16.mxu1 %v2156_v36  ;;  %v5892_v1 = vpop.permute.xlu1 %2706  ;;  %v2713_v36 = vsel %vm243_vm1, %v5863_v30, %v5861_v4 }
 0x113   : > { %v2716_v29 = vsel %vm243_vm1, %v5874_v24, %v5892_v1 }
 0x114   : > { %4813 = vmatmul.mubr.msk.bf16.vlgmr.msra.gmra.mrb[64].mxu0 %vm253_vm3, %v4810_v49 }
 0x115   : > { %4959 = vmatpush3.bf16.msra.mxu0 %v1903_v17  ;;  %4960 = vmatprep.mubr.msk.bf16.mxu0 %vm5060_vm4, %v5059_v34  ;;  %v5890_v59 = vpop.permute.xlu0 %2964  ;;  %v2715_v17 = vsel %vm243_vm1, %v5878_v28, %v5874_v24 }
 0x116   : > { %2220 = vmatprep.subr.bf16.mxu0 %v2162_v26  ;;  %v5907_v18 = vpop.permute.xlu1 %2966  ;;  %v2727_v26 = vand.u32 %v2710_v41, %v5297_v46  ;;  %v2742_v39 = vand.u32 %v2715_v17, %v5297_v46 }
 0x117   : > { %v2983_v50 = vsel %vm748_vm5, %v5890_v59, %v5907_v18 }
 0x118   : > { %4814 = vmatmul.mubr.msk.bf16.vlgmr.msra.gmra.mrb[64].mxu1 %vm253_vm3, %v4810_v49 }
 0x119   : > { %2180 = vmatpush1.bf16.msra.mxu1 %v2153_v25  ;;  %2211 = vmatprep.mubr.bf16.mxu1 %v5055_v15  ;;  %v5902_v48 = vpop.permute.xlu0 %2962 }
 0x11a   : > { %2261 = vmatprep.subr.bf16.mxu1 %v2168_v37  ;;  %v5923_v9 = vpop.permute.xlu1 %2968  ;;  %v2982_v27 = vsel %vm748_vm5, %v5902_v48, %v5890_v59 }
 0x11b   : > { %v2995_v16 = vand.u32 %v2982_v27, %v5297_v46 }
 0x11c   : > { %4961 = vmatmul.mubr.msk.bf16.vlgmr.msra.gmra.mrb[68].mxu0 %vm253_vm3, %v4810_v49  ;;  %v2464_v49 = vand.u32 %v5338_v3, %v5297_v46  ;;  %v2708_v3 = vsel %vm243_vm1, %v5825_v57, %v5804_v7  ;;  %v2736_v7 = vand.u32 %v2713_v36, %v5297_v46 }
 0x11d   : > { %2221 = vmatpush1.bf16.msra.mxu0 %v2159_v21  ;;  %2252 = vmatprep.mubr.bf16.mxu0 %v5055_v15  ;;  %v5918_v40 = vpop.permute.xlu0 %2970  ;;  %v2721_v19 = vand.u32 %v2708_v3, %v5297_v46  ;;  %v2739_v21 = vand.u32 %v2714_v2, %v5297_v46 }
 0x11e   : > { %2302 = vmatprep.subr.bf16.mxu0 %v2174_v23  ;;  %v5940_v63 = vpop.permute.xlu1 %2972  ;;  %v2998_v23 = vand.u32 %v2983_v50, %v5297_v46  ;;  %v2985_v30 = vsel %vm748_vm5, %v5923_v9, %v5918_v40 }
 0x11f   : > { %v3004_v24 = vand.u32 %v2985_v30, %v5297_v46  ;;  %v4844_v30 = vld [vmem:[%s6461_s1 + $0x38] sm:$0xf] }
 0x120   : > { %4817 = vmatmul.mubr.msk.bf16.vlgmr.msra.gmra.mrb[68].mxu1 %vm253_vm3, %v4816_v14 }
 0x121   : > { %2262 = vmatpush1.bf16.msra.mxu1 %v2165_v10  ;;  %2293 = vmatprep.mubr.bf16.mxu1 %v5055_v15  ;;  %v5935_v55 = vpop.permute.xlu0 %2974 }
 0x122   : > { %4964 = vmatprep.subr.bf16.mxu1 %v5059_v34  ;;  %v2977_v0 = vpop.permute.xlu1 %2976 }
 0x124   : > { %4818 = vmatmul.mubr.msk.bf16.vlgmr.msra.gmra.mrb[72].mxu0 %vm253_vm3, %v4816_v14 }
 0x125   : > { %2303 = vmatpush1.bf16.msra.mxu0 %v2171_v54  ;;  %2334 = vmatprep.mubr.bf16.mxu0 %v5055_v15  ;;  %v5957_v57 = vpop.permute.xlu0 %2978  ;;  %v2987_v54 = vsel %vm748_vm5, %v5940_v63, %v5935_v55 }
 0x126   : > { %2472 = vmatprep.subr.bf16.mxu0 %v2449_v32  ;;  %v2981_v37 = vpop.permute.xlu1 %2980  ;;  %v2989_v59 = vsel %vm748_vm5, %v2977_v0, %v5957_v57 }
 0x128   : > { %4819 = vmatmul.mubr.msk.bf16.vlgmr.msra.gmra.mrb[72].mxu1 %vm253_vm3, %v4816_v14 }
 0x129   : > { %4965 = vmatpush3.bf16.msra.mxu1 %v2177_v11  ;;  %4966 = vmatprep.mubr.msk.bf16.mxu1 %vm5060_vm4, %v5059_v34  ;;  %v5970_v25 = vpop.permute.xlu0 %3238  ;;  %v2984_v11 = vsel %vm748_vm5, %v5907_v18, %v5923_v9 }
 0x12a   : > { %2513 = vmatprep.subr.bf16.mxu1 %v2455_v58  ;;  %v3241_v10 = vpop.permute.xlu1 %3240  ;;  %v3010_v58 = vand.u32 %v2987_v54, %v5297_v46  ;;  %v3001_v1 = vand.u32 %v2984_v11, %v5297_v46 }
 0x12c   : > { %4820 = vmatmul.mubr.msk.bf16.vlgmr.msra.gmra.mrb[76].mxu0 %vm253_vm3, %v4816_v14 }
 0x12d   : > { %2473 = vmatpush1.bf16.msra.mxu0 %v2446_v44  ;;  %2504 = vmatprep.mubr.bf16.mxu0 %v5055_v15  ;;  %v3237_v4 = vpop.permute.xlu0 %3236  ;;  %v2986_v44 = vsel %vm748_vm5, %v5918_v40, %v5940_v63 }
 0x12e   : > { %2554 = vmatprep.subr.bf16.mxu0 %v2461_v31  ;;  %v3243_v32 = vpop.permute.xlu1 %3242  ;;  %v3016_v31 = vand.u32 %v2989_v59, %v5297_v46  ;;  %v3007_v18 = vand.u32 %v2986_v44, %v5297_v46  ;;  %v3256_v3 = vsel %vm1023_vm6, %v3237_v4, %v5970_v25 }
 0x130   : > { %4967 = vmatmul.mubr.msk.bf16.vlgmr.msra.gmra.mrb[76].mxu1 %vm253_vm3, %v4816_v14  ;;  %v2745_v14 = vand.u32 %v2716_v29, %v5297_v46 }
 0x131   : > { %2514 = vmatpush1.bf16.msra.mxu1 %v2452_v47  ;;  %2545 = vmatprep.mubr.bf16.mxu1 %v5055_v15  ;;  %v6005_v28 = vpop.permute.xlu0 %3244 }
 0x132   : > { %2595 = vmatprep.subr.bf16.mxu1 %v2467_v38  ;;  %v3247_v47 = vpop.permute.xlu1 %3246  ;;  %v4838_v38 = vld [vmem:[%s6461_s1 + $0x30] sm:$0xf]  ;;  %v3259_v56 = vsel %vm1023_vm6, %v3243_v32, %v6005_v28 }
 0x134   : > { %4827 = vmatmul.mubr.msk.bf16.vlgmr.msra.gmra.mrb[80].mxu0 %vm253_vm3, %v4825_v62 }
 0x135   : > { %2555 = vmatpush1.bf16.msra.mxu0 %v2458_v42  ;;  %2586 = vmatprep.mubr.bf16.mxu0 %v5055_v15  ;;  %v3249_v48 = vpop.permute.xlu0 %3248  ;;  %v3257_v42 = vsel %vm1023_vm6, %v5970_v25, %v3241_v10 }
 0x136   : > { %4970 = vmatprep.subr.bf16.mxu0 %v5059_v34  ;;  %v3251_v9 = vpop.permute.xlu1 %3250  ;;  %v3261_v36 = vsel %vm1023_vm6, %v3247_v47, %v3249_v48 }
 0x138   : > { %4828 = vmatmul.mubr.msk.bf16.vlgmr.msra.gmra.mrb[80].mxu1 %vm253_vm3, %v4825_v62 }
 0x139   : > { %2596 = vmatpush1.bf16.msra.mxu1 %v2464_v49  ;;  %2627 = vmatprep.mubr.bf16.mxu1 %v5055_v15  ;;  %v6034_v40 = vpop.permute.xlu0 %3252  ;;  %v2990_v49 = vsel %vm748_vm5, %v5957_v57, %v2981_v37  ;;  %v3284_v57 = vand.u32 %v3261_v36, %v5297_v46 }
 0x13a   : > { %2747 = vmatprep.subr.bf16.mxu1 %v2724_v52  ;;  %v3272_v52 = vand.u32 %v3257_v42, %v5297_v46  ;;  %v3255_v63 = vpop.permute.xlu1 %3254 }
 0x13b   : > { %v3264_v11 = vsel %vm1023_vm6, %v6034_v40, %v3255_v63 }
 0x13c   : > { %4829 = vmatmul.mubr.msk.bf16.vlgmr.msra.gmra.mrb[84].mxu0 %vm253_vm3, %v4825_v62 }
 0x13d   : > { %4971 = vmatpush3.bf16.msra.mxu0 %v2470_v12  ;;  %4972 = vmatprep.mubr.msk.bf16.mxu0 %vm5060_vm4, %v5059_v34  ;;  %v3019_v12 = vand.u32 %v2990_v49, %v5297_v46 }
 0x13e   : > { %2788 = vmatprep.subr.bf16.mxu0 %v2730_v20  ;;  %v3278_v20 = vand.u32 %v3259_v56, %v5297_v46  ;;  %v6057_v41 = vpop.permute.xlu1 %3808 }
 0x140   : > { %4830 = vmatmul.mubr.msk.bf16.vlgmr.msra.gmra.mrb[84].mxu1 %vm253_vm3, %v4825_v62 }
 0x141   : > { %2748 = vmatpush1.bf16.msra.mxu1 %v2721_v19  ;;  %2779 = vmatprep.mubr.bf16.mxu1 %v5055_v15  ;;  %v3269_v19 = vand.u32 %v3256_v3, %v5297_v46 }
 0x142   : > { %2829 = vmatprep.subr.bf16.mxu1 %v2736_v7  ;;  %v3258_v7 = vsel %vm1023_vm6, %v3241_v10, %v3243_v32  ;;  %v6073_v50 = vpop.permute.xlu1 %3810  ;;  %v3262_v10 = vsel %vm1023_vm6, %v3249_v48, %v3251_v9  ;;  %v3293_v48 = vand.u32 %v3264_v11, %v5297_v46 }
 0x143   : > { %v3287_v54 = vand.u32 %v3262_v10, %v5297_v46 }
 0x144   : > { %4973 = vmatmul.mubr.msk.bf16.vlgmr.msra.gmra.mrb[88].mxu0 %vm253_vm3, %v4825_v62  ;;  %v2988_v62 = vsel %vm748_vm5, %v5935_v55, %v2977_v0  ;;  %v6045_v55 = vpop.permute.xlu0 %3806 }
 0x145   : > { %2789 = vmatpush1.bf16.msra.mxu0 %v2727_v26  ;;  %2820 = vmatprep.mubr.bf16.mxu0 %v5055_v15  ;;  %v3013_v33 = vand.u32 %v2988_v62, %v5297_v46  ;;  %v3263_v26 = vsel %vm1023_vm6, %v3251_v9, %v6034_v40 }
 0x146   : > { %2870 = vmatprep.subr.bf16.mxu0 %v2742_v39  ;;  %v3275_v39 = vand.u32 %v3258_v7, %v5297_v46  ;;  %v3290_v37 = vand.u32 %v3263_v26, %v5297_v46 }
 0x148   : > { %4833 = vmatmul.mubr.msk.bf16.vlgmr.msra.gmra.mrb[88].mxu1 %vm253_vm3, %v4832_v13  ;;  %v6061_v17 = vpop.permute.xlu0 %3804 }
 0x149   : > { %2830 = vmatpush1.bf16.msra.mxu1 %v2733_v5  ;;  %2861 = vmatprep.mubr.bf16.mxu1 %v5055_v15  ;;  %v3260_v5 = vsel %vm1023_vm6, %v6005_v28, %v3247_v47  ;;  %v3824_v11 = vsel %vm243_vm1, %v6061_v17, %v6045_v55 }
 0x14a   : > { %4976 = vmatprep.subr.bf16.mxu1 %v5059_v34 }
 0x14c   : > { %4834 = vmatmul.mubr.msk.bf16.vlgmr.msra.gmra.mrb[92].mxu0 %vm253_vm3, %v4832_v13  ;;  %v6078_v29 = vpop.permute.xlu0 %3812 }
 0x14d   : > { %2871 = vmatpush1.bf16.msra.mxu0 %v2739_v21  ;;  %2902 = vmatprep.mubr.bf16.mxu0 %v5055_v15 }
 0x14e   : > { %3021 = vmatprep.subr.bf16.mxu0 %v2998_v23  ;;  %v3281_v23 = vand.u32 %v3260_v5, %v5297_v46 }
 0x150   : > { %4835 = vmatmul.mubr.msk.bf16.vlgmr.msra.gmra.mrb[92].mxu1 %vm253_vm3, %v4832_v13  ;;  %v6100_v59 = vpop.permute.xlu0 %3816 }
 0x151   : > { %4977 = vmatpush3.bf16.msra.mxu1 %v2745_v14  ;;  %4978 = vmatprep.mubr.msk.bf16.mxu1 %vm5060_vm4, %v5059_v34 }
 0x152   : > { %3062 = vmatprep.subr.bf16.mxu1 %v3004_v24 }
 0x154   : > { %4836 = vmatmul.mubr.msk.bf16.vlgmr.msra.gmra.mrb[96].mxu0 %vm253_vm3, %v4832_v13  ;;  %v6116_v42 = vpop.permute.xlu0 %3820 }
 0x155   : > { %3022 = vmatpush1.bf16.msra.mxu0 %v2995_v16  ;;  %3053 = vmatprep.mubr.bf16.mxu0 %v5055_v15  ;;  %v6093_v16 = vpop.permute.xlu1 %3814 }
 0x156   : > { %3103 = vmatprep.subr.bf16.mxu0 %v3010_v58  ;;  %v3565_v58 = vand.u32 %v5523_v60, %v5297_v46 }
 0x158   : > { %4979 = vmatmul.mubr.msk.bf16.vlgmr.msra.gmra.mrb[96].mxu1 %vm253_vm3, %v4832_v13  ;;  %v6136_v36 = vpop.permute.xlu0 %4080 }
 0x159   : > { %3063 = vmatpush1.bf16.msra.mxu1 %v3001_v1  ;;  %3094 = vmatprep.mubr.bf16.mxu1 %v5055_v15 }
 0x15a   : > { %3144 = vmatprep.subr.bf16.mxu1 %v3016_v31 }
 0x15c   : > { %4839 = vmatmul.mubr.msk.bf16.vlgmr.msra.gmra.mrb[100].mxu0 %vm253_vm3, %v4838_v38 }
 0x15d   : > { %3104 = vmatpush1.bf16.msra.mxu0 %v3007_v18  ;;  %3135 = vmatprep.mubr.bf16.mxu0 %v5055_v15  ;;  %v3571_v18 = vand.u32 %v5550_v6, %v5297_v46  ;;  %v3577_v6 = vand.u32 %v5573_v35, %v5297_v46  ;;  %v3583_v35 = vand.u32 %v5596_v45, %v5297_v46 }
 0x15e   : > { %4982 = vmatprep.subr.bf16.mxu0 %v5059_v34  ;;  %v3574_v45 = vand.u32 %v5562_v22, %v5297_v46 }
 0x160   : > { %4840 = vmatmul.mubr.msk.bf16.vlgmr.msra.gmra.mrb[100].mxu1 %vm253_vm3, %v4838_v38 }
 0x161   : > { %3145 = vmatpush1.bf16.msra.mxu1 %v3013_v33  ;;  %3176 = vmatprep.mubr.bf16.mxu1 %v5055_v15  ;;  %v3562_v33 = vand.u32 %v5502_v53, %v5297_v46  ;;  %v3568_v53 = vand.u32 %v5531_v61, %v5297_v46  ;;  %v6148_v61 = vld [vmem:[%s6461_s1 + $0x14] sm:$0xf] }
 0x162   : > { %3295 = vmatprep.subr.bf16.mxu1 %v3272_v52 }
 0x164   : > { %4841 = vmatmul.mubr.msk.bf16.vlgmr.msra.gmra.mrb[104].mxu0 %vm253_vm3, %v4838_v38 }
 0x165   : > { %4983 = vmatpush3.bf16.msra.mxu0 %v3019_v12  ;;  %4984 = vmatprep.mubr.msk.bf16.mxu0 %vm5060_vm4, %v5059_v34 }
 0x166   : > { %3336 = vmatprep.subr.bf16.mxu0 %v3278_v20 }
 0x167   : > { %v322_v0 = vpop.f32.mrb[0].mxu0 }
 0x168   : > { %4842 = vmatmul.mubr.msk.bf16.vlgmr.msra.gmra.mrb[104].mxu1 %vm253_vm3, %v4838_v38  ;;  %v324_v51 = vpop.f32.mrb[1].mxu0 }
 0x169   : > { %3296 = vmatpush1.bf16.msra.mxu1 %v3269_v19  ;;  %v326_v25 = vpop.f32.mrb[2].mxu0  ;;  %3327 = vmatprep.mubr.bf16.mxu1 %v5055_v15 }
 0x16a   : > { %v327_v13 = vpop.f32.mrb[3].mxu0  ;;  %3377 = vmatprep.subr.bf16.mxu1 %v3284_v57  ;;  %v3825_v25 = vsel %vm243_vm1, %v6045_v55, %v6057_v41  ;;  %v3837_v55 = vand.u32 %v3824_v11, %v5297_v46 }
 0x16b   : > { %v6071_v2 = vpop.f32.mrb[0].mxu1 }
 0x16c   : > { %4985 = vmatmul.mubr.msk.bf16.vlgmr.msra.gmra.mrb[108].mxu0 %vm253_vm3, %v4838_v38  ;;  %v6076_v21 = vpop.f32.mrb[1].mxu1  ;;  %v6113_v38 = vpop.permute.xlu1 %3818 }
 0x16d   : > { %3337 = vmatpush1.bf16.msra.mxu0 %v3275_v39  ;;  %v367_v4 = vpop.f32.mrb[2].mxu1  ;;  %3368 = vmatprep.mubr.bf16.mxu0 %v5055_v15 }
 0x16e   : > { %v368_v14 = vpop.f32.mrb[3].mxu1  ;;  %3418 = vmatprep.subr.bf16.mxu0 %v3290_v37 }
 0x16f   : > { %v6086_v27 = vpop.f32.mrb[4].mxu0  ;;  %v3827_v14 = vsel %vm243_vm1, %v6073_v50, %v6078_v29 }
 0x170   : > { %4845 = vmatmul.mubr.msk.bf16.vlgmr.msra.gmra.mrb[108].mxu1 %vm253_vm3, %v4844_v30  ;;  %v6089_v24 = vpop.f32.mrb[5].mxu0  ;;  %v6132_v3 = vpop.permute.xlu1 %3822 }
 0x171   : > { %3378 = vmatpush1.bf16.msra.mxu1 %v3281_v23  ;;  %v408_v28 = vpop.f32.mrb[6].mxu0  ;;  %3409 = vmatprep.mubr.bf16.mxu1 %v5055_v15  ;;  %v3580_v23 = vand.u32 %v5585_v43, %v5297_v46 }
 0x172   : > { %v409_v32 = vpop.f32.mrb[7].mxu0  ;;  %4988 = vmatprep.subr.bf16.mxu1 %v5059_v34  ;;  %v3586_v28 = vand.u32 %v5607_v8, %v5297_v46 }
 0x173   : > { %v6102_v1 = vpop.f32.mrb[4].mxu1 }
 0x174   : > { %4846 = vmatmul.mubr.msk.bf16.vlgmr.msra.gmra.mrb[112].mxu0 %vm253_vm3, %v4844_v30  ;;  %v6105_v44 = vpop.f32.mrb[5].mxu1  ;;  %v6156_v5 = vpop.permute.xlu1 %4082 }
 0x175   : > { %3419 = vmatpush1.bf16.msra.mxu0 %v3287_v54  ;;  %v449_v31 = vpop.f32.mrb[6].mxu1  ;;  %3450 = vmatprep.mubr.bf16.mxu0 %v5055_v15 }
 0x176   : > { %v450_v47 = vpop.f32.mrb[7].mxu1  ;;  %3588 = vmatprep.subr.bf16.mxu0 %v3565_v58 }
 0x177   : > { %v6111_v60 = vpop.f32.mrb[8].mxu0 }
 0x178   : > { %4847 = vmatmul.mubr.msk.bf16.vlgmr.msra.gmra.mrb[112].mxu1 %vm253_vm3, %v4844_v30  ;;  %v4926_v62 = vpop.f32.mrb[9].mxu0  ;;  %v6187_v32 = vpop.permute.xlu1 %4084 }
 0x179   : > { %4989 = vmatpush3.bf16.msra.mxu1 %v3293_v48  ;;  %v489_v40 = vpop.f32.mrb[10].mxu0  ;;  %4990 = vmatprep.mubr.msk.bf16.mxu1 %vm5060_vm4, %v5059_v34  ;;  %v3829_v48 = vsel %vm243_vm1, %v6093_v16, %v6100_v59 }
 0x17a   : > { %v4927_v9 = vpop.f32.mrb[11].mxu0  ;;  %3629 = vmatprep.subr.bf16.mxu1 %v3571_v18  ;;  %v3826_v18 = vsel %vm243_vm1, %v6057_v41, %v6073_v50  ;;  %v3852_v40 = vand.u32 %v3829_v48, %v5297_v46 }
 0x17b   : > { %v556_v49 = vpop.f32.mrb[8].mxu1  ;;  %v3843_v41 = vand.u32 %v3826_v18, %v5297_v46 }
 0x17c   : > { %v6124_v52 = vadd.f32 %v556_v49, %v322_v0  ;;  %v558_v56 = vpop.f32.mrb[9].mxu1  ;;  %4848 = vmatmul.mubr.msk.bf16.vlgmr.msra.gmra.mrb[116].mxu0 %vm253_vm3, %v4844_v30  ;;  %v6213_v9 = vpop.permute.xlu1 %4088 }
 0x17d   : > { %v6127_v12 = vadd.f32 %v558_v56, %v324_v51  ;;  %v560_v63 = vpop.f32.mrb[10].mxu1  ;;  %3589 = vmatpush1.bf16.msra.mxu0 %v3562_v33  ;;  %3620 = vmatprep.mubr.bf16.mxu0 %v5055_v15  ;;  %v3831_v33 = vsel %vm243_vm1, %v6113_v38, %v6116_v42 }
 0x17e   : > { %v561_v20 = vpop.f32.mrb[11].mxu1  ;;  %3670 = vmatprep.subr.bf16.mxu0 %v3577_v6 }
 0x17f   : > { %v597_v19 = vpop.f32.mrb[12].mxu0  ;;  %v3858_v20 = vand.u32 %v3831_v33, %v5297_v46 }
 0x180   : > { %v6139_v7 = vadd.f32 %v597_v19, %v6071_v2  ;;  %v599_v57 = vpop.f32.mrb[13].mxu0  ;;  %4991 = vmatmul.mubr.msk.bf16.vlgmr.msra.gmra.mrb[116].mxu1 %vm253_vm3, %v4844_v30  ;;  %v6163_v2 = vpop.permute.xlu0 %4078  ;;  %v3840_v30 = vand.u32 %v3825_v25, %v5297_v46  ;;  %v4099_v25 = vsel %vm748_vm5, %v6136_v36, %v6156_v5 }
 0x181   : > { %v6143_v0 = vadd.f32 %v599_v57, %v6076_v21  ;;  %v601_v26 = vpop.f32.mrb[14].mxu0  ;;  %3630 = vmatpush1.bf16.msra.mxu1 %v3568_v53  ;;  %3661 = vmatprep.mubr.bf16.mxu1 %v5055_v15 }
 0x182   : > { %v602_v51 = vpop.f32.mrb[15].mxu0  ;;  %3711 = vmatprep.subr.bf16.mxu1 %v3583_v35 }
 0x183   : > { %v638_v39 = vpop.f32.mrb[12].mxu1 }
 0x184   : > { %v6159_v13 = vadd.f32 %v638_v39, %v6086_v27  ;;  %v640_v37 = vpop.f32.mrb[13].mxu1  ;;  %4855 = vmatmul.mubr.msk.bf16.vlgmr.msra.gmra.mrb[120].mxu0 %vm253_vm3, %v6148_v61  ;;  %v6193_v31 = vpop.permute.xlu0 %4086 }
 0x185   : > { %v6166_v22 = vadd.f32 %v640_v37, %v6089_v24  ;;  %v642_v21 = vpop.f32.mrb[14].mxu1  ;;  %3671 = vmatpush1.bf16.msra.mxu0 %v3574_v45  ;;  %3702 = vmatprep.mubr.bf16.mxu0 %v5055_v15 }
 0x186   : > { %v643_v4 = vpop.f32.mrb[15].mxu1  ;;  %4994 = vmatprep.subr.bf16.mxu0 %v5059_v34 }
 0x187   : > { %v679_v10 = vpop.f32.mrb[16].mxu0  ;;  %v3832_v4 = vsel %vm243_vm1, %v6116_v42, %v6132_v3 }
 0x188   : > { %v6177_v27 = vadd.f32 %v679_v10, %v6102_v1  ;;  %v681_v24 = vpop.f32.mrb[17].mxu0  ;;  %4856 = vmatmul.mubr.msk.bf16.vlgmr.msra.gmra.mrb[120].mxu1 %vm253_vm3, %v6148_v61  ;;  %v3846_v1 = vand.u32 %v3827_v14, %v5297_v46  ;;  %v6220_v56 = vpop.permute.xlu0 %4090  ;;  %v4101_v14 = vsel %vm748_vm5, %v6187_v32, %v6193_v31  ;;  %v3861_v3 = vand.u32 %v3832_v4, %v5297_v46 }
 0x189   : > { %v6182_v54 = vadd.f32 %v681_v24, %v6105_v44  ;;  %3712 = vmatpush1.bf16.msra.mxu1 %v3580_v23  ;;  %v683_v43 = vpop.f32.mrb[18].mxu0  ;;  %3743 = vmatprep.mubr.bf16.mxu1 %v5055_v15  ;;  %v4103_v48 = vsel %vm748_vm5, %v6213_v9, %v6220_v56 }
 0x18a   : > { %v684_v58 = vpop.f32.mrb[19].mxu0  ;;  %3863 = vmatprep.subr.bf16.mxu1 %v3840_v30 }
 0x18b   : > { %v720_v44 = vpop.f32.mrb[16].mxu1 }
 0x18c   : > { %v6199_v47 = vadd.f32 %v720_v44, %v6111_v60  ;;  %4857 = vmatmul.mubr.msk.bf16.vlgmr.msra.gmra.mrb[124].mxu0 %vm253_vm3, %v6148_v61  ;;  %v4932_v8 = vpop.f32.mrb[17].mxu1  ;;  %v6254_v51 = vpop.permute.xlu0 %4094 }
 0x18d   : > { %v723_v17 = vpop.f32.mrb[18].mxu1  ;;  %4995 = vmatpush3.bf16.msra.mxu0 %v3586_v28  ;;  %4996 = vmatprep.mubr.msk.bf16.mxu0 %vm5060_vm4, %v5059_v34 }
 0x18e   : > { %v4933_v62 = vpop.f32.mrb[19].mxu1  ;;  %3904 = vmatprep.subr.bf16.mxu0 %v3846_v1  ;;  %v4120_v1 = vand.u32 %v4101_v14, %v5297_v46  ;;  %v4100_v17 = vsel %vm748_vm5, %v6156_v5, %v6187_v32 }
 0x18f   : > { %v822_v60 = vpop.f32.mrb[20].mxu0 }
 0x190   : > { %v6216_v6 = vadd.f32 %v822_v60, %v6124_v52  ;;  %v824_v49 = vpop.f32.mrb[21].mxu0  ;;  %4858 = vmatmul.mubr.msk.bf16.vlgmr.msra.gmra.mrb[124].mxu1 %vm253_vm3, %v6148_v61  ;;  %v3828_v52 = vsel %vm243_vm1, %v6078_v29, %v6093_v16  ;;  %v6243_v29 = vld [vmem:[%s6461_s1 + $0x1c] sm:$0xf]  ;;  %v6246_v16 = vpop.permute.xlu1 %4092 }
 0x191   : > { %v6224_v50 = vadd.f32 %v824_v49, %v6127_v12  ;;  %3864 = vmatpush1.bf16.msra.mxu1 %v3837_v55  ;;  %v826_v63 = vpop.f32.mrb[22].mxu0  ;;  %3895 = vmatprep.mubr.bf16.mxu1 %v5055_v15  ;;  %v3849_v12 = vand.u32 %v3828_v52, %v5297_v46  ;;  %v6284_v42 = vpop.permute.xlu0 %4354  ;;  %v4105_v60 = vsel %vm748_vm5, %v6246_v16, %v6254_v51 }
 0x192   : > { %v827_v53 = vpop.f32.mrb[23].mxu0  ;;  %3945 = vmatprep.subr.bf16.mxu1 %v3852_v40  ;;  %v4102_v63 = vsel %vm748_vm5, %v6193_v31, %v6213_v9  ;;  %v6343_v31 = vld [vmem:[%s6461_s1 + $0x34] sm:$0xf] }
 0x193   : > { %v863_v35 = vpop.f32.mrb[20].mxu1 }
 0x194   : > { %v6232_v19 = vadd.f32 %v863_v35, %v6139_v7  ;;  %v865_v57 = vpop.f32.mrb[21].mxu1  ;;  %4997 = vmatmul.mubr.msk.bf16.vlgmr.msra.gmra.mrb[128].mxu0 %vm253_vm3, %v6148_v61  ;;  %v4624_v7 = vld [vmem:[%s6462_s2] sm:$0xff] }
 0x195   : > { %v6238_v26 = vadd.f32 %v865_v57, %v6143_v0  ;;  %3905 = vmatpush1.bf16.msra.mxu0 %v3843_v41  ;;  %v867_v45 = vpop.f32.mrb[22].mxu1  ;;  %3936 = vmatprep.mubr.bf16.mxu0 %v5055_v15  ;;  %v3830_v0 = vsel %vm243_vm1, %v6100_v59, %v6113_v38  ;;  %v4353_v62 = vpop.permute.xlu0 %4352  ;;  %v4117_v41 = vand.u32 %v4100_v17, %v5297_v46 }
 0x196   : > { %v868_v61 = vpop.f32.mrb[23].mxu1  ;;  %3986 = vmatprep.subr.bf16.mxu0 %v3858_v20  ;;  %4627 = vperm.xlu0 %5036, %v4624_v7   ;;  %v3855_v23 = vand.u32 %v3830_v0, %v5297_v46 }
 0x197   : > { %v904_v39 = vpop.f32.mrb[24].mxu0 }
 0x198   : > { %v6260_v37 = vadd.f32 %v904_v39, %v6159_v13  ;;  %v906_v21 = vpop.f32.mrb[25].mxu0  ;;  %4861 = vmatmul.mubr.msk.bf16.vlgmr.msra.gmra.mrb[128].mxu1 %vm253_vm3, %v6243_v29  ;;  %v4114_v13 = vand.u32 %v4099_v25, %v5297_v46 }
 0x199   : > { %v6266_v59 = vadd.f32 %v906_v21, %v6166_v22  ;;  %3946 = vmatpush1.bf16.msra.mxu1 %v3849_v12  ;;  %v908_v38 = vpop.f32.mrb[26].mxu0  ;;  %3977 = vmatprep.mubr.bf16.mxu1 %v5055_v15  ;;  %v6277_v22 = vpop.permute.xlu1 %4096  ;;  %v4123_v12 = vand.u32 %v4102_v63, %v5297_v46 }
 0x19a   : > { %v909_v30 = vpop.f32.mrb[27].mxu0  ;;  %5000 = vmatprep.subr.bf16.mxu1 %v5059_v34  ;;  %v4106_v21 = vsel %vm748_vm5, %v6254_v51, %v6277_v22  ;;  %v4372_v22 = vsel %vm1023_vm6, %v4353_v62, %v6284_v42 }
 0x19b   : > { %v945_v10 = vpop.f32.mrb[24].mxu1 }
 0x19c   : > { %v6280_v24 = vadd.f32 %v945_v10, %v6177_v27  ;;  %v947_v43 = vpop.f32.mrb[25].mxu1  ;;  %4862 = vmatmul.mubr.msk.bf16.vlgmr.msra.gmra.mrb[132].mxu0 %vm253_vm3, %v6243_v29  ;;  %v4098_v27 = vsel %vm748_vm5, %v6163_v2, %v6136_v36  ;;  %v4135_v10 = vand.u32 %v4106_v21, %v5297_v46 }
 0x19d   : > { %v6288_v28 = vadd.f32 %v947_v43, %v6182_v54  ;;  %3987 = vmatpush1.bf16.msra.mxu0 %v3855_v23  ;;  %v949_v11 = vpop.f32.mrb[26].mxu1  ;;  %4018 = vmatprep.mubr.bf16.mxu0 %v5055_v15  ;;  %v4111_v55 = vand.u32 %v4098_v27, %v5297_v46  ;;  %v6306_v2 = vpop.permute.xlu1 %4356 }
 0x19e   : > { %v950_v58 = vpop.f32.mrb[27].mxu1  ;;  %4137 = vmatprep.subr.bf16.mxu0 %v4114_v13 }
 0x19f   : > { %v986_v44 = vpop.f32.mrb[28].mxu0 }
 0x1a0   : > { %v6299_v54 = vadd.f32 %v986_v44, %v6199_v47  ;;  %4863 = vmatmul.mubr.msk.bf16.vlgmr.msra.gmra.mrb[132].mxu1 %vm253_vm3, %v6243_v29  ;;  %v4938_v8 = vpop.f32.mrb[29].mxu0  ;;  %v4126_v47 = vand.u32 %v4103_v48, %v5297_v46  ;;  %v4385_v44 = vand.u32 %v4372_v22, %v5297_v46 }
 0x1a1   : > { %5001 = vmatpush3.bf16.msra.mxu1 %v3861_v3  ;;  %v989_v36 = vpop.f32.mrb[30].mxu0  ;;  %5002 = vmatprep.mubr.msk.bf16.mxu1 %vm5060_vm4, %v5059_v34  ;;  %v4359_v20 = vpop.permute.xlu1 %4358 }
 0x1a2   : > { %v4939_v18 = vpop.f32.mrb[31].mxu0  ;;  %4178 = vmatprep.subr.bf16.mxu1 %v4120_v1  ;;  %v4374_v48 = vsel %vm1023_vm6, %v6306_v2, %v4359_v20 }
 0x1a3   : > { %v1097_v40 = vpop.f32.mrb[28].mxu1 }
 0x1a4   : > { %v6316_v33 = vadd.f32 %v1097_v40, %v6216_v6  ;;  %v1099_v49 = vpop.f32.mrb[29].mxu1  ;;  %4864 = vmatmul.mubr.msk.bf16.vlgmr.msra.gmra.mrb[136].mxu0 %vm253_vm3, %v6243_v29  ;;  %v4132_v6 = vand.u32 %v4105_v60, %v5297_v46 }
 0x1a5   : > { %v6322_v5 = vadd.f32 %v1099_v49, %v6224_v50  ;;  %4138 = vmatpush1.bf16.msra.mxu0 %v4111_v55  ;;  %v1101_v32 = vpop.f32.mrb[30].mxu1  ;;  %4169 = vmatprep.mubr.bf16.mxu0 %v5055_v15  ;;  %v6334_v50 = vpop.permute.xlu0 %4360 }
 0x1a6   : > { %v1102_v52 = vpop.f32.mrb[31].mxu1  ;;  %4219 = vmatprep.subr.bf16.mxu0 %v4126_v47  ;;  %v4391_v47 = vand.u32 %v4374_v48, %v5297_v46 }
 0x1a7   : > { %v1138_v53 = vpop.f32.mrb[32].mxu0 }
 0x1a8   : > { %v6330_v35 = vadd.f32 %v1138_v53, %v6232_v19  ;;  %v1140_v57 = vpop.f32.mrb[33].mxu0  ;;  %5003 = vmatmul.mubr.msk.bf16.vlgmr.msra.gmra.mrb[136].mxu1 %vm253_vm3, %v6243_v29  ;;  %v4104_v19 = vsel %vm748_vm5, %v6220_v56, %v6246_v16  ;;  %v4363_v16 = vpop.permute.xlu1 %4362 }
 0x1a9   : > { %v6338_v45 = vadd.f32 %v1140_v57, %v6238_v26  ;;  %4179 = vmatpush1.bf16.msra.mxu1 %v4117_v41  ;;  %v1142_v9 = vpop.f32.mrb[34].mxu0  ;;  %4210 = vmatprep.mubr.bf16.mxu1 %v5055_v15  ;;  %v4373_v26 = vsel %vm1023_vm6, %v6284_v42, %v6306_v2  ;;  %v4129_v39 = vand.u32 %v4104_v19, %v5297_v46  ;;  %v4365_v38 = vpop.permute.xlu0 %4364 }
 0x1aa   : > { %v1143_v29 = vpop.f32.mrb[35].mxu0  ;;  %4260 = vmatprep.subr.bf16.mxu1 %v4132_v6  ;;  %v4388_v23 = vand.u32 %v4373_v26, %v5297_v46  ;;  %v4377_v11 = vsel %vm1023_vm6, %v4363_v16, %v4365_v38  ;;  %v4376_v2 = vsel %vm1023_vm6, %v6334_v50, %v4363_v16  ;;  %v4872_v6 = vld [vmem:[%s6461_s1 + $0x3c] sm:$0xf] }
 0x1ab   : > { %v1179_v7 = vpop.f32.mrb[32].mxu1  ;;  %v4400_v55 = vand.u32 %v4377_v11, %v5297_v46 }
 0x1ac   : > { %v6353_v0 = vadd.f32 %v1179_v7, %v6260_v37  ;;  %v1181_v61 = vpop.f32.mrb[33].mxu1  ;;  %4867 = vmatmul.mubr.msk.bf16.vlgmr.msra.gmra.mrb[140].mxu0 %vm253_vm3, %v6343_v31  ;;  %v4367_v27 = vpop.permute.xlu1 %4366 }
 0x1ad   : > { %v6359_v25 = vadd.f32 %v1181_v61, %v6266_v59  ;;  %4220 = vmatpush1.bf16.msra.mxu0 %v4123_v12  ;;  %v1183_v56 = vpop.f32.mrb[34].mxu1  ;;  %4251 = vmatprep.mubr.bf16.mxu0 %v5055_v15  ;;  %v4375_v59 = vsel %vm1023_vm6, %v4359_v20, %v6334_v50  ;;  %v4369_v1 = vpop.permute.xlu0 %4368  ;;  %v4378_v53 = vsel %vm1023_vm6, %v4365_v38, %v4367_v27 }
 0x1ae   : > { %v1184_v37 = vpop.f32.mrb[35].mxu1  ;;  %5006 = vmatprep.subr.bf16.mxu0 %v5059_v34  ;;  %v4379_v36 = vsel %vm1023_vm6, %v4367_v27, %v4369_v1 }
 0x1af   : > { %v1220_v4 = vpop.f32.mrb[36].mxu0  ;;  %v4406_v49 = vand.u32 %v4379_v36, %v5297_v46 }
 0x1b0   : > { %v6370_v30 = vadd.f32 %v1220_v4, %v6280_v24  ;;  %v1222_v13 = vpop.f32.mrb[37].mxu0  ;;  %4868 = vmatmul.mubr.msk.bf16.vlgmr.msra.gmra.mrb[140].mxu1 %vm253_vm3, %v6343_v31  ;;  %v4394_v24 = vand.u32 %v4375_v59, %v5297_v46  ;;  %v4371_v57 = vpop.permute.xlu1 %4370 }
 0x1b1   : > { %v6376_v51 = vadd.f32 %v1222_v13, %v6288_v28  ;;  %4261 = vmatpush1.bf16.msra.mxu1 %v4129_v39  ;;  %v1224_v14 = vpop.f32.mrb[38].mxu0  ;;  %4292 = vmatprep.mubr.bf16.mxu1 %v5055_v15  ;;  %v4380_v29 = vsel %vm1023_vm6, %v4369_v1, %v4371_v57 }
 0x1b2   : > { %v1225_v43 = vpop.f32.mrb[39].mxu0  ;;  %4411 = vmatprep.subr.bf16.mxu1 %v4388_v23 }
 0x1b3   : > { %v1261_v3 = vpop.f32.mrb[36].mxu1 }
 0x1b4   : > { %v6384_v58 = vadd.f32 %v1261_v3, %v6299_v54  ;;  %4869 = vmatmul.mubr.msk.bf16.vlgmr.msra.gmra.mrb[144].mxu0 %vm253_vm3, %v6343_v31  ;;  %v4944_v28 = vpop.f32.mrb[37].mxu1 }
 0x1b5   : > { %5007 = vmatpush3.bf16.msra.mxu0 %v4135_v10  ;;  %v1264_v42 = vpop.f32.mrb[38].mxu1  ;;  %5008 = vmatprep.mubr.msk.bf16.mxu0 %vm5060_vm4, %v5059_v34 }
 0x1b6   : > { %v4945_v8 = vpop.f32.mrb[39].mxu1  ;;  %4452 = vmatprep.subr.bf16.mxu0 %v4394_v24 }
 0x1b7   : > { %v1390_v54 = vpop.f32.mrb[40].mxu0 }
 0x1b8   : > { %v1560_v17 = vadd.f32 %v1390_v54, %v6316_v33  ;;  %v1392_v18 = vpop.f32.mrb[41].mxu0  ;;  %4870 = vmatmul.mubr.msk.bf16.vlgmr.msra.gmra.mrb[144].mxu1 %vm253_vm3, %v6343_v31 }
 0x1b9   : > { %v1561_v62 = vadd.f32 %v1392_v18, %v6322_v5  ;;  %4412 = vmatpush1.bf16.msra.mxu1 %v4385_v44  ;;  %v1394_v40 = vpop.f32.mrb[42].mxu0  ;;  %4443 = vmatprep.mubr.bf16.mxu1 %v5055_v15  ;;  %v4397_v5 = vand.u32 %v4376_v2, %v5297_v46 }
 0x1ba   : > { %v1395_v60 = vpop.f32.mrb[43].mxu0  ;;  %4493 = vmatprep.subr.bf16.mxu1 %v4400_v55 }
 0x1bb   : > { %v1431_v33 = vpop.f32.mrb[40].mxu1 }
 0x1bc   : > { %v1562_v41 = vadd.f32 %v1431_v33, %v6330_v35  ;;  %v1433_v32 = vpop.f32.mrb[41].mxu1  ;;  %5009 = vmatmul.mubr.msk.bf16.vlgmr.msra.gmra.mrb[148].mxu0 %vm253_vm3, %v6343_v31 }
 0x1bd   : > { %v1563_v63 = vadd.f32 %v1433_v32, %v6338_v45  ;;  %4453 = vmatpush1.bf16.msra.mxu0 %v4391_v47  ;;  %v1435_v52 = vpop.f32.mrb[42].mxu1  ;;  %4484 = vmatprep.mubr.bf16.mxu0 %v5055_v15  ;;  %v4403_v45 = vand.u32 %v4378_v53, %v5297_v46 }
 0x1be   : > { %v1436_v20 = vpop.f32.mrb[43].mxu1  ;;  %4534 = vmatprep.subr.bf16.mxu0 %v4406_v49 }
 0x1bf   : > { %v1472_v35 = vpop.f32.mrb[44].mxu0 }
 0x1c0   : > { %v1564_v50 = vadd.f32 %v1472_v35, %v6353_v0  ;;  %v1474_v12 = vpop.f32.mrb[45].mxu0  ;;  %4873 = vmatmul.mubr.msk.bf16.vlgmr.msra.gmra.mrb[148].mxu1 %vm253_vm3, %v4872_v6 }
 0x1c1   : > { %v1565_v31 = vadd.f32 %v1474_v12, %v6359_v25  ;;  %4494 = vmatpush1.bf16.msra.mxu1 %v4397_v5  ;;  %v1476_v9 = vpop.f32.mrb[46].mxu0  ;;  %4525 = vmatprep.mubr.bf16.mxu1 %v5055_v15  ;;  %v4409_v25 = vand.u32 %v4380_v29, %v5297_v46 }
 0x1c2   : > { %v1477_v19 = vpop.f32.mrb[47].mxu0  ;;  %5012 = vmatprep.subr.bf16.mxu1 %v5059_v34 }
 0x1c3   : > { %v1513_v7 = vpop.f32.mrb[44].mxu1 }
 0x1c4   : > { %v1566_v26 = vadd.f32 %v1513_v7, %v6370_v30  ;;  %v1515_v0 = vpop.f32.mrb[45].mxu1  ;;  %4874 = vmatmul.mubr.msk.bf16.vlgmr.msra.gmra.mrb[152].mxu0 %vm253_vm3, %v4872_v6 }
 0x1c5   : > { %v1567_v61 = vadd.f32 %v1515_v0, %v6376_v51  ;;  %4535 = vmatpush1.bf16.msra.mxu0 %v4403_v45  ;;  %v1517_v39 = vpop.f32.mrb[46].mxu1  ;;  %4566 = vmatprep.mubr.bf16.mxu0 %v5055_v15 }
 0x1c6   : > { %v1518_v56 = vpop.f32.mrb[47].mxu1 }
 0x1c7   : > { %v1554_v16 = vpop.f32.mrb[48].mxu0 }
 0x1c8   : > { %v1568_v21 = vadd.f32 %v1554_v16, %v6384_v58  ;;  %4875 = vmatmul.mubr.msk.bf16.vlgmr.msra.gmra.mrb[152].mxu1 %vm253_vm3, %v4872_v6  ;;  %v4950_v37 = vpop.f32.mrb[49].mxu0 }
 0x1c9   : > { %5013 = vmatpush3.bf16.msra.mxu1 %v4409_v25  ;;  %v1557_v23 = vpop.f32.mrb[50].mxu0  ;;  %5014 = vmatprep.mubr.msk.bf16.mxu1 %vm5060_vm4, %v5059_v34 }
 0x1ca   : > { %v4951_v38 = vpop.f32.mrb[51].mxu0 }
 0x1cb   : > { %v1665_v4 = vpop.f32.mrb[48].mxu1 }
 0x1cc   : > { %v1835_v59 = vadd.f32 %v1665_v4, %v1560_v17  ;;  %v1667_v30 = vpop.f32.mrb[49].mxu1  ;;  %4876 = vmatmul.mubr.msk.bf16.vlgmr.msra.gmra.mrb[156].mxu0 %vm253_vm3, %v4872_v6 }
 0x1cd   : > { %v1836_v46 = vadd.f32 %v1667_v30, %v1561_v62  ;;  %v1669_v15 = vpop.f32.mrb[50].mxu1 }
 0x1ce   : > { %v1670_v13 = vpop.f32.mrb[51].mxu1 }
 0x1cf   : > { %v1706_v10 = vpop.f32.mrb[52].mxu0 }
 0x1d0   : > { %v1837_v51 = vadd.f32 %v1706_v10, %v1562_v41  ;;  %v1708_v14 = vpop.f32.mrb[53].mxu0  ;;  %5015 = vmatmul.mubr.msk.bf16.vlgmr.msra.gmra.mrb[156].mxu1 %vm253_vm3, %v4872_v6 }
 0x1d1   : > { %v1838_v22 = vadd.f32 %v1708_v14, %v1563_v63  ;;  %v1710_v43 = vpop.f32.mrb[54].mxu0 }
 0x1d2   : > { %v1711_v24 = vpop.f32.mrb[55].mxu0 }
 0x1d3   : > { %v1747_v3 = vpop.f32.mrb[52].mxu1 }
 0x1d4   : > { %v1839_v11 = vadd.f32 %v1747_v3, %v1564_v50  ;;  %v1749_v34 = vpop.f32.mrb[53].mxu1 }
 0x1d5   : > { %v1840_v27 = vadd.f32 %v1749_v34, %v1565_v31  ;;  %v1751_v58 = vpop.f32.mrb[54].mxu1 }
 0x1d6   : > { %v1752_v28 = vpop.f32.mrb[55].mxu1 }
 0x1d7   : > { %v1788_v1 = vpop.f32.mrb[56].mxu0 }
 0x1d8   : > { %v1841_v44 = vadd.f32 %v1788_v1, %v1566_v26  ;;  %v1790_v42 = vpop.f32.mrb[57].mxu0 }
 0x1d9   : > { %v1842_v48 = vadd.f32 %v1790_v42, %v1567_v61  ;;  %v1792_v8 = vpop.f32.mrb[58].mxu0 }
 0x1da   : > { %v1793_v55 = vpop.f32.mrb[59].mxu0 }
 0x1db   : > { %v1829_v54 = vpop.f32.mrb[56].mxu1 }
 0x1dc   : > { %v1843_v36 = vadd.f32 %v1829_v54, %v1568_v21  ;;  %v4956_v17 = vpop.f32.mrb[57].mxu1 }
 0x1dd   : > { %v1832_v18 = vpop.f32.mrb[58].mxu1 }
 0x1de   : > { %v4957_v47 = vpop.f32.mrb[59].mxu1 }
 0x1df   : > { %v1939_v62 = vpop.f32.mrb[60].mxu0 }
 0x1e0   : > { %v2109_v40 = vadd.f32 %v1939_v62, %v1835_v59  ;;  %v1941_v2 = vpop.f32.mrb[61].mxu0 }
 0x1e1   : > { %v2110_v60 = vadd.f32 %v1941_v2, %v1836_v46  ;;  %v1943_v49 = vpop.f32.mrb[62].mxu0 }
 0x1e2   : > { %v1944_v33 = vpop.f32.mrb[63].mxu0 }
 0x1e3   : > { %v1980_v41 = vpop.f32.mrb[60].mxu1 }
 0x1e4   : > { %v2111_v32 = vadd.f32 %v1980_v41, %v1837_v51  ;;  %v1982_v5 = vpop.f32.mrb[61].mxu1 }
 0x1e5   : > { %v2112_v63 = vadd.f32 %v1982_v5, %v1838_v22  ;;  %v1984_v52 = vpop.f32.mrb[62].mxu1 }
 0x1e6   : > { %v1985_v6 = vpop.f32.mrb[63].mxu1 }
 0x1e7   : > { %v2021_v53 = vpop.f32.mrb[64].mxu0 }
 0x1e8   : > { %v2113_v20 = vadd.f32 %v2021_v53, %v1839_v11  ;;  %v2023_v35 = vpop.f32.mrb[65].mxu0 }
 0x1e9   : > { %v2114_v57 = vadd.f32 %v2023_v35, %v1840_v27  ;;  %v2025_v50 = vpop.f32.mrb[66].mxu0 }
 0x1ea   : > { %v2026_v12 = vpop.f32.mrb[67].mxu0 }
 0x1eb   : > { %v2062_v45 = vpop.f32.mrb[64].mxu1 }
 0x1ec   : > { %v2115_v31 = vadd.f32 %v2062_v45, %v1841_v44  ;;  %v2064_v9 = vpop.f32.mrb[65].mxu1 }
 0x1ed   : > { %v2116_v19 = vadd.f32 %v2064_v9, %v1842_v48  ;;  %v2066_v29 = vpop.f32.mrb[66].mxu1 }
 0x1ee   : > { %v2067_v7 = vpop.f32.mrb[67].mxu1 }
 0x1ef   : > { %v2103_v26 = vpop.f32.mrb[68].mxu0 }
 0x1f0   : > { %v2117_v0 = vadd.f32 %v2103_v26, %v1843_v36  ;;  %v4962_v61 = vpop.f32.mrb[69].mxu0 }
 0x1f1   : > { %v2106_v39 = vpop.f32.mrb[70].mxu0 }
 0x1f2   : > { %v4963_v25 = vpop.f32.mrb[71].mxu0 }
 0x1f3   : > { %v2213_v56 = vpop.f32.mrb[68].mxu1 }
 0x1f4   : > { %v2383_v16 = vadd.f32 %v2213_v56, %v2109_v40  ;;  %v2215_v21 = vpop.f32.mrb[69].mxu1 }
 0x1f5   : > { %v2384_v37 = vadd.f32 %v2215_v21, %v2110_v60  ;;  %v2217_v23 = vpop.f32.mrb[70].mxu1 }
 0x1f6   : > { %v2218_v38 = vpop.f32.mrb[71].mxu1 }
 0x1f7   : > { %v2254_v4 = vpop.f32.mrb[72].mxu0 }
 0x1f8   : > { %v2385_v59 = vadd.f32 %v2254_v4, %v2111_v32  ;;  %v2256_v30 = vpop.f32.mrb[73].mxu0 }
 0x1f9   : > { %v2386_v46 = vadd.f32 %v2256_v30, %v2112_v63  ;;  %v2258_v15 = vpop.f32.mrb[74].mxu0 }
 0x1fa   : > { %v2259_v13 = vpop.f32.mrb[75].mxu0 }
 0x1fb   : > { %v2295_v10 = vpop.f32.mrb[72].mxu1 }
 0x1fc   : > { %v2387_v51 = vadd.f32 %v2295_v10, %v2113_v20  ;;  %v2297_v14 = vpop.f32.mrb[73].mxu1 }
 0x1fd   : > { %v2388_v22 = vadd.f32 %v2297_v14, %v2114_v57  ;;  %v2299_v43 = vpop.f32.mrb[74].mxu1 }
 0x1fe   : > { %v2300_v24 = vpop.f32.mrb[75].mxu1 }
 0x1ff   : > { %v2336_v3 = vpop.f32.mrb[76].mxu0 }
 0x200   : > { %v2389_v11 = vadd.f32 %v2336_v3, %v2115_v31  ;;  %v2338_v34 = vpop.f32.mrb[77].mxu0 }
 0x201   : > { %v2390_v27 = vadd.f32 %v2338_v34, %v2116_v19  ;;  %v2340_v58 = vpop.f32.mrb[78].mxu0 }
 0x202   : > { %v2341_v28 = vpop.f32.mrb[79].mxu0 }
 0x203   : > { %v2377_v1 = vpop.f32.mrb[76].mxu1 }
 0x204   : > { %v2391_v44 = vadd.f32 %v2377_v1, %v2117_v0  ;;  %v4968_v42 = vpop.f32.mrb[77].mxu1 }
 0x205   : > { %v2380_v48 = vpop.f32.mrb[78].mxu1 }
 0x206   : > { %v4969_v8 = vpop.f32.mrb[79].mxu1 }
 0x207   : > { %v2506_v55 = vpop.f32.mrb[80].mxu0 }
 0x208   : > { %v2676_v54 = vadd.f32 %v2506_v55, %v2383_v16  ;;  %v2508_v36 = vpop.f32.mrb[81].mxu0 }
 0x209   : > { %v2677_v17 = vadd.f32 %v2508_v36, %v2384_v37  ;;  %v2510_v18 = vpop.f32.mrb[82].mxu0 }
 0x20a   : > { %v2511_v47 = vpop.f32.mrb[83].mxu0 }
 0x20b   : > { %v2547_v62 = vpop.f32.mrb[80].mxu1 }
 0x20c   : > { %v2678_v40 = vadd.f32 %v2547_v62, %v2385_v59  ;;  %v2549_v2 = vpop.f32.mrb[81].mxu1 }
 0x20d   : > { %v2679_v60 = vadd.f32 %v2549_v2, %v2386_v46  ;;  %v2551_v49 = vpop.f32.mrb[82].mxu1 }
 0x20e   : > { %v2552_v33 = vpop.f32.mrb[83].mxu1 }
 0x20f   : > { %v2588_v41 = vpop.f32.mrb[84].mxu0 }
 0x210   : > { %v2680_v32 = vadd.f32 %v2588_v41, %v2387_v51  ;;  %v2590_v5 = vpop.f32.mrb[85].mxu0 }
 0x211   : > { %v2681_v63 = vadd.f32 %v2590_v5, %v2388_v22  ;;  %v2592_v52 = vpop.f32.mrb[86].mxu0 }
 0x212   : > { %v2593_v6 = vpop.f32.mrb[87].mxu0 }
 0x213   : > { %v2629_v53 = vpop.f32.mrb[84].mxu1 }
 0x214   : > { %v2682_v20 = vadd.f32 %v2629_v53, %v2389_v11  ;;  %v2631_v35 = vpop.f32.mrb[85].mxu1 }
 0x215   : > { %v2683_v57 = vadd.f32 %v2631_v35, %v2390_v27  ;;  %v2633_v50 = vpop.f32.mrb[86].mxu1 }
 0x216   : > { %v2634_v12 = vpop.f32.mrb[87].mxu1 }
 0x217   : > { %v2670_v45 = vpop.f32.mrb[88].mxu0 }
 0x218   : > { %v2684_v31 = vadd.f32 %v2670_v45, %v2391_v44  ;;  %v4974_v9 = vpop.f32.mrb[89].mxu0 }
 0x219   : > { %v2673_v19 = vpop.f32.mrb[90].mxu0 }
 0x21a   : > { %v4975_v29 = vpop.f32.mrb[91].mxu0 }
 0x21b   : > { %v2781_v7 = vpop.f32.mrb[88].mxu1 }
 0x21c   : > { %v2951_v26 = vadd.f32 %v2781_v7, %v2676_v54  ;;  %v2783_v0 = vpop.f32.mrb[89].mxu1 }
 0x21d   : > { %v2952_v61 = vadd.f32 %v2783_v0, %v2677_v17  ;;  %v2785_v39 = vpop.f32.mrb[90].mxu1 }
 0x21e   : > { %v2786_v25 = vpop.f32.mrb[91].mxu1 }
 0x21f   : > { %v2822_v56 = vpop.f32.mrb[92].mxu0 }
 0x220   : > { %v2953_v16 = vadd.f32 %v2822_v56, %v2678_v40  ;;  %v2824_v21 = vpop.f32.mrb[93].mxu0 }
 0x221   : > { %v2954_v37 = vadd.f32 %v2824_v21, %v2679_v60  ;;  %v2826_v23 = vpop.f32.mrb[94].mxu0 }
 0x222   : > { %v2827_v38 = vpop.f32.mrb[95].mxu0 }
 0x223   : > { %v2863_v4 = vpop.f32.mrb[92].mxu1 }
 0x224   : > { %v2955_v59 = vadd.f32 %v2863_v4, %v2680_v32  ;;  %v2865_v30 = vpop.f32.mrb[93].mxu1 }
 0x225   : > { %v2956_v46 = vadd.f32 %v2865_v30, %v2681_v63  ;;  %v2867_v15 = vpop.f32.mrb[94].mxu1 }
 0x226   : > { %v2868_v13 = vpop.f32.mrb[95].mxu1 }
 0x227   : > { %v2904_v10 = vpop.f32.mrb[96].mxu0 }
 0x228   : > { %v2957_v51 = vadd.f32 %v2904_v10, %v2682_v20  ;;  %v2906_v14 = vpop.f32.mrb[97].mxu0 }
 0x229   : > { %v2958_v22 = vadd.f32 %v2906_v14, %v2683_v57  ;;  %v2908_v43 = vpop.f32.mrb[98].mxu0 }
 0x22a   : > { %v2909_v24 = vpop.f32.mrb[99].mxu0 }
 0x22b   : > { %v2945_v3 = vpop.f32.mrb[96].mxu1 }
 0x22c   : > { %v2959_v11 = vadd.f32 %v2945_v3, %v2684_v31  ;;  %v4980_v34 = vpop.f32.mrb[97].mxu1 }
 0x22d   : > { %v2948_v27 = vpop.f32.mrb[98].mxu1 }
 0x22e   : > { %v4981_v58 = vpop.f32.mrb[99].mxu1 }
 0x22f   : > { %v3055_v28 = vpop.f32.mrb[100].mxu0 }
 0x230   : > { %v3225_v1 = vadd.f32 %v3055_v28, %v2951_v26  ;;  %v3057_v44 = vpop.f32.mrb[101].mxu0 }
 0x231   : > { %v3226_v42 = vadd.f32 %v3057_v44, %v2952_v61  ;;  %v3059_v48 = vpop.f32.mrb[102].mxu0 }
 0x232   : > { %v3060_v8 = vpop.f32.mrb[103].mxu0 }
 0x233   : > { %v3096_v55 = vpop.f32.mrb[100].mxu1 }
 0x234   : > { %v3227_v54 = vadd.f32 %v3096_v55, %v2953_v16  ;;  %v3098_v36 = vpop.f32.mrb[101].mxu1 }
 0x235   : > { %v3228_v17 = vadd.f32 %v3098_v36, %v2954_v37  ;;  %v3100_v18 = vpop.f32.mrb[102].mxu1 }
 0x236   : > { %v3101_v47 = vpop.f32.mrb[103].mxu1 }
 0x237   : > { %v3137_v62 = vpop.f32.mrb[104].mxu0 }
 0x238   : > { %v3229_v40 = vadd.f32 %v3137_v62, %v2955_v59  ;;  %v3139_v2 = vpop.f32.mrb[105].mxu0 }
 0x239   : > { %v3230_v60 = vadd.f32 %v3139_v2, %v2956_v46  ;;  %v3141_v49 = vpop.f32.mrb[106].mxu0 }
 0x23a   : > { %v3142_v33 = vpop.f32.mrb[107].mxu0 }
 0x23b   : > { %v3178_v41 = vpop.f32.mrb[104].mxu1 }
 0x23c   : > { %v3231_v32 = vadd.f32 %v3178_v41, %v2957_v51  ;;  %v3180_v5 = vpop.f32.mrb[105].mxu1 }
 0x23d   : > { %v3232_v63 = vadd.f32 %v3180_v5, %v2958_v22  ;;  %v3182_v52 = vpop.f32.mrb[106].mxu1 }
 0x23e   : > { %v3183_v6 = vpop.f32.mrb[107].mxu1 }
 0x23f   : > { %v3219_v53 = vpop.f32.mrb[108].mxu0 }
 0x240   : > { %v3233_v20 = vadd.f32 %v3219_v53, %v2959_v11  ;;  %v4986_v35 = vpop.f32.mrb[109].mxu0 }
 0x241   : > { %v3222_v57 = vpop.f32.mrb[110].mxu0 }
 0x242   : > { %v4987_v50 = vpop.f32.mrb[111].mxu0 }
 0x243   : > { %v3329_v12 = vpop.f32.mrb[108].mxu1 }
 0x244   : > { %v3499_v45 = vadd.f32 %v3329_v12, %v3225_v1  ;;  %v3331_v31 = vpop.f32.mrb[109].mxu1 }
 0x245   : > { %v3500_v9 = vadd.f32 %v3331_v31, %v3226_v42  ;;  %v3333_v19 = vpop.f32.mrb[110].mxu1 }
 0x246   : > { %v3334_v29 = vpop.f32.mrb[111].mxu1 }
 0x247   : > { %v3370_v7 = vpop.f32.mrb[112].mxu0 }
 0x248   : > { %v3501_v26 = vadd.f32 %v3370_v7, %v3227_v54  ;;  %v3372_v0 = vpop.f32.mrb[113].mxu0 }
 0x249   : > { %v3502_v61 = vadd.f32 %v3372_v0, %v3228_v17  ;;  %v3374_v39 = vpop.f32.mrb[114].mxu0 }
 0x24a   : > { %v3375_v25 = vpop.f32.mrb[115].mxu0 }
 0x24b   : > { %v3411_v56 = vpop.f32.mrb[112].mxu1 }
 0x24c   : > { %v3503_v16 = vadd.f32 %v3411_v56, %v3229_v40  ;;  %v3413_v21 = vpop.f32.mrb[113].mxu1 }
 0x24d   : > { %v3504_v37 = vadd.f32 %v3413_v21, %v3230_v60  ;;  %v3415_v23 = vpop.f32.mrb[114].mxu1 }
 0x24e   : > { %v3416_v38 = vpop.f32.mrb[115].mxu1 }
 0x24f   : > { %v3452_v4 = vpop.f32.mrb[116].mxu0 }
 0x250   : > { %v3505_v59 = vadd.f32 %v3452_v4, %v3231_v32  ;;  %v3454_v30 = vpop.f32.mrb[117].mxu0 }
 0x251   : > { %v3506_v46 = vadd.f32 %v3454_v30, %v3232_v63  ;;  %v3456_v15 = vpop.f32.mrb[118].mxu0 }
 0x252   : > { %v3457_v13 = vpop.f32.mrb[119].mxu0 }
 0x253   : > { %v3493_v10 = vpop.f32.mrb[116].mxu1 }
 0x254   : > { %v3507_v51 = vadd.f32 %v3493_v10, %v3233_v20  ;;  %v4992_v14 = vpop.f32.mrb[117].mxu1 }
 0x255   : > { %v3496_v22 = vpop.f32.mrb[118].mxu1 }
 0x256   : > { %v4993_v43 = vpop.f32.mrb[119].mxu1 }
 0x257   : > { %v3622_v24 = vpop.f32.mrb[120].mxu0 }
 0x258   : > { %v3792_v3 = vadd.f32 %v3622_v24, %v3499_v45  ;;  %v3624_v11 = vpop.f32.mrb[121].mxu0 }
 0x259   : > { %v3793_v34 = vadd.f32 %v3624_v11, %v3500_v9  ;;  %v3626_v27 = vpop.f32.mrb[122].mxu0 }
 0x25a   : > { %v3627_v58 = vpop.f32.mrb[123].mxu0 }
 0x25b   : > { %v3663_v28 = vpop.f32.mrb[120].mxu1 }
 0x25c   : > { %v3794_v1 = vadd.f32 %v3663_v28, %v3501_v26  ;;  %v3665_v44 = vpop.f32.mrb[121].mxu1 }
 0x25d   : > { %v3795_v42 = vadd.f32 %v3665_v44, %v3502_v61  ;;  %v3667_v48 = vpop.f32.mrb[122].mxu1 }
 0x25e   : > { %v3668_v8 = vpop.f32.mrb[123].mxu1 }
 0x25f   : > { %v3704_v55 = vpop.f32.mrb[124].mxu0 }
 0x260   : > { %v3796_v54 = vadd.f32 %v3704_v55, %v3503_v16  ;;  %v3706_v36 = vpop.f32.mrb[125].mxu0 }
 0x261   : > { %v3797_v17 = vadd.f32 %v3706_v36, %v3504_v37  ;;  %v3708_v18 = vpop.f32.mrb[126].mxu0 }
 0x262   : > { %v3709_v47 = vpop.f32.mrb[127].mxu0 }
 0x263   : > { %v3745_v62 = vpop.f32.mrb[124].mxu1 }
 0x264   : > { %v3798_v40 = vadd.f32 %v3745_v62, %v3505_v59  ;;  %v3747_v2 = vpop.f32.mrb[125].mxu1 }
 0x265   : > { %v3799_v60 = vadd.f32 %v3747_v2, %v3506_v46  ;;  %v3749_v49 = vpop.f32.mrb[126].mxu1 }
 0x266   : > { %v3750_v33 = vpop.f32.mrb[127].mxu1 }
 0x267   : > { %v3786_v41 = vpop.f32.mrb[128].mxu0 }
 0x268   : > { %v3800_v32 = vadd.f32 %v3786_v41, %v3507_v51  ;;  %v4998_v5 = vpop.f32.mrb[129].mxu0  ;;  %v6434_v41 = vpop.permute.xlu0 %4627 }
 0x269   : > { %v3789_v63 = vpop.f32.mrb[130].mxu0 }
 0x26a   : > { %v4999_v52 = vpop.f32.mrb[131].mxu0 }
 0x26b   : > { %v3897_v6 = vpop.f32.mrb[128].mxu1 }
 0x26c   : > { %v4067_v53 = vadd.f32 %v3897_v6, %v3792_v3  ;;  %v3899_v20 = vpop.f32.mrb[129].mxu1 }
 0x26d   : > { %v4068_v35 = vadd.f32 %v3899_v20, %v3793_v34  ;;  %v3901_v57 = vpop.f32.mrb[130].mxu1 }
 0x26e   : > { %v3902_v50 = vpop.f32.mrb[131].mxu1 }
 0x26f   : > { %v3938_v12 = vpop.f32.mrb[132].mxu0 }
 0x270   : > { %v4069_v45 = vadd.f32 %v3938_v12, %v3794_v1  ;;  %v3940_v31 = vpop.f32.mrb[133].mxu0 }
 0x271   : > { %v4070_v9 = vadd.f32 %v3940_v31, %v3795_v42  ;;  %v3942_v19 = vpop.f32.mrb[134].mxu0 }
 0x272   : > { %v3943_v29 = vpop.f32.mrb[135].mxu0 }
 0x273   : > { %v3979_v7 = vpop.f32.mrb[132].mxu1 }
 0x274   : > { %v4071_v26 = vadd.f32 %v3979_v7, %v3796_v54  ;;  %v3981_v0 = vpop.f32.mrb[133].mxu1 }
 0x275   : > { %v4072_v61 = vadd.f32 %v3981_v0, %v3797_v17  ;;  %v3983_v39 = vpop.f32.mrb[134].mxu1 }
 0x276   : > { %v3984_v25 = vpop.f32.mrb[135].mxu1 }
 0x277   : > { %v4020_v56 = vpop.f32.mrb[136].mxu0 }
 0x278   : > { %v4073_v16 = vadd.f32 %v4020_v56, %v3798_v40  ;;  %v4022_v21 = vpop.f32.mrb[137].mxu0 }
 0x279   : > { %v4074_v37 = vadd.f32 %v4022_v21, %v3799_v60  ;;  %v4024_v23 = vpop.f32.mrb[138].mxu0 }
 0x27a   : > { %v4025_v38 = vpop.f32.mrb[139].mxu0 }
 0x27b   : > { %v4061_v4 = vpop.f32.mrb[136].mxu1 }
 0x27c   : > { %v4075_v59 = vadd.f32 %v4061_v4, %v3800_v32  ;;  %v5004_v30 = vpop.f32.mrb[137].mxu1 }
 0x27d   : > { %v4064_v46 = vpop.f32.mrb[138].mxu1 }
 0x27e   : > { %v5005_v15 = vpop.f32.mrb[139].mxu1 }
 0x27f   : > { %v4171_v13 = vpop.f32.mrb[140].mxu0 }
 0x280   : > { %v4341_v10 = vadd.f32 %v4171_v13, %v4067_v53  ;;  %v4173_v51 = vpop.f32.mrb[141].mxu0 }
 0x281   : > { %v4342_v14 = vadd.f32 %v4173_v51, %v4068_v35  ;;  %v4175_v22 = vpop.f32.mrb[142].mxu0 }
 0x282   : > { %v4176_v43 = vpop.f32.mrb[143].mxu0 }
 0x283   : > { %v4212_v24 = vpop.f32.mrb[140].mxu1 }
 0x284   : > { %v4343_v3 = vadd.f32 %v4212_v24, %v4069_v45  ;;  %v4214_v11 = vpop.f32.mrb[141].mxu1 }
 0x285   : > { %v4344_v34 = vadd.f32 %v4214_v11, %v4070_v9  ;;  %v4216_v27 = vpop.f32.mrb[142].mxu1 }
 0x286   : > { %v4217_v58 = vpop.f32.mrb[143].mxu1 }
 0x287   : > { %v4253_v28 = vpop.f32.mrb[144].mxu0 }
 0x288   : > { %v4345_v1 = vadd.f32 %v4253_v28, %v4071_v26  ;;  %v4255_v44 = vpop.f32.mrb[145].mxu0 }
 0x289   : > { %v4346_v42 = vadd.f32 %v4255_v44, %v4072_v61  ;;  %v4257_v48 = vpop.f32.mrb[146].mxu0 }
 0x28a   : > { %v4258_v8 = vpop.f32.mrb[147].mxu0 }
 0x28b   : > { %v4294_v55 = vpop.f32.mrb[144].mxu1 }
 0x28c   : > { %v4347_v54 = vadd.f32 %v4294_v55, %v4073_v16  ;;  %v4296_v36 = vpop.f32.mrb[145].mxu1 }
 0x28d   : > { %v4348_v17 = vadd.f32 %v4296_v36, %v4074_v37  ;;  %v4298_v18 = vpop.f32.mrb[146].mxu1 }
 0x28e   : > { %v4299_v47 = vpop.f32.mrb[147].mxu1 }
 0x28f   : > { %v4335_v62 = vpop.f32.mrb[148].mxu0 }
 0x290   : > { %v6432_v40 = vadd.f32 %v4335_v62, %v4075_v59  ;;  %v5010_v2 = vpop.f32.mrb[149].mxu0 }
 0x291   : > { %v4338_v60 = vpop.f32.mrb[150].mxu0 }
 0x292   : > { %v5011_v49 = vpop.f32.mrb[151].mxu0 }
 0x293   : > { %v4445_v33 = vpop.f32.mrb[148].mxu1 }
 0x294   : > { %v4615_v32 = vadd.f32 %v4445_v33, %v4341_v10  ;;  %v4447_v5 = vpop.f32.mrb[149].mxu1 }
 0x295   : > { %v4616_v63 = vadd.f32 %v4447_v5, %v4342_v14  ;;  %v4449_v52 = vpop.f32.mrb[150].mxu1 }
 0x296   : > { %v4630_v6 = vadd.f32 %v6434_v41, %v4615_v32  ;;  %v4450_v53 = vpop.f32.mrb[151].mxu1 }
 0x297   : > { %v4631_v20 = vadd.f32 %v6434_v41, %v4616_v63  ;;  %v4486_v35 = vpop.f32.mrb[152].mxu0 }
 0x298   : > { %vm4639_vm7 = vcmp.gt.f32.partialorder %v4630_v6, 0.0  ;;  %v4648_v57 = vmul.f32 0.2, %v4630_v6  ;;  %v4617_v50 = vadd.f32 %v4486_v35, %v4343_v3  ;;  %v4488_v12 = vpop.f32.mrb[153].mxu0 }
 0x299   : > { %vm4640_vm8 = vcmp.gt.f32.partialorder %v4631_v20, 0.0  ;;  %v4649_v45 = vmul.f32 0.2, %v4631_v20  ;;  %v4618_v31 = vadd.f32 %v4488_v12, %v4344_v34  ;;  %v4490_v9 = vpop.f32.mrb[154].mxu0 }
 0x29a   : > { %v4657_v19 = vsel %vm4639_vm7, %v4630_v6, %v4648_v57  ;;  %v4632_v29 = vadd.f32 %v6434_v41, %v4617_v50  ;;  %v4491_v7 = vpop.f32.mrb[155].mxu0 }
 0x29b   : > { %v4658_v26 = vsel %vm4640_vm8, %v4631_v20, %v4649_v45  ;;  %v4633_v0 = vadd.f32 %v6434_v41, %v4618_v31  ;;  %v4527_v61 = vpop.f32.mrb[152].mxu1 }
 0x29c   : > { %vm4641_vm9 = vcmp.gt.f32.partialorder %v4632_v29, 0.0  ;;  %v4650_v39 = vmul.f32 0.2, %v4632_v29  ;;  %v4885_v25 = vpack.c.bf16 %v4658_v26, %v4657_v19  ;;  %v4619_v56 = vadd.f32 %v4527_v61, %v4345_v1  ;;  %v4529_v16 = vpop.f32.mrb[153].mxu1 }
 0x29d   : > { %vm4642_vm10 = vcmp.gt.f32.partialorder %v4633_v0, 0.0  ;;  %v4651_v21 = vmul.f32 0.2, %v4633_v0  ;;  %v4620_v37 = vadd.f32 %v4529_v16, %v4346_v42  ;;  %v4531_v23 = vpop.f32.mrb[154].mxu1 }
 0x29e   : > { %v4659_v38 = vsel %vm4641_vm9, %v4632_v29, %v4650_v39  ;;  %4703 = vst [vmem:[%s6443_s6] sm:$0xff] %v4885_v25  ;;  %v4634_v4 = vadd.f32 %v6434_v41, %v4619_v56  ;;  %v4532_v59 = vpop.f32.mrb[155].mxu1 }
 0x29f   : > { %v4660_v30 = vsel %vm4642_vm10, %v4633_v0, %v4651_v21  ;;  %v4635_v46 = vadd.f32 %v6434_v41, %v4620_v37  ;;  %v4568_v15 = vpop.f32.mrb[156].mxu0 }
 0x2a0   : > { %v4886_v13 = vpack.c.bf16 %v4660_v30, %v4659_v38  ;;  %vm4643_vm11 = vcmp.gt.f32.partialorder %v4634_v4, 0.0  ;;  %v4652_v10 = vmul.f32 0.2, %v4634_v4  ;;  %v4621_v51 = vadd.f32 %v4568_v15, %v4347_v54  ;;  %v4570_v14 = vpop.f32.mrb[157].mxu0 }
 0x2a1   : > { %vm4644_vm12 = vcmp.gt.f32.partialorder %v4635_v46, 0.0  ;;  %v4653_v22 = vmul.f32 0.2, %v4635_v46  ;;  %v4622_v43 = vadd.f32 %v4570_v14, %v4348_v17  ;;  %v4572_v24 = vpop.f32.mrb[158].mxu0 }
 0x2a2   : > { %4704 = vst [vmem:[%s6443_s6 + $0x8] sm:$0xff] %v4886_v13  ;;  %v4661_v3 = vsel %vm4643_vm11, %v4634_v4, %v4652_v10  ;;  %v4636_v11 = vadd.f32 %v6434_v41, %v4621_v51  ;;  %v4573_v34 = vpop.f32.mrb[159].mxu0 }
 0x2a3   : > { %v4662_v27 = vsel %vm4644_vm12, %v4635_v46, %v4653_v22  ;;  %v4637_v58 = vadd.f32 %v6434_v41, %v4622_v43  ;;  %v4609_v28 = vpop.f32.mrb[156].mxu1 }
 0x2a4   : > { %v4887_v1 = vpack.c.bf16 %v4662_v27, %v4661_v3  ;;  %vm4645_vm13 = vcmp.gt.f32.partialorder %v4636_v11, 0.0  ;;  %v4654_v44 = vmul.f32 0.2, %v4636_v11  ;;  %v4623_v42 = vadd.f32 %v4609_v28, %v6432_v40  ;;  %v5016_v48 = vpop.f32.mrb[157].mxu1 }
 0x2a5   : > { %vm4646_vm14 = vcmp.gt.f32.partialorder %v4637_v58, 0.0  ;;  %v4655_v8 = vmul.f32 0.2, %v4637_v58  ;;  %v4612_v55 = vpop.f32.mrb[158].mxu1 }
 0x2a6   : > { %4705 = vst [vmem:[%s6443_s6 + $0x10] sm:$0xff] %v4887_v1  ;;  %v4663_v54 = vsel %vm4645_vm13, %v4636_v11, %v4654_v44  ;;  %v4638_v36 = vadd.f32 %v6434_v41, %v4623_v42  ;;  %v5017_v17 = vpop.f32.mrb[159].mxu1 }
 0x2a7   : > { %v4664_v18 = vsel %vm4646_vm14, %v4637_v58, %v4655_v8 }
 0x2a8   : > { %v4888_v47 = vpack.c.bf16 %v4664_v18, %v4663_v54  ;;  %vm4647_vm15 = vcmp.gt.f32.partialorder %v4638_v36, 0.0  ;;  %v4656_v62 = vmul.f32 0.2, %v4638_v36 }
 0x2aa   : > { %4706 = vst [vmem:[%s6443_s6 + $0x18] sm:$0xff] %v4888_v47  ;;  %v4665_v2 = vsel %vm4647_vm15, %v4638_v36, %v4656_v62 }
 0x2ab   : > { %v4889_v60 = vpack.c.bf16 %v4665_v2, %v4665_v2 }
 0x2ad   : > { %4707 = vst [vmem:[%s6443_s6 + $0x20] sm:$0xf] %v4889_v60 }
 0x2ae PF: > { %s13_s12 = sadd.s32 1, %s5051_s12  }
 0x2af   : > { %p10_p4 = scmp.ge.s32.totalorder %s13_s12, 4  }
 0x2b1   :  { %12 = sbr.rel (!%p10_p4) target bundleno = 1 (0x1), region = 80 }

// kernel: discriminator_forward.9
= control target key start
LH: loop header
LB: loop body
LE: loop exit
PB: predicated region body
PF: predicated region fallthrough
CT: control target
= control target key end

     0   :  { %s336_s9 = smov 0   ;;  %s363_s0 = inlined_call_operand.vmem [shape: f32[2,16,384], index: 0, kind: input, shape index: {}]   ;;  %s364_s1 = inlined_call_operand.vmem [shape: f32[16,2], index: 1, kind: input, shape index: {}]   ;;  %s365_s2 = inlined_call_operand.vmem [shape: bf16[2,16,384], index: 2, kind: output, shape index: {}]  }
   0x1 LB: > { %s279_s10 = sadd.s32 4294967295, %s317_s9   ;;  %p283_p0 = scmp.ge.s32.totalorder %s317_s9, 1  ;;  %s317_s9 = sphi %s336_s9, %s12_s9  }
   0x2   : > { %p112_p1 = scmp.lt.s32.totalorder %s317_s9, 3 }
   0x4   : > { %p113_p2 = pnand %p283_p0, %p112_p1 }
   0x5   : > { %v150_v0 = vld [vmem:[%s364_s1] sm:$0xff] (!%p113_p2)  ;;  %v319_v1 = vmov (!%p113_p2), 1   ;;  %v320_v2 = vmov (!%p113_p2), 0   ;;  %v151_v3 = vld [vmem:[%s364_s1 + $0x8] sm:$0xff] (!%p113_p2)  ;;  %p134_p3 = scmp.lt.s32.totalorder (!%p113_p2), %s279_s10, 1 }
   0x6   : > { %116 = sbr.rel (%p113_p2) target bundleno = 151 (0x97), region = 28  ;;  %309 = vset.pattern.permute.xlu1 (!%p113_p2), %v319_v1  ;;  %308 = vset.pattern.permute.xlu0 (!%p113_p2), %v320_v2 }
   0x7   : > { %169 = vperm.xlu1 (!%p113_p2), %309, %v150_v0   ;;  %154 = vperm.xlu0 (!%p113_p2), %308, %v150_v0  }
   0xb   : > { %173 = vperm.xlu1 (!%p113_p2), %309, %v151_v3   ;;  %159 = vperm.xlu0 (!%p113_p2), %308, %v151_v3  }
   0xd   : > { %s367_s10 = smov (!%p134_p3, %s279_s10), 1 }
   0xe   : > { %s296_s15 = smul.u32 48, %s367_s10 }
   0xf   : > { %310 = vset.pattern.permute.xlu0 %v319_v1  ;;  %s297_s19 = smul.u32 24, %s367_s10 }
  0x10   : > { %s138_s18 = scalar_lea.vmem %s363_s0, %s296_s15 }
  0x11   : > { %v144_v4 = vld [vmem:[%s138_s18] sm:$0xff]  ;;  %v145_v5 = vld [vmem:[%s138_s18 + $0x8] sm:$0xff]  ;;  %v146_v6 = vld [vmem:[%s138_s18 + $0x10] sm:$0xff]  ;;  %s143_s22 = scalar_lea.vmem %s365_s2, %s297_s19 }
  0x12   : > { %v147_v15 = vld [vmem:[%s138_s18 + $0x18] sm:$0xff]  ;;  %v148_v16 = vld [vmem:[%s138_s18 + $0x20] sm:$0xff]  ;;  %v149_v18 = vld [vmem:[%s138_s18 + $0x28] sm:$0xff] }
  0x86   : > { %v155_v7 = vpop.permute.xlu0 %154  ;;  %v170_v8 = vpop.permute.xlu1 %169 }
  0x87   : > { %v162_v9 = vmul.f32 %v155_v7, %v144_v4  ;;  %v163_v10 = vmul.f32 %v155_v7, %v145_v5  ;;  %v164_v11 = vmul.f32 %v155_v7, %v146_v6 }
  0x89   : > { %v176_v12 = vadd.f32 %v170_v8, %v162_v9  ;;  %v177_v13 = vadd.f32 %v170_v8, %v163_v10  ;;  %v178_v14 = vadd.f32 %v170_v8, %v164_v11 }
  0x8a   : > { %v160_v17 = vpop.permute.xlu0 %159  ;;  %v174_v25 = vpop.permute.xlu1 %173 }
  0x8b   : > { %vm182_vm0 = vcmp.gt.f32.partialorder %v176_v12, 0.0  ;;  %vm183_vm1 = vcmp.gt.f32.partialorder %v177_v13, 0.0  ;;  %vm184_vm2 = vcmp.gt.f32.partialorder %v178_v14, 0.0  ;;  %v188_v19 = vmul.f32 0.2, %v176_v12 }
  0x8c   : > { %v189_v20 = vmul.f32 0.2, %v177_v13  ;;  %v190_v21 = vmul.f32 0.2, %v178_v14  ;;  %v165_v22 = vmul.f32 %v160_v17, %v147_v15  ;;  %v166_v23 = vmul.f32 %v160_v17, %v148_v16 }
  0x8d   : > { %v194_v24 = vsel %vm182_vm0, %v176_v12, %v188_v19  ;;  %v167_v26 = vmul.f32 %v160_v17, %v149_v18 }
  0x8e   : > { %v195_v27 = vsel %vm183_vm1, %v177_v13, %v189_v20  ;;  %v196_v28 = vsel %vm184_vm2, %v178_v14, %v190_v21  ;;  %v179_v29 = vadd.f32 %v174_v25, %v165_v22  ;;  %v180_v30 = vadd.f32 %v174_v25, %v166_v23 }
  0x8f   : > { %v292_v31 = vpack.c.bf16 %v195_v27, %v194_v24  ;;  %v293_v32 = vpack.c.bf16 %v196_v28, %v196_v28  ;;  %v181_v33 = vadd.f32 %v174_v25, %v167_v26 }
  0x90   : > { %vm185_vm3 = vcmp.gt.f32.partialorder %v179_v29, 0.0  ;;  %vm186_vm4 = vcmp.gt.f32.partialorder %v180_v30, 0.0  ;;  %v191_v34 = vmul.f32 0.2, %v179_v29  ;;  %v192_v35 = vmul.f32 0.2, %v180_v30 }
  0x91   : > { %220 = vst [vmem:[%s143_s22] sm:$0xff] %v292_v31  ;;  %221 = vst [vmem:[%s143_s22 + $0x8] sm:$0xf] %v293_v32  ;;  %vm187_vm5 = vcmp.gt.f32.partialorder %v181_v33, 0.0  ;;  %v193_v36 = vmul.f32 0.2, %v181_v33 }
  0x92   : > { %v197_v37 = vsel %vm185_vm3, %v179_v29, %v191_v34  ;;  %v198_v38 = vsel %vm186_vm4, %v180_v30, %v192_v35 }
  0x93   : > { %v199_v39 = vsel %vm187_vm5, %v181_v33, %v193_v36  ;;  %v294_v40 = vpack.c.bf16 %v198_v38, %v197_v37 }
  0x94   : > { %v295_v41 = vpack.c.bf16 %v199_v39, %v199_v39 }
  0x95   : > { %222 = vst [vmem:[%s143_s22 + $0xc] sm:$0xff] %v294_v40 }
  0x96   : > { %223 = vst [vmem:[%s143_s22 + $0x14] sm:$0xf] %v295_v41 }
  0x97 PF: > { %s12_s9 = sadd.s32 1, %s317_s9  }
  0x98   : > { %p9_p4 = scmp.ge.s32.totalorder %s12_s9, 4  }
  0x9a   :  { %11 = sbr.rel (!%p9_p4) target bundleno = 1 (0x1), region = 58 }

// kernel: discriminator_forward.8
= control target key start
LH: loop header
LB: loop body
LE: loop exit
PB: predicated region body
PF: predicated region fallthrough
CT: control target
= control target key end

     0   :  { %s2756_s15 = smov 0   ;;  %s3142_s0 = inlined_call_operand.vmem [shape: bf16[2,4,8,512], index: 0, kind: input, shape index: {}]   ;;  %s3143_s1 = inlined_call_operand.vmem [shape: bf16[16,16,8], index: 1, kind: input, shape index: {}]   ;;  %s3144_s2 = inlined_call_operand.vmem [shape: f32[1,384], index: 2, kind: input, shape index: {}]   ;;  %s3145_s3 = inlined_call_operand.vmem [shape: f32[2,16,384], index: 3, kind: output, shape index: {0}]   ;;  %s3146_s4 = inlined_call_operand.vmem [shape: f32[2,16,2], index: 4, kind: output, shape index: {1}]  }
   0x1 LB: > { %s2292_s16 = sadd.s32 4294967295, %s2723_s15   ;;  %p2296_p0 = scmp.ge.s32.totalorder %s2723_s15, 1  ;;  %s2723_s15 = sphi %s2756_s15, %s15_s15  }
   0x2   : > { %p165_p1 = scmp.lt.s32.totalorder %s2723_s15, 3 }
   0x4   : > { %p166_p2 = pnand %p2296_p0, %p165_p1 }
   0x5   : > { %p196_p3 = scmp.lt.s32.totalorder (!%p166_p2), %s2292_s16, 1  ;;  %v2725_v0 = vmov (!%p166_p2), 0.0   ;;  %v2726_v1 = vmov (!%p166_p2), 0   ;;  %vm2727_vm0 = vmmov (!%p166_p2), 0   ;;  %s2728_s21 = smov (!%p166_p2), 127   ;;  %vm242_vm1 = vcmask (!%p166_p2), 1039360  }
   0x6   : > { %169 = sbr.rel (%p166_p2) target bundleno = 693 (0x2b5), region = 32  ;;  %2454 = vmatprep.subr.bf16.mxu1 (!%p166_p2), %v2725_v0  ;;  %292 = vmatprep.mubr.bf16.mxu0 (!%p166_p2), %v2726_v1  ;;  %s2729_s22 = smov (!%p166_p2), 111   ;;  %vm250_vm2 = vcmask (!%p166_p2), 1043456   ;;  %v2697_v35 = vld [vmem:[%s3143_s1 + $0x10] sm:$0xff] (!%p166_p2)   ;;  %vm246_vm3 = vcmask (!%p166_p2), 64512   ;;  %vm461_vm4 = vcmask (!%p166_p2), 908288  }
   0x7   : > { %2456 = vmatprep.mubr.msk.bf16.mxu1 (!%p166_p2), %vm2727_vm0, %v2725_v0  ;;  %s2730_s23 = smov (!%p166_p2), 110   ;;  %v2698_v46 = vld [vmem:[%s3143_s1] sm:$0xff] (!%p166_p2)   ;;  %vm583_vm5 = vcmask (!%p166_p2), 900096   ;;  %v2704_v59 = vld [vmem:[%s3143_s1 + $0x50] sm:$0xff] (!%p166_p2)   ;;  %vm2184_vm6 = vcmask (!%p166_p2), 7168   ;;  %vm2201_vm7 = vcmask (!%p166_p2), 15368  }
   0x8   : > { %v2701_v55 = vld [vmem:[%s3143_s1 + $0x40] sm:$0xff] (!%p166_p2)  }
   0xd   : > { %s3148_s16 = smov (!%p196_p3, %s2292_s16), 1 }
   0xe   : > { %s2420_s17 = sshll.u32 %s3148_s16, 6  ;;  %s2670_s6 = smul.u32 48, %s3148_s16 }
   0xf   : > { %s2774_s20 = scalar_lea.vmem %s3142_s0, %s2420_s17  ;;  %s2421_s12 = sshll.u32 %s3148_s16, 4 }
  0x10   : > { %v213_v2 = vld [vmem:[%s2774_s20 + $0x8] sm:$0xff]  ;;  %v212_v3 = vld [vmem:[%s2774_s20] sm:$0xff]  ;;  %v2328_v8 = vld [vmem:[%s2774_s20 + $0x10] sm:$0xff]  ;;  %s205_s11 = scalar_lea.vmem %s3145_s3, %s2670_s6  ;;  %s210_s17 = scalar_lea.vmem %s3146_s4, %s2421_s12 }
  0x11   : > { %v2778_v4 = vcombine.low %v213_v2, %v213_v2  ;;  %v2780_v5 = vcombine.low %v212_v3, %v212_v3  ;;  %v2308_v6 = vcombine.high %v213_v2, %v213_v2  ;;  %v2786_v7 = vcombine.high %v212_v3, %v212_v3  ;;  %v2329_v11 = vld [vmem:[%s2774_s20 + $0x18] sm:$0xff]  ;;  %v2358_v14 = vld [vmem:[%s2774_s20 + $0x20] sm:$0xff]  ;;  %v2359_v17 = vld [vmem:[%s2774_s20 + $0x28] sm:$0xff] }
  0x12   : > { %v2806_v9 = vcombine.low %v2328_v8, %v2328_v8  ;;  %v2808_v10 = vcombine.high %v2328_v8, %v2328_v8  ;;  %v2815_v12 = vcombine.low %v2329_v11, %v2329_v11  ;;  %v2342_v13 = vcombine.high %v2329_v11, %v2329_v11  ;;  %v2388_v20 = vld [vmem:[%s2774_s20 + $0x30] sm:$0xff]  ;;  %v2389_v23 = vld [vmem:[%s2774_s20 + $0x38] sm:$0xff] }
  0x13   : > { %238 = vrot.lane.b32.xlu1 %v2778_v4, %s2728_s21  ;;  %234 = vrot.lane.b32.xlu0 %v2780_v5, %s2728_s21  ;;  %v2835_v15 = vcombine.low %v2358_v14, %v2358_v14  ;;  %v2837_v16 = vcombine.high %v2358_v14, %v2358_v14  ;;  %v2844_v18 = vcombine.low %v2359_v17, %v2359_v17  ;;  %v353_v36 = vsel %vm250_vm2, %v2780_v5, 0 }
  0x14   : > { %v2372_v19 = vcombine.high %v2359_v17, %v2359_v17  ;;  %v2864_v21 = vcombine.low %v2388_v20, %v2388_v20  ;;  %v2866_v22 = vcombine.high %v2388_v20, %v2388_v20  ;;  %v2873_v24 = vcombine.low %v2389_v23, %v2389_v23  ;;  %v2706_v20 = vld [vmem:[%s3143_s1 + $0x18] sm:$0xff]  }
  0x15   : > { %v2402_v25 = vcombine.high %v2389_v23, %v2389_v23  ;;  %v359_v37 = vsel %vm250_vm2, %v2778_v4, 0  ;;  %v712_v62 = vsel %vm250_vm2, %v2806_v9, 0  ;;  %v718_v63 = vsel %vm250_vm2, %v2815_v12, 0 }
  0x17   : > { %240 = vrot.lane.b32.xlu1 %v2308_v6, %s2728_s21  ;;  %236 = vrot.lane.b32.xlu0 %v2786_v7, %s2728_s21 }
  0x1b   : > { %453 = vrot.lane.b32.xlu0 %v2780_v5, %s2729_s22  ;;  %455 = vrot.lane.b32.xlu1 %v2786_v7, %s2729_s22 }
  0x1f   : > { %457 = vrot.lane.b32.xlu0 %v2778_v4, %s2729_s22  ;;  %459 = vrot.lane.b32.xlu1 %v2308_v6, %s2729_s22 }
  0x23   : > { %575 = vrot.lane.b32.xlu0 %v2780_v5, %s2730_s23  ;;  %577 = vrot.lane.b32.xlu1 %v2786_v7, %s2730_s23 }
  0x27   : > { %579 = vrot.lane.b32.xlu0 %v2778_v4, %s2730_s23  ;;  %581 = vrot.lane.b32.xlu1 %v2308_v6, %s2730_s23 }
  0x2b   : > { %820 = vrot.lane.b32.xlu0 %v2806_v9, %s2728_s21  ;;  %822 = vrot.lane.b32.xlu1 %v2808_v10, %s2728_s21 }
  0x2f   : > { %824 = vrot.lane.b32.xlu0 %v2815_v12, %s2728_s21  ;;  %826 = vrot.lane.b32.xlu1 %v2342_v13, %s2728_s21 }
  0x33   : > { %941 = vrot.lane.b32.xlu0 %v2806_v9, %s2729_s22  ;;  %943 = vrot.lane.b32.xlu1 %v2808_v10, %s2729_s22 }
  0x37   : > { %945 = vrot.lane.b32.xlu0 %v2815_v12, %s2729_s22  ;;  %947 = vrot.lane.b32.xlu1 %v2342_v13, %s2729_s22 }
  0x3b   : > { %1062 = vrot.lane.b32.xlu0 %v2806_v9, %s2730_s23  ;;  %1064 = vrot.lane.b32.xlu1 %v2808_v10, %s2730_s23 }
  0x3f   : > { %1066 = vrot.lane.b32.xlu0 %v2815_v12, %s2730_s23  ;;  %1068 = vrot.lane.b32.xlu1 %v2342_v13, %s2730_s23 }
  0x43   : > { %1306 = vrot.lane.b32.xlu0 %v2835_v15, %s2728_s21  ;;  %1308 = vrot.lane.b32.xlu1 %v2837_v16, %s2728_s21 }
  0x47   : > { %1310 = vrot.lane.b32.xlu0 %v2844_v18, %s2728_s21  ;;  %1312 = vrot.lane.b32.xlu1 %v2372_v19, %s2728_s21 }
  0x4b   : > { %1427 = vrot.lane.b32.xlu0 %v2835_v15, %s2729_s22  ;;  %1429 = vrot.lane.b32.xlu1 %v2837_v16, %s2729_s22 }
  0x4f   : > { %1431 = vrot.lane.b32.xlu0 %v2844_v18, %s2729_s22  ;;  %1433 = vrot.lane.b32.xlu1 %v2372_v19, %s2729_s22 }
  0x53   : > { %1548 = vrot.lane.b32.xlu0 %v2835_v15, %s2730_s23  ;;  %1550 = vrot.lane.b32.xlu1 %v2837_v16, %s2730_s23 }
  0x57   : > { %1552 = vrot.lane.b32.xlu0 %v2844_v18, %s2730_s23  ;;  %1554 = vrot.lane.b32.xlu1 %v2372_v19, %s2730_s23 }
  0x5b   : > { %1792 = vrot.lane.b32.xlu0 %v2864_v21, %s2728_s21  ;;  %1794 = vrot.lane.b32.xlu1 %v2866_v22, %s2728_s21 }
  0x5f   : > { %1796 = vrot.lane.b32.xlu0 %v2873_v24, %s2728_s21  ;;  %1798 = vrot.lane.b32.xlu1 %v2402_v25, %s2728_s21 }
  0x63   : > { %1913 = vrot.lane.b32.xlu0 %v2864_v21, %s2729_s22  ;;  %1915 = vrot.lane.b32.xlu1 %v2866_v22, %s2729_s22 }
  0x67   : > { %1917 = vrot.lane.b32.xlu0 %v2873_v24, %s2729_s22  ;;  %1919 = vrot.lane.b32.xlu1 %v2402_v25, %s2729_s22 }
  0x6b   : > { %2034 = vrot.lane.b32.xlu0 %v2864_v21, %s2730_s23  ;;  %2036 = vrot.lane.b32.xlu1 %v2866_v22, %s2730_s23 }
  0x6f   : > { %2038 = vrot.lane.b32.xlu0 %v2873_v24, %s2730_s23  ;;  %2040 = vrot.lane.b32.xlu1 %v2402_v25, %s2730_s23 }
  0x85   : > { %v239_v26 = vpop.permute.xlu1 %238  ;;  %v235_v27 = vpop.permute.xlu0 %234 }
  0x89   : > { %v241_v28 = vpop.permute.xlu1 %240  ;;  %v237_v29 = vpop.permute.xlu0 %236 }
  0x8a   : > { %v244_v30 = vsel %vm242_vm1, %v237_v29, %v239_v26  ;;  %v243_v31 = vsel %vm242_vm1, %v235_v27, %v237_v29  ;;  %v245_v32 = vsel %vm242_vm1, %v239_v26, %v241_v28 }
  0x8b   : > { %2309 = vmatprep.subr.msk.bf16.mxu0 %vm250_vm2, %v244_v30  ;;  %v252_v33 = vsel %vm250_vm2, %v243_v31, 0  ;;  %v258_v34 = vsel %vm250_vm2, %v245_v32, 0  ;;  %v2707_v32 = vld [vmem:[%s3143_s1 + $0x48] sm:$0xff]  }
  0x8c   : > { %261 = vmatpush1.bf16.msra.mxu0 %v252_v33  ;;  %2455 = vmatpush3.bf16.msra.mxu1 %v258_v34 }
  0x8d   : > { %2313 = vmatprep.subr.msk.bf16.mxu0 %vm250_vm2, %v2786_v7  ;;  %2460 = vmatprep.subr.bf16.mxu1 %v2725_v0  ;;  %v454_v38 = vpop.permute.xlu0 %453  ;;  %v456_v39 = vpop.permute.xlu1 %455  ;;  %v2705_v7 = vld [vmem:[%s3143_s1 + $0x8] sm:$0xff]  }
  0x8e   : > { %v462_v44 = vsel %vm461_vm4, %v454_v38, %v456_v39 }
  0x8f   : > { %2457 = vmatmul.mubr.msk.bf16.vlgmr.msra.gmra.mrb[0].mxu1 %vm246_vm3, %v2697_v35  ;;  %2310 = vmatmul.mubr.msk.bf16.vlgmr.msra.gmra.mrb[0].mxu0 %vm246_vm3, %v2697_v35  ;;  %v469_v48 = vsel %vm250_vm2, %v462_v44, 0 }
  0x90   : > { %362 = vmatpush1.bf16.msra.mxu0 %v353_v36  ;;  %2461 = vmatpush3.bf16.msra.mxu1 %v359_v37  ;;  %v2708_v36 = vld [vmem:[%s3143_s1 + $0x58] sm:$0xff]  }
  0x91   : > { %v458_v40 = vpop.permute.xlu0 %457  ;;  %393 = vmatprep.mubr.bf16.mxu0 %v2726_v1  ;;  %2462 = vmatprep.mubr.msk.bf16.mxu1 %vm2727_vm0, %v2725_v0  ;;  %v460_v42 = vpop.permute.xlu1 %459 }
  0x92   : > { %v463_v41 = vsel %vm461_vm4, %v456_v39, %v458_v40  ;;  %2466 = vmatprep.subr.bf16.mxu1 %v2725_v0  ;;  %v464_v45 = vsel %vm461_vm4, %v458_v40, %v460_v42  ;;  %v1198_v39 = vsel %vm250_vm2, %v2835_v15, 0  ;;  %v1204_v40 = vsel %vm250_vm2, %v2844_v18, 0 }
  0x93   : > { %2319 = vmatprep.subr.msk.bf16.mxu0 %vm250_vm2, %v463_v41  ;;  %v475_v49 = vsel %vm250_vm2, %v464_v45, 0 }
  0x95   : > { %v576_v43 = vpop.permute.xlu0 %575  ;;  %v578_v47 = vpop.permute.xlu1 %577 }
  0x96   : > { %v584_v53 = vsel %vm583_vm5, %v576_v43, %v578_v47  ;;  %v2709_v43 = vld [vmem:[%s3143_s1 + $0x20] sm:$0xff]  }
  0x97   : > { %v591_v56 = vsel %vm250_vm2, %v584_v53, 0  ;;  %v2710_v53 = vld [vmem:[%s3143_s1 + $0x30] sm:$0xff]  }
  0x99   : > { %v580_v50 = vpop.permute.xlu0 %579  ;;  %v582_v52 = vpop.permute.xlu1 %581 }
  0x9a   : > { %v585_v51 = vsel %vm583_vm5, %v578_v47, %v580_v50  ;;  %v586_v54 = vsel %vm583_vm5, %v580_v50, %v582_v52 }
  0x9b   : > { %2314 = vmatmul.mubr.msk.bf16.vlgmr.msra.gmra.mrb[0].mxu0 %vm246_vm3, %v2698_v46  ;;  %2463 = vmatmul.mubr.msk.bf16.vlgmr.msra.gmra.mrb[0].mxu1 %vm246_vm3, %v2698_v46  ;;  %v597_v57 = vsel %vm250_vm2, %v586_v54, 0 }
  0x9c   : > { %478 = vmatpush1.bf16.msra.mxu0 %v469_v48  ;;  %2467 = vmatpush3.bf16.msra.mxu1 %v475_v49 }
  0x9d   : > { %2468 = vmatprep.mubr.msk.bf16.mxu1 %vm2727_vm0, %v2725_v0  ;;  %509 = vmatprep.mubr.bf16.mxu0 %v2726_v1  ;;  %v821_v58 = vpop.permute.xlu0 %820  ;;  %v823_v60 = vpop.permute.xlu1 %822 }
  0x9e   : > { %2325 = vmatprep.subr.msk.bf16.mxu0 %vm250_vm2, %v585_v51  ;;  %2472 = vmatprep.subr.bf16.mxu1 %v2725_v0  ;;  %v828_v5 = vsel %vm242_vm1, %v821_v58, %v823_v60 }
  0xa1   : > { %v825_v61 = vpop.permute.xlu0 %824  ;;  %v827_v4 = vpop.permute.xlu1 %826 }
  0xa2   : > { %v829_v2 = vsel %vm242_vm1, %v823_v60, %v825_v61  ;;  %v830_v6 = vsel %vm242_vm1, %v825_v61, %v827_v4  ;;  %v2712_v4 = vld [vmem:[%s3143_s1 + $0x70] sm:$0xff]  }
  0xa3   : > { %v841_v11 = vsel %vm250_vm2, %v830_v6, 0 }
  0xa5   : > { %v942_v3 = vpop.permute.xlu0 %941  ;;  %v944_v8 = vpop.permute.xlu1 %943 }
  0xa6   : > { %v949_v17 = vsel %vm461_vm4, %v942_v3, %v944_v8 }
  0xa7   : > { %2320 = vmatmul.mubr.msk.bf16.vlgmr.msra.gmra.mrb[0].mxu0 %vm246_vm3, %v2701_v55  ;;  %2469 = vmatmul.mubr.msk.bf16.vlgmr.msra.gmra.mrb[0].mxu1 %vm246_vm3, %v2701_v55  ;;  %v956_v26 = vsel %vm250_vm2, %v949_v17, 0 }
  0xa8   : > { %600 = vmatpush1.bf16.msra.mxu0 %v591_v56  ;;  %2473 = vmatpush3.bf16.msra.mxu1 %v597_v57 }
  0xa9   : > { %631 = vmatprep.mubr.bf16.mxu0 %v2726_v1  ;;  %2474 = vmatprep.mubr.msk.bf16.mxu1 %vm2727_vm0, %v2725_v0  ;;  %v946_v9 = vpop.permute.xlu0 %945  ;;  %v948_v14 = vpop.permute.xlu1 %947 }
  0xaa   : > { %2336 = vmatprep.subr.msk.bf16.mxu0 %vm250_vm2, %v2808_v10  ;;  %2478 = vmatprep.subr.bf16.mxu1 %v2725_v0  ;;  %v835_v10 = vsel %vm250_vm2, %v828_v5, 0  ;;  %v950_v12 = vsel %vm461_vm4, %v944_v8, %v946_v9  ;;  %v951_v19 = vsel %vm461_vm4, %v946_v9, %v948_v14  ;;  %v1690_v8 = vsel %vm250_vm2, %v2873_v24, 0 }
  0xab   : > { %v962_v27 = vsel %vm250_vm2, %v951_v19, 0 }
  0xad   : > { %v1063_v13 = vpop.permute.xlu0 %1062  ;;  %v1065_v23 = vpop.permute.xlu1 %1064 }
  0xae   : > { %v1070_v30 = vsel %vm583_vm5, %v1063_v13, %v1065_v23 }
  0xaf   : > { %v1077_v33 = vsel %vm250_vm2, %v1070_v30, 0 }
  0xb1   : > { %v1067_v25 = vpop.permute.xlu0 %1066  ;;  %v1069_v29 = vpop.permute.xlu1 %1068 }
  0xb2   : > { %v1071_v28 = vsel %vm583_vm5, %v1065_v23, %v1067_v25  ;;  %v1072_v31 = vsel %vm583_vm5, %v1067_v25, %v1069_v29 }
  0xb3   : > { %2326 = vmatmul.mubr.msk.bf16.vlgmr.msra.gmra.mrb[0].mxu0 %vm246_vm3, %v2704_v59  ;;  %2475 = vmatmul.mubr.msk.bf16.vlgmr.msra.gmra.mrb[0].mxu1 %vm246_vm3, %v2704_v59  ;;  %v1083_v34 = vsel %vm250_vm2, %v1072_v31, 0 }
  0xb4   : > { %721 = vmatpush1.bf16.msra.mxu0 %v712_v62  ;;  %2479 = vmatpush3.bf16.msra.mxu1 %v718_v63  ;;  %v2711_v62 = vld [vmem:[%s3143_s1 + $0x60] sm:$0xff]  }
  0xb5   : > { %752 = vmatprep.mubr.bf16.mxu0 %v2726_v1  ;;  %2480 = vmatprep.mubr.msk.bf16.mxu1 %vm2727_vm0, %v2725_v0  ;;  %v1307_v35 = vpop.permute.xlu0 %1306  ;;  %v1309_v37 = vpop.permute.xlu1 %1308 }
  0xb6   : > { %2343 = vmatprep.subr.msk.bf16.mxu0 %vm250_vm2, %v829_v2  ;;  %2484 = vmatprep.subr.bf16.mxu1 %v2725_v0  ;;  %v1314_v18 = vsel %vm242_vm1, %v1307_v35, %v1309_v37 }
  0xb7   : > { %v1321_v46 = vsel %vm250_vm2, %v1314_v18, 0 }
  0xb9   : > { %v1311_v38 = vpop.permute.xlu0 %1310  ;;  %v1313_v41 = vpop.permute.xlu1 %1312 }
  0xba   : > { %v1316_v42 = vsel %vm242_vm1, %v1311_v38, %v1313_v41 }
  0xbb   : > { %v1327_v47 = vsel %vm250_vm2, %v1316_v42, 0 }
  0xbd   : > { %v1428_v15 = vpop.permute.xlu0 %1427  ;;  %v1430_v44 = vpop.permute.xlu1 %1429 }
  0xbe   : > { %v1435_v51 = vsel %vm461_vm4, %v1428_v15, %v1430_v44 }
  0xbf   : > { %2337 = vmatmul.mubr.msk.bf16.vlgmr.msra.gmra.mrb[0].mxu0 %vm246_vm3, %v2705_v7  ;;  %2481 = vmatmul.mubr.msk.bf16.vlgmr.msra.gmra.mrb[0].mxu1 %vm246_vm3, %v2705_v7  ;;  %v1442_v56 = vsel %vm250_vm2, %v1435_v51, 0  ;;  %v1684_v7 = vsel %vm250_vm2, %v2864_v21, 0 }
  0xc0   : > { %844 = vmatpush1.bf16.msra.mxu0 %v835_v10  ;;  %2485 = vmatpush3.bf16.msra.mxu1 %v841_v11  ;;  %v2713_v11 = vld [vmem:[%s3143_s1 + $0x28] sm:$0xff]  }
  0xc1   : > { %875 = vmatprep.mubr.bf16.mxu0 %v2726_v1  ;;  %2486 = vmatprep.mubr.msk.bf16.mxu1 %vm2727_vm0, %v2725_v0  ;;  %v1432_v45 = vpop.permute.xlu0 %1431  ;;  %v1434_v50 = vpop.permute.xlu1 %1433 }
  0xc2   : > { %2349 = vmatprep.subr.msk.bf16.mxu0 %vm250_vm2, %v950_v12  ;;  %2490 = vmatprep.subr.bf16.mxu1 %v2725_v0  ;;  %v1436_v48 = vsel %vm461_vm4, %v1430_v44, %v1432_v45  ;;  %v1437_v52 = vsel %vm461_vm4, %v1432_v45, %v1434_v50 }
  0xc3   : > { %v1448_v57 = vsel %vm250_vm2, %v1437_v52, 0 }
  0xc5   : > { %v1549_v49 = vpop.permute.xlu0 %1548  ;;  %v1551_v54 = vpop.permute.xlu1 %1550 }
  0xc6   : > { %v1556_v60 = vsel %vm583_vm5, %v1549_v49, %v1551_v54 }
  0xc7   : > { %v1563_v63 = vsel %vm250_vm2, %v1556_v60, 0 }
  0xc9   : > { %v1553_v55 = vpop.permute.xlu0 %1552  ;;  %v1555_v59 = vpop.permute.xlu1 %1554 }
  0xca   : > { %v1557_v58 = vsel %vm583_vm5, %v1551_v54, %v1553_v55  ;;  %v1558_v61 = vsel %vm583_vm5, %v1553_v55, %v1555_v59 }
  0xcb   : > { %2344 = vmatmul.mubr.msk.bf16.vlgmr.msra.gmra.mrb[0].mxu0 %vm246_vm3, %v2706_v20  ;;  %2487 = vmatmul.mubr.msk.bf16.vlgmr.msra.gmra.mrb[0].mxu1 %vm246_vm3, %v2706_v20  ;;  %v1569_v2 = vsel %vm250_vm2, %v1558_v61, 0 }
  0xcc   : > { %965 = vmatpush1.bf16.msra.mxu0 %v956_v26  ;;  %2491 = vmatpush3.bf16.msra.mxu1 %v962_v27  ;;  %v2714_v27 = vld [vmem:[%s3143_s1 + $0x38] sm:$0xff]  }
  0xcd   : > { %996 = vmatprep.mubr.bf16.mxu0 %v2726_v1  ;;  %2492 = vmatprep.mubr.msk.bf16.mxu1 %vm2727_vm0, %v2725_v0  ;;  %v1793_v3 = vpop.permute.xlu0 %1792  ;;  %v1795_v5 = vpop.permute.xlu1 %1794 }
  0xce   : > { %2355 = vmatprep.subr.msk.bf16.mxu0 %vm250_vm2, %v1071_v28  ;;  %2496 = vmatprep.subr.bf16.mxu1 %v2725_v0  ;;  %v1800_v24 = vsel %vm242_vm1, %v1793_v3, %v1795_v5 }
  0xcf   : > { %v1807_v14 = vsel %vm250_vm2, %v1800_v24, 0 }
  0xd1   : > { %v1797_v6 = vpop.permute.xlu0 %1796  ;;  %v1799_v9 = vpop.permute.xlu1 %1798 }
  0xd2   : > { %v1802_v10 = vsel %vm242_vm1, %v1797_v6, %v1799_v9 }
  0xd3   : > { %v1813_v17 = vsel %vm250_vm2, %v1802_v10, 0 }
  0xd5   : > { %v1914_v21 = vpop.permute.xlu0 %1913  ;;  %v1916_v12 = vpop.permute.xlu1 %1915 }
  0xd6   : > { %v1921_v25 = vsel %vm461_vm4, %v1914_v21, %v1916_v12 }
  0xd7   : > { %2350 = vmatmul.mubr.msk.bf16.vlgmr.msra.gmra.mrb[0].mxu0 %vm246_vm3, %v2707_v32  ;;  %2493 = vmatmul.mubr.msk.bf16.vlgmr.msra.gmra.mrb[0].mxu1 %vm246_vm3, %v2707_v32  ;;  %v1928_v30 = vsel %vm250_vm2, %v1921_v25, 0 }
  0xd8   : > { %1086 = vmatpush1.bf16.msra.mxu0 %v1077_v33  ;;  %2497 = vmatpush3.bf16.msra.mxu1 %v1083_v34 }
  0xd9   : > { %1117 = vmatprep.mubr.bf16.mxu0 %v2726_v1  ;;  %2498 = vmatprep.mubr.msk.bf16.mxu1 %vm2727_vm0, %v2725_v0  ;;  %v1918_v13 = vpop.permute.xlu0 %1917  ;;  %v1920_v23 = vpop.permute.xlu1 %1919 }
  0xda   : > { %2366 = vmatprep.subr.msk.bf16.mxu0 %vm250_vm2, %v2837_v16  ;;  %2502 = vmatprep.subr.bf16.mxu1 %v2725_v0  ;;  %v1315_v16 = vsel %vm242_vm1, %v1309_v37, %v1311_v38  ;;  %v1922_v19 = vsel %vm461_vm4, %v1916_v12, %v1918_v13  ;;  %v1923_v26 = vsel %vm461_vm4, %v1918_v13, %v1920_v23 }
  0xdb   : > { %v1934_v31 = vsel %vm250_vm2, %v1923_v26, 0 }
  0xdd   : > { %v2035_v20 = vpop.permute.xlu0 %2034  ;;  %v2037_v28 = vpop.permute.xlu1 %2036 }
  0xde   : > { %v2042_v34 = vsel %vm583_vm5, %v2035_v20, %v2037_v28 }
  0xdf   : > { %v2049_v37 = vsel %vm250_vm2, %v2042_v34, 0 }
  0xe1   : > { %v2039_v29 = vpop.permute.xlu0 %2038  ;;  %v2041_v33 = vpop.permute.xlu1 %2040 }
  0xe2   : > { %v2043_v32 = vsel %vm583_vm5, %v2037_v28, %v2039_v29  ;;  %v2044_v35 = vsel %vm583_vm5, %v2039_v29, %v2041_v33 }
  0xe3   : > { %2356 = vmatmul.mubr.msk.bf16.vlgmr.msra.gmra.mrb[0].mxu0 %vm246_vm3, %v2708_v36  ;;  %2499 = vmatmul.mubr.msk.bf16.vlgmr.msra.gmra.mrb[0].mxu1 %vm246_vm3, %v2708_v36  ;;  %v2715_v36 = vld [vmem:[%s3143_s1 + $0x68] sm:$0xff]   ;;  %v2055_v38 = vsel %vm250_vm2, %v2044_v35, 0 }
  0xe4   : > { %1207 = vmatpush1.bf16.msra.mxu0 %v1198_v39  ;;  %2503 = vmatpush3.bf16.msra.mxu1 %v1204_v40  ;;  %v2716_v39 = vld [vmem:[%s3143_s1 + $0x78] sm:$0xff]   ;;  %v2155_v40 = vlaneseq }
  0xe5   : > { %1238 = vmatprep.mubr.bf16.mxu0 %v2726_v1  ;;  %2504 = vmatprep.mubr.msk.bf16.mxu1 %vm2727_vm0, %v2725_v0 }
  0xe6   : > { %2373 = vmatprep.subr.msk.bf16.mxu0 %vm250_vm2, %v1315_v16  ;;  %2508 = vmatprep.subr.bf16.mxu1 %v2725_v0  ;;  %v2156_v16 = vshrl.u32 %v2155_v40, 7 }
  0xe8   : > { %v2157_v15 = vsub.s32 0, %v2156_v16  ;;  %v2165_v41 = vsub.s32 2, %v2156_v16  ;;  %v2161_v18 = vsub.s32 1, %v2156_v16 }
  0xef   : > { %2367 = vmatmul.mubr.msk.bf16.vlgmr.msra.gmra.mrb[0].mxu0 %vm246_vm3, %v2709_v43  ;;  %2505 = vmatmul.mubr.msk.bf16.vlgmr.msra.gmra.mrb[0].mxu1 %vm246_vm3, %v2709_v43 }
  0xf0   : > { %1330 = vmatpush1.bf16.msra.mxu0 %v1321_v46  ;;  %2509 = vmatpush3.bf16.msra.mxu1 %v1327_v47 }
  0xf1   : > { %1361 = vmatprep.mubr.bf16.mxu0 %v2726_v1  ;;  %2510 = vmatprep.mubr.msk.bf16.mxu1 %vm2727_vm0, %v2725_v0 }
  0xf2   : > { %2379 = vmatprep.subr.msk.bf16.mxu0 %vm250_vm2, %v1436_v48  ;;  %2514 = vmatprep.subr.bf16.mxu1 %v2725_v0 }
  0xfb   : > { %2374 = vmatmul.mubr.msk.bf16.vlgmr.msra.gmra.mrb[0].mxu0 %vm246_vm3, %v2710_v53  ;;  %2511 = vmatmul.mubr.msk.bf16.vlgmr.msra.gmra.mrb[0].mxu1 %vm246_vm3, %v2710_v53 }
  0xfc   : > { %1451 = vmatpush1.bf16.msra.mxu0 %v1442_v56  ;;  %2515 = vmatpush3.bf16.msra.mxu1 %v1448_v57 }
  0xfd   : > { %1482 = vmatprep.mubr.bf16.mxu0 %v2726_v1  ;;  %2516 = vmatprep.mubr.msk.bf16.mxu1 %vm2727_vm0, %v2725_v0 }
  0xfe   : > { %2385 = vmatprep.subr.msk.bf16.mxu0 %vm250_vm2, %v1557_v58  ;;  %2520 = vmatprep.subr.bf16.mxu1 %v2725_v0 }
 0x107   : > { %2380 = vmatmul.mubr.msk.bf16.vlgmr.msra.gmra.mrb[0].mxu0 %vm246_vm3, %v2711_v62  ;;  %2517 = vmatmul.mubr.msk.bf16.vlgmr.msra.gmra.mrb[0].mxu1 %vm246_vm3, %v2711_v62 }
 0x108   : > { %1572 = vmatpush1.bf16.msra.mxu0 %v1563_v63  ;;  %2521 = vmatpush3.bf16.msra.mxu1 %v1569_v2 }
 0x109   : > { %1603 = vmatprep.mubr.bf16.mxu0 %v2726_v1  ;;  %2522 = vmatprep.mubr.msk.bf16.mxu1 %vm2727_vm0, %v2725_v0 }
 0x10a   : > { %2396 = vmatprep.subr.msk.bf16.mxu0 %vm250_vm2, %v2866_v22  ;;  %2526 = vmatprep.subr.bf16.mxu1 %v2725_v0  ;;  %v1801_v22 = vsel %vm242_vm1, %v1795_v5, %v1797_v6 }
 0x113   : > { %2386 = vmatmul.mubr.msk.bf16.vlgmr.msra.gmra.mrb[0].mxu0 %vm246_vm3, %v2712_v4  ;;  %2523 = vmatmul.mubr.msk.bf16.vlgmr.msra.gmra.mrb[0].mxu1 %vm246_vm3, %v2712_v4 }
 0x114   : > { %1693 = vmatpush1.bf16.msra.mxu0 %v1684_v7  ;;  %2527 = vmatpush3.bf16.msra.mxu1 %v1690_v8 }
 0x115   : > { %1724 = vmatprep.mubr.bf16.mxu0 %v2726_v1  ;;  %2528 = vmatprep.mubr.msk.bf16.mxu1 %vm2727_vm0, %v2725_v0 }
 0x116   : > { %2403 = vmatprep.subr.msk.bf16.mxu0 %vm250_vm2, %v1801_v22  ;;  %2532 = vmatprep.subr.bf16.mxu1 %v2725_v0 }
 0x11f   : > { %2397 = vmatmul.mubr.msk.bf16.vlgmr.msra.gmra.mrb[0].mxu0 %vm246_vm3, %v2713_v11  ;;  %2529 = vmatmul.mubr.msk.bf16.vlgmr.msra.gmra.mrb[0].mxu1 %vm246_vm3, %v2713_v11 }
 0x120   : > { %1816 = vmatpush1.bf16.msra.mxu0 %v1807_v14  ;;  %2533 = vmatpush3.bf16.msra.mxu1 %v1813_v17 }
 0x121   : > { %1847 = vmatprep.mubr.bf16.mxu0 %v2726_v1  ;;  %2534 = vmatprep.mubr.msk.bf16.mxu1 %vm2727_vm0, %v2725_v0 }
 0x122   : > { %2409 = vmatprep.subr.msk.bf16.mxu0 %vm250_vm2, %v1922_v19  ;;  %2538 = vmatprep.subr.bf16.mxu1 %v2725_v0 }
 0x12b   : > { %2404 = vmatmul.mubr.msk.bf16.vlgmr.msra.gmra.mrb[0].mxu0 %vm246_vm3, %v2714_v27  ;;  %2535 = vmatmul.mubr.msk.bf16.vlgmr.msra.gmra.mrb[0].mxu1 %vm246_vm3, %v2714_v27 }
 0x12c   : > { %1937 = vmatpush1.bf16.msra.mxu0 %v1928_v30  ;;  %2539 = vmatpush3.bf16.msra.mxu1 %v1934_v31 }
 0x12d   : > { %1968 = vmatprep.mubr.bf16.mxu0 %v2726_v1  ;;  %2540 = vmatprep.mubr.msk.bf16.mxu1 %vm2727_vm0, %v2725_v0 }
 0x12e   : > { %2415 = vmatprep.subr.msk.bf16.mxu0 %vm250_vm2, %v2043_v32  ;;  %2544 = vmatprep.subr.bf16.mxu1 %v2725_v0 }
 0x137   : > { %2410 = vmatmul.mubr.msk.bf16.vlgmr.msra.gmra.mrb[0].mxu0 %vm246_vm3, %v2715_v36  ;;  %2541 = vmatmul.mubr.msk.bf16.vlgmr.msra.gmra.mrb[0].mxu1 %vm246_vm3, %v2715_v36 }
 0x138   : > { %2058 = vmatpush1.bf16.msra.mxu0 %v2049_v37  ;;  %2545 = vmatpush3.bf16.msra.mxu1 %v2055_v38 }
 0x139   : > { %2089 = vmatprep.mubr.bf16.mxu0 %v2726_v1  ;;  %2546 = vmatprep.mubr.msk.bf16.mxu1 %vm2727_vm0, %v2725_v0  ;;  %v2153_v1 = vld [vmem:[%s3144_s2] sm:$0x7] }
 0x13a   : > { %v2158_v42 = vrot.slane %v2153_v1, %v2157_v15  ;;  %v2166_v0 = vrot.slane %v2153_v1, %v2165_v41  ;;  %v2162_v43 = vrot.slane %v2153_v1, %v2161_v18 }
 0x143   : > { %2416 = vmatmul.mubr.msk.bf16.vlgmr.msra.gmra.mrb[0].mxu0 %vm246_vm3, %v2716_v39  ;;  %2547 = vmatmul.mubr.msk.bf16.vlgmr.msra.gmra.mrb[0].mxu1 %vm246_vm3, %v2716_v39 }
 0x216   : > { %v2091_v44 = vpop.f32.mrb[0].mxu0  ;;  %v2134_v45 = vpop.f32.mrb[0].mxu1 }
 0x217   : > { %2147 = vst [vmem:[%s205_s11] sm:$0xff] %v2091_v44  ;;  %v2170_v46 = vmul.f32 %v2158_v42, %v2091_v44  ;;  %2149 = vst [vmem:[%s205_s11 + $0x10] sm:$0xff] %v2134_v45  ;;  %v2093_v47 = vpop.f32.mrb[1].mxu0  ;;  %v2548_v48 = vpop.f32.mrb[1].mxu1  ;;  %v2172_v49 = vmul.f32 %v2166_v0, %v2134_v45 }
 0x218   : > { %2148 = vst [vmem:[%s205_s11 + $0x8] sm:$0xff] %v2093_v47  ;;  %v2171_v50 = vmul.f32 %v2162_v43, %v2093_v47  ;;  %v2095_v51 = vpop.f32.mrb[2].mxu0  ;;  %v2137_v52 = vpop.f32.mrb[2].mxu1 }
 0x219   : > { %v2187_v53 = vmul.f32 %v2170_v46, %v2091_v44  ;;  %2150 = vst [vmem:[%s205_s11 + $0x18] sm:$0xff] %v2095_v51  ;;  %v2173_v54 = vmul.f32 %v2158_v42, %v2095_v51  ;;  %2152 = vst [vmem:[%s205_s11 + $0x28] sm:$0xff] %v2137_v52  ;;  %v2097_v55 = vpop.f32.mrb[3].mxu0  ;;  %v2549_v56 = vpop.f32.mrb[3].mxu1  ;;  %v2175_v60 = vmul.f32 %v2166_v0, %v2137_v52 }
 0x21a   : > { %v2188_v57 = vmul.f32 %v2171_v50, %v2093_v47  ;;  %2151 = vst [vmem:[%s205_s11 + $0x20] sm:$0xff] %v2097_v55  ;;  %v2174_v58 = vmul.f32 %v2162_v43, %v2097_v55  ;;  %v2176_v59 = vadd.f32 %v2171_v50, %v2170_v46  ;;  %v2189_v62 = vmul.f32 %v2172_v49, %v2134_v45 }
 0x21b   : > { %v2190_v61 = vmul.f32 %v2173_v54, %v2095_v51  ;;  %v2192_v7 = vmul.f32 %v2175_v60, %v2137_v52 }
 0x21c   : > { %v2191_v63 = vmul.f32 %v2174_v58, %v2097_v55  ;;  %v2177_v2 = vadd.f32 %v2176_v59, %v2172_v49  ;;  %v2180_v3 = vadd.f32 %v2174_v58, %v2173_v54  ;;  %v2193_v4 = vadd.f32 %v2188_v57, %v2187_v53 }
 0x21e   : > { %2178 = vadd.xlane.f32.xlu0 %v2177_v2  ;;  %v2181_v5 = vadd.f32 %v2180_v3, %v2175_v60  ;;  %v2194_v6 = vadd.f32 %v2193_v4, %v2189_v62  ;;  %v2197_v8 = vadd.f32 %v2191_v63, %v2190_v61 }
 0x220   : > { %2182 = vadd.xlane.f32.xlu1 %v2181_v5  ;;  %v2198_v22 = vadd.f32 %v2197_v8, %v2192_v7 }
 0x222   : > { %2195 = vadd.xlane.f32.xlu0 %v2194_v6 }
 0x226   : > { %2199 = vadd.xlane.f32.xlu0 %v2198_v22 }
 0x2ab   : > { %v2179_v21 = vpop.xlane.xlu0 %2178 }
 0x2ac   : > { %2185 = vst.msk [vmem:[%s210_s17] sm:$0xff] %vm2184_vm6, %v2179_v21 }
 0x2ad   : > { %v2183_v9 = vpop.xlane.xlu1 %2182 }
 0x2ae   : > { %2186 = vst.msk [vmem:[%s210_s17 + $0x8] sm:$0xff] %vm2184_vm6, %v2183_v9 }
 0x2af   : > { %v2196_v24 = vpop.xlane.xlu0 %2195 }
 0x2b0   : > { %2202 = vst.msk [vmem:[%s210_s17] sm:$0xff] %vm2201_vm7, %v2196_v24 }
 0x2b3   : > { %v2200_v10 = vpop.xlane.xlu0 %2199 }
 0x2b4   : > { %2203 = vst.msk [vmem:[%s210_s17 + $0x8] sm:$0xff] %vm2201_vm7, %v2200_v10 }
 0x2b5 PF: > { %s15_s15 = sadd.s32 1, %s2723_s15  }
 0x2b6   : > { %p12_p4 = scmp.ge.s32.totalorder %s15_s15, 4  }
 0x2b8   :  { %14 = sbr.rel (!%p12_p4) target bundleno = 1 (0x1), region = 92 }

// kernel: discriminator_forward.11
= control target key start
LH: loop header
LB: loop body
LE: loop exit
PB: predicated region body
PF: predicated region fallthrough
CT: control target
= control target key end

     0   :  { %s354_s9 = smov 0   ;;  %s383_s0 = inlined_call_operand.vmem [shape: f32[2,32,128], index: 0, kind: input, shape index: {}]   ;;  %s384_s1 = inlined_call_operand.vmem [shape: f32[32,2], index: 1, kind: input, shape index: {}]   ;;  %s385_s2 = inlined_call_operand.vmem [shape: bf16[2,32,128], index: 2, kind: output, shape index: {}]  }
   0x1 LB: > { %s283_s10 = sadd.s32 4294967295, %s335_s9   ;;  %p287_p0 = scmp.ge.s32.totalorder %s335_s9, 1  ;;  %s335_s9 = sphi %s354_s9, %s12_s9  }
   0x2   : > { %p112_p1 = scmp.lt.s32.totalorder %s335_s9, 3 }
   0x4   : > { %p113_p2 = pnand %p287_p0, %p112_p1 }
   0x5   : > { %v150_v0 = vld [vmem:[%s384_s1 + $0x10] sm:$0xff] (!%p113_p2)  ;;  %v148_v1 = vld [vmem:[%s384_s1] sm:$0xff] (!%p113_p2)  ;;  %v337_v2 = vmov (!%p113_p2), 0   ;;  %v151_v3 = vld [vmem:[%s384_s1 + $0x18] sm:$0xff] (!%p113_p2)  ;;  %v338_v5 = vmov (!%p113_p2), 1   ;;  %p134_p3 = scmp.lt.s32.totalorder (!%p113_p2), %s283_s10, 1 }
   0x6   : > { %116 = sbr.rel (%p113_p2) target bundleno = 156 (0x9c), region = 28  ;;  %326 = vset.pattern.permute.xlu1 (!%p113_p2), %v337_v2  ;;  %325 = vset.pattern.permute.xlu0 (!%p113_p2), %v337_v2  ;;  %v149_v4 = vld [vmem:[%s384_s1 + $0x8] sm:$0xff] (!%p113_p2) }
   0x7   : > { %164 = vperm.xlu1 (!%p113_p2), %326, %v150_v0   ;;  %154 = vperm.xlu0 (!%p113_p2), %325, %v148_v1  }
   0xb   : > { %169 = vperm.xlu1 (!%p113_p2), %326, %v151_v3   ;;  %159 = vperm.xlu0 (!%p113_p2), %325, %v149_v4  }
   0xd   : > { %s387_s10 = smov (!%p134_p3, %s283_s10), 1 }
   0xe   : > { %s298_s19 = sshll.u32 %s387_s10, 5  ;;  %s299_s23 = sshll.u32 %s387_s10, 4 }
   0xf   : > { %328 = vset.pattern.permute.xlu1 %v338_v5  ;;  %327 = vset.pattern.permute.xlu0 %v338_v5  ;;  %s138_s22 = scalar_lea.vmem %s383_s0, %s298_s19  ;;  %s143_s26 = scalar_lea.vmem %s385_s2, %s299_s23 }
  0x10   : > { %181 = vperm.xlu1 %328, %v149_v4   ;;  %177 = vperm.xlu0 %327, %v148_v1   ;;  %v144_v10 = vld [vmem:[%s138_s22] sm:$0xff]  ;;  %v145_v11 = vld [vmem:[%s138_s22 + $0x8] sm:$0xff]  ;;  %v146_v12 = vld [vmem:[%s138_s22 + $0x10] sm:$0xff] }
  0x11   : > { %v147_v14 = vld [vmem:[%s138_s22 + $0x18] sm:$0xff] }
  0x14   : > { %185 = vperm.xlu1 %328, %v150_v0   ;;  %189 = vperm.xlu0 %327, %v151_v3  }
  0x86   : > { %v165_v6 = vpop.permute.xlu1 %164  ;;  %v155_v7 = vpop.permute.xlu0 %154 }
  0x87   : > { %v172_v13 = vmul.f32 %v155_v7, %v144_v10  ;;  %v174_v20 = vmul.f32 %v165_v6, %v146_v12 }
  0x8a   : > { %v170_v8 = vpop.permute.xlu1 %169  ;;  %v160_v9 = vpop.permute.xlu0 %159 }
  0x8b   : > { %v173_v15 = vmul.f32 %v160_v9, %v145_v11  ;;  %v175_v21 = vmul.f32 %v170_v8, %v147_v14 }
  0x8f   : > { %v182_v16 = vpop.permute.xlu1 %181  ;;  %v178_v17 = vpop.permute.xlu0 %177 }
  0x90   : > { %v193_v18 = vadd.f32 %v182_v16, %v173_v15  ;;  %v192_v19 = vadd.f32 %v178_v17, %v172_v13 }
  0x92   : > { %vm197_vm0 = vcmp.gt.f32.partialorder %v193_v18, 0.0  ;;  %v201_v22 = vmul.f32 0.2, %v193_v18  ;;  %vm196_vm1 = vcmp.gt.f32.partialorder %v192_v19, 0.0  ;;  %v200_v23 = vmul.f32 0.2, %v192_v19 }
  0x93   : > { %v186_v24 = vpop.permute.xlu1 %185  ;;  %v190_v25 = vpop.permute.xlu0 %189 }
  0x94   : > { %v205_v26 = vsel %vm197_vm0, %v193_v18, %v201_v22  ;;  %v204_v27 = vsel %vm196_vm1, %v192_v19, %v200_v23  ;;  %v194_v28 = vadd.f32 %v186_v24, %v174_v20  ;;  %v195_v29 = vadd.f32 %v190_v25, %v175_v21 }
  0x95   : > { %v307_v30 = vpack.c.bf16 %v205_v26, %v204_v27 }
  0x96   : > { %vm198_vm2 = vcmp.gt.f32.partialorder %v194_v28, 0.0  ;;  %v202_v31 = vmul.f32 0.2, %v194_v28  ;;  %vm199_vm3 = vcmp.gt.f32.partialorder %v195_v29, 0.0  ;;  %v203_v32 = vmul.f32 0.2, %v195_v29 }
  0x97   : > { %308 = vst [vmem:[%s143_s26] sm:$0xff] %v307_v30  }
  0x98   : > { %v206_v33 = vsel %vm198_vm2, %v194_v28, %v202_v31  ;;  %v207_v34 = vsel %vm199_vm3, %v195_v29, %v203_v32 }
  0x99   : > { %v312_v35 = vpack.c.bf16 %v207_v34, %v206_v33 }
  0x9b   : > { %314 = vst [vmem:[%s143_s26 + $0x8] sm:$0xff] %v312_v35  }
  0x9c PF: > { %s12_s9 = sadd.s32 1, %s335_s9  }
  0x9d   : > { %p9_p4 = scmp.ge.s32.totalorder %s12_s9, 4  }
  0x9f   :  { %11 = sbr.rel (!%p9_p4) target bundleno = 1 (0x1), region = 58 }

// kernel: discriminator_forward.10
= control target key start
LH: loop header
LB: loop body
LE: loop exit
PB: predicated region body
PF: predicated region fallthrough
CT: control target
= control target key end

     0   :  { %s2093_s15 = smov 0   ;;  %s2295_s0 = inlined_call_operand.vmem [shape: bf16[2,4,16,256], index: 0, kind: input, shape index: {}]   ;;  %s2296_s1 = inlined_call_operand.vmem [shape: bf16[16,32,16], index: 1, kind: input, shape index: {}]   ;;  %s2297_s2 = inlined_call_operand.vmem [shape: f32[1,128], index: 2, kind: input, shape index: {}]   ;;  %s2298_s3 = inlined_call_operand.vmem [shape: f32[2,32,128], index: 3, kind: output, shape index: {0}]   ;;  %s2299_s4 = inlined_call_operand.vmem [shape: f32[2,32,2], index: 4, kind: output, shape index: {1}]  }
   0x1 LB: > { %s1643_s16 = sadd.s32 4294967295, %s2063_s15   ;;  %p1647_p0 = scmp.ge.s32.totalorder %s2063_s15, 1  ;;  %s2063_s15 = sphi %s2093_s15, %s15_s15  }
   0x2   : > { %p165_p1 = scmp.lt.s32.totalorder %s2063_s15, 3 }
   0x4   : > { %p166_p2 = pnand %p1647_p0, %p165_p1 }
   0x5   : > { %p196_p3 = scmp.lt.s32.totalorder (!%p166_p2), %s1643_s16, 1  ;;  %vm248_vm0 = vcmask (!%p166_p2), 130048   ;;  %v2025_v0 = vld [vmem:[%s2296_s1 + $0x40] sm:$0xff] (!%p166_p2)   ;;  %s2065_s25 = smov (!%p166_p2), 127   ;;  %v2026_v5 = vld [vmem:[%s2296_s1 + $0x48] sm:$0xff] (!%p166_p2)   ;;  %vm245_vm1 = vcmask (!%p166_p2), 1039360  }
   0x6   : > { %169 = sbr.rel (%p166_p2) target bundleno = 601 (0x259), region = 32  ;;  %1896 = vmatprep.mubr.msk.bf16.mxu0 (!%p166_p2), %vm248_vm0, %v2025_v0  ;;  %v2027_v1 = vld [vmem:[%s2296_s1 + $0x20] sm:$0xff] (!%p166_p2)   ;;  %s2066_s30 = smov (!%p166_p2), 119   ;;  %v2030_v18 = vld [vmem:[%s2296_s1 + $0x68] sm:$0xff] (!%p166_p2)   ;;  %vm389_vm2 = vcmask (!%p166_p2), 973824   ;;  %vm470_vm3 = vcmask (!%p166_p2), 965632  }
   0x7   : > { %1848 = vmatprep.mubr.msk.bf16.mxu1 (!%p166_p2), %vm248_vm0, %v2027_v1  ;;  %v2028_v7 = vld [vmem:[%s2296_s1 + $0x60] sm:$0xff] (!%p166_p2)   ;;  %s2067_s5 = smov (!%p166_p2), 118   ;;  %v2029_v19 = vld [vmem:[%s2296_s1 + $0x28] sm:$0xff] (!%p166_p2)   ;;  %v2040_v45 = vld [vmem:[%s2296_s1 + $0x50] sm:$0xff] (!%p166_p2)   ;;  %vm1533_vm4 = vcmask (!%p166_p2), 7168   ;;  %vm1550_vm5 = vcmask (!%p166_p2), 15368  }
   0x8   : > { %v2032_v20 = vld [vmem:[%s2296_s1 + $0xc0] sm:$0xff] (!%p166_p2)   ;;  %v2034_v30 = vld [vmem:[%s2296_s1 + $0xc8] sm:$0xff] (!%p166_p2)   ;;  %v2042_v49 = vld [vmem:[%s2296_s1 + $0x58] sm:$0xff] (!%p166_p2)  }
   0x9   : > { %v2031_v22 = vld [vmem:[%s2296_s1] sm:$0xff] (!%p166_p2)   ;;  %v2033_v31 = vld [vmem:[%s2296_s1 + $0x8] sm:$0xff] (!%p166_p2)   ;;  %v2043_v51 = vld [vmem:[%s2296_s1 + $0x10] sm:$0xff] (!%p166_p2)  }
   0xa   : > { %v2035_v34 = vld [vmem:[%s2296_s1 + $0x80] sm:$0xff] (!%p166_p2)   ;;  %v2038_v40 = vld [vmem:[%s2296_s1 + $0xe8] sm:$0xff] (!%p166_p2)   ;;  %v2044_v54 = vld [vmem:[%s2296_s1 + $0x70] sm:$0xff] (!%p166_p2)  }
   0xb   : > { %v2036_v37 = vld [vmem:[%s2296_s1 + $0xe0] sm:$0xff] (!%p166_p2)   ;;  %v2037_v41 = vld [vmem:[%s2296_s1 + $0x88] sm:$0xff] (!%p166_p2)   ;;  %v2046_v59 = vld [vmem:[%s2296_s1 + $0x78] sm:$0xff] (!%p166_p2)  }
   0xc   : > { %v2039_v42 = vld [vmem:[%s2296_s1 + $0xa0] sm:$0xff] (!%p166_p2)   ;;  %v2041_v50 = vld [vmem:[%s2296_s1 + $0xa8] sm:$0xff] (!%p166_p2)   ;;  %v2045_v60 = vld [vmem:[%s2296_s1 + $0x18] sm:$0xff] (!%p166_p2)  }
   0xd   : > { %s2301_s16 = smov (!%p196_p3, %s1643_s16), 1  ;;  %v2047_v61 = vld [vmem:[%s2296_s1 + $0x30] sm:$0xff]  }
   0xe   : > { %s1795_s21 = sshll.u32 %s2301_s16, 6  ;;  %v2048_v0 = vld [vmem:[%s2296_s1 + $0xd0] sm:$0xff]   ;;  %s1796_s14 = sshll.u32 %s2301_s16, 5 }
   0xf   : > { %s2115_s24 = scalar_lea.vmem %s2295_s0, %s1795_s21  ;;  %s205_s19 = scalar_lea.vmem %s2298_s3, %s1796_s14 }
  0x10   : > { %v2013_v2 = vld [vmem:[%s2115_s24 + $0x20] ss:$8 sps:$4 sm:$0xff]   ;;  %v2017_v4 = vld [vmem:[%s2115_s24 + $0x24] ss:$8 sps:$4 sm:$0xff]   ;;  %v2135_v8 = vld [vmem:[%s2115_s24 + $0x10] ss:$8 sps:$4 sm:$0xff]  }
  0x11   : > { %v2119_v3 = vld [vmem:[%s2115_s24] ss:$8 sps:$4 sm:$0xff]   ;;  %959 = vrot.lane.b32.xlu1 %v2013_v2, %s2065_s25  ;;  %1894 = vmatprep.subr.bf16.mxu0 %v2013_v2  ;;  %v2018_v6 = vld [vmem:[%s2115_s24 + $0x4] ss:$8 sps:$4 sm:$0xff]   ;;  %v2021_v9 = vld [vmem:[%s2115_s24 + $0x14] ss:$8 sps:$4 sm:$0xff]  }
  0x12   : > { %241 = vrot.lane.b32.xlu0 %v2119_v3, %s2065_s25  ;;  %1895 = vmatpush3.bf16.msra.mxu0 %v2013_v2  ;;  %v2024_v10 = vld [vmem:[%s2115_s24 + $0x34] ss:$8 sps:$4 sm:$0xff]   ;;  %v2141_v11 = vld [vmem:[%s2115_s24 + $0x30] ss:$8 sps:$4 sm:$0xff]   ;;  %s210_s24 = scalar_lea.vmem %s2299_s4, %s1796_s14 }
  0x15   : > { %961 = vrot.lane.b32.xlu1 %v2017_v4, %s2065_s25  ;;  %1897 = vmatmul.mubr.msk.bf16.vlgmr.msra.gmra.mrb[0].mxu0 %vm248_vm0, %v2026_v5  ;;  %v2051_v5 = vld [vmem:[%s2296_s1 + $0x90] sm:$0xff]  }
  0x16   : > { %243 = vrot.lane.b32.xlu0 %v2018_v6, %s2065_s25  ;;  %1902 = vmatprep.mubr.msk.bf16.mxu0 %vm248_vm0, %v2028_v7 }
  0x19   : > { %387 = vrot.lane.b32.xlu1 %v2018_v6, %s2066_s30 }
  0x1a   : > { %385 = vrot.lane.b32.xlu0 %v2119_v3, %s2066_s30 }
  0x1d   : > { %1041 = vrot.lane.b32.xlu1 %v2017_v4, %s2066_s30 }
  0x1e   : > { %1039 = vrot.lane.b32.xlu0 %v2013_v2, %s2066_s30 }
  0x21   : > { %468 = vrot.lane.b32.xlu1 %v2018_v6, %s2067_s5  ;;  %v2052_v6 = vld [vmem:[%s2296_s1 + $0xf0] sm:$0xff]  }
  0x22   : > { %466 = vrot.lane.b32.xlu0 %v2119_v3, %s2067_s5 }
  0x25   : > { %1121 = vrot.lane.b32.xlu1 %v2017_v4, %s2067_s5  ;;  %v2049_v4 = vld [vmem:[%s2296_s1 + $0x38] sm:$0xff]  }
  0x26   : > { %1119 = vrot.lane.b32.xlu0 %v2013_v2, %s2067_s5 }
  0x29   : > { %635 = vrot.lane.b32.xlu1 %v2021_v9, %s2065_s25 }
  0x2a   : > { %633 = vrot.lane.b32.xlu0 %v2135_v8, %s2065_s25 }
  0x2d   : > { %1287 = vrot.lane.b32.xlu1 %v2024_v10, %s2065_s25 }
  0x2e   : > { %1285 = vrot.lane.b32.xlu0 %v2141_v11, %s2065_s25 }
  0x31   : > { %715 = vrot.lane.b32.xlu1 %v2021_v9, %s2066_s30 }
  0x32   : > { %713 = vrot.lane.b32.xlu0 %v2135_v8, %s2066_s30 }
  0x35   : > { %1367 = vrot.lane.b32.xlu1 %v2024_v10, %s2066_s30 }
  0x36   : > { %1365 = vrot.lane.b32.xlu0 %v2141_v11, %s2066_s30 }
  0x39   : > { %795 = vrot.lane.b32.xlu1 %v2021_v9, %s2067_s5  ;;  %v2053_v9 = vld [vmem:[%s2296_s1 + $0x98] sm:$0xff]  }
  0x3a   : > { %793 = vrot.lane.b32.xlu0 %v2135_v8, %s2067_s5 }
  0x3d   : > { %1447 = vrot.lane.b32.xlu1 %v2024_v10, %s2067_s5  ;;  %v2055_v10 = vld [vmem:[%s2296_s1 + $0xb0] sm:$0xff]  }
  0x3e   : > { %1445 = vrot.lane.b32.xlu0 %v2141_v11, %s2067_s5 }
  0x83   : > { %v960_v12 = vpop.permute.xlu1 %959 }
  0x84   : > { %v242_v13 = vpop.permute.xlu0 %241 }
  0x87   : > { %v962_v14 = vpop.permute.xlu1 %961 }
  0x88   : > { %v244_v15 = vpop.permute.xlu0 %243  ;;  %v963_v16 = vsel %vm245_vm1, %v960_v12, %v962_v14 }
  0x89   : > { %v246_v17 = vsel %vm245_vm1, %v242_v13, %v244_v15  ;;  %1900 = vmatprep.subr.bf16.mxu0 %v963_v16 }
  0x8a   : > { %1846 = vmatprep.subr.bf16.mxu1 %v246_v17  ;;  %1901 = vmatpush3.bf16.msra.mxu0 %v963_v16 }
  0x8b   : > { %1847 = vmatpush3.bf16.msra.mxu1 %v246_v17  ;;  %v388_v21 = vpop.permute.xlu1 %387  ;;  %v1792_v17 = vld [vmem:[%s2297_s2] ss:$0 sm:$0xff] }
  0x8c   : > { %1852 = vmatprep.subr.bf16.mxu1 %v2119_v3  ;;  %v386_v23 = vpop.permute.xlu0 %385 }
  0x8d   : > { %1903 = vmatmul.mubr.msk.bf16.vlgmr.msra.gmra.mrb[0].mxu0 %vm248_vm0, %v2030_v18  ;;  %v390_v24 = vsel %vm389_vm2, %v386_v23, %v388_v21 }
  0x8e   : > { %1849 = vmatmul.mubr.msk.bf16.vlgmr.msra.gmra.mrb[0].mxu1 %vm248_vm0, %v2029_v19  ;;  %1908 = vmatprep.mubr.msk.bf16.mxu0 %vm248_vm0, %v2032_v20 }
  0x8f   : > { %1853 = vmatpush3.bf16.msra.mxu1 %v2119_v3  ;;  %v1042_v25 = vpop.permute.xlu1 %1041  ;;  %1854 = vmatprep.mubr.msk.bf16.mxu1 %vm248_vm0, %v2031_v22  ;;  %v2050_v3 = vld [vmem:[%s2296_s1 + $0xd8] sm:$0xff]  }
  0x90   : > { %v1040_v26 = vpop.permute.xlu0 %1039  ;;  %1858 = vmatprep.subr.bf16.mxu1 %v390_v24 }
  0x91   : > { %v1043_v27 = vsel %vm389_vm2, %v1040_v26, %v1042_v25 }
  0x92   : > { %1906 = vmatprep.subr.bf16.mxu0 %v1043_v27 }
  0x93   : > { %1907 = vmatpush3.bf16.msra.mxu0 %v1043_v27  ;;  %v469_v28 = vpop.permute.xlu1 %468 }
  0x94   : > { %v467_v29 = vpop.permute.xlu0 %466 }
  0x95   : > { %v471_v35 = vsel %vm470_vm3, %v467_v29, %v469_v28 }
  0x97   : > { %v1122_v32 = vpop.permute.xlu1 %1121 }
  0x98   : > { %v1120_v33 = vpop.permute.xlu0 %1119 }
  0x99   : > { %1909 = vmatmul.mubr.msk.bf16.vlgmr.msra.gmra.mrb[0].mxu0 %vm248_vm0, %v2034_v30  ;;  %v1123_v36 = vsel %vm470_vm3, %v1120_v33, %v1122_v32 }
  0x9a   : > { %1855 = vmatmul.mubr.msk.bf16.vlgmr.msra.gmra.mrb[0].mxu1 %vm248_vm0, %v2033_v31  ;;  %1912 = vmatprep.subr.bf16.mxu0 %v1123_v36 }
  0x9b   : > { %1859 = vmatpush3.bf16.msra.mxu1 %v390_v24  ;;  %1913 = vmatpush3.bf16.msra.mxu0 %v1123_v36  ;;  %v636_v38 = vpop.permute.xlu1 %635 }
  0x9c   : > { %1864 = vmatprep.subr.bf16.mxu1 %v471_v35  ;;  %1860 = vmatprep.mubr.msk.bf16.mxu1 %vm248_vm0, %v2035_v34  ;;  %v634_v39 = vpop.permute.xlu0 %633 }
  0x9d   : > { %1914 = vmatprep.mubr.msk.bf16.mxu0 %vm248_vm0, %v2036_v37  ;;  %1918 = vmatprep.subr.bf16.mxu0 %v2141_v11  ;;  %v637_v55 = vsel %vm245_vm1, %v634_v39, %v636_v38 }
  0x9f   : > { %v1288_v43 = vpop.permute.xlu1 %1287 }
  0xa0   : > { %v1286_v44 = vpop.permute.xlu0 %1285 }
  0xa1   : > { %v1289_v46 = vsel %vm245_vm1, %v1286_v44, %v1288_v43 }
  0xa3   : > { %v716_v47 = vpop.permute.xlu1 %715 }
  0xa4   : > { %v714_v48 = vpop.permute.xlu0 %713 }
  0xa5   : > { %1915 = vmatmul.mubr.msk.bf16.vlgmr.msra.gmra.mrb[0].mxu0 %vm248_vm0, %v2038_v40  ;;  %v717_v1 = vsel %vm389_vm2, %v714_v48, %v716_v47 }
  0xa6   : > { %1861 = vmatmul.mubr.msk.bf16.vlgmr.msra.gmra.mrb[0].mxu1 %vm248_vm0, %v2037_v41  ;;  %1919 = vmatpush3.bf16.msra.mxu0 %v2141_v11  ;;  %v2056_v11 = vld [vmem:[%s2296_s1 + $0xb8] sm:$0xff]  }
  0xa7   : > { %1865 = vmatpush3.bf16.msra.mxu1 %v471_v35  ;;  %1866 = vmatprep.mubr.msk.bf16.mxu1 %vm248_vm0, %v2039_v42  ;;  %v1368_v52 = vpop.permute.xlu1 %1367 }
  0xa8   : > { %1920 = vmatprep.mubr.msk.bf16.mxu0 %vm248_vm0, %v2040_v45  ;;  %1870 = vmatprep.subr.bf16.mxu1 %v2135_v8  ;;  %v1366_v53 = vpop.permute.xlu0 %1365 }
  0xa9   : > { %1924 = vmatprep.subr.bf16.mxu0 %v1289_v46  ;;  %v1369_v56 = vsel %vm389_vm2, %v1366_v53, %v1368_v52 }
  0xab   : > { %v796_v57 = vpop.permute.xlu1 %795 }
  0xac   : > { %v794_v58 = vpop.permute.xlu0 %793 }
  0xad   : > { %v797_v7 = vsel %vm470_vm3, %v794_v58, %v796_v57 }
  0xaf   : > { %v1448_v62 = vpop.permute.xlu1 %1447 }
  0xb0   : > { %v1446_v63 = vpop.permute.xlu0 %1445 }
  0xb1   : > { %1921 = vmatmul.mubr.msk.bf16.vlgmr.msra.gmra.mrb[0].mxu0 %vm248_vm0, %v2042_v49  ;;  %v1449_v2 = vsel %vm470_vm3, %v1446_v63, %v1448_v62 }
  0xb2   : > { %1867 = vmatmul.mubr.msk.bf16.vlgmr.msra.gmra.mrb[0].mxu1 %vm248_vm0, %v2041_v50  ;;  %1925 = vmatpush3.bf16.msra.mxu0 %v1289_v46 }
  0xb3   : > { %1871 = vmatpush3.bf16.msra.mxu1 %v2135_v8  ;;  %1872 = vmatprep.mubr.msk.bf16.mxu1 %vm248_vm0, %v2043_v51  ;;  %v2054_v8 = vld [vmem:[%s2296_s1 + $0xf8] sm:$0xff]  }
  0xb4   : > { %1876 = vmatprep.subr.bf16.mxu1 %v637_v55  ;;  %1926 = vmatprep.mubr.msk.bf16.mxu0 %vm248_vm0, %v2044_v54 }
  0xb5   : > { %1930 = vmatprep.subr.bf16.mxu0 %v1369_v56 }
  0xbd   : > { %1927 = vmatmul.mubr.msk.bf16.vlgmr.msra.gmra.mrb[0].mxu0 %vm248_vm0, %v2046_v59 }
  0xbe   : > { %1873 = vmatmul.mubr.msk.bf16.vlgmr.msra.gmra.mrb[0].mxu1 %vm248_vm0, %v2045_v60  ;;  %1931 = vmatpush3.bf16.msra.mxu0 %v1369_v56 }
  0xbf   : > { %1877 = vmatpush3.bf16.msra.mxu1 %v637_v55  ;;  %1878 = vmatprep.mubr.msk.bf16.mxu1 %vm248_vm0, %v2047_v61 }
  0xc0   : > { %1882 = vmatprep.subr.bf16.mxu1 %v717_v1  ;;  %1932 = vmatprep.mubr.msk.bf16.mxu0 %vm248_vm0, %v2048_v0 }
  0xc1   : > { %1936 = vmatprep.subr.bf16.mxu0 %v1449_v2 }
  0xc9   : > { %1933 = vmatmul.mubr.msk.bf16.vlgmr.msra.gmra.mrb[0].mxu0 %vm248_vm0, %v2050_v3 }
  0xca   : > { %1879 = vmatmul.mubr.msk.bf16.vlgmr.msra.gmra.mrb[0].mxu1 %vm248_vm0, %v2049_v4  ;;  %1937 = vmatpush3.bf16.msra.mxu0 %v1449_v2 }
  0xcb   : > { %1883 = vmatpush3.bf16.msra.mxu1 %v717_v1  ;;  %1884 = vmatprep.mubr.msk.bf16.mxu1 %vm248_vm0, %v2051_v5 }
  0xcc   : > { %1888 = vmatprep.subr.bf16.mxu1 %v797_v7  ;;  %1938 = vmatprep.mubr.msk.bf16.mxu0 %vm248_vm0, %v2052_v6 }
  0xd5   : > { %1939 = vmatmul.mubr.msk.bf16.vlgmr.msra.gmra.mrb[0].mxu0 %vm248_vm0, %v2054_v8 }
  0xd6   : > { %1885 = vmatmul.mubr.msk.bf16.vlgmr.msra.gmra.mrb[0].mxu1 %vm248_vm0, %v2053_v9 }
  0xd7   : > { %1889 = vmatpush3.bf16.msra.mxu1 %v797_v7  ;;  %1890 = vmatprep.mubr.msk.bf16.mxu1 %vm248_vm0, %v2055_v10 }
  0xe2   : > { %1891 = vmatmul.mubr.msk.bf16.vlgmr.msra.gmra.mrb[0].mxu1 %vm248_vm0, %v2056_v11 }
 0x1a8   : > { %v1940_v12 = vpop.f32.mrb[0].mxu0 }
 0x1a9   : > { %v1491_v13 = vpop.f32.mrb[1].mxu0 }
 0x1aa   : > { %v1941_v14 = vpop.f32.mrb[2].mxu0 }
 0x1ab   : > { %v1494_v15 = vpop.f32.mrb[3].mxu0 }
 0x1b5   : > { %v1892_v16 = vpop.f32.mrb[0].mxu1 }
 0x1b6   : > { %v1942_v18 = vadd.f32 %v1940_v12, %v1892_v16  ;;  %v839_v19 = vpop.f32.mrb[1].mxu1 }
 0x1b7   : > { %v1943_v20 = vadd.f32 %v1491_v13, %v839_v19  ;;  %v1893_v21 = vpop.f32.mrb[2].mxu1 }
 0x1b8   : > { %1512 = vst [vmem:[%s205_s19 + $0x10] sm:$0xff] %v1942_v18  ;;  %v1944_v22 = vadd.f32 %v1941_v14, %v1893_v21  ;;  %v842_v23 = vpop.f32.mrb[3].mxu1  ;;  %v1523_v24 = vmul.f32 %v1942_v18, %v1792_v17 }
 0x1b9   : > { %1510 = vst [vmem:[%s205_s19] sm:$0xff] %v1943_v20  ;;  %v1945_v25 = vadd.f32 %v1494_v15, %v842_v23  ;;  %v1521_v27 = vmul.f32 %v1943_v20, %v1792_v17 }
 0x1ba   : > { %1513 = vst [vmem:[%s205_s19 + $0x18] sm:$0xff] %v1944_v22  ;;  %1529 = vadd.xlane.f32.xlu0 %v1523_v24  ;;  %v1524_v29 = vmul.f32 %v1944_v22, %v1792_v17  ;;  %v1540_v30 = vmul.f32 %v1942_v18, %v1523_v24 }
 0x1bb   : > { %1511 = vst [vmem:[%s205_s19 + $0x8] sm:$0xff] %v1945_v25  ;;  %v1522_v26 = vmul.f32 %v1945_v25, %v1792_v17  ;;  %v1538_v28 = vmul.f32 %v1943_v20, %v1521_v27 }
 0x1bc   : > { %v1541_v32 = vmul.f32 %v1944_v22, %v1524_v29 }
 0x1bd   : > { %1527 = vadd.xlane.f32.xlu1 %v1522_v26  ;;  %v1539_v31 = vmul.f32 %v1945_v25, %v1522_v26 }
 0x1be   : > { %1525 = vadd.xlane.f32.xlu0 %v1521_v27 }
 0x1c1   : > { %1542 = vadd.xlane.f32.xlu1 %v1538_v28 }
 0x1c2   : > { %1531 = vadd.xlane.f32.xlu0 %v1524_v29 }
 0x1c5   : > { %1546 = vadd.xlane.f32.xlu1 %v1540_v30 }
 0x1c6   : > { %1544 = vadd.xlane.f32.xlu0 %v1539_v31 }
 0x1ca   : > { %1548 = vadd.xlane.f32.xlu0 %v1541_v32 }
 0x247   : > { %v1530_v33 = vpop.xlane.xlu0 %1529 }
 0x248   : > { %1536 = vst.msk [vmem:[%s210_s24 + $0x10] sm:$0xff] %vm1533_vm4, %v1530_v33 }
 0x24a   : > { %v1528_v34 = vpop.xlane.xlu1 %1527 }
 0x24b   : > { %1535 = vst.msk [vmem:[%s210_s24 + $0x8] sm:$0xff] %vm1533_vm4, %v1528_v34  ;;  %v1526_v35 = vpop.xlane.xlu0 %1525 }
 0x24c   : > { %1534 = vst.msk [vmem:[%s210_s24] sm:$0xff] %vm1533_vm4, %v1526_v35 }
 0x24e   : > { %v1543_v36 = vpop.xlane.xlu1 %1542 }
 0x24f   : > { %1551 = vst.msk [vmem:[%s210_s24] sm:$0xff] %vm1550_vm5, %v1543_v36  ;;  %v1532_v37 = vpop.xlane.xlu0 %1531 }
 0x250   : > { %1537 = vst.msk [vmem:[%s210_s24 + $0x18] sm:$0xff] %vm1533_vm4, %v1532_v37 }
 0x252   : > { %v1547_v38 = vpop.xlane.xlu1 %1546 }
 0x253   : > { %1553 = vst.msk [vmem:[%s210_s24 + $0x10] sm:$0xff] %vm1550_vm5, %v1547_v38  ;;  %v1545_v39 = vpop.xlane.xlu0 %1544 }
 0x254   : > { %1552 = vst.msk [vmem:[%s210_s24 + $0x8] sm:$0xff] %vm1550_vm5, %v1545_v39 }
 0x257   : > { %v1549_v40 = vpop.xlane.xlu0 %1548 }
 0x258   : > { %1554 = vst.msk [vmem:[%s210_s24 + $0x18] sm:$0xff] %vm1550_vm5, %v1549_v40 }
 0x259 PF: > { %s15_s15 = sadd.s32 1, %s2063_s15  }
 0x25a   : > { %p12_p4 = scmp.ge.s32.totalorder %s15_s15, 4  }
 0x25c   :  { %14 = sbr.rel (!%p12_p4) target bundleno = 1 (0x1), region = 92 }

// kernel: discriminator_forward.13
= control target key start
LH: loop header
LB: loop body
LE: loop exit
PB: predicated region body
PF: predicated region fallthrough
CT: control target
= control target key end

     0   :  { %s499_s17 = smov 0   ;;  %s582_s0 = inlined_call_operand.vmem [shape: f32[2,64,128], index: 0, kind: input, shape index: {}]   ;;  %s583_s1 = inlined_call_operand.vmem [shape: f32[64,2], index: 1, kind: input, shape index: {}]   ;;  %s584_s2 = inlined_call_operand.vmem [shape: f32[64,128], index: 2, kind: input, shape index: {}]   ;;  %s585_s3 = inlined_call_operand.<no memory space> [shape: f32[1,1], index: 3, kind: input, shape index: {}]   ;;  %s586_s4 = inlined_call_operand.vmem [shape: f32[2,1,1], index: 4, kind: output, shape index: {}]  }
   0x1   :  { %v9_v0 = vstv %s585_s3 }
   0x2   :  { %10 = vst [vmem:[#allocation2] sm:$0x1] %v9_v0 }
   0x3 LB: > { %s426_s18 = sadd.s32 4294967295, %s467_s17   ;;  %p430_p0 = scmp.ge.s32.totalorder %s467_s17, 1  ;;  %s467_s17 = sphi %s499_s17, %s16_s17  }
   0x4   : > { %p164_p1 = scmp.lt.s32.totalorder %s467_s17, 3 }
   0x6   : > { %p165_p2 = pnand %p430_p0, %p164_p1 }
   0x7   : > { %v206_v1 = vld [vmem:[%s583_s1 + $0x10] sm:$0xff] (!%p165_p2)  ;;  %v204_v2 = vld [vmem:[%s583_s1] sm:$0xff] (!%p165_p2)  ;;  %v469_v3 = vmov (!%p165_p2), 0   ;;  %v205_v4 = vld [vmem:[%s583_s1 + $0x8] sm:$0xff] (!%p165_p2)  ;;  %v470_v5 = vmov (!%p165_p2), 1   ;;  %p188_p3 = scmp.lt.s32.totalorder (!%p165_p2), %s426_s18, 1 }
   0x8   : > { %168 = sbr.rel (%p165_p2) target bundleno = 370 (0x172), region = 36  ;;  %448 = vset.pattern.permute.xlu1 (!%p165_p2), %v469_v3  ;;  %447 = vset.pattern.permute.xlu0 (!%p165_p2), %v469_v3  ;;  %v208_v6 = vld [vmem:[%s583_s1 + $0x20] sm:$0xff] (!%p165_p2)  ;;  %v207_v7 = vld [vmem:[%s583_s1 + $0x18] sm:$0xff] (!%p165_p2)  ;;  %v209_v9 = vld [vmem:[%s583_s1 + $0x28] sm:$0xff] (!%p165_p2)  ;;  %vm377_vm8 = vcmask (!%p165_p2), 0  }
   0x9   : > { %224 = vperm.xlu1 (!%p165_p2), %448, %v206_v1   ;;  %214 = vperm.xlu0 (!%p165_p2), %447, %v204_v2   ;;  %v211_v8 = vld [vmem:[%s583_s1 + $0x38] sm:$0xff] (!%p165_p2)  ;;  %v210_v10 = vld [vmem:[%s583_s1 + $0x30] sm:$0xff] (!%p165_p2)  ;;  %v324_v21 = vld [vmem:[%s584_s2] sm:$0xff] (!%p165_p2) }
   0xa   : > { %v325_v36 = vld [vmem:[%s584_s2 + $0x8] sm:$0xff] (!%p165_p2)  ;;  %v326_v42 = vld [vmem:[%s584_s2 + $0x10] sm:$0xff] (!%p165_p2)  ;;  %v328_v48 = vld [vmem:[%s584_s2 + $0x20] sm:$0xff] (!%p165_p2) }
   0xb   : > { %v327_v52 = vld [vmem:[%s584_s2 + $0x18] sm:$0xff] (!%p165_p2) }
   0xd   : > { %449 = vset.pattern.permute.xlu1 (!%p165_p2), %v470_v5  ;;  %219 = vperm.xlu0 (!%p165_p2), %447, %v205_v4  }
   0xe   : > { %261 = vperm.xlu1 (!%p165_p2), %449, %v204_v2  }
   0xf   : > { %s588_s18 = smov (!%p188_p3, %s426_s18), 1 }
  0x10   : > { %s436_s8 = sshll.u32 %s588_s18, 6  ;;  %s195_s5 = scalar_lea.vmem %s586_s4, %s588_s18 }
  0x11   : > { %234 = vperm.xlu0 %447, %v208_v6   ;;  %s541_s11 = scalar_lea.vmem %s582_s0, %s436_s8 }
  0x12   : > { %450 = vset.pattern.permute.xlu1 %v469_v3  ;;  %v196_v11 = vld [vmem:[%s541_s11] sm:$0xff]  ;;  %v197_v18 = vld [vmem:[%s541_s11 + $0x8] sm:$0xff]  ;;  %v198_v25 = vld [vmem:[%s541_s11 + $0x10] sm:$0xff] }
  0x13   : > { %229 = vperm.xlu1 %450, %v207_v7   ;;  %v200_v26 = vld [vmem:[%s541_s11 + $0x20] sm:$0xff]  ;;  %v199_v31 = vld [vmem:[%s541_s11 + $0x18] sm:$0xff]  ;;  %v201_v58 = vld [vmem:[%s541_s11 + $0x28] sm:$0xff] }
  0x14   : > { %v202_v60 = vld [vmem:[%s541_s11 + $0x30] sm:$0xff]  ;;  %v203_v0 = vld [vmem:[%s541_s11 + $0x38] sm:$0xff] }
  0x15   : > { %452 = vset.pattern.permute.xlu0 %v470_v5 }
  0x16   : > { %265 = vperm.xlu0 %452, %v205_v4  }
  0x17   : > { %451 = vset.pattern.permute.xlu1 %v470_v5 }
  0x18   : > { %269 = vperm.xlu1 %451, %v206_v1  }
  0x1a   : > { %277 = vperm.xlu0 %452, %v208_v6  }
  0x1c   : > { %273 = vperm.xlu1 %451, %v207_v7  }
  0x1e   : > { %455 = vset.pattern.permute.xlu0 %v469_v3 }
  0x1f   : > { %249 = vperm.xlu0 %455, %v211_v8  }
  0x20   : > { %453 = vset.pattern.permute.xlu1 %v469_v3  ;;  %v329_v3 = vld [vmem:[%s584_s2 + $0x28] sm:$0xff] }
  0x21   : > { %239 = vperm.xlu1 %453, %v209_v9  }
  0x23   : > { %456 = vset.pattern.permute.xlu0 %v470_v5 }
  0x25   : > { %244 = vperm.xlu1 %453, %v210_v10  }
  0x29   : > { %454 = vset.pattern.permute.xlu1 %v470_v5 }
  0x2a   : > { %281 = vperm.xlu1 %454, %v209_v9  }
  0x2e   : > { %285 = vperm.xlu1 %454, %v210_v10   ;;  %v330_v10 = vld [vmem:[%s584_s2 + $0x30] sm:$0xff] }
  0x32   : > { %289 = vperm.xlu1 %454, %v211_v8  }
  0x88   : > { %v225_v12 = vpop.permute.xlu1 %224  ;;  %v215_v13 = vpop.permute.xlu0 %214 }
  0x89   : > { %v252_v14 = vmul.f32 %v215_v13, %v196_v11  ;;  %v254_v29 = vmul.f32 %v225_v12, %v198_v25 }
  0x8c   : > { %v220_v15 = vpop.permute.xlu0 %219 }
  0x8d   : > { %v262_v16 = vpop.permute.xlu1 %261  ;;  %v253_v22 = vmul.f32 %v220_v15, %v197_v18 }
  0x8e   : > { %v292_v17 = vadd.f32 %v262_v16, %v252_v14  ;;  %v331_v16 = vld [vmem:[%s584_s2 + $0x38] sm:$0xff] }
  0x90   : > { %v308_v19 = vmul.f32 0.2, %v292_v17  ;;  %v235_v20 = vpop.permute.xlu0 %234  ;;  %vm300_vm0 = vcmp.gt.f32.partialorder %v292_v17, 0.0 }
  0x91   : > { %v256_v30 = vmul.f32 %v235_v20, %v200_v26 }
  0x92   : > { %v230_v23 = vpop.permute.xlu1 %229  ;;  %v316_v24 = vsel %vm300_vm0, %v292_v17, %v308_v19 }
  0x93   : > { %v332_v27 = vmul.f32 %v324_v21, %v316_v24  ;;  %v255_v37 = vmul.f32 %v230_v23, %v199_v31 }
  0x95   : > { %v266_v28 = vpop.permute.xlu0 %265  ;;  %340 = vadd.xlane.f32.xlu0 %v332_v27 }
  0x96   : > { %v293_v32 = vadd.f32 %v266_v28, %v253_v22 }
  0x97   : > { %v270_v33 = vpop.permute.xlu1 %269 }
  0x98   : > { %v309_v34 = vmul.f32 0.2, %v293_v32  ;;  %v294_v35 = vadd.f32 %v270_v33, %v254_v29  ;;  %vm301_vm1 = vcmp.gt.f32.partialorder %v293_v32, 0.0 }
  0x99   : > { %v278_v38 = vpop.permute.xlu0 %277 }
  0x9a   : > { %v310_v39 = vmul.f32 0.2, %v294_v35  ;;  %v296_v40 = vadd.f32 %v278_v38, %v256_v30  ;;  %v317_v41 = vsel %vm301_vm1, %v293_v32, %v309_v34  ;;  %vm302_vm2 = vcmp.gt.f32.partialorder %v294_v35, 0.0 }
  0x9b   : > { %v274_v43 = vpop.permute.xlu1 %273  ;;  %v333_v44 = vmul.f32 %v325_v36, %v317_v41 }
  0x9c   : > { %v312_v45 = vmul.f32 0.2, %v296_v40  ;;  %v295_v46 = vadd.f32 %v274_v43, %v255_v37  ;;  %v318_v47 = vsel %vm302_vm2, %v294_v35, %v310_v39  ;;  %vm304_vm3 = vcmp.gt.f32.partialorder %v296_v40, 0.0  ;;  %v369_v39 = vld [vmem:[#allocation2] sm:$0x1] }
  0x9d   : > { %342 = vadd.xlane.f32.xlu1 %v333_v44  ;;  %v334_v49 = vmul.f32 %v326_v42, %v318_v47 }
  0x9e   : > { %v311_v50 = vmul.f32 0.2, %v295_v46  ;;  %v320_v51 = vsel %vm304_vm3, %v296_v40, %v312_v45  ;;  %vm303_vm4 = vcmp.gt.f32.partialorder %v295_v46, 0.0  ;;  %v250_v63 = vpop.permute.xlu0 %249 }
  0x9f   : > { %344 = vadd.xlane.f32.xlu0 %v334_v49  ;;  %v336_v53 = vmul.f32 %v328_v48, %v320_v51  ;;  %v259_v6 = vmul.f32 %v250_v63, %v203_v0 }
  0xa0   : > { %v240_v54 = vpop.permute.xlu1 %239  ;;  %v319_v55 = vsel %vm303_vm4, %v295_v46, %v311_v50 }
  0xa1   : > { %348 = vadd.xlane.f32.xlu1 %v336_v53  ;;  %v335_v56 = vmul.f32 %v327_v52, %v319_v55  ;;  %v257_v59 = vmul.f32 %v240_v54, %v201_v58 }
  0xa3   : > { %346 = vadd.xlane.f32.xlu0 %v335_v56 }
  0xa4   : > { %v245_v57 = vpop.permute.xlu1 %244 }
  0xa5   : > { %v258_v1 = vmul.f32 %v245_v57, %v202_v60 }
  0xa9   : > { %v282_v61 = vpop.permute.xlu1 %281 }
  0xaa   : > { %v297_v62 = vadd.f32 %v282_v61, %v257_v59 }
  0xac   : > { %v313_v2 = vmul.f32 0.2, %v297_v62  ;;  %vm305_vm5 = vcmp.gt.f32.partialorder %v297_v62, 0.0 }
  0xad   : > { %v286_v4 = vpop.permute.xlu1 %285 }
  0xae   : > { %v298_v5 = vadd.f32 %v286_v4, %v258_v1  ;;  %v321_v7 = vsel %vm305_vm5, %v297_v62, %v313_v2 }
  0xaf   : > { %v337_v8 = vmul.f32 %v329_v3, %v321_v7 }
  0xb0   : > { %v314_v9 = vmul.f32 0.2, %v298_v5  ;;  %vm306_vm6 = vcmp.gt.f32.partialorder %v298_v5, 0.0 }
  0xb1   : > { %v290_v11 = vpop.permute.xlu1 %289  ;;  %350 = vadd.xlane.f32.xlu0 %v337_v8 }
  0xb2   : > { %v299_v12 = vadd.f32 %v290_v11, %v259_v6  ;;  %v322_v13 = vsel %vm306_vm6, %v298_v5, %v314_v9 }
  0xb3   : > { %v338_v14 = vmul.f32 %v330_v10, %v322_v13 }
  0xb4   : > { %v315_v15 = vmul.f32 0.2, %v299_v12  ;;  %vm307_vm7 = vcmp.gt.f32.partialorder %v299_v12, 0.0 }
  0xb5   : > { %352 = vadd.xlane.f32.xlu1 %v338_v14 }
  0xb6   : > { %v323_v17 = vsel %vm307_vm7, %v299_v12, %v315_v15 }
  0xb7   : > { %v339_v18 = vmul.f32 %v331_v16, %v323_v17 }
  0xb9   : > { %354 = vadd.xlane.f32.xlu0 %v339_v18 }
 0x122   : > { %v341_v19 = vpop.xlane.xlu0 %340 }
 0x12a   : > { %v343_v20 = vpop.xlane.xlu1 %342 }
 0x12b   : > { %v356_v22 = vadd.f32 %v343_v20, %v341_v19 }
 0x12c   : > { %v345_v21 = vpop.xlane.xlu0 %344 }
 0x12d   : > { %v357_v24 = vadd.f32 %v356_v22, %v345_v21 }
 0x12e   : > { %v349_v26 = vpop.xlane.xlu1 %348 }
 0x130   : > { %v347_v23 = vpop.xlane.xlu0 %346 }
 0x131   : > { %v358_v25 = vadd.f32 %v357_v24, %v347_v23 }
 0x133   : > { %v359_v28 = vadd.f32 %v358_v25, %v349_v26 }
 0x13e   : > { %v351_v27 = vpop.xlane.xlu0 %350 }
 0x13f   : > { %v360_v30 = vadd.f32 %v359_v28, %v351_v27 }
 0x142   : > { %v353_v29 = vpop.xlane.xlu1 %352 }
 0x143   : > { %v361_v31 = vadd.f32 %v360_v30, %v353_v29 }
 0x146   : > { %v355_v32 = vpop.xlane.xlu0 %354 }
 0x147   : > { %v362_v33 = vadd.f32 %v361_v31, %v355_v32 }
 0x149   : > { %v363_v34 = vrot.slane %v362_v33, 4 }
 0x14b   : > { %v364_v35 = vadd.f32 %v363_v34, %v362_v33 }
 0x14d   : > { %v365_v36 = vrot.slane %v364_v35, 2 }
 0x14f   : > { %v366_v37 = vadd.f32 %v365_v36, %v364_v35 }
 0x151   : > { %v367_v38 = vrot.slane %v366_v37, 1 }
 0x153   : > { %v368_v40 = vadd.f32 %v367_v38, %v366_v37 }
 0x155   : > { %v370_v41 = vadd.f32 %v369_v39, %v368_v40 }
 0x157   : > { %v433_v42 = vmul.f32 -1.442695, %v370_v41 }
 0x159   : > { %457 = vpow2.f32 %v433_v42 }
 0x163   : > { %v458_v43 = vpop.eup %457 }
 0x164   : > { %v374_v44 = vadd.f32 1.0, %v458_v43 }
 0x166   : > { %459 = vrcp.f32 %v374_v44 }
 0x170   : > { %v460_v45 = vpop.eup %459 }
 0x171   : > { %378 = vst.msk [vmem:[%s195_s5] sm:$0x1] %vm377_vm8, %v460_v45 }
 0x172 PF: > { %s16_s17 = sadd.s32 1, %s467_s17  }
 0x173   : > { %p13_p4 = scmp.ge.s32.totalorder %s16_s17, 4  }
 0x175   :  { %15 = sbr.rel (!%p13_p4) target bundleno = 3 (0x3), region = 66 }

// kernel: discriminator_forward.12
= control target key start
LH: loop header
LB: loop body
LE: loop exit
PB: predicated region body
PF: predicated region fallthrough
CT: control target
= control target key end

     0   :  { %s3263_s15 = smov 0   ;;  %s3726_s0 = inlined_call_operand.vmem [shape: bf16[2,4,32,256], index: 0, kind: input, shape index: {}]   ;;  %s3727_s1 = inlined_call_operand.vmem [shape: bf16[16,64,32], index: 1, kind: input, shape index: {}]   ;;  %s3728_s2 = inlined_call_operand.vmem [shape: f32[1,128], index: 2, kind: input, shape index: {}]   ;;  %s3729_s3 = inlined_call_operand.vmem [shape: f32[2,64,128], index: 3, kind: output, shape index: {0}]   ;;  %s3730_s4 = inlined_call_operand.vmem [shape: f32[2,64,2], index: 4, kind: output, shape index: {1}]  }
   0x1 LB: > { %s2427_s16 = sadd.s32 4294967295, %s3233_s15   ;;  %p2431_p0 = scmp.ge.s32.totalorder %s3233_s15, 1  ;;  %s3233_s15 = sphi %s3263_s15, %s15_s15  }
   0x2   : > { %p165_p1 = scmp.lt.s32.totalorder %s3233_s15, 3 }
   0x4   : > { %p166_p2 = pnand %p2431_p0, %p165_p1 }
   0x5   : > { %p196_p3 = scmp.lt.s32.totalorder (!%p166_p2), %s2427_s16, 1  ;;  %vm282_vm0 = vcmask (!%p166_p2), 261120   ;;  %v3163_v0 = vld [vmem:[%s3727_s1 + $0x80] sm:$0xff] (!%p166_p2)   ;;  %s3235_s23 = smov (!%p166_p2), 127   ;;  %v3164_v8 = vld [vmem:[%s3727_s1 + $0x88] sm:$0xff] (!%p166_p2)   ;;  %v3165_v10 = vld [vmem:[%s3727_s1 + $0x90] sm:$0xff] (!%p166_p2)  }
   0x6   : > { %169 = sbr.rel (%p166_p2) target bundleno = 648 (0x288), region = 32  ;;  %2916 = vmatprep.mubr.msk.bf16.mxu0 (!%p166_p2), %vm282_vm0, %v3163_v0  ;;  %v3167_v11 = vld [vmem:[%s3727_s1 + $0x40] sm:$0xff] (!%p166_p2)   ;;  %v3166_v12 = vld [vmem:[%s3727_s1 + $0x98] sm:$0xff] (!%p166_p2)   ;;  %s3236_s6 = smov (!%p166_p2), 123   ;;  %vm277_vm1 = vcmask (!%p166_p2), 1039360   ;;  %v3168_v31 = vld [vmem:[%s3727_s1 + $0x48] sm:$0xff] (!%p166_p2)  }
   0x7   : > { %2820 = vmatprep.mubr.msk.bf16.mxu1 (!%p166_p2), %vm282_vm0, %v3167_v11  ;;  %v3169_v13 = vld [vmem:[%s3727_s1 + $0xc0] sm:$0xff] (!%p166_p2)   ;;  %s3237_s9 = smov (!%p166_p2), 122   ;;  %v3171_v34 = vld [vmem:[%s3727_s1 + $0x50] sm:$0xff] (!%p166_p2)   ;;  %v3170_v36 = vld [vmem:[%s3727_s1 + $0xc8] sm:$0xff] (!%p166_p2)   ;;  %vm496_vm2 = vcmask (!%p166_p2), 1006592   ;;  %vm623_vm3 = vcmask (!%p166_p2), 998400  }
   0x8   : > { %v3173_v38 = vld [vmem:[%s3727_s1 + $0xd0] sm:$0xff] (!%p166_p2)   ;;  %v3172_v41 = vld [vmem:[%s3727_s1 + $0x58] sm:$0xff] (!%p166_p2)   ;;  %v3175_v43 = vld [vmem:[%s3727_s1] sm:$0xff] (!%p166_p2)   ;;  %vm2297_vm4 = vcmask (!%p166_p2), 7168   ;;  %vm2330_vm5 = vcmask (!%p166_p2), 15368  }
   0x9   : > { %v3174_v46 = vld [vmem:[%s3727_s1 + $0xd8] sm:$0xff] (!%p166_p2)   ;;  %v3177_v48 = vld [vmem:[%s3727_s1 + $0x180] sm:$0xff] (!%p166_p2)   ;;  %v3176_v50 = vld [vmem:[%s3727_s1 + $0x8] sm:$0xff] (!%p166_p2)  }
   0xa   : > { %v3179_v53 = vld [vmem:[%s3727_s1 + $0x10] sm:$0xff] (!%p166_p2)   ;;  %v3178_v56 = vld [vmem:[%s3727_s1 + $0x188] sm:$0xff] (!%p166_p2)   ;;  %v3180_v61 = vld [vmem:[%s3727_s1 + $0x18] sm:$0xff] (!%p166_p2)  }
   0xb   : > { %v3181_v58 = vld [vmem:[%s3727_s1 + $0x190] sm:$0xff] (!%p166_p2)   ;;  %v3183_v63 = vld [vmem:[%s3727_s1 + $0x100] sm:$0xff] (!%p166_p2)  }
   0xd   : > { %s3732_s16 = smov (!%p196_p3, %s2427_s16), 1 }
   0xe   : > { %s2717_s19 = sshll.u32 %s3732_s16, 7 }
   0xf   : > { %s3281_s22 = scalar_lea.vmem %s3726_s0, %s2717_s19 }
  0x10   : > { %v3284_v1 = vld [vmem:[%s3281_s22 + $0x10] ss:$8 sps:$4 sm:$0xff]   ;;  %v3287_v2 = vld [vmem:[%s3281_s22] ss:$8 sps:$4 sm:$0xff]   ;;  %v3143_v3 = vld [vmem:[%s3281_s22 + $0x14] ss:$8 sps:$4 sm:$0xff]  }
  0x11   : > { %273 = vrot.lane.b32.xlu1 %v3284_v1, %s3235_s23  ;;  %269 = vrot.lane.b32.xlu0 %v3287_v2, %s3235_s23  ;;  %v3144_v4 = vld [vmem:[%s3281_s22 + $0x4] ss:$8 sps:$4 sm:$0xff]   ;;  %v3145_v5 = vld [vmem:[%s3281_s22 + $0x40] ss:$8 sps:$4 sm:$0xff]  }
  0x12   : > { %v3148_v6 = vld [vmem:[%s3281_s22 + $0x50] ss:$8 sps:$4 sm:$0xff]   ;;  %2912 = vmatprep.subr.bf16.mxu0 %v3145_v5  ;;  %v3147_v7 = vld [vmem:[%s3281_s22 + $0x44] ss:$8 sps:$4 sm:$0xff]   ;;  %v3150_v9 = vld [vmem:[%s3281_s22 + $0x54] ss:$8 sps:$4 sm:$0xff]  }
  0x13   : > { %2913 = vmatpush3.bf16.msra.mxu0 %v3145_v5  ;;  %v3153_v14 = vld [vmem:[%s3281_s22 + $0x24] ss:$8 sps:$4 sm:$0xff]   ;;  %v3347_v15 = vld [vmem:[%s3281_s22 + $0x20] ss:$8 sps:$4 sm:$0xff]   ;;  %v3159_v18 = vld [vmem:[%s3281_s22 + $0x34] ss:$8 sps:$4 sm:$0xff]  }
  0x14   : > { %2914 = vmatprep.subr.bf16.mxu0 %v3148_v6  ;;  %v3156_v16 = vld [vmem:[%s3281_s22 + $0x64] ss:$8 sps:$4 sm:$0xff]   ;;  %v3351_v17 = vld [vmem:[%s3281_s22 + $0x60] ss:$8 sps:$4 sm:$0xff]   ;;  %v3361_v19 = vld [vmem:[%s3281_s22 + $0x30] ss:$8 sps:$4 sm:$0xff]  }
  0x15   : > { %275 = vrot.lane.b32.xlu1 %v3143_v3, %s3235_s23  ;;  %271 = vrot.lane.b32.xlu0 %v3144_v4, %s3235_s23  ;;  %v3162_v20 = vld [vmem:[%s3281_s22 + $0x74] ss:$8 sps:$4 sm:$0xff]   ;;  %v3368_v21 = vld [vmem:[%s3281_s22 + $0x70] ss:$8 sps:$4 sm:$0xff]  }
  0x17   : > { %2915 = vmatpush3.bf16.msra.mxu0 %v3148_v6 }
  0x19   : > { %1396 = vrot.lane.b32.xlu1 %v3147_v7, %s3235_s23  ;;  %1394 = vrot.lane.b32.xlu0 %v3145_v5, %s3235_s23 }
  0x1a   : > { %2917 = vmatmul.mubr.msk.bf16.vlgmr.msra.gmra.mrb[0].mxu0 %vm282_vm0, %v3164_v8 }
  0x1b   : > { %2920 = vmatprep.mubr.msk.bf16.mxu0 %vm282_vm0, %v3165_v10 }
  0x1d   : > { %1400 = vrot.lane.b32.xlu1 %v3150_v9, %s3235_s23  ;;  %1398 = vrot.lane.b32.xlu0 %v3148_v6, %s3235_s23 }
  0x21   : > { %490 = vrot.lane.b32.xlu1 %v3144_v4, %s3236_s6  ;;  %488 = vrot.lane.b32.xlu0 %v3287_v2, %s3236_s6 }
  0x22   : > { %2921 = vmatmul.mubr.msk.bf16.gmra.mrb[4].mxu0 %vm282_vm0, %v3166_v12  ;;  %v3186_v12 = vld [vmem:[%s3727_s1 + $0x1c8] sm:$0xff]  }
  0x23   : > { %2928 = vmatprep.mubr.msk.bf16.mxu0 %vm282_vm0, %v3169_v13  ;;  %v3189_v13 = vld [vmem:[%s3727_s1 + $0x1d0] sm:$0xff]  }
  0x25   : > { %1522 = vrot.lane.b32.xlu1 %v3147_v7, %s3236_s6  ;;  %1520 = vrot.lane.b32.xlu0 %v3145_v5, %s3236_s6 }
  0x29   : > { %494 = vrot.lane.b32.xlu1 %v3143_v3, %s3236_s6  ;;  %492 = vrot.lane.b32.xlu0 %v3284_v1, %s3236_s6 }
  0x2d   : > { %1526 = vrot.lane.b32.xlu1 %v3150_v9, %s3236_s6  ;;  %1524 = vrot.lane.b32.xlu0 %v3148_v6, %s3236_s6 }
  0x31   : > { %617 = vrot.lane.b32.xlu1 %v3144_v4, %s3237_s9  ;;  %615 = vrot.lane.b32.xlu0 %v3287_v2, %s3237_s9  ;;  %v3185_v4 = vld [vmem:[%s3727_s1 + $0x1c0] sm:$0xff]  }
  0x35   : > { %1648 = vrot.lane.b32.xlu1 %v3147_v7, %s3237_s9  ;;  %1646 = vrot.lane.b32.xlu0 %v3145_v5, %s3237_s9 }
  0x39   : > { %621 = vrot.lane.b32.xlu1 %v3143_v3, %s3237_s9  ;;  %619 = vrot.lane.b32.xlu0 %v3284_v1, %s3237_s9 }
  0x3d   : > { %1652 = vrot.lane.b32.xlu1 %v3150_v9, %s3237_s9  ;;  %1650 = vrot.lane.b32.xlu0 %v3148_v6, %s3237_s9  ;;  %v3184_v6 = vld [vmem:[%s3727_s1 + $0x108] sm:$0xff]   ;;  %v3187_v9 = vld [vmem:[%s3727_s1 + $0x110] sm:$0xff]  }
  0x41   : > { %881 = vrot.lane.b32.xlu1 %v3153_v14, %s3235_s23  ;;  %879 = vrot.lane.b32.xlu0 %v3347_v15, %s3235_s23 }
  0x45   : > { %1911 = vrot.lane.b32.xlu1 %v3156_v16, %s3235_s23  ;;  %1909 = vrot.lane.b32.xlu0 %v3351_v17, %s3235_s23 }
  0x49   : > { %885 = vrot.lane.b32.xlu1 %v3159_v18, %s3235_s23  ;;  %883 = vrot.lane.b32.xlu0 %v3361_v19, %s3235_s23 }
  0x4d   : > { %1915 = vrot.lane.b32.xlu1 %v3162_v20, %s3235_s23  ;;  %1913 = vrot.lane.b32.xlu0 %v3368_v21, %s3235_s23 }
  0x51   : > { %1007 = vrot.lane.b32.xlu1 %v3153_v14, %s3236_s6  ;;  %1005 = vrot.lane.b32.xlu0 %v3347_v15, %s3236_s6 }
  0x55   : > { %2037 = vrot.lane.b32.xlu1 %v3156_v16, %s3236_s6  ;;  %2035 = vrot.lane.b32.xlu0 %v3351_v17, %s3236_s6 }
  0x59   : > { %1011 = vrot.lane.b32.xlu1 %v3159_v18, %s3236_s6  ;;  %1009 = vrot.lane.b32.xlu0 %v3361_v19, %s3236_s6 }
  0x5d   : > { %2041 = vrot.lane.b32.xlu1 %v3162_v20, %s3236_s6  ;;  %2039 = vrot.lane.b32.xlu0 %v3368_v21, %s3236_s6  ;;  %s2718_s6 = sshll.u32 %s3732_s16, 6 }
  0x5e   : > { %s3689_s14 = scalar_lea.vmem %s3730_s4, %s2718_s6 }
  0x61   : > { %1133 = vrot.lane.b32.xlu1 %v3153_v14, %s3237_s9  ;;  %1131 = vrot.lane.b32.xlu0 %v3347_v15, %s3237_s9 }
  0x65   : > { %2163 = vrot.lane.b32.xlu1 %v3156_v16, %s3237_s9  ;;  %2161 = vrot.lane.b32.xlu0 %v3351_v17, %s3237_s9 }
  0x69   : > { %1137 = vrot.lane.b32.xlu1 %v3159_v18, %s3237_s9  ;;  %1135 = vrot.lane.b32.xlu0 %v3361_v19, %s3237_s9  ;;  %v3188_v18 = vld [vmem:[%s3727_s1 + $0x118] sm:$0xff]  }
  0x6d   : > { %2167 = vrot.lane.b32.xlu1 %v3162_v20, %s3237_s9  ;;  %2165 = vrot.lane.b32.xlu0 %v3368_v21, %s3237_s9  ;;  %v3191_v20 = vld [vmem:[%s3727_s1 + $0x140] sm:$0xff]   ;;  %s3671_s9 = scalar_lea.vmem %s3729_s3, %s2718_s6 }
  0x83   : > { %v274_v22 = vpop.permute.xlu1 %273  ;;  %v270_v23 = vpop.permute.xlu0 %269 }
  0x87   : > { %v276_v24 = vpop.permute.xlu1 %275  ;;  %v272_v25 = vpop.permute.xlu0 %271 }
  0x88   : > { %v278_v26 = vsel %vm277_vm1, %v270_v23, %v272_v25  ;;  %v279_v28 = vsel %vm277_vm1, %v274_v22, %v276_v24  ;;  %v3190_v24 = vld [vmem:[%s3727_s1 + $0x1d8] sm:$0xff]  }
  0x89   : > { %2816 = vmatprep.subr.bf16.mxu1 %v278_v26 }
  0x8a   : > { %2817 = vmatpush3.bf16.msra.mxu1 %v278_v26  ;;  %v3193_v26 = vld [vmem:[%s3727_s1 + $0xa0] sm:$0xff]  }
  0x8b   : > { %v1397_v27 = vpop.permute.xlu1 %1396  ;;  %2818 = vmatprep.subr.bf16.mxu1 %v279_v28  ;;  %v1395_v29 = vpop.permute.xlu0 %1394 }
  0x8c   : > { %v1402_v30 = vsel %vm277_vm1, %v1395_v29, %v1397_v27  ;;  %v3195_v29 = vld [vmem:[%s3727_s1 + $0x150] sm:$0xff]  }
  0x8d   : > { %2924 = vmatprep.subr.bf16.mxu0 %v1402_v30 }
  0x8e   : > { %2819 = vmatpush3.bf16.msra.mxu1 %v279_v28  ;;  %2925 = vmatpush3.bf16.msra.mxu0 %v1402_v30  ;;  %v3192_v28 = vld [vmem:[%s3727_s1 + $0x148] sm:$0xff]  }
  0x8f   : > { %v1401_v32 = vpop.permute.xlu1 %1400  ;;  %v1399_v33 = vpop.permute.xlu0 %1398  ;;  %2828 = vmatprep.subr.bf16.mxu1 %v3287_v2 }
  0x90   : > { %v1403_v35 = vsel %vm277_vm1, %v1399_v33, %v1401_v32  ;;  %v3197_v32 = vld [vmem:[%s3727_s1 + $0xb0] sm:$0xff]  }
  0x91   : > { %2821 = vmatmul.mubr.msk.bf16.vlgmr.msra.gmra.mrb[0].mxu1 %vm282_vm0, %v3168_v31  ;;  %2926 = vmatprep.subr.bf16.mxu0 %v1403_v35 }
  0x92   : > { %2829 = vmatpush3.bf16.msra.mxu1 %v3287_v2  ;;  %2927 = vmatpush3.bf16.msra.mxu0 %v1403_v35  ;;  %v3182_v2 = vld [vmem:[%s3727_s1 + $0x198] sm:$0xff]  }
  0x93   : > { %v491_v37 = vpop.permute.xlu1 %490  ;;  %v489_v39 = vpop.permute.xlu0 %488  ;;  %2824 = vmatprep.mubr.msk.bf16.mxu1 %vm282_vm0, %v3171_v34  ;;  %2830 = vmatprep.subr.bf16.mxu1 %v3284_v1 }
  0x94   : > { %v497_v40 = vsel %vm496_vm2, %v489_v39, %v491_v37  ;;  %v3199_v37 = vld [vmem:[%s3727_s1 + $0x20] sm:$0xff]  }
  0x95   : > { %2929 = vmatmul.mubr.msk.bf16.vlgmr.msra.gmra.mrb[0].mxu0 %vm282_vm0, %v3170_v36  ;;  %v3196_v36 = vld [vmem:[%s3727_s1 + $0x158] sm:$0xff]  }
  0x96   : > { %2831 = vmatpush3.bf16.msra.mxu1 %v3284_v1  ;;  %2932 = vmatprep.mubr.msk.bf16.mxu0 %vm282_vm0, %v3173_v38 }
  0x97   : > { %v1523_v42 = vpop.permute.xlu1 %1522  ;;  %v1521_v44 = vpop.permute.xlu0 %1520  ;;  %2840 = vmatprep.subr.bf16.mxu1 %v497_v40 }
  0x98   : > { %v1528_v45 = vsel %vm496_vm2, %v1521_v44, %v1523_v42  ;;  %v3200_v44 = vld [vmem:[%s3727_s1 + $0x28] sm:$0xff]  }
  0x99   : > { %2825 = vmatmul.mubr.msk.bf16.gmra.mrb[4].mxu1 %vm282_vm0, %v3172_v41  ;;  %2936 = vmatprep.subr.bf16.mxu0 %v1528_v45 }
  0x9a   : > { %2937 = vmatpush3.bf16.msra.mxu0 %v1528_v45  ;;  %2832 = vmatprep.mubr.msk.bf16.mxu1 %vm282_vm0, %v3175_v43  ;;  %v3203_v45 = vld [vmem:[%s3727_s1 + $0x30] sm:$0xff]  }
  0x9b   : > { %v495_v47 = vpop.permute.xlu1 %494  ;;  %v493_v49 = vpop.permute.xlu0 %492 }
  0x9c   : > { %v498_v55 = vsel %vm496_vm2, %v493_v49, %v495_v47  ;;  %v3202_v49 = vld [vmem:[%s3727_s1 + $0xe8] sm:$0xff]  }
  0x9d   : > { %2933 = vmatmul.mubr.msk.bf16.gmra.mrb[4].mxu0 %vm282_vm0, %v3174_v46 }
  0x9e   : > { %2940 = vmatprep.mubr.msk.bf16.mxu0 %vm282_vm0, %v3177_v48 }
  0x9f   : > { %v1527_v51 = vpop.permute.xlu1 %1526  ;;  %v1525_v52 = vpop.permute.xlu0 %1524 }
  0xa0   : > { %v1529_v54 = vsel %vm496_vm2, %v1525_v52, %v1527_v51 }
  0xa1   : > { %2833 = vmatmul.mubr.msk.bf16.vlgmr.msra.gmra.mrb[0].mxu1 %vm282_vm0, %v3176_v50  ;;  %2938 = vmatprep.subr.bf16.mxu0 %v1529_v54  ;;  %v3205_v50 = vld [vmem:[%s3727_s1 + $0xf0] sm:$0xff]  }
  0xa2   : > { %2841 = vmatpush3.bf16.msra.mxu1 %v497_v40  ;;  %2939 = vmatpush3.bf16.msra.mxu0 %v1529_v54  ;;  %v3198_v40 = vld [vmem:[%s3727_s1 + $0xb8] sm:$0xff]  }
  0xa3   : > { %v618_v57 = vpop.permute.xlu1 %617  ;;  %v616_v59 = vpop.permute.xlu0 %615  ;;  %2842 = vmatprep.subr.bf16.mxu1 %v498_v55  ;;  %2836 = vmatprep.mubr.msk.bf16.mxu1 %vm282_vm0, %v3179_v53  ;;  %v3204_v54 = vld [vmem:[%s3727_s1 + $0x38] sm:$0xff]  }
  0xa4   : > { %v624_v60 = vsel %vm623_vm3, %v616_v59, %v618_v57  ;;  %v3206_v59 = vld [vmem:[%s3727_s1 + $0xf8] sm:$0xff]  }
  0xa5   : > { %2941 = vmatmul.mubr.msk.bf16.vlgmr.msra.gmra.mrb[0].mxu0 %vm282_vm0, %v3178_v56  ;;  %v3207_v56 = vld [vmem:[%s3727_s1 + $0x60] sm:$0xff]  }
  0xa6   : > { %2843 = vmatpush3.bf16.msra.mxu1 %v498_v55  ;;  %2944 = vmatprep.mubr.msk.bf16.mxu0 %vm282_vm0, %v3181_v58 }
  0xa7   : > { %v1649_v62 = vpop.permute.xlu1 %1648  ;;  %v1647_v0 = vpop.permute.xlu0 %1646  ;;  %2852 = vmatprep.subr.bf16.mxu1 %v624_v60 }
  0xa8   : > { %v1654_v1 = vsel %vm623_vm3, %v1647_v0, %v1649_v62  ;;  %v3208_v0 = vld [vmem:[%s3727_s1 + $0x68] sm:$0xff]  }
  0xa9   : > { %2837 = vmatmul.mubr.msk.bf16.gmra.mrb[4].mxu1 %vm282_vm0, %v3180_v61  ;;  %2948 = vmatprep.subr.bf16.mxu0 %v1654_v1  ;;  %v3209_v61 = vld [vmem:[%s3727_s1 + $0x1a0] sm:$0xff]  }
  0xaa   : > { %2949 = vmatpush3.bf16.msra.mxu0 %v1654_v1  ;;  %2844 = vmatprep.mubr.msk.bf16.mxu1 %vm282_vm0, %v3183_v63  ;;  %v3211_v1 = vld [vmem:[%s3727_s1 + $0x70] sm:$0xff]  }
  0xab   : > { %v622_v3 = vpop.permute.xlu1 %621  ;;  %v620_v5 = vpop.permute.xlu0 %619 }
  0xac   : > { %v625_v11 = vsel %vm623_vm3, %v620_v5, %v622_v3  ;;  %v3210_v3 = vld [vmem:[%s3727_s1 + $0x1a8] sm:$0xff]  }
  0xad   : > { %2945 = vmatmul.mubr.msk.bf16.gmra.mrb[4].mxu0 %vm282_vm0, %v3182_v2 }
  0xae   : > { %2952 = vmatprep.mubr.msk.bf16.mxu0 %vm282_vm0, %v3185_v4  ;;  %v3213_v4 = vld [vmem:[%s3727_s1 + $0x1b0] sm:$0xff]  }
  0xaf   : > { %v1653_v7 = vpop.permute.xlu1 %1652  ;;  %v1651_v8 = vpop.permute.xlu0 %1650 }
  0xb0   : > { %v1655_v10 = vsel %vm623_vm3, %v1651_v8, %v1653_v7  ;;  %v3212_v8 = vld [vmem:[%s3727_s1 + $0x78] sm:$0xff]  }
  0xb1   : > { %2845 = vmatmul.mubr.msk.bf16.vlgmr.msra.gmra.mrb[0].mxu1 %vm282_vm0, %v3184_v6  ;;  %2950 = vmatprep.subr.bf16.mxu0 %v1655_v10 }
  0xb2   : > { %2853 = vmatpush3.bf16.msra.mxu1 %v624_v60  ;;  %2951 = vmatpush3.bf16.msra.mxu0 %v1655_v10  ;;  %v3215_v10 = vld [vmem:[%s3727_s1 + $0x120] sm:$0xff]  }
  0xb3   : > { %v882_v14 = vpop.permute.xlu1 %881  ;;  %2854 = vmatprep.subr.bf16.mxu1 %v625_v11  ;;  %2848 = vmatprep.mubr.msk.bf16.mxu1 %vm282_vm0, %v3187_v9  ;;  %v880_v16 = vpop.permute.xlu0 %879 }
  0xb4   : > { %2960 = vmatprep.subr.bf16.mxu0 %v3351_v17  ;;  %v887_v35 = vsel %vm277_vm1, %v880_v16, %v882_v14  ;;  %v3219_v14 = vld [vmem:[%s3727_s1 + $0x130] sm:$0xff]  }
  0xb5   : > { %2953 = vmatmul.mubr.msk.bf16.vlgmr.msra.gmra.mrb[0].mxu0 %vm282_vm0, %v3186_v12  ;;  %v3217_v12 = vld [vmem:[%s3727_s1 + $0x1e0] sm:$0xff]  }
  0xb6   : > { %2855 = vmatpush3.bf16.msra.mxu1 %v625_v11  ;;  %2956 = vmatprep.mubr.msk.bf16.mxu0 %vm282_vm0, %v3189_v13  ;;  %v3214_v11 = vld [vmem:[%s3727_s1 + $0x1b8] sm:$0xff]   ;;  %v3216_v13 = vld [vmem:[%s3727_s1 + $0x128] sm:$0xff]  }
  0xb7   : > { %v1912_v22 = vpop.permute.xlu1 %1911  ;;  %2961 = vmatpush3.bf16.msra.mxu0 %v3351_v17  ;;  %2864 = vmatprep.subr.bf16.mxu1 %v3347_v15  ;;  %v1910_v23 = vpop.permute.xlu0 %1909 }
  0xb8   : > { %2962 = vmatprep.subr.bf16.mxu0 %v3368_v21  ;;  %v1917_v25 = vsel %vm277_vm1, %v1910_v23, %v1912_v22  ;;  %v3220_v22 = vld [vmem:[%s3727_s1 + $0x138] sm:$0xff]   ;;  %v3223_v23 = vld [vmem:[%s3727_s1 + $0x160] sm:$0xff]  }
  0xb9   : > { %2849 = vmatmul.mubr.msk.bf16.gmra.mrb[4].mxu1 %vm282_vm0, %v3188_v18  ;;  %v3218_v18 = vld [vmem:[%s3727_s1 + $0x1e8] sm:$0xff]  }
  0xba   : > { %2856 = vmatprep.mubr.msk.bf16.mxu1 %vm282_vm0, %v3191_v20  ;;  %v3221_v20 = vld [vmem:[%s3727_s1 + $0x1f0] sm:$0xff]  }
  0xbb   : > { %v886_v17 = vpop.permute.xlu1 %885  ;;  %2963 = vmatpush3.bf16.msra.mxu0 %v3368_v21  ;;  %v884_v27 = vpop.permute.xlu0 %883  ;;  %v3194_v21 = vld [vmem:[%s3727_s1 + $0xa8] sm:$0xff]  }
  0xbc   : > { %2972 = vmatprep.subr.bf16.mxu0 %v1917_v25  ;;  %v888_v48 = vsel %vm277_vm1, %v884_v27, %v886_v17  ;;  %v3226_v17 = vld [vmem:[%s3727_s1 + $0x178] sm:$0xff]  }
  0xbd   : > { %2957 = vmatmul.mubr.msk.bf16.gmra.mrb[4].mxu0 %vm282_vm0, %v3190_v24  ;;  %v3222_v24 = vld [vmem:[%s3727_s1 + $0x1f8] sm:$0xff]  }
  0xbe   : > { %2964 = vmatprep.mubr.msk.bf16.mxu0 %vm282_vm0, %v3193_v26  ;;  %v3225_v26 = vld [vmem:[%s3727_s1 + $0x170] sm:$0xff]  }
  0xbf   : > { %v1916_v30 = vpop.permute.xlu1 %1915  ;;  %v1914_v31 = vpop.permute.xlu0 %1913 }
  0xc1   : > { %2857 = vmatmul.mubr.msk.bf16.vlgmr.msra.gmra.mrb[0].mxu1 %vm282_vm0, %v3192_v28 }
  0xc2   : > { %2865 = vmatpush3.bf16.msra.mxu1 %v3347_v15  ;;  %2860 = vmatprep.mubr.msk.bf16.mxu1 %vm282_vm0, %v3195_v29  ;;  %v1918_v15 = vsel %vm277_vm1, %v1914_v31, %v1916_v30 }
  0xc3   : > { %v1008_v33 = vpop.permute.xlu1 %1007  ;;  %2866 = vmatprep.subr.bf16.mxu1 %v3361_v19  ;;  %v1006_v34 = vpop.permute.xlu0 %1005 }
  0xc4   : > { %v1013_v53 = vsel %vm496_vm2, %v1006_v34, %v1008_v33 }
  0xc5   : > { %2965 = vmatmul.mubr.msk.bf16.vlgmr.msra.gmra.mrb[0].mxu0 %vm282_vm0, %v3194_v21 }
  0xc6   : > { %2867 = vmatpush3.bf16.msra.mxu1 %v3361_v19  ;;  %2968 = vmatprep.mubr.msk.bf16.mxu0 %vm282_vm0, %v3197_v32  ;;  %v3201_v19 = vld [vmem:[%s3727_s1 + $0xe0] sm:$0xff]  }
  0xc7   : > { %v2038_v38 = vpop.permute.xlu1 %2037  ;;  %2876 = vmatprep.subr.bf16.mxu1 %v887_v35  ;;  %2973 = vmatpush3.bf16.msra.mxu0 %v1917_v25  ;;  %v2036_v39 = vpop.permute.xlu0 %2035  ;;  %v3224_v25 = vld [vmem:[%s3727_s1 + $0x168] sm:$0xff]  }
  0xc8   : > { %2974 = vmatprep.subr.bf16.mxu0 %v1918_v15  ;;  %v2043_v41 = vsel %vm496_vm2, %v2036_v39, %v2038_v38 }
  0xc9   : > { %2861 = vmatmul.mubr.msk.bf16.gmra.mrb[4].mxu1 %vm282_vm0, %v3196_v36 }
  0xca   : > { %2868 = vmatprep.mubr.msk.bf16.mxu1 %vm282_vm0, %v3199_v37 }
  0xcb   : > { %v1012_v42 = vpop.permute.xlu1 %1011  ;;  %2975 = vmatpush3.bf16.msra.mxu0 %v1918_v15  ;;  %v1010_v43 = vpop.permute.xlu0 %1009 }
  0xcc   : > { %2984 = vmatprep.subr.bf16.mxu0 %v2043_v41  ;;  %v1014_v2 = vsel %vm496_vm2, %v1010_v43, %v1012_v42 }
  0xcd   : > { %2969 = vmatmul.mubr.msk.bf16.gmra.mrb[4].mxu0 %vm282_vm0, %v3198_v40 }
  0xce   : > { %2976 = vmatprep.mubr.msk.bf16.mxu0 %vm282_vm0, %v3201_v19 }
  0xcf   : > { %v2042_v46 = vpop.permute.xlu1 %2041  ;;  %v2040_v47 = vpop.permute.xlu0 %2039 }
  0xd0   : > { %v2044_v55 = vsel %vm496_vm2, %v2040_v47, %v2042_v46 }
  0xd1   : > { %2869 = vmatmul.mubr.msk.bf16.vlgmr.msra.gmra.mrb[0].mxu1 %vm282_vm0, %v3200_v44 }
  0xd2   : > { %2877 = vmatpush3.bf16.msra.mxu1 %v887_v35  ;;  %2872 = vmatprep.mubr.msk.bf16.mxu1 %vm282_vm0, %v3203_v45  ;;  %v2714_v35 = vld [vmem:[%s3728_s2] ss:$0 sm:$0xff] }
  0xd3   : > { %v1134_v51 = vpop.permute.xlu1 %1133  ;;  %2878 = vmatprep.subr.bf16.mxu1 %v888_v48  ;;  %v1132_v52 = vpop.permute.xlu0 %1131 }
  0xd4   : > { %v1139_v7 = vsel %vm623_vm3, %v1132_v52, %v1134_v51 }
  0xd5   : > { %2977 = vmatmul.mubr.msk.bf16.vlgmr.msra.gmra.mrb[0].mxu0 %vm282_vm0, %v3202_v49 }
  0xd6   : > { %2879 = vmatpush3.bf16.msra.mxu1 %v888_v48  ;;  %2980 = vmatprep.mubr.msk.bf16.mxu0 %vm282_vm0, %v3205_v50 }
  0xd7   : > { %v2164_v57 = vpop.permute.xlu1 %2163  ;;  %2888 = vmatprep.subr.bf16.mxu1 %v1013_v53  ;;  %2985 = vmatpush3.bf16.msra.mxu0 %v2043_v41  ;;  %v2162_v58 = vpop.permute.xlu0 %2161 }
  0xd8   : > { %2986 = vmatprep.subr.bf16.mxu0 %v2044_v55  ;;  %v2169_v60 = vsel %vm623_vm3, %v2162_v58, %v2164_v57 }
  0xd9   : > { %2873 = vmatmul.mubr.msk.bf16.gmra.mrb[4].mxu1 %vm282_vm0, %v3204_v54 }
  0xda   : > { %2880 = vmatprep.mubr.msk.bf16.mxu1 %vm282_vm0, %v3207_v56 }
  0xdb   : > { %2987 = vmatpush3.bf16.msra.mxu0 %v2044_v55  ;;  %v1138_v62 = vpop.permute.xlu1 %1137  ;;  %v1136_v63 = vpop.permute.xlu0 %1135 }
  0xdc   : > { %2996 = vmatprep.subr.bf16.mxu0 %v2169_v60  ;;  %v1140_v16 = vsel %vm623_vm3, %v1136_v63, %v1138_v62 }
  0xdd   : > { %2981 = vmatmul.mubr.msk.bf16.gmra.mrb[4].mxu0 %vm282_vm0, %v3206_v59 }
  0xde   : > { %2988 = vmatprep.mubr.msk.bf16.mxu0 %vm282_vm0, %v3209_v61 }
  0xdf   : > { %v2168_v5 = vpop.permute.xlu1 %2167  ;;  %v2166_v6 = vpop.permute.xlu0 %2165 }
  0xe0   : > { %v2170_v9 = vsel %vm623_vm3, %v2166_v6, %v2168_v5 }
  0xe1   : > { %2881 = vmatmul.mubr.msk.bf16.vlgmr.msra.gmra.mrb[0].mxu1 %vm282_vm0, %v3208_v0 }
  0xe2   : > { %2889 = vmatpush3.bf16.msra.mxu1 %v1013_v53  ;;  %2884 = vmatprep.mubr.msk.bf16.mxu1 %vm282_vm0, %v3211_v1 }
  0xe3   : > { %2890 = vmatprep.subr.bf16.mxu1 %v1014_v2 }
  0xe5   : > { %2989 = vmatmul.mubr.msk.bf16.vlgmr.msra.gmra.mrb[0].mxu0 %vm282_vm0, %v3210_v3 }
  0xe6   : > { %2891 = vmatpush3.bf16.msra.mxu1 %v1014_v2  ;;  %2992 = vmatprep.mubr.msk.bf16.mxu0 %vm282_vm0, %v3213_v4 }
  0xe7   : > { %2900 = vmatprep.subr.bf16.mxu1 %v1139_v7  ;;  %2997 = vmatpush3.bf16.msra.mxu0 %v2169_v60 }
  0xe8   : > { %2998 = vmatprep.subr.bf16.mxu0 %v2170_v9 }
  0xe9   : > { %2885 = vmatmul.mubr.msk.bf16.gmra.mrb[4].mxu1 %vm282_vm0, %v3212_v8 }
  0xea   : > { %2892 = vmatprep.mubr.msk.bf16.mxu1 %vm282_vm0, %v3215_v10 }
  0xeb   : > { %2999 = vmatpush3.bf16.msra.mxu0 %v2170_v9 }
  0xed   : > { %2993 = vmatmul.mubr.msk.bf16.gmra.mrb[4].mxu0 %vm282_vm0, %v3214_v11 }
  0xee   : > { %3000 = vmatprep.mubr.msk.bf16.mxu0 %vm282_vm0, %v3217_v12 }
  0xf1   : > { %2893 = vmatmul.mubr.msk.bf16.vlgmr.msra.gmra.mrb[0].mxu1 %vm282_vm0, %v3216_v13 }
  0xf2   : > { %2901 = vmatpush3.bf16.msra.mxu1 %v1139_v7  ;;  %2896 = vmatprep.mubr.msk.bf16.mxu1 %vm282_vm0, %v3219_v14 }
  0xf3   : > { %2902 = vmatprep.subr.bf16.mxu1 %v1140_v16 }
  0xf5   : > { %3001 = vmatmul.mubr.msk.bf16.vlgmr.msra.gmra.mrb[0].mxu0 %vm282_vm0, %v3218_v18 }
  0xf6   : > { %2903 = vmatpush3.bf16.msra.mxu1 %v1140_v16  ;;  %3004 = vmatprep.mubr.msk.bf16.mxu0 %vm282_vm0, %v3221_v20 }
  0xf9   : > { %2897 = vmatmul.mubr.msk.bf16.gmra.mrb[4].mxu1 %vm282_vm0, %v3220_v22 }
  0xfa   : > { %2904 = vmatprep.mubr.msk.bf16.mxu1 %vm282_vm0, %v3223_v23 }
  0xfd   : > { %3005 = vmatmul.mubr.msk.bf16.gmra.mrb[4].mxu0 %vm282_vm0, %v3222_v24 }
 0x101   : > { %2905 = vmatmul.mubr.msk.bf16.vlgmr.msra.gmra.mrb[0].mxu1 %vm282_vm0, %v3224_v25 }
 0x102   : > { %2908 = vmatprep.mubr.msk.bf16.mxu1 %vm282_vm0, %v3225_v26 }
 0x109   : > { %2909 = vmatmul.mubr.msk.bf16.gmra.mrb[4].mxu1 %vm282_vm0, %v3226_v17 }
 0x1c8   : > { %v3002_v27 = vpop.f32.mrb[0].mxu0 }
 0x1c9   : > { %v2219_v28 = vpop.f32.mrb[1].mxu0 }
 0x1ca   : > { %v3003_v29 = vpop.f32.mrb[2].mxu0 }
 0x1cb   : > { %v2222_v30 = vpop.f32.mrb[3].mxu0 }
 0x1d0   : > { %v3006_v31 = vpop.f32.mrb[4].mxu0 }
 0x1d1   : > { %v2235_v21 = vpop.f32.mrb[5].mxu0 }
 0x1d2   : > { %v3007_v32 = vpop.f32.mrb[6].mxu0 }
 0x1d3   : > { %v2238_v33 = vpop.f32.mrb[7].mxu0 }
 0x1d4   : > { %v2906_v34 = vpop.f32.mrb[0].mxu1 }
 0x1d5   : > { %v3008_v36 = vadd.f32 %v3002_v27, %v2906_v34  ;;  %v1189_v15 = vpop.f32.mrb[1].mxu1 }
 0x1d6   : > { %v3009_v37 = vadd.f32 %v2219_v28, %v1189_v15  ;;  %v2907_v38 = vpop.f32.mrb[2].mxu1 }
 0x1d7   : > { %2260 = vst [vmem:[%s3671_s9 + $0x10] sm:$0xff] %v3008_v36  ;;  %v3010_v39 = vadd.f32 %v3003_v29, %v2907_v38  ;;  %v1192_v40 = vpop.f32.mrb[3].mxu1  ;;  %v2275_v41 = vmul.f32 %v3008_v36, %v2714_v35 }
 0x1d8   : > { %2258 = vst [vmem:[%s3671_s9] sm:$0xff] %v3009_v37  ;;  %v3011_v19 = vadd.f32 %v2222_v30, %v1192_v40  ;;  %v2273_v43 = vmul.f32 %v3009_v37, %v2714_v35 }
 0x1d9   : > { %2261 = vst [vmem:[%s3671_s9 + $0x18] sm:$0xff] %v3010_v39  ;;  %2285 = vadd.xlane.f32.xlu0 %v2275_v41  ;;  %v2308_v42 = vmul.f32 %v3008_v36, %v2275_v41  ;;  %v2276_v52 = vmul.f32 %v3010_v39, %v2714_v35 }
 0x1da   : > { %2259 = vst [vmem:[%s3671_s9 + $0x8] sm:$0xff] %v3011_v19  ;;  %v2274_v47 = vmul.f32 %v3011_v19, %v2714_v35  ;;  %v2306_v54 = vmul.f32 %v3009_v37, %v2273_v43 }
 0x1db   : > { %2318 = vadd.xlane.f32.xlu1 %v2308_v42  ;;  %v2309_v55 = vmul.f32 %v3010_v39, %v2276_v52 }
 0x1dc   : > { %v2910_v44 = vpop.f32.mrb[4].mxu1  ;;  %v2307_v57 = vmul.f32 %v3011_v19, %v2274_v47 }
 0x1dd   : > { %v3012_v45 = vadd.f32 %v3006_v31, %v2910_v44  ;;  %v1205_v46 = vpop.f32.mrb[5].mxu1  ;;  %2281 = vadd.xlane.f32.xlu0 %v2273_v43 }
 0x1de   : > { %v3013_v48 = vadd.f32 %v2235_v21, %v1205_v46  ;;  %v2911_v49 = vpop.f32.mrb[6].mxu1 }
 0x1df   : > { %2264 = vst [vmem:[%s3671_s9 + $0x30] sm:$0xff] %v3012_v45  ;;  %v3014_v50 = vadd.f32 %v3007_v32, %v2911_v49  ;;  %v1208_v51 = vpop.f32.mrb[7].mxu1  ;;  %2283 = vadd.xlane.f32.xlu1 %v2274_v47  ;;  %v2279_v56 = vmul.f32 %v3012_v45, %v2714_v35 }
 0x1e0   : > { %2262 = vst [vmem:[%s3671_s9 + $0x20] sm:$0xff] %v3013_v48  ;;  %v3015_v53 = vadd.f32 %v2238_v33, %v1208_v51  ;;  %v2277_v58 = vmul.f32 %v3013_v48, %v2714_v35 }
 0x1e1   : > { %2265 = vst [vmem:[%s3671_s9 + $0x38] sm:$0xff] %v3014_v50  ;;  %2287 = vadd.xlane.f32.xlu0 %v2276_v52  ;;  %v2280_v59 = vmul.f32 %v3014_v50, %v2714_v35  ;;  %v2312_v62 = vmul.f32 %v3012_v45, %v2279_v56 }
 0x1e2   : > { %2263 = vst [vmem:[%s3671_s9 + $0x28] sm:$0xff] %v3015_v53  ;;  %v2310_v60 = vmul.f32 %v3013_v48, %v2277_v58  ;;  %v2278_v61 = vmul.f32 %v3015_v53, %v2714_v35 }
 0x1e3   : > { %2314 = vadd.xlane.f32.xlu1 %v2306_v54  ;;  %v2313_v0 = vmul.f32 %v3014_v50, %v2280_v59 }
 0x1e4   : > { %v2311_v63 = vmul.f32 %v3015_v53, %v2278_v61 }
 0x1e5   : > { %2320 = vadd.xlane.f32.xlu0 %v2309_v55 }
 0x1e7   : > { %2293 = vadd.xlane.f32.xlu1 %v2279_v56 }
 0x1e9   : > { %2316 = vadd.xlane.f32.xlu0 %v2307_v57 }
 0x1eb   : > { %2289 = vadd.xlane.f32.xlu1 %v2277_v58 }
 0x1ed   : > { %2295 = vadd.xlane.f32.xlu0 %v2280_v59 }
 0x1ef   : > { %2322 = vadd.xlane.f32.xlu1 %v2310_v60 }
 0x1f1   : > { %2291 = vadd.xlane.f32.xlu0 %v2278_v61 }
 0x1f3   : > { %2326 = vadd.xlane.f32.xlu1 %v2312_v62 }
 0x1f5   : > { %2324 = vadd.xlane.f32.xlu0 %v2311_v63 }
 0x1f9   : > { %2328 = vadd.xlane.f32.xlu0 %v2313_v0 }
 0x266   : > { %v2286_v1 = vpop.xlane.xlu0 %2285 }
 0x267   : > { %2300 = vst.msk [vmem:[%s3689_s14 + $0x10] sm:$0xff] %vm2297_vm4, %v2286_v1 }
 0x268   : > { %v2319_v2 = vpop.xlane.xlu1 %2318 }
 0x269   : > { %2333 = vst.msk [vmem:[%s3689_s14 + $0x10] sm:$0xff] %vm2330_vm5, %v2319_v2 }
 0x26a   : > { %v2282_v3 = vpop.xlane.xlu0 %2281 }
 0x26b   : > { %2298 = vst.msk [vmem:[%s3689_s14] sm:$0xff] %vm2297_vm4, %v2282_v3 }
 0x26c   : > { %v2284_v4 = vpop.xlane.xlu1 %2283 }
 0x26d   : > { %2299 = vst.msk [vmem:[%s3689_s14 + $0x8] sm:$0xff] %vm2297_vm4, %v2284_v4 }
 0x26e   : > { %v2288_v5 = vpop.xlane.xlu0 %2287 }
 0x26f   : > { %2301 = vst.msk [vmem:[%s3689_s14 + $0x18] sm:$0xff] %vm2297_vm4, %v2288_v5 }
 0x270   : > { %v2315_v6 = vpop.xlane.xlu1 %2314 }
 0x271   : > { %2331 = vst.msk [vmem:[%s3689_s14] sm:$0xff] %vm2330_vm5, %v2315_v6 }
 0x272   : > { %v2321_v7 = vpop.xlane.xlu0 %2320 }
 0x273   : > { %2334 = vst.msk [vmem:[%s3689_s14 + $0x18] sm:$0xff] %vm2330_vm5, %v2321_v7 }
 0x274   : > { %v2294_v8 = vpop.xlane.xlu1 %2293 }
 0x275   : > { %2304 = vst.msk [vmem:[%s3689_s14 + $0x30] sm:$0xff] %vm2297_vm4, %v2294_v8 }
 0x276   : > { %v2317_v9 = vpop.xlane.xlu0 %2316 }
 0x277   : > { %2332 = vst.msk [vmem:[%s3689_s14 + $0x8] sm:$0xff] %vm2330_vm5, %v2317_v9 }
 0x278   : > { %v2290_v10 = vpop.xlane.xlu1 %2289 }
 0x279   : > { %2302 = vst.msk [vmem:[%s3689_s14 + $0x20] sm:$0xff] %vm2297_vm4, %v2290_v10 }
 0x27a   : > { %v2296_v11 = vpop.xlane.xlu0 %2295 }
 0x27b   : > { %2305 = vst.msk [vmem:[%s3689_s14 + $0x38] sm:$0xff] %vm2297_vm4, %v2296_v11 }
 0x27c   : > { %v2323_v12 = vpop.xlane.xlu1 %2322 }
 0x27d   : > { %2335 = vst.msk [vmem:[%s3689_s14 + $0x20] sm:$0xff] %vm2330_vm5, %v2323_v12 }
 0x27e   : > { %v2292_v13 = vpop.xlane.xlu0 %2291 }
 0x27f   : > { %2303 = vst.msk [vmem:[%s3689_s14 + $0x28] sm:$0xff] %vm2297_vm4, %v2292_v13 }
 0x280   : > { %v2327_v14 = vpop.xlane.xlu1 %2326 }
 0x281   : > { %2337 = vst.msk [vmem:[%s3689_s14 + $0x30] sm:$0xff] %vm2330_vm5, %v2327_v14 }
 0x282   : > { %v2325_v16 = vpop.xlane.xlu0 %2324 }
 0x283   : > { %2336 = vst.msk [vmem:[%s3689_s14 + $0x28] sm:$0xff] %vm2330_vm5, %v2325_v16 }
 0x286   : > { %v2329_v18 = vpop.xlane.xlu0 %2328 }
 0x287   : > { %2338 = vst.msk [vmem:[%s3689_s14 + $0x38] sm:$0xff] %vm2330_vm5, %v2329_v18 }
 0x288 PF: > { %s15_s15 = sadd.s32 1, %s3233_s15  }
 0x289   : > { %p12_p4 = scmp.ge.s32.totalorder %s15_s15, 4  }
 0x28b   :  { %14 = sbr.rel (!%p12_p4) target bundleno = 1 (0x1), region = 92 }

</bundles_post_ra>
